<compile_context>
chip_gen: v5e
topology: v5e:2x2
jax: 0.10.0
libtpu: 0.0.40
codegen_flags: <defaults>
</compile_context>

<pallas_src>
import math

import jax
import jax.numpy as jnp
from jax.experimental import pallas as pl
from jax.experimental.pallas import tpu as pltpu


# ----------------------------------------------------------------------------
# Parameter bookkeeping (deterministic synthetic init; no checkpoint loading).
# ----------------------------------------------------------------------------
def param_specs(C):
    """Ordered list of (name, shape) mirroring the PyTorch module's layers."""
    specs = [
        ("W_tp", (C, 2 * C)), ("b_tp", (1, 2 * C)),   # trend_projection Linear
        ("W_sp", (C, 2 * C)), ("b_sp", (1, 2 * C)),   # season_projection Linear
    ]
    for pre in ("at_", "as_"):                        # crs_att_t / crs_att_s
        for n in ("q", "k", "v", "o"):
            specs.append((pre + "W" + n, (C, C)))
            specs.append((pre + "b" + n, (1, C)))
    for pre in ("mt_", "ms_"):                        # trend_mlp / season_mlp
        specs += [
            (pre + "W1", (C, 4 * C)), (pre + "b1", (1, 4 * C)),
            (pre + "W2", (4 * C, C)), (pre + "b2", (1, C)),
        ]
    return specs


def init_params(key, C):
    specs = param_specs(C)
    keys = jax.random.split(key, len(specs))
    return {
        name: 0.05 * jax.random.normal(k, shp, jnp.float32)
        for k, (name, shp) in zip(keys, specs)
    }


def pack_params(params, C, nheads, matmul_dtype=jnp.bfloat16):
    """Pack the per-layer params into 12 stacked tensors (branch 0=trend, 1=season).

    K|V weights/biases are fused along the output dim, the 1/sqrt(head_dim)
    attention scale is folded into W_q / b_q, and matmul weights are cast to
    bf16 (biases and the channel-contraction projection weight stay f32).
    """
    scale = 1.0 / math.sqrt(C // nheads)
    f32 = jnp.float32

    def stack(a, b, dtype):
        return jnp.stack([a, b], axis=0).astype(dtype)

    w_proj = stack(params["W_tp"], params["W_sp"], f32)   # f32: used transposed
    b_proj = stack(params["b_tp"], params["b_sp"], f32)
    w_q = stack(params["at_Wq"] * scale, params["as_Wq"] * scale, matmul_dtype)
    b_q = stack(params["at_bq"] * scale, params["as_bq"] * scale, f32)
    w_kv = stack(jnp.concatenate([params["at_Wk"], params["at_Wv"]], axis=1),
                 jnp.concatenate([params["as_Wk"], params["as_Wv"]], axis=1),
                 matmul_dtype)
    b_kv = stack(jnp.concatenate([params["at_bk"], params["at_bv"]], axis=1),
                 jnp.concatenate([params["as_bk"], params["as_bv"]], axis=1),
                 f32)
    w_o = stack(params["at_Wo"], params["as_Wo"], matmul_dtype)
    b_o = stack(params["at_bo"], params["as_bo"], f32)
    w_m1 = stack(params["mt_W1"], params["ms_W1"], matmul_dtype)
    b_m1 = stack(params["mt_b1"], params["ms_b1"], f32)
    w_m2 = stack(params["mt_W2"], params["ms_W2"], matmul_dtype)
    b_m2 = stack(params["mt_b2"], params["ms_b2"], f32)
    return [w_proj, b_proj, w_q, b_q, w_kv, b_kv, w_o, b_o,
            w_m1, b_m1, w_m2, b_m2]


# ----------------------------------------------------------------------------
# Fused kernel: projections + cross-attention + LayerNorm + MLP on a
# (Bt*L, C) slab per grid step.
# ----------------------------------------------------------------------------
def make_kernel(C, H, L, Bt):
    dh = C // H
    M = Bt * L

    def gelu(x):
        return jax.nn.gelu(x, approximate=True)

    def kernel(trend_ref, season_ref, mask_ref,
               w_proj, b_proj, w_q, b_q, w_kv, b_kv, w_o, b_o,
               w_m1, b_m1, w_m2, b_m2, out_ref):
        mask = mask_ref[...]                      # (M, M) block-diagonal bias (0 / -1e30)

        def linear(x, w_ref, b_ref, br):
            # Full-width (M, Din) @ (Din, Dout) on the MXU in bf16, f32 accumulation.
            y = jnp.dot(x.astype(w_ref.dtype), w_ref[br],
                        preferred_element_type=jnp.float32)
            return y + b_ref[br]

        def layer_norm(x):                        # nn.LayerNorm(C, elementwise_affine=False)
            mu = jnp.mean(x, axis=-1, keepdims=True)
            xc = x - mu
            var = jnp.mean(xc * xc, axis=-1, keepdims=True)
            return xc * jax.lax.rsqrt(var + 1e-5)

        def project(x_ref, br):
            # Channel contraction: (C, L)^T @ (C, 2C) -> (L, 2C); the MXU absorbs the
            # module's permute(0, 2, 1) so no wrapper-side transpose pass is needed.
            w = w_proj[br]                        # (C, 2C) f32
            rows = [
                jax.lax.dot_general(x_ref[bi], w, (((0,), (0,)), ((), ())),
                                    preferred_element_type=jnp.float32)
                for bi in range(Bt)
            ]
            y = rows[0] if Bt == 1 else jnp.concatenate(rows, axis=0)   # (M, 2C)
            return gelu(y + b_proj[br])

        def cross_attention(x, cond, br):
            # TODO(synk): CrossAttention not defined in source; standard 1-layer MHA.
            q = linear(x, w_q, b_q, br).astype(jnp.bfloat16)   # scale pre-folded, (M, C)
            kv = linear(cond, w_kv, b_kv, br)                  # fused K|V, (M, 2C)
            k = kv[:, :C].astype(jnp.bfloat16)
            v = kv[:, C:].astype(jnp.bfloat16)
            wo = w_o[br]                                       # (C, C) bf16
            o = jnp.zeros((M, C), jnp.float32)
            for h in range(H):
                sl = slice(h * dh, (h + 1) * dh)
                s = jax.lax.dot_general(q[:, sl], k[:, sl],
                                        (((1,), (1,)), ((), ())),
                                        preferred_element_type=jnp.float32)  # (M, M)
                s = s + mask                       # per-batch-element attention only
                s = s - jnp.max(s, axis=-1, keepdims=True)
                e = jnp.exp(s)
                p = e * pl.reciprocal(jnp.sum(e, axis=-1, keepdims=True),
                                      approx=True)
                ctx = jnp.dot(p.astype(jnp.bfloat16), v[:, sl],
                              preferred_element_type=jnp.float32)            # (M, dh)
                # Per-head output-projection accumulation: no concat relayout,
                # every head contributes via a full-width (dh, C) matmul.
                o = o + jnp.dot(ctx.astype(jnp.bfloat16), wo[sl, :],
                                preferred_element_type=jnp.float32)
            return o + b_o[br]

        def mlp(x, br):
            h1 = gelu(linear(x, w_m1, b_m1, br))   # (M, 4C)
            return linear(h1, w_m2, b_m2, br)      # (M, C); Dropout = identity (eval)

        tp = project(trend_ref, 0)                 # (M, 2C)
        sp = project(season_ref, 1)
        trend, trend_cond = tp[:, :C], tp[:, C:]
        season, season_cond = sp[:, :C], sp[:, C:]

        trend = trend + cross_attention(trend, season_cond, 0)
        trend = trend + mlp(layer_norm(trend), 0)
        season = season + cross_attention(season, trend_cond, 1)
        season = season + mlp(layer_norm(season), 1)

        # Lane-dense combined output slab: [trend | season] along the lane axis.
        out_ref[:, :C] = trend.astype(out_ref.dtype)
        out_ref[:, C:] = season.astype(out_ref.dtype)

    return kernel


# ----------------------------------------------------------------------------
# Wrapper
# ----------------------------------------------------------------------------
def _choose_block_batch(B, L, max_rows=256, max_block_batch=8):
    """Largest Bt dividing B with Bt*L <= max_rows, Bt <= max_block_batch,
    (Bt*L) % 8 == 0, and >= 2 grid steps left when B >= 2 (v7x has 2 TCs)."""
    best = None
    for bt in range(1, B + 1):
        if B % bt != 0:
            continue
        if bt > max_block_batch or bt * L > max_rows:
            continue
        if (bt * L) % 8 != 0 and bt != B:
            continue
        if B >= 2 and B // bt < 2:
            continue
        best = bt
    return best if best is not None else B


def _vmem_budget(Bt, C, L, const_inputs, single_buffer_weights):
    M = Bt * L
    f32 = 4
    io = 2 * 2 * Bt * C * L * f32            # two double-buffered input blocks
    io += 2 * M * 2 * C * f32                # double-buffered output block
    wmult = 1 if single_buffer_weights else 2
    weights = wmult * sum(int(a.size) * a.dtype.itemsize for a in const_inputs)
    live = (6 * M * 2 * C + M * 4 * C + 3 * M * M) * f32    # rough live activations
    est = io + weights + live
    # Generous headroom, clamped to v7x's 64 MiB physical VMEM.
    return int(min(64 * 2 ** 20, max(32 * 2 ** 20, 2 * est)))


def seasonal_trend_correlation(trend_ncl, season_ncl, packed_params, nheads,
                               block_batch=None):
    B, C, L = trend_ncl.shape
    assert season_ncl.shape == (B, C, L)
    assert C % nheads == 0

    Bt = block_batch if block_batch is not None else _choose_block_batch(B, L)
    assert B % Bt == 0
    M = Bt * L
    grid = (B // Bt,)

    # Block-diagonal additive mask bias: queries of one batch element only
    # attend to keys of the same element inside the fused (M, M) scores.
    blk = jnp.arange(M, dtype=jnp.int32) // L
    mask_bias = jnp.where(blk[:, None] == blk[None, :], 0.0, -1e30)
    mask_bias = mask_bias.astype(jnp.float32)

    const_inputs = [mask_bias] + list(packed_params)

    batch_spec = pl.BlockSpec((Bt, C, L), lambda b: (b, 0, 0))
    out_spec = pl.BlockSpec((M, 2 * C), lambda b: (b, 0))
    out_shape = jax.ShapeDtypeStruct((B * L, 2 * C), jnp.float32)

    kernel = make_kernel(C, nheads, L, Bt)

    def launch(single_buffer_weights):
        def const_spec(arr):
            nd = arr.ndim
            idx = lambda b, _n=nd: (0,) * _n
            if single_buffer_weights:
                # Constant block across the grid: no need for double buffering.
                return pl.BlockSpec(arr.shape, idx, pipeline_mode=pl.Buffered(1))
            return pl.BlockSpec(arr.shape, idx)

        out = pl.pallas_call(
            kernel,
            grid=grid,
            in_specs=[batch_spec, batch_spec]
                     + [const_spec(a) for a in const_inputs],
            out_specs=out_spec,
            out_shape=out_shape,
            compiler_params=pltpu.CompilerParams(
                dimension_semantics=("parallel",),
                vmem_limit_bytes=_vmem_budget(Bt, C, L, const_inputs,
                                              single_buffer_weights),
            ),
        )(trend_ncl, season_ncl, *const_inputs)
        return jax.block_until_ready(out)

    try:
        out = launch(True)
    except Exception:
        # TODO(synk): pl.Buffered(1) single-buffering of constant weights is not
        # accepted by every JAX/Mosaic build; fall back to default double buffering.
        out = launch(False)

    out = out.reshape(B, L, 2 * C)
    return out[..., :C], out[..., C:]


# ----------------------------------------------------------------------------
# Pure-JAX reference (same packed params / same precision policy as the kernel).
# ----------------------------------------------------------------------------
def reference_forward(trend_ncl, season_ncl, packed, C, H):
    (w_proj, b_proj, w_q, b_q, w_kv, b_kv, w_o, b_o,
     w_m1, b_m1, w_m2, b_m2) = packed
    dh = C // H

    def gelu(x):
        return jax.nn.gelu(x, approximate=True)

    def lin(x, w, b):
        return jnp.dot(x.astype(w.dtype), w,
                       preferred_element_type=jnp.float32) + b

    def ln(x):
        mu = jnp.mean(x, axis=-1, keepdims=True)
        xc = x - mu
        return xc * jax.lax.rsqrt(jnp.mean(xc * xc, axis=-1, keepdims=True) + 1e-5)

    def attn(x, cond, br):
        q = lin(x, w_q[br], b_q[br])
        kv = lin(cond, w_kv[br], b_kv[br])
        k, v = kv[..., :C], kv[..., C:]
        outs = []
        for h in range(H):
            sl = slice(h * dh, (h + 1) * dh)
            s = jnp.einsum("bld,bmd->blm",
                           q[..., sl].astype(jnp.bfloat16),
                           k[..., sl].astype(jnp.bfloat16),
                           preferred_element_type=jnp.float32)
            a = jax.nn.softmax(s, axis=-1)
            outs.append(jnp.einsum("blm,bmd->bld",
                                   a.astype(jnp.bfloat16),
                                   v[..., sl].astype(jnp.bfloat16),
                                   preferred_element_type=jnp.float32))
        o = jnp.concatenate(outs, axis=-1)
        return jnp.dot(o.astype(w_o.dtype), w_o[br],
                       preferred_element_type=jnp.float32) + b_o[br]

    def mlp(x, br):
        return lin(gelu(lin(x, w_m1[br], b_m1[br])), w_m2[br], b_m2[br])

    t = gelu(lin(jnp.transpose(trend_ncl, (0, 2, 1)), w_proj[0], b_proj[0]))
    s = gelu(lin(jnp.transpose(season_ncl, (0, 2, 1)), w_proj[1], b_proj[1]))
    t, t_cond = t[..., :C], t[..., C:]
    s, s_cond = s[..., :C], s[..., C:]
    t = t + attn(t, s_cond, 0)
    t = t + mlp(ln(t), 0)
    s = s + attn(s, t_cond, 1)
    s = s + mlp(ln(s), 1)
    return t, s


if __name__ == "__main__":
    B, C, L, H = 8, 32, 16, 4   # batch, channels, sequence length, heads

    key = jax.random.PRNGKey(0)
    k_t, k_s, k_p = jax.random.split(key, 3)
    trend = jax.random.normal(k_t, (B, C, L), jnp.float32)    # (B, C, L) channels-first
    season = jax.random.normal(k_s, (B, C, L), jnp.float32)
    params = init_params(k_p, C)
    packed = pack_params(params, C, H)

    t_out, s_out = seasonal_trend_correlation(trend, season, packed, H)
    jax.block_until_ready((t_out, s_out))
    assert t_out.shape == (B, L, C) and s_out.shape == (B, L, C)

    t_ref, s_ref = reference_forward(trend, season, packed, C, H)
    ok_t = bool(jnp.allclose(t_out, t_ref, atol=1e-2, rtol=1e-2))
    ok_s = bool(jnp.allclose(s_out, s_ref, atol=1e-2, rtol=1e-2))
    assert ok_t and ok_s, (float(jnp.max(jnp.abs(t_out - t_ref))),
                           float(jnp.max(jnp.abs(s_out - s_ref))))
    print("KERNEL_OK")
</pallas_src>

<mosaic_0001>
module attributes {stable_mosaic.version = 11 : i64} {
  func.func @kernel(%arg0: i32, %arg1: memref<4x32x16xf32, #tpu.memory_space<vmem>>, %arg2: memref<4x32x16xf32, #tpu.memory_space<vmem>>, %arg3: memref<64x64xf32, #tpu.memory_space<vmem>>, %arg4: memref<2x32x64xf32, #tpu.memory_space<vmem>>, %arg5: memref<2x1x64xf32, #tpu.memory_space<vmem>>, %arg6: memref<2x32x32xbf16, #tpu.memory_space<vmem>>, %arg7: memref<2x1x32xf32, #tpu.memory_space<vmem>>, %arg8: memref<2x32x64xbf16, #tpu.memory_space<vmem>>, %arg9: memref<2x1x64xf32, #tpu.memory_space<vmem>>, %arg10: memref<2x32x32xbf16, #tpu.memory_space<vmem>>, %arg11: memref<2x1x32xf32, #tpu.memory_space<vmem>>, %arg12: memref<2x32x128xbf16, #tpu.memory_space<vmem>>, %arg13: memref<2x1x128xf32, #tpu.memory_space<vmem>>, %arg14: memref<2x128x32xbf16, #tpu.memory_space<vmem>>, %arg15: memref<2x1x32xf32, #tpu.memory_space<vmem>>, %arg16: memref<64x64xf32, #tpu.memory_space<vmem>>) attributes {dimension_semantics = [#tpu.dimension_semantics<parallel>], iteration_bounds = array<i64: 2>, scalar_prefetch = 0 : i64, scratch_operands = 0 : i64, tpu.core_type = #tpu.core_type<tc>, window_params = [{transform_indices = @transform_0, window_bounds = array<i64: 4, 32, 16>}, {transform_indices = @transform_1, window_bounds = array<i64: 4, 32, 16>}, {pipeline_mode = #tpu.pipeline_mode<synchronous>, transform_indices = @transform_2, window_bounds = array<i64: 64, 64>}, {pipeline_mode = #tpu.pipeline_mode<synchronous>, transform_indices = @transform_3, window_bounds = array<i64: 2, 32, 64>}, {pipeline_mode = #tpu.pipeline_mode<synchronous>, transform_indices = @transform_4, window_bounds = array<i64: 2, 1, 64>}, {pipeline_mode = #tpu.pipeline_mode<synchronous>, transform_indices = @transform_5, window_bounds = array<i64: 2, 32, 32>}, {pipeline_mode = #tpu.pipeline_mode<synchronous>, transform_indices = @transform_6, window_bounds = array<i64: 2, 1, 32>}, {pipeline_mode = #tpu.pipeline_mode<synchronous>, transform_indices = @transform_7, window_bounds = array<i64: 2, 32, 64>}, {pipeline_mode = #tpu.pipeline_mode<synchronous>, transform_indices = @transform_8, window_bounds = array<i64: 2, 1, 64>}, {pipeline_mode = #tpu.pipeline_mode<synchronous>, transform_indices = @transform_9, window_bounds = array<i64: 2, 32, 32>}, {pipeline_mode = #tpu.pipeline_mode<synchronous>, transform_indices = @transform_10, window_bounds = array<i64: 2, 1, 32>}, {pipeline_mode = #tpu.pipeline_mode<synchronous>, transform_indices = @transform_11, window_bounds = array<i64: 2, 32, 128>}, {pipeline_mode = #tpu.pipeline_mode<synchronous>, transform_indices = @transform_12, window_bounds = array<i64: 2, 1, 128>}, {pipeline_mode = #tpu.pipeline_mode<synchronous>, transform_indices = @transform_13, window_bounds = array<i64: 2, 128, 32>}, {pipeline_mode = #tpu.pipeline_mode<synchronous>, transform_indices = @transform_14, window_bounds = array<i64: 2, 1, 32>}, {transform_indices = @transform_15, window_bounds = array<i64: 64, 64>}]} {
    %c0 = arith.constant 0 : index
    %c0_0 = arith.constant 0 : index
    %0 = vector.load %arg3[%c0, %c0_0] : memref<64x64xf32, #tpu.memory_space<vmem>>, vector<64x64xf32>
    %c0_1 = arith.constant 0 : index
    %c0_2 = arith.constant 0 : index
    %c0_3 = arith.constant 0 : index
    %1 = vector.load %arg4[%c0_1, %c0_2, %c0_3] : memref<2x32x64xf32, #tpu.memory_space<vmem>>, vector<1x32x64xf32>
    %2 = vector.shape_cast %1 : vector<1x32x64xf32> to vector<32x64xf32>
    %c0_4 = arith.constant 0 : index
    %c0_5 = arith.constant 0 : index
    %c0_6 = arith.constant 0 : index
    %3 = vector.load %arg1[%c0_4, %c0_5, %c0_6] : memref<4x32x16xf32, #tpu.memory_space<vmem>>, vector<1x32x16xf32>
    %4 = vector.shape_cast %3 : vector<1x32x16xf32> to vector<32x16xf32>
    %cst = arith.constant dense<0.000000e+00> : vector<16x64xf32>
    %5 = tpu.matmul %4, %2, %cst {dimension_numbers = #tpu.dot_dimension_numbers<[0], [0], [1], [1], [0, 1, 1, 1], [], []>} : vector<32x16xf32>, vector<32x64xf32>, vector<16x64xf32> -> vector<16x64xf32>
    %c1 = arith.constant 1 : index
    %c0_7 = arith.constant 0 : index
    %c0_8 = arith.constant 0 : index
    %6 = vector.load %arg1[%c1, %c0_7, %c0_8] : memref<4x32x16xf32, #tpu.memory_space<vmem>>, vector<1x32x16xf32>
    %7 = vector.shape_cast %6 : vector<1x32x16xf32> to vector<32x16xf32>
    %cst_9 = arith.constant dense<0.000000e+00> : vector<16x64xf32>
    %8 = tpu.matmul %7, %2, %cst_9 {dimension_numbers = #tpu.dot_dimension_numbers<[0], [0], [1], [1], [0, 1, 1, 1], [], []>} : vector<32x16xf32>, vector<32x64xf32>, vector<16x64xf32> -> vector<16x64xf32>
    %c2 = arith.constant 2 : index
    %c0_10 = arith.constant 0 : index
    %c0_11 = arith.constant 0 : index
    %9 = vector.load %arg1[%c2, %c0_10, %c0_11] : memref<4x32x16xf32, #tpu.memory_space<vmem>>, vector<1x32x16xf32>
    %10 = vector.shape_cast %9 : vector<1x32x16xf32> to vector<32x16xf32>
    %cst_12 = arith.constant dense<0.000000e+00> : vector<16x64xf32>
    %11 = tpu.matmul %10, %2, %cst_12 {dimension_numbers = #tpu.dot_dimension_numbers<[0], [0], [1], [1], [0, 1, 1, 1], [], []>} : vector<32x16xf32>, vector<32x64xf32>, vector<16x64xf32> -> vector<16x64xf32>
    %c3 = arith.constant 3 : index
    %c0_13 = arith.constant 0 : index
    %c0_14 = arith.constant 0 : index
    %12 = vector.load %arg1[%c3, %c0_13, %c0_14] : memref<4x32x16xf32, #tpu.memory_space<vmem>>, vector<1x32x16xf32>
    %13 = vector.shape_cast %12 : vector<1x32x16xf32> to vector<32x16xf32>
    %cst_15 = arith.constant dense<0.000000e+00> : vector<16x64xf32>
    %14 = tpu.matmul %13, %2, %cst_15 {dimension_numbers = #tpu.dot_dimension_numbers<[0], [0], [1], [1], [0, 1, 1, 1], [], []>} : vector<32x16xf32>, vector<32x64xf32>, vector<16x64xf32> -> vector<16x64xf32>
    %15 = tpu.concatenate %5, %8, %11, %14 in 0 : vector<16x64xf32>, vector<16x64xf32>, vector<16x64xf32>, vector<16x64xf32> -> vector<64x64xf32>
    %c0_16 = arith.constant 0 : index
    %c0_17 = arith.constant 0 : index
    %c0_18 = arith.constant 0 : index
    %16 = vector.load %arg5[%c0_16, %c0_17, %c0_18] : memref<2x1x64xf32, #tpu.memory_space<vmem>>, vector<1x1x64xf32>
    %17 = vector.shape_cast %16 : vector<1x1x64xf32> to vector<1x64xf32>
    %18 = vector.broadcast %17 : vector<1x64xf32> to vector<64x64xf32>
    %19 = arith.addf %15, %18 : vector<64x64xf32>
    %20 = arith.mulf %19, %19 : vector<64x64xf32>
    %21 = arith.mulf %19, %20 : vector<64x64xf32>
    %cst_19 = arith.constant 4.471500e-02 : f32
    %22 = vector.broadcast %cst_19 : f32 to vector<64x64xf32>
    %23 = arith.mulf %22, %21 : vector<64x64xf32>
    %24 = arith.addf %19, %23 : vector<64x64xf32>
    %cst_20 = arith.constant 0.797884583 : f32
    %25 = vector.broadcast %cst_20 : f32 to vector<64x64xf32>
    %26 = arith.mulf %25, %24 : vector<64x64xf32>
    %27 = math.tanh %26 : vector<64x64xf32>
    %cst_21 = arith.constant 1.000000e+00 : f32
    %28 = vector.broadcast %cst_21 : f32 to vector<64x64xf32>
    %29 = arith.addf %28, %27 : vector<64x64xf32>
    %cst_22 = arith.constant 5.000000e-01 : f32
    %30 = vector.broadcast %cst_22 : f32 to vector<64x64xf32>
    %31 = arith.mulf %30, %29 : vector<64x64xf32>
    %32 = arith.mulf %19, %31 : vector<64x64xf32>
    %c1_23 = arith.constant 1 : index
    %c0_24 = arith.constant 0 : index
    %c0_25 = arith.constant 0 : index
    %33 = vector.load %arg4[%c1_23, %c0_24, %c0_25] : memref<2x32x64xf32, #tpu.memory_space<vmem>>, vector<1x32x64xf32>
    %34 = vector.shape_cast %33 : vector<1x32x64xf32> to vector<32x64xf32>
    %c0_26 = arith.constant 0 : index
    %c0_27 = arith.constant 0 : index
    %c0_28 = arith.constant 0 : index
    %35 = vector.load %arg2[%c0_26, %c0_27, %c0_28] : memref<4x32x16xf32, #tpu.memory_space<vmem>>, vector<1x32x16xf32>
    %36 = vector.shape_cast %35 : vector<1x32x16xf32> to vector<32x16xf32>
    %cst_29 = arith.constant dense<0.000000e+00> : vector<16x64xf32>
    %37 = tpu.matmul %36, %34, %cst_29 {dimension_numbers = #tpu.dot_dimension_numbers<[0], [0], [1], [1], [0, 1, 1, 1], [], []>} : vector<32x16xf32>, vector<32x64xf32>, vector<16x64xf32> -> vector<16x64xf32>
    %c1_30 = arith.constant 1 : index
    %c0_31 = arith.constant 0 : index
    %c0_32 = arith.constant 0 : index
    %38 = vector.load %arg2[%c1_30, %c0_31, %c0_32] : memref<4x32x16xf32, #tpu.memory_space<vmem>>, vector<1x32x16xf32>
    %39 = vector.shape_cast %38 : vector<1x32x16xf32> to vector<32x16xf32>
    %cst_33 = arith.constant dense<0.000000e+00> : vector<16x64xf32>
    %40 = tpu.matmul %39, %34, %cst_33 {dimension_numbers = #tpu.dot_dimension_numbers<[0], [0], [1], [1], [0, 1, 1, 1], [], []>} : vector<32x16xf32>, vector<32x64xf32>, vector<16x64xf32> -> vector<16x64xf32>
    %c2_34 = arith.constant 2 : index
    %c0_35 = arith.constant 0 : index
    %c0_36 = arith.constant 0 : index
    %41 = vector.load %arg2[%c2_34, %c0_35, %c0_36] : memref<4x32x16xf32, #tpu.memory_space<vmem>>, vector<1x32x16xf32>
    %42 = vector.shape_cast %41 : vector<1x32x16xf32> to vector<32x16xf32>
    %cst_37 = arith.constant dense<0.000000e+00> : vector<16x64xf32>
    %43 = tpu.matmul %42, %34, %cst_37 {dimension_numbers = #tpu.dot_dimension_numbers<[0], [0], [1], [1], [0, 1, 1, 1], [], []>} : vector<32x16xf32>, vector<32x64xf32>, vector<16x64xf32> -> vector<16x64xf32>
    %c3_38 = arith.constant 3 : index
    %c0_39 = arith.constant 0 : index
    %c0_40 = arith.constant 0 : index
    %44 = vector.load %arg2[%c3_38, %c0_39, %c0_40] : memref<4x32x16xf32, #tpu.memory_space<vmem>>, vector<1x32x16xf32>
    %45 = vector.shape_cast %44 : vector<1x32x16xf32> to vector<32x16xf32>
    %cst_41 = arith.constant dense<0.000000e+00> : vector<16x64xf32>
    %46 = tpu.matmul %45, %34, %cst_41 {dimension_numbers = #tpu.dot_dimension_numbers<[0], [0], [1], [1], [0, 1, 1, 1], [], []>} : vector<32x16xf32>, vector<32x64xf32>, vector<16x64xf32> -> vector<16x64xf32>
    %47 = tpu.concatenate %37, %40, %43, %46 in 0 : vector<16x64xf32>, vector<16x64xf32>, vector<16x64xf32>, vector<16x64xf32> -> vector<64x64xf32>
    %c1_42 = arith.constant 1 : index
    %c0_43 = arith.constant 0 : index
    %c0_44 = arith.constant 0 : index
    %48 = vector.load %arg5[%c1_42, %c0_43, %c0_44] : memref<2x1x64xf32, #tpu.memory_space<vmem>>, vector<1x1x64xf32>
    %49 = vector.shape_cast %48 : vector<1x1x64xf32> to vector<1x64xf32>
    %50 = vector.broadcast %49 : vector<1x64xf32> to vector<64x64xf32>
    %51 = arith.addf %47, %50 : vector<64x64xf32>
    %52 = arith.mulf %51, %51 : vector<64x64xf32>
    %53 = arith.mulf %51, %52 : vector<64x64xf32>
    %cst_45 = arith.constant 4.471500e-02 : f32
    %54 = vector.broadcast %cst_45 : f32 to vector<64x64xf32>
    %55 = arith.mulf %54, %53 : vector<64x64xf32>
    %56 = arith.addf %51, %55 : vector<64x64xf32>
    %cst_46 = arith.constant 0.797884583 : f32
    %57 = vector.broadcast %cst_46 : f32 to vector<64x64xf32>
    %58 = arith.mulf %57, %56 : vector<64x64xf32>
    %59 = math.tanh %58 : vector<64x64xf32>
    %cst_47 = arith.constant 1.000000e+00 : f32
    %60 = vector.broadcast %cst_47 : f32 to vector<64x64xf32>
    %61 = arith.addf %60, %59 : vector<64x64xf32>
    %cst_48 = arith.constant 5.000000e-01 : f32
    %62 = vector.broadcast %cst_48 : f32 to vector<64x64xf32>
    %63 = arith.mulf %62, %61 : vector<64x64xf32>
    %64 = arith.mulf %51, %63 : vector<64x64xf32>
    %65 = vector.extract_strided_slice %32 {offsets = [0, 0], sizes = [64, 32], strides = [1, 1]} : vector<64x64xf32> to vector<64x32xf32>
    %66 = vector.extract_strided_slice %32 {offsets = [0, 32], sizes = [64, 32], strides = [1, 1]} : vector<64x64xf32> to vector<64x32xf32>
    %67 = vector.extract_strided_slice %64 {offsets = [0, 0], sizes = [64, 32], strides = [1, 1]} : vector<64x64xf32> to vector<64x32xf32>
    %68 = vector.extract_strided_slice %64 {offsets = [0, 32], sizes = [64, 32], strides = [1, 1]} : vector<64x64xf32> to vector<64x32xf32>
    %69 = arith.truncf %65 : vector<64x32xf32> to vector<64x32xbf16>
    %c0_49 = arith.constant 0 : index
    %c0_50 = arith.constant 0 : index
    %c0_51 = arith.constant 0 : index
    %70 = vector.load %arg6[%c0_49, %c0_50, %c0_51] : memref<2x32x32xbf16, #tpu.memory_space<vmem>>, vector<1x32x32xbf16>
    %71 = vector.shape_cast %70 : vector<1x32x32xbf16> to vector<32x32xbf16>
    %cst_52 = arith.constant dense<0.000000e+00> : vector<64x32xf32>
    %72 = tpu.matmul %69, %71, %cst_52 {dimension_numbers = #tpu.dot_dimension_numbers<[1], [0], [0], [1], [0, 0, 1, 1], [], []>} : vector<64x32xbf16>, vector<32x32xbf16>, vector<64x32xf32> -> vector<64x32xf32>
    %c0_53 = arith.constant 0 : index
    %c0_54 = arith.constant 0 : index
    %c0_55 = arith.constant 0 : index
    %73 = vector.load %arg7[%c0_53, %c0_54, %c0_55] : memref<2x1x32xf32, #tpu.memory_space<vmem>>, vector<1x1x32xf32>
    %74 = vector.shape_cast %73 : vector<1x1x32xf32> to vector<1x32xf32>
    %75 = vector.broadcast %74 : vector<1x32xf32> to vector<64x32xf32>
    %76 = arith.addf %72, %75 : vector<64x32xf32>
    %77 = arith.truncf %76 : vector<64x32xf32> to vector<64x32xbf16>
    %78 = arith.truncf %68 : vector<64x32xf32> to vector<64x32xbf16>
    %c0_56 = arith.constant 0 : index
    %c0_57 = arith.constant 0 : index
    %c0_58 = arith.constant 0 : index
    %79 = vector.load %arg8[%c0_56, %c0_57, %c0_58] : memref<2x32x64xbf16, #tpu.memory_space<vmem>>, vector<1x32x64xbf16>
    %80 = vector.shape_cast %79 : vector<1x32x64xbf16> to vector<32x64xbf16>
    %cst_59 = arith.constant dense<0.000000e+00> : vector<64x64xf32>
    %81 = tpu.matmul %78, %80, %cst_59 {dimension_numbers = #tpu.dot_dimension_numbers<[1], [0], [0], [1], [0, 0, 1, 1], [], []>} : vector<64x32xbf16>, vector<32x64xbf16>, vector<64x64xf32> -> vector<64x64xf32>
    %c0_60 = arith.constant 0 : index
    %c0_61 = arith.constant 0 : index
    %c0_62 = arith.constant 0 : index
    %82 = vector.load %arg9[%c0_60, %c0_61, %c0_62] : memref<2x1x64xf32, #tpu.memory_space<vmem>>, vector<1x1x64xf32>
    %83 = vector.shape_cast %82 : vector<1x1x64xf32> to vector<1x64xf32>
    %84 = vector.broadcast %83 : vector<1x64xf32> to vector<64x64xf32>
    %85 = arith.addf %81, %84 : vector<64x64xf32>
    %86 = vector.extract_strided_slice %85 {offsets = [0, 0], sizes = [64, 32], strides = [1, 1]} : vector<64x64xf32> to vector<64x32xf32>
    %87 = arith.truncf %86 : vector<64x32xf32> to vector<64x32xbf16>
    %88 = vector.extract_strided_slice %85 {offsets = [0, 32], sizes = [64, 32], strides = [1, 1]} : vector<64x64xf32> to vector<64x32xf32>
    %89 = arith.truncf %88 : vector<64x32xf32> to vector<64x32xbf16>
    %c0_63 = arith.constant 0 : index
    %c0_64 = arith.constant 0 : index
    %c0_65 = arith.constant 0 : index
    %90 = vector.load %arg10[%c0_63, %c0_64, %c0_65] : memref<2x32x32xbf16, #tpu.memory_space<vmem>>, vector<1x32x32xbf16>
    %91 = vector.shape_cast %90 : vector<1x32x32xbf16> to vector<32x32xbf16>
    %cst_66 = arith.constant 0.000000e+00 : f32
    %92 = vector.broadcast %cst_66 : f32 to vector<64x32xf32>
    %93 = vector.extract_strided_slice %77 {offsets = [0, 0], sizes = [64, 8], strides = [1, 1]} : vector<64x32xbf16> to vector<64x8xbf16>
    %94 = vector.extract_strided_slice %87 {offsets = [0, 0], sizes = [64, 8], strides = [1, 1]} : vector<64x32xbf16> to vector<64x8xbf16>
    %cst_67 = arith.constant dense<0.000000e+00> : vector<64x64xf32>
    %95 = tpu.matmul %93, %94, %cst_67 {dimension_numbers = #tpu.dot_dimension_numbers<[1], [1], [0], [0], [0, 0, 1, 0], [], []>} : vector<64x8xbf16>, vector<64x8xbf16>, vector<64x64xf32> -> vector<64x64xf32>
    %96 = arith.addf %95, %0 : vector<64x64xf32>
    %cst_68 = arith.constant dense<0xFF800000> : vector<64xf32>
    %97 = vector.multi_reduction <maximumf>, %96, %cst_68 [1] : vector<64x64xf32> to vector<64xf32>
    %98 = vector.shape_cast %97 : vector<64xf32> to vector<64x1xf32>
    %99 = vector.broadcast %98 : vector<64x1xf32> to vector<64x64xf32>
    %100 = arith.subf %96, %99 : vector<64x64xf32>
    %101 = math.exp %100 : vector<64x64xf32>
    %cst_69 = arith.constant dense<0.000000e+00> : vector<64xf32>
    %102 = vector.multi_reduction <add>, %101, %cst_69 [1] : vector<64x64xf32> to vector<64xf32>
    %103 = vector.shape_cast %102 : vector<64xf32> to vector<64x1xf32>
    %104 = tpu.reciprocal %103 {approx = true} : vector<64x1xf32> -> vector<64x1xf32>
    %105 = vector.broadcast %104 : vector<64x1xf32> to vector<64x64xf32>
    %106 = arith.mulf %101, %105 : vector<64x64xf32>
    %107 = arith.truncf %106 : vector<64x64xf32> to vector<64x64xbf16>
    %108 = vector.extract_strided_slice %89 {offsets = [0, 0], sizes = [64, 8], strides = [1, 1]} : vector<64x32xbf16> to vector<64x8xbf16>
    %cst_70 = arith.constant dense<0.000000e+00> : vector<64x8xf32>
    %109 = tpu.matmul %107, %108, %cst_70 {dimension_numbers = #tpu.dot_dimension_numbers<[1], [0], [0], [1], [0, 0, 1, 1], [], []>} : vector<64x64xbf16>, vector<64x8xbf16>, vector<64x8xf32> -> vector<64x8xf32>
    %110 = arith.truncf %109 : vector<64x8xf32> to vector<64x8xbf16>
    %111 = vector.extract_strided_slice %91 {offsets = [0, 0], sizes = [8, 32], strides = [1, 1]} : vector<32x32xbf16> to vector<8x32xbf16>
    %cst_71 = arith.constant dense<0.000000e+00> : vector<64x32xf32>
    %112 = tpu.matmul %110, %111, %cst_71 {dimension_numbers = #tpu.dot_dimension_numbers<[1], [0], [0], [1], [0, 0, 1, 1], [], []>} : vector<64x8xbf16>, vector<8x32xbf16>, vector<64x32xf32> -> vector<64x32xf32>
    %113 = arith.addf %92, %112 : vector<64x32xf32>
    %114 = vector.extract_strided_slice %77 {offsets = [0, 8], sizes = [64, 8], strides = [1, 1]} : vector<64x32xbf16> to vector<64x8xbf16>
    %115 = vector.extract_strided_slice %87 {offsets = [0, 8], sizes = [64, 8], strides = [1, 1]} : vector<64x32xbf16> to vector<64x8xbf16>
    %cst_72 = arith.constant dense<0.000000e+00> : vector<64x64xf32>
    %116 = tpu.matmul %114, %115, %cst_72 {dimension_numbers = #tpu.dot_dimension_numbers<[1], [1], [0], [0], [0, 0, 1, 0], [], []>} : vector<64x8xbf16>, vector<64x8xbf16>, vector<64x64xf32> -> vector<64x64xf32>
    %117 = arith.addf %116, %0 : vector<64x64xf32>
    %cst_73 = arith.constant dense<0xFF800000> : vector<64xf32>
    %118 = vector.multi_reduction <maximumf>, %117, %cst_73 [1] : vector<64x64xf32> to vector<64xf32>
    %119 = vector.shape_cast %118 : vector<64xf32> to vector<64x1xf32>
    %120 = vector.broadcast %119 : vector<64x1xf32> to vector<64x64xf32>
    %121 = arith.subf %117, %120 : vector<64x64xf32>
    %122 = math.exp %121 : vector<64x64xf32>
    %cst_74 = arith.constant dense<0.000000e+00> : vector<64xf32>
    %123 = vector.multi_reduction <add>, %122, %cst_74 [1] : vector<64x64xf32> to vector<64xf32>
    %124 = vector.shape_cast %123 : vector<64xf32> to vector<64x1xf32>
    %125 = tpu.reciprocal %124 {approx = true} : vector<64x1xf32> -> vector<64x1xf32>
    %126 = vector.broadcast %125 : vector<64x1xf32> to vector<64x64xf32>
    %127 = arith.mulf %122, %126 : vector<64x64xf32>
    %128 = arith.truncf %127 : vector<64x64xf32> to vector<64x64xbf16>
    %129 = vector.extract_strided_slice %89 {offsets = [0, 8], sizes = [64, 8], strides = [1, 1]} : vector<64x32xbf16> to vector<64x8xbf16>
    %cst_75 = arith.constant dense<0.000000e+00> : vector<64x8xf32>
    %130 = tpu.matmul %128, %129, %cst_75 {dimension_numbers = #tpu.dot_dimension_numbers<[1], [0], [0], [1], [0, 0, 1, 1], [], []>} : vector<64x64xbf16>, vector<64x8xbf16>, vector<64x8xf32> -> vector<64x8xf32>
    %131 = arith.truncf %130 : vector<64x8xf32> to vector<64x8xbf16>
    %132 = vector.extract_strided_slice %91 {offsets = [8, 0], sizes = [8, 32], strides = [1, 1]} : vector<32x32xbf16> to vector<8x32xbf16>
    %cst_76 = arith.constant dense<0.000000e+00> : vector<64x32xf32>
    %133 = tpu.matmul %131, %132, %cst_76 {dimension_numbers = #tpu.dot_dimension_numbers<[1], [0], [0], [1], [0, 0, 1, 1], [], []>} : vector<64x8xbf16>, vector<8x32xbf16>, vector<64x32xf32> -> vector<64x32xf32>
    %134 = arith.addf %113, %133 : vector<64x32xf32>
    %135 = vector.extract_strided_slice %77 {offsets = [0, 16], sizes = [64, 8], strides = [1, 1]} : vector<64x32xbf16> to vector<64x8xbf16>
    %136 = vector.extract_strided_slice %87 {offsets = [0, 16], sizes = [64, 8], strides = [1, 1]} : vector<64x32xbf16> to vector<64x8xbf16>
    %cst_77 = arith.constant dense<0.000000e+00> : vector<64x64xf32>
    %137 = tpu.matmul %135, %136, %cst_77 {dimension_numbers = #tpu.dot_dimension_numbers<[1], [1], [0], [0], [0, 0, 1, 0], [], []>} : vector<64x8xbf16>, vector<64x8xbf16>, vector<64x64xf32> -> vector<64x64xf32>
    %138 = arith.addf %137, %0 : vector<64x64xf32>
    %cst_78 = arith.constant dense<0xFF800000> : vector<64xf32>
    %139 = vector.multi_reduction <maximumf>, %138, %cst_78 [1] : vector<64x64xf32> to vector<64xf32>
    %140 = vector.shape_cast %139 : vector<64xf32> to vector<64x1xf32>
    %141 = vector.broadcast %140 : vector<64x1xf32> to vector<64x64xf32>
    %142 = arith.subf %138, %141 : vector<64x64xf32>
    %143 = math.exp %142 : vector<64x64xf32>
    %cst_79 = arith.constant dense<0.000000e+00> : vector<64xf32>
    %144 = vector.multi_reduction <add>, %143, %cst_79 [1] : vector<64x64xf32> to vector<64xf32>
    %145 = vector.shape_cast %144 : vector<64xf32> to vector<64x1xf32>
    %146 = tpu.reciprocal %145 {approx = true} : vector<64x1xf32> -> vector<64x1xf32>
    %147 = vector.broadcast %146 : vector<64x1xf32> to vector<64x64xf32>
    %148 = arith.mulf %143, %147 : vector<64x64xf32>
    %149 = arith.truncf %148 : vector<64x64xf32> to vector<64x64xbf16>
    %150 = vector.extract_strided_slice %89 {offsets = [0, 16], sizes = [64, 8], strides = [1, 1]} : vector<64x32xbf16> to vector<64x8xbf16>
    %cst_80 = arith.constant dense<0.000000e+00> : vector<64x8xf32>
    %151 = tpu.matmul %149, %150, %cst_80 {dimension_numbers = #tpu.dot_dimension_numbers<[1], [0], [0], [1], [0, 0, 1, 1], [], []>} : vector<64x64xbf16>, vector<64x8xbf16>, vector<64x8xf32> -> vector<64x8xf32>
    %152 = arith.truncf %151 : vector<64x8xf32> to vector<64x8xbf16>
    %153 = vector.extract_strided_slice %91 {offsets = [16, 0], sizes = [8, 32], strides = [1, 1]} : vector<32x32xbf16> to vector<8x32xbf16>
    %cst_81 = arith.constant dense<0.000000e+00> : vector<64x32xf32>
    %154 = tpu.matmul %152, %153, %cst_81 {dimension_numbers = #tpu.dot_dimension_numbers<[1], [0], [0], [1], [0, 0, 1, 1], [], []>} : vector<64x8xbf16>, vector<8x32xbf16>, vector<64x32xf32> -> vector<64x32xf32>
    %155 = arith.addf %134, %154 : vector<64x32xf32>
    %156 = vector.extract_strided_slice %77 {offsets = [0, 24], sizes = [64, 8], strides = [1, 1]} : vector<64x32xbf16> to vector<64x8xbf16>
    %157 = vector.extract_strided_slice %87 {offsets = [0, 24], sizes = [64, 8], strides = [1, 1]} : vector<64x32xbf16> to vector<64x8xbf16>
    %cst_82 = arith.constant dense<0.000000e+00> : vector<64x64xf32>
    %158 = tpu.matmul %156, %157, %cst_82 {dimension_numbers = #tpu.dot_dimension_numbers<[1], [1], [0], [0], [0, 0, 1, 0], [], []>} : vector<64x8xbf16>, vector<64x8xbf16>, vector<64x64xf32> -> vector<64x64xf32>
    %159 = arith.addf %158, %0 : vector<64x64xf32>
    %cst_83 = arith.constant dense<0xFF800000> : vector<64xf32>
    %160 = vector.multi_reduction <maximumf>, %159, %cst_83 [1] : vector<64x64xf32> to vector<64xf32>
    %161 = vector.shape_cast %160 : vector<64xf32> to vector<64x1xf32>
    %162 = vector.broadcast %161 : vector<64x1xf32> to vector<64x64xf32>
    %163 = arith.subf %159, %162 : vector<64x64xf32>
    %164 = math.exp %163 : vector<64x64xf32>
    %cst_84 = arith.constant dense<0.000000e+00> : vector<64xf32>
    %165 = vector.multi_reduction <add>, %164, %cst_84 [1] : vector<64x64xf32> to vector<64xf32>
    %166 = vector.shape_cast %165 : vector<64xf32> to vector<64x1xf32>
    %167 = tpu.reciprocal %166 {approx = true} : vector<64x1xf32> -> vector<64x1xf32>
    %168 = vector.broadcast %167 : vector<64x1xf32> to vector<64x64xf32>
    %169 = arith.mulf %164, %168 : vector<64x64xf32>
    %170 = arith.truncf %169 : vector<64x64xf32> to vector<64x64xbf16>
    %171 = vector.extract_strided_slice %89 {offsets = [0, 24], sizes = [64, 8], strides = [1, 1]} : vector<64x32xbf16> to vector<64x8xbf16>
    %cst_85 = arith.constant dense<0.000000e+00> : vector<64x8xf32>
    %172 = tpu.matmul %170, %171, %cst_85 {dimension_numbers = #tpu.dot_dimension_numbers<[1], [0], [0], [1], [0, 0, 1, 1], [], []>} : vector<64x64xbf16>, vector<64x8xbf16>, vector<64x8xf32> -> vector<64x8xf32>
    %173 = arith.truncf %172 : vector<64x8xf32> to vector<64x8xbf16>
    %174 = vector.extract_strided_slice %91 {offsets = [24, 0], sizes = [8, 32], strides = [1, 1]} : vector<32x32xbf16> to vector<8x32xbf16>
    %cst_86 = arith.constant dense<0.000000e+00> : vector<64x32xf32>
    %175 = tpu.matmul %173, %174, %cst_86 {dimension_numbers = #tpu.dot_dimension_numbers<[1], [0], [0], [1], [0, 0, 1, 1], [], []>} : vector<64x8xbf16>, vector<8x32xbf16>, vector<64x32xf32> -> vector<64x32xf32>
    %176 = arith.addf %155, %175 : vector<64x32xf32>
    %c0_87 = arith.constant 0 : index
    %c0_88 = arith.constant 0 : index
    %c0_89 = arith.constant 0 : index
    %177 = vector.load %arg11[%c0_87, %c0_88, %c0_89] : memref<2x1x32xf32, #tpu.memory_space<vmem>>, vector<1x1x32xf32>
    %178 = vector.shape_cast %177 : vector<1x1x32xf32> to vector<1x32xf32>
    %179 = vector.broadcast %178 : vector<1x32xf32> to vector<64x32xf32>
    %180 = arith.addf %176, %179 : vector<64x32xf32>
    %181 = arith.addf %65, %180 : vector<64x32xf32>
    %cst_90 = arith.constant dense<0.000000e+00> : vector<64xf32>
    %182 = vector.multi_reduction <add>, %181, %cst_90 [1] : vector<64x32xf32> to vector<64xf32>
    %183 = vector.shape_cast %182 : vector<64xf32> to vector<64x1xf32>
    %cst_91 = arith.constant 3.200000e+01 : f32
    %184 = vector.broadcast %cst_91 : f32 to vector<64x1xf32>
    %185 = arith.divf %183, %184 : vector<64x1xf32>
    %186 = vector.broadcast %185 : vector<64x1xf32> to vector<64x32xf32>
    %187 = arith.subf %181, %186 : vector<64x32xf32>
    %188 = arith.mulf %187, %187 : vector<64x32xf32>
    %cst_92 = arith.constant dense<0.000000e+00> : vector<64xf32>
    %189 = vector.multi_reduction <add>, %188, %cst_92 [1] : vector<64x32xf32> to vector<64xf32>
    %190 = vector.shape_cast %189 : vector<64xf32> to vector<64x1xf32>
    %cst_93 = arith.constant 3.200000e+01 : f32
    %191 = vector.broadcast %cst_93 : f32 to vector<64x1xf32>
    %192 = arith.divf %190, %191 : vector<64x1xf32>
    %cst_94 = arith.constant 9.99999974E-6 : f32
    %193 = vector.broadcast %cst_94 : f32 to vector<64x1xf32>
    %194 = arith.addf %192, %193 : vector<64x1xf32>
    %195 = math.rsqrt %194 : vector<64x1xf32>
    %196 = vector.broadcast %195 : vector<64x1xf32> to vector<64x32xf32>
    %197 = arith.mulf %187, %196 : vector<64x32xf32>
    %198 = arith.truncf %197 : vector<64x32xf32> to vector<64x32xbf16>
    %c0_95 = arith.constant 0 : index
    %c0_96 = arith.constant 0 : index
    %c0_97 = arith.constant 0 : index
    %199 = vector.load %arg12[%c0_95, %c0_96, %c0_97] : memref<2x32x128xbf16, #tpu.memory_space<vmem>>, vector<1x32x128xbf16>
    %200 = vector.shape_cast %199 : vector<1x32x128xbf16> to vector<32x128xbf16>
    %cst_98 = arith.constant dense<0.000000e+00> : vector<64x128xf32>
    %201 = tpu.matmul %198, %200, %cst_98 {dimension_numbers = #tpu.dot_dimension_numbers<[1], [0], [0], [1], [0, 0, 1, 1], [], []>} : vector<64x32xbf16>, vector<32x128xbf16>, vector<64x128xf32> -> vector<64x128xf32>
    %c0_99 = arith.constant 0 : index
    %c0_100 = arith.constant 0 : index
    %c0_101 = arith.constant 0 : index
    %202 = vector.load %arg13[%c0_99, %c0_100, %c0_101] : memref<2x1x128xf32, #tpu.memory_space<vmem>>, vector<1x1x128xf32>
    %203 = vector.shape_cast %202 : vector<1x1x128xf32> to vector<1x128xf32>
    %204 = vector.broadcast %203 : vector<1x128xf32> to vector<64x128xf32>
    %205 = arith.addf %201, %204 : vector<64x128xf32>
    %206 = arith.mulf %205, %205 : vector<64x128xf32>
    %207 = arith.mulf %205, %206 : vector<64x128xf32>
    %cst_102 = arith.constant 4.471500e-02 : f32
    %208 = vector.broadcast %cst_102 : f32 to vector<64x128xf32>
    %209 = arith.mulf %208, %207 : vector<64x128xf32>
    %210 = arith.addf %205, %209 : vector<64x128xf32>
    %cst_103 = arith.constant 0.797884583 : f32
    %211 = vector.broadcast %cst_103 : f32 to vector<64x128xf32>
    %212 = arith.mulf %211, %210 : vector<64x128xf32>
    %213 = math.tanh %212 : vector<64x128xf32>
    %cst_104 = arith.constant 1.000000e+00 : f32
    %214 = vector.broadcast %cst_104 : f32 to vector<64x128xf32>
    %215 = arith.addf %214, %213 : vector<64x128xf32>
    %cst_105 = arith.constant 5.000000e-01 : f32
    %216 = vector.broadcast %cst_105 : f32 to vector<64x128xf32>
    %217 = arith.mulf %216, %215 : vector<64x128xf32>
    %218 = arith.mulf %205, %217 : vector<64x128xf32>
    %219 = arith.truncf %218 : vector<64x128xf32> to vector<64x128xbf16>
    %c0_106 = arith.constant 0 : index
    %c0_107 = arith.constant 0 : index
    %c0_108 = arith.constant 0 : index
    %220 = vector.load %arg14[%c0_106, %c0_107, %c0_108] : memref<2x128x32xbf16, #tpu.memory_space<vmem>>, vector<1x128x32xbf16>
    %221 = vector.shape_cast %220 : vector<1x128x32xbf16> to vector<128x32xbf16>
    %cst_109 = arith.constant dense<0.000000e+00> : vector<64x32xf32>
    %222 = tpu.matmul %219, %221, %cst_109 {dimension_numbers = #tpu.dot_dimension_numbers<[1], [0], [0], [1], [0, 0, 1, 1], [], []>} : vector<64x128xbf16>, vector<128x32xbf16>, vector<64x32xf32> -> vector<64x32xf32>
    %c0_110 = arith.constant 0 : index
    %c0_111 = arith.constant 0 : index
    %c0_112 = arith.constant 0 : index
    %223 = vector.load %arg15[%c0_110, %c0_111, %c0_112] : memref<2x1x32xf32, #tpu.memory_space<vmem>>, vector<1x1x32xf32>
    %224 = vector.shape_cast %223 : vector<1x1x32xf32> to vector<1x32xf32>
    %225 = vector.broadcast %224 : vector<1x32xf32> to vector<64x32xf32>
    %226 = arith.addf %222, %225 : vector<64x32xf32>
    %227 = arith.addf %181, %226 : vector<64x32xf32>
    %228 = arith.truncf %67 : vector<64x32xf32> to vector<64x32xbf16>
    %c1_113 = arith.constant 1 : index
    %c0_114 = arith.constant 0 : index
    %c0_115 = arith.constant 0 : index
    %229 = vector.load %arg6[%c1_113, %c0_114, %c0_115] : memref<2x32x32xbf16, #tpu.memory_space<vmem>>, vector<1x32x32xbf16>
    %230 = vector.shape_cast %229 : vector<1x32x32xbf16> to vector<32x32xbf16>
    %cst_116 = arith.constant dense<0.000000e+00> : vector<64x32xf32>
    %231 = tpu.matmul %228, %230, %cst_116 {dimension_numbers = #tpu.dot_dimension_numbers<[1], [0], [0], [1], [0, 0, 1, 1], [], []>} : vector<64x32xbf16>, vector<32x32xbf16>, vector<64x32xf32> -> vector<64x32xf32>
    %c1_117 = arith.constant 1 : index
    %c0_118 = arith.constant 0 : index
    %c0_119 = arith.constant 0 : index
    %232 = vector.load %arg7[%c1_117, %c0_118, %c0_119] : memref<2x1x32xf32, #tpu.memory_space<vmem>>, vector<1x1x32xf32>
    %233 = vector.shape_cast %232 : vector<1x1x32xf32> to vector<1x32xf32>
    %234 = vector.broadcast %233 : vector<1x32xf32> to vector<64x32xf32>
    %235 = arith.addf %231, %234 : vector<64x32xf32>
    %236 = arith.truncf %235 : vector<64x32xf32> to vector<64x32xbf16>
    %237 = arith.truncf %66 : vector<64x32xf32> to vector<64x32xbf16>
    %c1_120 = arith.constant 1 : index
    %c0_121 = arith.constant 0 : index
    %c0_122 = arith.constant 0 : index
    %238 = vector.load %arg8[%c1_120, %c0_121, %c0_122] : memref<2x32x64xbf16, #tpu.memory_space<vmem>>, vector<1x32x64xbf16>
    %239 = vector.shape_cast %238 : vector<1x32x64xbf16> to vector<32x64xbf16>
    %cst_123 = arith.constant dense<0.000000e+00> : vector<64x64xf32>
    %240 = tpu.matmul %237, %239, %cst_123 {dimension_numbers = #tpu.dot_dimension_numbers<[1], [0], [0], [1], [0, 0, 1, 1], [], []>} : vector<64x32xbf16>, vector<32x64xbf16>, vector<64x64xf32> -> vector<64x64xf32>
    %c1_124 = arith.constant 1 : index
    %c0_125 = arith.constant 0 : index
    %c0_126 = arith.constant 0 : index
    %241 = vector.load %arg9[%c1_124, %c0_125, %c0_126] : memref<2x1x64xf32, #tpu.memory_space<vmem>>, vector<1x1x64xf32>
    %242 = vector.shape_cast %241 : vector<1x1x64xf32> to vector<1x64xf32>
    %243 = vector.broadcast %242 : vector<1x64xf32> to vector<64x64xf32>
    %244 = arith.addf %240, %243 : vector<64x64xf32>
    %245 = vector.extract_strided_slice %244 {offsets = [0, 0], sizes = [64, 32], strides = [1, 1]} : vector<64x64xf32> to vector<64x32xf32>
    %246 = arith.truncf %245 : vector<64x32xf32> to vector<64x32xbf16>
    %247 = vector.extract_strided_slice %244 {offsets = [0, 32], sizes = [64, 32], strides = [1, 1]} : vector<64x64xf32> to vector<64x32xf32>
    %248 = arith.truncf %247 : vector<64x32xf32> to vector<64x32xbf16>
    %c1_127 = arith.constant 1 : index
    %c0_128 = arith.constant 0 : index
    %c0_129 = arith.constant 0 : index
    %249 = vector.load %arg10[%c1_127, %c0_128, %c0_129] : memref<2x32x32xbf16, #tpu.memory_space<vmem>>, vector<1x32x32xbf16>
    %250 = vector.shape_cast %249 : vector<1x32x32xbf16> to vector<32x32xbf16>
    %cst_130 = arith.constant 0.000000e+00 : f32
    %251 = vector.broadcast %cst_130 : f32 to vector<64x32xf32>
    %252 = vector.extract_strided_slice %236 {offsets = [0, 0], sizes = [64, 8], strides = [1, 1]} : vector<64x32xbf16> to vector<64x8xbf16>
    %253 = vector.extract_strided_slice %246 {offsets = [0, 0], sizes = [64, 8], strides = [1, 1]} : vector<64x32xbf16> to vector<64x8xbf16>
    %cst_131 = arith.constant dense<0.000000e+00> : vector<64x64xf32>
    %254 = tpu.matmul %252, %253, %cst_131 {dimension_numbers = #tpu.dot_dimension_numbers<[1], [1], [0], [0], [0, 0, 1, 0], [], []>} : vector<64x8xbf16>, vector<64x8xbf16>, vector<64x64xf32> -> vector<64x64xf32>
    %255 = arith.addf %254, %0 : vector<64x64xf32>
    %cst_132 = arith.constant dense<0xFF800000> : vector<64xf32>
    %256 = vector.multi_reduction <maximumf>, %255, %cst_132 [1] : vector<64x64xf32> to vector<64xf32>
    %257 = vector.shape_cast %256 : vector<64xf32> to vector<64x1xf32>
    %258 = vector.broadcast %257 : vector<64x1xf32> to vector<64x64xf32>
    %259 = arith.subf %255, %258 : vector<64x64xf32>
    %260 = math.exp %259 : vector<64x64xf32>
    %cst_133 = arith.constant dense<0.000000e+00> : vector<64xf32>
    %261 = vector.multi_reduction <add>, %260, %cst_133 [1] : vector<64x64xf32> to vector<64xf32>
    %262 = vector.shape_cast %261 : vector<64xf32> to vector<64x1xf32>
    %263 = tpu.reciprocal %262 {approx = true} : vector<64x1xf32> -> vector<64x1xf32>
    %264 = vector.broadcast %263 : vector<64x1xf32> to vector<64x64xf32>
    %265 = arith.mulf %260, %264 : vector<64x64xf32>
    %266 = arith.truncf %265 : vector<64x64xf32> to vector<64x64xbf16>
    %267 = vector.extract_strided_slice %248 {offsets = [0, 0], sizes = [64, 8], strides = [1, 1]} : vector<64x32xbf16> to vector<64x8xbf16>
    %cst_134 = arith.constant dense<0.000000e+00> : vector<64x8xf32>
    %268 = tpu.matmul %266, %267, %cst_134 {dimension_numbers = #tpu.dot_dimension_numbers<[1], [0], [0], [1], [0, 0, 1, 1], [], []>} : vector<64x64xbf16>, vector<64x8xbf16>, vector<64x8xf32> -> vector<64x8xf32>
    %269 = arith.truncf %268 : vector<64x8xf32> to vector<64x8xbf16>
    %270 = vector.extract_strided_slice %250 {offsets = [0, 0], sizes = [8, 32], strides = [1, 1]} : vector<32x32xbf16> to vector<8x32xbf16>
    %cst_135 = arith.constant dense<0.000000e+00> : vector<64x32xf32>
    %271 = tpu.matmul %269, %270, %cst_135 {dimension_numbers = #tpu.dot_dimension_numbers<[1], [0], [0], [1], [0, 0, 1, 1], [], []>} : vector<64x8xbf16>, vector<8x32xbf16>, vector<64x32xf32> -> vector<64x32xf32>
    %272 = arith.addf %251, %271 : vector<64x32xf32>
    %273 = vector.extract_strided_slice %236 {offsets = [0, 8], sizes = [64, 8], strides = [1, 1]} : vector<64x32xbf16> to vector<64x8xbf16>
    %274 = vector.extract_strided_slice %246 {offsets = [0, 8], sizes = [64, 8], strides = [1, 1]} : vector<64x32xbf16> to vector<64x8xbf16>
    %cst_136 = arith.constant dense<0.000000e+00> : vector<64x64xf32>
    %275 = tpu.matmul %273, %274, %cst_136 {dimension_numbers = #tpu.dot_dimension_numbers<[1], [1], [0], [0], [0, 0, 1, 0], [], []>} : vector<64x8xbf16>, vector<64x8xbf16>, vector<64x64xf32> -> vector<64x64xf32>
    %276 = arith.addf %275, %0 : vector<64x64xf32>
    %cst_137 = arith.constant dense<0xFF800000> : vector<64xf32>
    %277 = vector.multi_reduction <maximumf>, %276, %cst_137 [1] : vector<64x64xf32> to vector<64xf32>
    %278 = vector.shape_cast %277 : vector<64xf32> to vector<64x1xf32>
    %279 = vector.broadcast %278 : vector<64x1xf32> to vector<64x64xf32>
    %280 = arith.subf %276, %279 : vector<64x64xf32>
    %281 = math.exp %280 : vector<64x64xf32>
    %cst_138 = arith.constant dense<0.000000e+00> : vector<64xf32>
    %282 = vector.multi_reduction <add>, %281, %cst_138 [1] : vector<64x64xf32> to vector<64xf32>
    %283 = vector.shape_cast %282 : vector<64xf32> to vector<64x1xf32>
    %284 = tpu.reciprocal %283 {approx = true} : vector<64x1xf32> -> vector<64x1xf32>
    %285 = vector.broadcast %284 : vector<64x1xf32> to vector<64x64xf32>
    %286 = arith.mulf %281, %285 : vector<64x64xf32>
    %287 = arith.truncf %286 : vector<64x64xf32> to vector<64x64xbf16>
    %288 = vector.extract_strided_slice %248 {offsets = [0, 8], sizes = [64, 8], strides = [1, 1]} : vector<64x32xbf16> to vector<64x8xbf16>
    %cst_139 = arith.constant dense<0.000000e+00> : vector<64x8xf32>
    %289 = tpu.matmul %287, %288, %cst_139 {dimension_numbers = #tpu.dot_dimension_numbers<[1], [0], [0], [1], [0, 0, 1, 1], [], []>} : vector<64x64xbf16>, vector<64x8xbf16>, vector<64x8xf32> -> vector<64x8xf32>
    %290 = arith.truncf %289 : vector<64x8xf32> to vector<64x8xbf16>
    %291 = vector.extract_strided_slice %250 {offsets = [8, 0], sizes = [8, 32], strides = [1, 1]} : vector<32x32xbf16> to vector<8x32xbf16>
    %cst_140 = arith.constant dense<0.000000e+00> : vector<64x32xf32>
    %292 = tpu.matmul %290, %291, %cst_140 {dimension_numbers = #tpu.dot_dimension_numbers<[1], [0], [0], [1], [0, 0, 1, 1], [], []>} : vector<64x8xbf16>, vector<8x32xbf16>, vector<64x32xf32> -> vector<64x32xf32>
    %293 = arith.addf %272, %292 : vector<64x32xf32>
    %294 = vector.extract_strided_slice %236 {offsets = [0, 16], sizes = [64, 8], strides = [1, 1]} : vector<64x32xbf16> to vector<64x8xbf16>
    %295 = vector.extract_strided_slice %246 {offsets = [0, 16], sizes = [64, 8], strides = [1, 1]} : vector<64x32xbf16> to vector<64x8xbf16>
    %cst_141 = arith.constant dense<0.000000e+00> : vector<64x64xf32>
    %296 = tpu.matmul %294, %295, %cst_141 {dimension_numbers = #tpu.dot_dimension_numbers<[1], [1], [0], [0], [0, 0, 1, 0], [], []>} : vector<64x8xbf16>, vector<64x8xbf16>, vector<64x64xf32> -> vector<64x64xf32>
    %297 = arith.addf %296, %0 : vector<64x64xf32>
    %cst_142 = arith.constant dense<0xFF800000> : vector<64xf32>
    %298 = vector.multi_reduction <maximumf>, %297, %cst_142 [1] : vector<64x64xf32> to vector<64xf32>
    %299 = vector.shape_cast %298 : vector<64xf32> to vector<64x1xf32>
    %300 = vector.broadcast %299 : vector<64x1xf32> to vector<64x64xf32>
    %301 = arith.subf %297, %300 : vector<64x64xf32>
    %302 = math.exp %301 : vector<64x64xf32>
    %cst_143 = arith.constant dense<0.000000e+00> : vector<64xf32>
    %303 = vector.multi_reduction <add>, %302, %cst_143 [1] : vector<64x64xf32> to vector<64xf32>
    %304 = vector.shape_cast %303 : vector<64xf32> to vector<64x1xf32>
    %305 = tpu.reciprocal %304 {approx = true} : vector<64x1xf32> -> vector<64x1xf32>
    %306 = vector.broadcast %305 : vector<64x1xf32> to vector<64x64xf32>
    %307 = arith.mulf %302, %306 : vector<64x64xf32>
    %308 = arith.truncf %307 : vector<64x64xf32> to vector<64x64xbf16>
    %309 = vector.extract_strided_slice %248 {offsets = [0, 16], sizes = [64, 8], strides = [1, 1]} : vector<64x32xbf16> to vector<64x8xbf16>
    %cst_144 = arith.constant dense<0.000000e+00> : vector<64x8xf32>
    %310 = tpu.matmul %308, %309, %cst_144 {dimension_numbers = #tpu.dot_dimension_numbers<[1], [0], [0], [1], [0, 0, 1, 1], [], []>} : vector<64x64xbf16>, vector<64x8xbf16>, vector<64x8xf32> -> vector<64x8xf32>
    %311 = arith.truncf %310 : vector<64x8xf32> to vector<64x8xbf16>
    %312 = vector.extract_strided_slice %250 {offsets = [16, 0], sizes = [8, 32], strides = [1, 1]} : vector<32x32xbf16> to vector<8x32xbf16>
    %cst_145 = arith.constant dense<0.000000e+00> : vector<64x32xf32>
    %313 = tpu.matmul %311, %312, %cst_145 {dimension_numbers = #tpu.dot_dimension_numbers<[1], [0], [0], [1], [0, 0, 1, 1], [], []>} : vector<64x8xbf16>, vector<8x32xbf16>, vector<64x32xf32> -> vector<64x32xf32>
    %314 = arith.addf %293, %313 : vector<64x32xf32>
    %315 = vector.extract_strided_slice %236 {offsets = [0, 24], sizes = [64, 8], strides = [1, 1]} : vector<64x32xbf16> to vector<64x8xbf16>
    %316 = vector.extract_strided_slice %246 {offsets = [0, 24], sizes = [64, 8], strides = [1, 1]} : vector<64x32xbf16> to vector<64x8xbf16>
    %cst_146 = arith.constant dense<0.000000e+00> : vector<64x64xf32>
    %317 = tpu.matmul %315, %316, %cst_146 {dimension_numbers = #tpu.dot_dimension_numbers<[1], [1], [0], [0], [0, 0, 1, 0], [], []>} : vector<64x8xbf16>, vector<64x8xbf16>, vector<64x64xf32> -> vector<64x64xf32>
    %318 = arith.addf %317, %0 : vector<64x64xf32>
    %cst_147 = arith.constant dense<0xFF800000> : vector<64xf32>
    %319 = vector.multi_reduction <maximumf>, %318, %cst_147 [1] : vector<64x64xf32> to vector<64xf32>
    %320 = vector.shape_cast %319 : vector<64xf32> to vector<64x1xf32>
    %321 = vector.broadcast %320 : vector<64x1xf32> to vector<64x64xf32>
    %322 = arith.subf %318, %321 : vector<64x64xf32>
    %323 = math.exp %322 : vector<64x64xf32>
    %cst_148 = arith.constant dense<0.000000e+00> : vector<64xf32>
    %324 = vector.multi_reduction <add>, %323, %cst_148 [1] : vector<64x64xf32> to vector<64xf32>
    %325 = vector.shape_cast %324 : vector<64xf32> to vector<64x1xf32>
    %326 = tpu.reciprocal %325 {approx = true} : vector<64x1xf32> -> vector<64x1xf32>
    %327 = vector.broadcast %326 : vector<64x1xf32> to vector<64x64xf32>
    %328 = arith.mulf %323, %327 : vector<64x64xf32>
    %329 = arith.truncf %328 : vector<64x64xf32> to vector<64x64xbf16>
    %330 = vector.extract_strided_slice %248 {offsets = [0, 24], sizes = [64, 8], strides = [1, 1]} : vector<64x32xbf16> to vector<64x8xbf16>
    %cst_149 = arith.constant dense<0.000000e+00> : vector<64x8xf32>
    %331 = tpu.matmul %329, %330, %cst_149 {dimension_numbers = #tpu.dot_dimension_numbers<[1], [0], [0], [1], [0, 0, 1, 1], [], []>} : vector<64x64xbf16>, vector<64x8xbf16>, vector<64x8xf32> -> vector<64x8xf32>
    %332 = arith.truncf %331 : vector<64x8xf32> to vector<64x8xbf16>
    %333 = vector.extract_strided_slice %250 {offsets = [24, 0], sizes = [8, 32], strides = [1, 1]} : vector<32x32xbf16> to vector<8x32xbf16>
    %cst_150 = arith.constant dense<0.000000e+00> : vector<64x32xf32>
    %334 = tpu.matmul %332, %333, %cst_150 {dimension_numbers = #tpu.dot_dimension_numbers<[1], [0], [0], [1], [0, 0, 1, 1], [], []>} : vector<64x8xbf16>, vector<8x32xbf16>, vector<64x32xf32> -> vector<64x32xf32>
    %335 = arith.addf %314, %334 : vector<64x32xf32>
    %c1_151 = arith.constant 1 : index
    %c0_152 = arith.constant 0 : index
    %c0_153 = arith.constant 0 : index
    %336 = vector.load %arg11[%c1_151, %c0_152, %c0_153] : memref<2x1x32xf32, #tpu.memory_space<vmem>>, vector<1x1x32xf32>
    %337 = vector.shape_cast %336 : vector<1x1x32xf32> to vector<1x32xf32>
    %338 = vector.broadcast %337 : vector<1x32xf32> to vector<64x32xf32>
    %339 = arith.addf %335, %338 : vector<64x32xf32>
    %340 = arith.addf %67, %339 : vector<64x32xf32>
    %cst_154 = arith.constant dense<0.000000e+00> : vector<64xf32>
    %341 = vector.multi_reduction <add>, %340, %cst_154 [1] : vector<64x32xf32> to vector<64xf32>
    %342 = vector.shape_cast %341 : vector<64xf32> to vector<64x1xf32>
    %cst_155 = arith.constant 3.200000e+01 : f32
    %343 = vector.broadcast %cst_155 : f32 to vector<64x1xf32>
    %344 = arith.divf %342, %343 : vector<64x1xf32>
    %345 = vector.broadcast %344 : vector<64x1xf32> to vector<64x32xf32>
    %346 = arith.subf %340, %345 : vector<64x32xf32>
    %347 = arith.mulf %346, %346 : vector<64x32xf32>
    %cst_156 = arith.constant dense<0.000000e+00> : vector<64xf32>
    %348 = vector.multi_reduction <add>, %347, %cst_156 [1] : vector<64x32xf32> to vector<64xf32>
    %349 = vector.shape_cast %348 : vector<64xf32> to vector<64x1xf32>
    %cst_157 = arith.constant 3.200000e+01 : f32
    %350 = vector.broadcast %cst_157 : f32 to vector<64x1xf32>
    %351 = arith.divf %349, %350 : vector<64x1xf32>
    %cst_158 = arith.constant 9.99999974E-6 : f32
    %352 = vector.broadcast %cst_158 : f32 to vector<64x1xf32>
    %353 = arith.addf %351, %352 : vector<64x1xf32>
    %354 = math.rsqrt %353 : vector<64x1xf32>
    %355 = vector.broadcast %354 : vector<64x1xf32> to vector<64x32xf32>
    %356 = arith.mulf %346, %355 : vector<64x32xf32>
    %357 = arith.truncf %356 : vector<64x32xf32> to vector<64x32xbf16>
    %c1_159 = arith.constant 1 : index
    %c0_160 = arith.constant 0 : index
    %c0_161 = arith.constant 0 : index
    %358 = vector.load %arg12[%c1_159, %c0_160, %c0_161] : memref<2x32x128xbf16, #tpu.memory_space<vmem>>, vector<1x32x128xbf16>
    %359 = vector.shape_cast %358 : vector<1x32x128xbf16> to vector<32x128xbf16>
    %cst_162 = arith.constant dense<0.000000e+00> : vector<64x128xf32>
    %360 = tpu.matmul %357, %359, %cst_162 {dimension_numbers = #tpu.dot_dimension_numbers<[1], [0], [0], [1], [0, 0, 1, 1], [], []>} : vector<64x32xbf16>, vector<32x128xbf16>, vector<64x128xf32> -> vector<64x128xf32>
    %c1_163 = arith.constant 1 : index
    %c0_164 = arith.constant 0 : index
    %c0_165 = arith.constant 0 : index
    %361 = vector.load %arg13[%c1_163, %c0_164, %c0_165] : memref<2x1x128xf32, #tpu.memory_space<vmem>>, vector<1x1x128xf32>
    %362 = vector.shape_cast %361 : vector<1x1x128xf32> to vector<1x128xf32>
    %363 = vector.broadcast %362 : vector<1x128xf32> to vector<64x128xf32>
    %364 = arith.addf %360, %363 : vector<64x128xf32>
    %365 = arith.mulf %364, %364 : vector<64x128xf32>
    %366 = arith.mulf %364, %365 : vector<64x128xf32>
    %cst_166 = arith.constant 4.471500e-02 : f32
    %367 = vector.broadcast %cst_166 : f32 to vector<64x128xf32>
    %368 = arith.mulf %367, %366 : vector<64x128xf32>
    %369 = arith.addf %364, %368 : vector<64x128xf32>
    %cst_167 = arith.constant 0.797884583 : f32
    %370 = vector.broadcast %cst_167 : f32 to vector<64x128xf32>
    %371 = arith.mulf %370, %369 : vector<64x128xf32>
    %372 = math.tanh %371 : vector<64x128xf32>
    %cst_168 = arith.constant 1.000000e+00 : f32
    %373 = vector.broadcast %cst_168 : f32 to vector<64x128xf32>
    %374 = arith.addf %373, %372 : vector<64x128xf32>
    %cst_169 = arith.constant 5.000000e-01 : f32
    %375 = vector.broadcast %cst_169 : f32 to vector<64x128xf32>
    %376 = arith.mulf %375, %374 : vector<64x128xf32>
    %377 = arith.mulf %364, %376 : vector<64x128xf32>
    %378 = arith.truncf %377 : vector<64x128xf32> to vector<64x128xbf16>
    %c1_170 = arith.constant 1 : index
    %c0_171 = arith.constant 0 : index
    %c0_172 = arith.constant 0 : index
    %379 = vector.load %arg14[%c1_170, %c0_171, %c0_172] : memref<2x128x32xbf16, #tpu.memory_space<vmem>>, vector<1x128x32xbf16>
    %380 = vector.shape_cast %379 : vector<1x128x32xbf16> to vector<128x32xbf16>
    %cst_173 = arith.constant dense<0.000000e+00> : vector<64x32xf32>
    %381 = tpu.matmul %378, %380, %cst_173 {dimension_numbers = #tpu.dot_dimension_numbers<[1], [0], [0], [1], [0, 0, 1, 1], [], []>} : vector<64x128xbf16>, vector<128x32xbf16>, vector<64x32xf32> -> vector<64x32xf32>
    %c1_174 = arith.constant 1 : index
    %c0_175 = arith.constant 0 : index
    %c0_176 = arith.constant 0 : index
    %382 = vector.load %arg15[%c1_174, %c0_175, %c0_176] : memref<2x1x32xf32, #tpu.memory_space<vmem>>, vector<1x1x32xf32>
    %383 = vector.shape_cast %382 : vector<1x1x32xf32> to vector<1x32xf32>
    %384 = vector.broadcast %383 : vector<1x32xf32> to vector<64x32xf32>
    %385 = arith.addf %381, %384 : vector<64x32xf32>
    %386 = arith.addf %340, %385 : vector<64x32xf32>
    %c0_177 = arith.constant 0 : index
    %c0_178 = arith.constant 0 : index
    %387 = vector.load %arg16[%c0_177, %c0_178] : memref<64x64xf32, #tpu.memory_space<vmem>>, vector<64x32xf32>
    tpu.vector_store %arg16[%c0_177, %c0_178], %227 {strides = array<i32>} : memref<64x64xf32, #tpu.memory_space<vmem>>, vector<64x32xf32>,
    %c0_179 = arith.constant 0 : index
    %c32 = arith.constant 32 : index
    %388 = vector.load %arg16[%c0_179, %c32] : memref<64x64xf32, #tpu.memory_space<vmem>>, vector<64x32xf32>
    tpu.vector_store %arg16[%c0_179, %c32], %386 {strides = array<i32>} : memref<64x64xf32, #tpu.memory_space<vmem>>, vector<64x32xf32>,
    return
  }
  func.func @transform_0(%arg0: i32) -> (i32, i32, i32) {
    %c0_i32 = arith.constant 0 : i32
    %c0_i32_0 = arith.constant 0 : i32
    %c0_i32_1 = arith.constant 0 : i32
    return %arg0, %c0_i32, %c0_i32_0 : i32, i32, i32
  }
  func.func @transform_1(%arg0: i32) -> (i32, i32, i32) {
    %c0_i32 = arith.constant 0 : i32
    %c0_i32_0 = arith.constant 0 : i32
    %c0_i32_1 = arith.constant 0 : i32
    return %arg0, %c0_i32, %c0_i32_0 : i32, i32, i32
  }
  func.func @transform_2(%arg0: i32) -> (i32, i32) {
    %c0_i32 = arith.constant 0 : i32
    %c0_i32_0 = arith.constant 0 : i32
    %c0_i32_1 = arith.constant 0 : i32
    return %c0_i32, %c0_i32_0 : i32, i32
  }
  func.func @transform_3(%arg0: i32) -> (i32, i32, i32) {
    %c0_i32 = arith.constant 0 : i32
    %c0_i32_0 = arith.constant 0 : i32
    %c0_i32_1 = arith.constant 0 : i32
    %c0_i32_2 = arith.constant 0 : i32
    return %c0_i32, %c0_i32_0, %c0_i32_1 : i32, i32, i32
  }
  func.func @transform_4(%arg0: i32) -> (i32, i32, i32) {
    %c0_i32 = arith.constant 0 : i32
    %c0_i32_0 = arith.constant 0 : i32
    %c0_i32_1 = arith.constant 0 : i32
    %c0_i32_2 = arith.constant 0 : i32
    return %c0_i32, %c0_i32_0, %c0_i32_1 : i32, i32, i32
  }
  func.func @transform_5(%arg0: i32) -> (i32, i32, i32) {
    %c0_i32 = arith.constant 0 : i32
    %c0_i32_0 = arith.constant 0 : i32
    %c0_i32_1 = arith.constant 0 : i32
    %c0_i32_2 = arith.constant 0 : i32
    return %c0_i32, %c0_i32_0, %c0_i32_1 : i32, i32, i32
  }
  func.func @transform_6(%arg0: i32) -> (i32, i32, i32) {
    %c0_i32 = arith.constant 0 : i32
    %c0_i32_0 = arith.constant 0 : i32
    %c0_i32_1 = arith.constant 0 : i32
    %c0_i32_2 = arith.constant 0 : i32
    return %c0_i32, %c0_i32_0, %c0_i32_1 : i32, i32, i32
  }
  func.func @transform_7(%arg0: i32) -> (i32, i32, i32) {
    %c0_i32 = arith.constant 0 : i32
    %c0_i32_0 = arith.constant 0 : i32
    %c0_i32_1 = arith.constant 0 : i32
    %c0_i32_2 = arith.constant 0 : i32
    return %c0_i32, %c0_i32_0, %c0_i32_1 : i32, i32, i32
  }
  func.func @transform_8(%arg0: i32) -> (i32, i32, i32) {
    %c0_i32 = arith.constant 0 : i32
    %c0_i32_0 = arith.constant 0 : i32
    %c0_i32_1 = arith.constant 0 : i32
    %c0_i32_2 = arith.constant 0 : i32
    return %c0_i32, %c0_i32_0, %c0_i32_1 : i32, i32, i32
  }
  func.func @transform_9(%arg0: i32) -> (i32, i32, i32) {
    %c0_i32 = arith.constant 0 : i32
    %c0_i32_0 = arith.constant 0 : i32
    %c0_i32_1 = arith.constant 0 : i32
    %c0_i32_2 = arith.constant 0 : i32
    return %c0_i32, %c0_i32_0, %c0_i32_1 : i32, i32, i32
  }
  func.func @transform_10(%arg0: i32) -> (i32, i32, i32) {
    %c0_i32 = arith.constant 0 : i32
    %c0_i32_0 = arith.constant 0 : i32
    %c0_i32_1 = arith.constant 0 : i32
    %c0_i32_2 = arith.constant 0 : i32
    return %c0_i32, %c0_i32_0, %c0_i32_1 : i32, i32, i32
  }
  func.func @transform_11(%arg0: i32) -> (i32, i32, i32) {
    %c0_i32 = arith.constant 0 : i32
    %c0_i32_0 = arith.constant 0 : i32
    %c0_i32_1 = arith.constant 0 : i32
    %c0_i32_2 = arith.constant 0 : i32
    return %c0_i32, %c0_i32_0, %c0_i32_1 : i32, i32, i32
  }
  func.func @transform_12(%arg0: i32) -> (i32, i32, i32) {
    %c0_i32 = arith.constant 0 : i32
    %c0_i32_0 = arith.constant 0 : i32
    %c0_i32_1 = arith.constant 0 : i32
    %c0_i32_2 = arith.constant 0 : i32
    return %c0_i32, %c0_i32_0, %c0_i32_1 : i32, i32, i32
  }
  func.func @transform_13(%arg0: i32) -> (i32, i32, i32) {
    %c0_i32 = arith.constant 0 : i32
    %c0_i32_0 = arith.constant 0 : i32
    %c0_i32_1 = arith.constant 0 : i32
    %c0_i32_2 = arith.constant 0 : i32
    return %c0_i32, %c0_i32_0, %c0_i32_1 : i32, i32, i32
  }
  func.func @transform_14(%arg0: i32) -> (i32, i32, i32) {
    %c0_i32 = arith.constant 0 : i32
    %c0_i32_0 = arith.constant 0 : i32
    %c0_i32_1 = arith.constant 0 : i32
    %c0_i32_2 = arith.constant 0 : i32
    return %c0_i32, %c0_i32_0, %c0_i32_1 : i32, i32, i32
  }
  func.func @transform_15(%arg0: i32) -> (i32, i32) {
    %c0_i32 = arith.constant 0 : i32
    %c0_i32_0 = arith.constant 0 : i32
    return %arg0, %c0_i32 : i32, i32
  }
}

module attributes {stable_mosaic.version = 11 : i64} {
  func.func @kernel(%arg0: i32, %arg1: memref<4x32x16xf32, #tpu.memory_space<vmem>>, %arg2: memref<4x32x16xf32, #tpu.memory_space<vmem>>, %arg3: memref<64x64xf32, #tpu.memory_space<vmem>>, %arg4: memref<2x32x64xf32, #tpu.memory_space<vmem>>, %arg5: memref<2x1x64xf32, #tpu.memory_space<vmem>>, %arg6: memref<2x32x32xbf16, #tpu.memory_space<vmem>>, %arg7: memref<2x1x32xf32, #tpu.memory_space<vmem>>, %arg8: memref<2x32x64xbf16, #tpu.memory_space<vmem>>, %arg9: memref<2x1x64xf32, #tpu.memory_space<vmem>>, %arg10: memref<2x32x32xbf16, #tpu.memory_space<vmem>>, %arg11: memref<2x1x32xf32, #tpu.memory_space<vmem>>, %arg12: memref<2x32x128xbf16, #tpu.memory_space<vmem>>, %arg13: memref<2x1x128xf32, #tpu.memory_space<vmem>>, %arg14: memref<2x128x32xbf16, #tpu.memory_space<vmem>>, %arg15: memref<2x1x32xf32, #tpu.memory_space<vmem>>, %arg16: memref<64x64xf32, #tpu.memory_space<vmem>>) attributes {dimension_semantics = [#tpu.dimension_semantics<parallel>], iteration_bounds = array<i64: 2>, scalar_prefetch = 0 : i64, scratch_operands = 0 : i64, tpu.core_type = #tpu.core_type<tc>, window_params = [{transform_indices = @transform_0, window_bounds = array<i64: 4, 32, 16>}, {transform_indices = @transform_1, window_bounds = array<i64: 4, 32, 16>}, {pipeline_mode = #tpu.pipeline_mode<synchronous>, transform_indices = @transform_2, window_bounds = array<i64: 64, 64>}, {pipeline_mode = #tpu.pipeline_mode<synchronous>, transform_indices = @transform_3, window_bounds = array<i64: 2, 32, 64>}, {pipeline_mode = #tpu.pipeline_mode<synchronous>, transform_indices = @transform_4, window_bounds = array<i64: 2, 1, 64>}, {pipeline_mode = #tpu.pipeline_mode<synchronous>, transform_indices = @transform_5, window_bounds = array<i64: 2, 32, 32>}, {pipeline_mode = #tpu.pipeline_mode<synchronous>, transform_indices = @transform_6, window_bounds = array<i64: 2, 1, 32>}, {pipeline_mode = #tpu.pipeline_mode<synchronous>, transform_indices = @transform_7, window_bounds = array<i64: 2, 32, 64>}, {pipeline_mode = #tpu.pipeline_mode<synchronous>, transform_indices = @transform_8, window_bounds = array<i64: 2, 1, 64>}, {pipeline_mode = #tpu.pipeline_mode<synchronous>, transform_indices = @transform_9, window_bounds = array<i64: 2, 32, 32>}, {pipeline_mode = #tpu.pipeline_mode<synchronous>, transform_indices = @transform_10, window_bounds = array<i64: 2, 1, 32>}, {pipeline_mode = #tpu.pipeline_mode<synchronous>, transform_indices = @transform_11, window_bounds = array<i64: 2, 32, 128>}, {pipeline_mode = #tpu.pipeline_mode<synchronous>, transform_indices = @transform_12, window_bounds = array<i64: 2, 1, 128>}, {pipeline_mode = #tpu.pipeline_mode<synchronous>, transform_indices = @transform_13, window_bounds = array<i64: 2, 128, 32>}, {pipeline_mode = #tpu.pipeline_mode<synchronous>, transform_indices = @transform_14, window_bounds = array<i64: 2, 1, 32>}, {transform_indices = @transform_15, window_bounds = array<i64: 64, 64>}]} {
    %c0 = arith.constant 0 : index
    %c0_0 = arith.constant 0 : index
    %0 = vector.load %arg3[%c0, %c0_0] : memref<64x64xf32, #tpu.memory_space<vmem>>, vector<64x64xf32>
    %c0_1 = arith.constant 0 : index
    %c0_2 = arith.constant 0 : index
    %c0_3 = arith.constant 0 : index
    %1 = vector.load %arg4[%c0_1, %c0_2, %c0_3] : memref<2x32x64xf32, #tpu.memory_space<vmem>>, vector<1x32x64xf32>
    %2 = vector.shape_cast %1 : vector<1x32x64xf32> to vector<32x64xf32>
    %c0_4 = arith.constant 0 : index
    %c0_5 = arith.constant 0 : index
    %c0_6 = arith.constant 0 : index
    %3 = vector.load %arg1[%c0_4, %c0_5, %c0_6] : memref<4x32x16xf32, #tpu.memory_space<vmem>>, vector<1x32x16xf32>
    %4 = vector.shape_cast %3 : vector<1x32x16xf32> to vector<32x16xf32>
    %cst = arith.constant dense<0.000000e+00> : vector<16x64xf32>
    %5 = tpu.matmul %4, %2, %cst {dimension_numbers = #tpu.dot_dimension_numbers<[0], [0], [1], [1], [0, 1, 1, 1], [], []>} : vector<32x16xf32>, vector<32x64xf32>, vector<16x64xf32> -> vector<16x64xf32>
    %c1 = arith.constant 1 : index
    %c0_7 = arith.constant 0 : index
    %c0_8 = arith.constant 0 : index
    %6 = vector.load %arg1[%c1, %c0_7, %c0_8] : memref<4x32x16xf32, #tpu.memory_space<vmem>>, vector<1x32x16xf32>
    %7 = vector.shape_cast %6 : vector<1x32x16xf32> to vector<32x16xf32>
    %cst_9 = arith.constant dense<0.000000e+00> : vector<16x64xf32>
    %8 = tpu.matmul %7, %2, %cst_9 {dimension_numbers = #tpu.dot_dimension_numbers<[0], [0], [1], [1], [0, 1, 1, 1], [], []>} : vector<32x16xf32>, vector<32x64xf32>, vector<16x64xf32> -> vector<16x64xf32>
    %c2 = arith.constant 2 : index
    %c0_10 = arith.constant 0 : index
    %c0_11 = arith.constant 0 : index
    %9 = vector.load %arg1[%c2, %c0_10, %c0_11] : memref<4x32x16xf32, #tpu.memory_space<vmem>>, vector<1x32x16xf32>
    %10 = vector.shape_cast %9 : vector<1x32x16xf32> to vector<32x16xf32>
    %cst_12 = arith.constant dense<0.000000e+00> : vector<16x64xf32>
    %11 = tpu.matmul %10, %2, %cst_12 {dimension_numbers = #tpu.dot_dimension_numbers<[0], [0], [1], [1], [0, 1, 1, 1], [], []>} : vector<32x16xf32>, vector<32x64xf32>, vector<16x64xf32> -> vector<16x64xf32>
    %c3 = arith.constant 3 : index
    %c0_13 = arith.constant 0 : index
    %c0_14 = arith.constant 0 : index
    %12 = vector.load %arg1[%c3, %c0_13, %c0_14] : memref<4x32x16xf32, #tpu.memory_space<vmem>>, vector<1x32x16xf32>
    %13 = vector.shape_cast %12 : vector<1x32x16xf32> to vector<32x16xf32>
    %cst_15 = arith.constant dense<0.000000e+00> : vector<16x64xf32>
    %14 = tpu.matmul %13, %2, %cst_15 {dimension_numbers = #tpu.dot_dimension_numbers<[0], [0], [1], [1], [0, 1, 1, 1], [], []>} : vector<32x16xf32>, vector<32x64xf32>, vector<16x64xf32> -> vector<16x64xf32>
    %15 = tpu.concatenate %5, %8, %11, %14 in 0 : vector<16x64xf32>, vector<16x64xf32>, vector<16x64xf32>, vector<16x64xf32> -> vector<64x64xf32>
    %c0_16 = arith.constant 0 : index
    %c0_17 = arith.constant 0 : index
    %c0_18 = arith.constant 0 : index
    %16 = vector.load %arg5[%c0_16, %c0_17, %c0_18] : memref<2x1x64xf32, #tpu.memory_space<vmem>>, vector<1x1x64xf32>
    %17 = vector.shape_cast %16 : vector<1x1x64xf32> to vector<1x64xf32>
    %18 = vector.broadcast %17 : vector<1x64xf32> to vector<64x64xf32>
    %19 = arith.addf %15, %18 : vector<64x64xf32>
    %20 = arith.mulf %19, %19 : vector<64x64xf32>
    %21 = arith.mulf %19, %20 : vector<64x64xf32>
    %cst_19 = arith.constant 4.471500e-02 : f32
    %22 = vector.broadcast %cst_19 : f32 to vector<64x64xf32>
    %23 = arith.mulf %22, %21 : vector<64x64xf32>
    %24 = arith.addf %19, %23 : vector<64x64xf32>
    %cst_20 = arith.constant 0.797884583 : f32
    %25 = vector.broadcast %cst_20 : f32 to vector<64x64xf32>
    %26 = arith.mulf %25, %24 : vector<64x64xf32>
    %27 = math.tanh %26 : vector<64x64xf32>
    %cst_21 = arith.constant 1.000000e+00 : f32
    %28 = vector.broadcast %cst_21 : f32 to vector<64x64xf32>
    %29 = arith.addf %28, %27 : vector<64x64xf32>
    %cst_22 = arith.constant 5.000000e-01 : f32
    %30 = vector.broadcast %cst_22 : f32 to vector<64x64xf32>
    %31 = arith.mulf %30, %29 : vector<64x64xf32>
    %32 = arith.mulf %19, %31 : vector<64x64xf32>
    %c1_23 = arith.constant 1 : index
    %c0_24 = arith.constant 0 : index
    %c0_25 = arith.constant 0 : index
    %33 = vector.load %arg4[%c1_23, %c0_24, %c0_25] : memref<2x32x64xf32, #tpu.memory_space<vmem>>, vector<1x32x64xf32>
    %34 = vector.shape_cast %33 : vector<1x32x64xf32> to vector<32x64xf32>
    %c0_26 = arith.constant 0 : index
    %c0_27 = arith.constant 0 : index
    %c0_28 = arith.constant 0 : index
    %35 = vector.load %arg2[%c0_26, %c0_27, %c0_28] : memref<4x32x16xf32, #tpu.memory_space<vmem>>, vector<1x32x16xf32>
    %36 = vector.shape_cast %35 : vector<1x32x16xf32> to vector<32x16xf32>
    %cst_29 = arith.constant dense<0.000000e+00> : vector<16x64xf32>
    %37 = tpu.matmul %36, %34, %cst_29 {dimension_numbers = #tpu.dot_dimension_numbers<[0], [0], [1], [1], [0, 1, 1, 1], [], []>} : vector<32x16xf32>, vector<32x64xf32>, vector<16x64xf32> -> vector<16x64xf32>
    %c1_30 = arith.constant 1 : index
    %c0_31 = arith.constant 0 : index
    %c0_32 = arith.constant 0 : index
    %38 = vector.load %arg2[%c1_30, %c0_31, %c0_32] : memref<4x32x16xf32, #tpu.memory_space<vmem>>, vector<1x32x16xf32>
    %39 = vector.shape_cast %38 : vector<1x32x16xf32> to vector<32x16xf32>
    %cst_33 = arith.constant dense<0.000000e+00> : vector<16x64xf32>
    %40 = tpu.matmul %39, %34, %cst_33 {dimension_numbers = #tpu.dot_dimension_numbers<[0], [0], [1], [1], [0, 1, 1, 1], [], []>} : vector<32x16xf32>, vector<32x64xf32>, vector<16x64xf32> -> vector<16x64xf32>
    %c2_34 = arith.constant 2 : index
    %c0_35 = arith.constant 0 : index
    %c0_36 = arith.constant 0 : index
    %41 = vector.load %arg2[%c2_34, %c0_35, %c0_36] : memref<4x32x16xf32, #tpu.memory_space<vmem>>, vector<1x32x16xf32>
    %42 = vector.shape_cast %41 : vector<1x32x16xf32> to vector<32x16xf32>
    %cst_37 = arith.constant dense<0.000000e+00> : vector<16x64xf32>
    %43 = tpu.matmul %42, %34, %cst_37 {dimension_numbers = #tpu.dot_dimension_numbers<[0], [0], [1], [1], [0, 1, 1, 1], [], []>} : vector<32x16xf32>, vector<32x64xf32>, vector<16x64xf32> -> vector<16x64xf32>
    %c3_38 = arith.constant 3 : index
    %c0_39 = arith.constant 0 : index
    %c0_40 = arith.constant 0 : index
    %44 = vector.load %arg2[%c3_38, %c0_39, %c0_40] : memref<4x32x16xf32, #tpu.memory_space<vmem>>, vector<1x32x16xf32>
    %45 = vector.shape_cast %44 : vector<1x32x16xf32> to vector<32x16xf32>
    %cst_41 = arith.constant dense<0.000000e+00> : vector<16x64xf32>
    %46 = tpu.matmul %45, %34, %cst_41 {dimension_numbers = #tpu.dot_dimension_numbers<[0], [0], [1], [1], [0, 1, 1, 1], [], []>} : vector<32x16xf32>, vector<32x64xf32>, vector<16x64xf32> -> vector<16x64xf32>
    %47 = tpu.concatenate %37, %40, %43, %46 in 0 : vector<16x64xf32>, vector<16x64xf32>, vector<16x64xf32>, vector<16x64xf32> -> vector<64x64xf32>
    %c1_42 = arith.constant 1 : index
    %c0_43 = arith.constant 0 : index
    %c0_44 = arith.constant 0 : index
    %48 = vector.load %arg5[%c1_42, %c0_43, %c0_44] : memref<2x1x64xf32, #tpu.memory_space<vmem>>, vector<1x1x64xf32>
    %49 = vector.shape_cast %48 : vector<1x1x64xf32> to vector<1x64xf32>
    %50 = vector.broadcast %49 : vector<1x64xf32> to vector<64x64xf32>
    %51 = arith.addf %47, %50 : vector<64x64xf32>
    %52 = arith.mulf %51, %51 : vector<64x64xf32>
    %53 = arith.mulf %51, %52 : vector<64x64xf32>
    %cst_45 = arith.constant 4.471500e-02 : f32
    %54 = vector.broadcast %cst_45 : f32 to vector<64x64xf32>
    %55 = arith.mulf %54, %53 : vector<64x64xf32>
    %56 = arith.addf %51, %55 : vector<64x64xf32>
    %cst_46 = arith.constant 0.797884583 : f32
    %57 = vector.broadcast %cst_46 : f32 to vector<64x64xf32>
    %58 = arith.mulf %57, %56 : vector<64x64xf32>
    %59 = math.tanh %58 : vector<64x64xf32>
    %cst_47 = arith.constant 1.000000e+00 : f32
    %60 = vector.broadcast %cst_47 : f32 to vector<64x64xf32>
    %61 = arith.addf %60, %59 : vector<64x64xf32>
    %cst_48 = arith.constant 5.000000e-01 : f32
    %62 = vector.broadcast %cst_48 : f32 to vector<64x64xf32>
    %63 = arith.mulf %62, %61 : vector<64x64xf32>
    %64 = arith.mulf %51, %63 : vector<64x64xf32>
    %65 = vector.extract_strided_slice %32 {offsets = [0, 0], sizes = [64, 32], strides = [1, 1]} : vector<64x64xf32> to vector<64x32xf32>
    %66 = vector.extract_strided_slice %32 {offsets = [0, 32], sizes = [64, 32], strides = [1, 1]} : vector<64x64xf32> to vector<64x32xf32>
    %67 = vector.extract_strided_slice %64 {offsets = [0, 0], sizes = [64, 32], strides = [1, 1]} : vector<64x64xf32> to vector<64x32xf32>
    %68 = vector.extract_strided_slice %64 {offsets = [0, 32], sizes = [64, 32], strides = [1, 1]} : vector<64x64xf32> to vector<64x32xf32>
    %69 = arith.truncf %65 : vector<64x32xf32> to vector<64x32xbf16>
    %c0_49 = arith.constant 0 : index
    %c0_50 = arith.constant 0 : index
    %c0_51 = arith.constant 0 : index
    %70 = vector.load %arg6[%c0_49, %c0_50, %c0_51] : memref<2x32x32xbf16, #tpu.memory_space<vmem>>, vector<1x32x32xbf16>
    %71 = vector.shape_cast %70 : vector<1x32x32xbf16> to vector<32x32xbf16>
    %cst_52 = arith.constant dense<0.000000e+00> : vector<64x32xf32>
    %72 = tpu.matmul %69, %71, %cst_52 {dimension_numbers = #tpu.dot_dimension_numbers<[1], [0], [0], [1], [0, 0, 1, 1], [], []>} : vector<64x32xbf16>, vector<32x32xbf16>, vector<64x32xf32> -> vector<64x32xf32>
    %c0_53 = arith.constant 0 : index
    %c0_54 = arith.constant 0 : index
    %c0_55 = arith.constant 0 : index
    %73 = vector.load %arg7[%c0_53, %c0_54, %c0_55] : memref<2x1x32xf32, #tpu.memory_space<vmem>>, vector<1x1x32xf32>
    %74 = vector.shape_cast %73 : vector<1x1x32xf32> to vector<1x32xf32>
    %75 = vector.broadcast %74 : vector<1x32xf32> to vector<64x32xf32>
    %76 = arith.addf %72, %75 : vector<64x32xf32>
    %77 = arith.truncf %76 : vector<64x32xf32> to vector<64x32xbf16>
    %78 = arith.truncf %68 : vector<64x32xf32> to vector<64x32xbf16>
    %c0_56 = arith.constant 0 : index
    %c0_57 = arith.constant 0 : index
    %c0_58 = arith.constant 0 : index
    %79 = vector.load %arg8[%c0_56, %c0_57, %c0_58] : memref<2x32x64xbf16, #tpu.memory_space<vmem>>, vector<1x32x64xbf16>
    %80 = vector.shape_cast %79 : vector<1x32x64xbf16> to vector<32x64xbf16>
    %cst_59 = arith.constant dense<0.000000e+00> : vector<64x64xf32>
    %81 = tpu.matmul %78, %80, %cst_59 {dimension_numbers = #tpu.dot_dimension_numbers<[1], [0], [0], [1], [0, 0, 1, 1], [], []>} : vector<64x32xbf16>, vector<32x64xbf16>, vector<64x64xf32> -> vector<64x64xf32>
    %c0_60 = arith.constant 0 : index
    %c0_61 = arith.constant 0 : index
    %c0_62 = arith.constant 0 : index
    %82 = vector.load %arg9[%c0_60, %c0_61, %c0_62] : memref<2x1x64xf32, #tpu.memory_space<vmem>>, vector<1x1x64xf32>
    %83 = vector.shape_cast %82 : vector<1x1x64xf32> to vector<1x64xf32>
    %84 = vector.broadcast %83 : vector<1x64xf32> to vector<64x64xf32>
    %85 = arith.addf %81, %84 : vector<64x64xf32>
    %86 = vector.extract_strided_slice %85 {offsets = [0, 0], sizes = [64, 32], strides = [1, 1]} : vector<64x64xf32> to vector<64x32xf32>
    %87 = arith.truncf %86 : vector<64x32xf32> to vector<64x32xbf16>
    %88 = vector.extract_strided_slice %85 {offsets = [0, 32], sizes = [64, 32], strides = [1, 1]} : vector<64x64xf32> to vector<64x32xf32>
    %89 = arith.truncf %88 : vector<64x32xf32> to vector<64x32xbf16>
    %c0_63 = arith.constant 0 : index
    %c0_64 = arith.constant 0 : index
    %c0_65 = arith.constant 0 : index
    %90 = vector.load %arg10[%c0_63, %c0_64, %c0_65] : memref<2x32x32xbf16, #tpu.memory_space<vmem>>, vector<1x32x32xbf16>
    %91 = vector.shape_cast %90 : vector<1x32x32xbf16> to vector<32x32xbf16>
    %cst_66 = arith.constant 0.000000e+00 : f32
    %92 = vector.broadcast %cst_66 : f32 to vector<64x32xf32>
    %93 = vector.extract_strided_slice %77 {offsets = [0, 0], sizes = [64, 8], strides = [1, 1]} : vector<64x32xbf16> to vector<64x8xbf16>
    %94 = vector.extract_strided_slice %87 {offsets = [0, 0], sizes = [64, 8], strides = [1, 1]} : vector<64x32xbf16> to vector<64x8xbf16>
    %cst_67 = arith.constant dense<0.000000e+00> : vector<64x64xf32>
    %95 = tpu.matmul %93, %94, %cst_67 {dimension_numbers = #tpu.dot_dimension_numbers<[1], [1], [0], [0], [0, 0, 1, 0], [], []>} : vector<64x8xbf16>, vector<64x8xbf16>, vector<64x64xf32> -> vector<64x64xf32>
    %96 = arith.addf %95, %0 : vector<64x64xf32>
    %cst_68 = arith.constant dense<0xFF800000> : vector<64xf32>
    %97 = vector.multi_reduction <maximumf>, %96, %cst_68 [1] : vector<64x64xf32> to vector<64xf32>
    %98 = vector.shape_cast %97 : vector<64xf32> to vector<64x1xf32>
    %99 = vector.broadcast %98 : vector<64x1xf32> to vector<64x64xf32>
    %100 = arith.subf %96, %99 : vector<64x64xf32>
    %101 = math.exp %100 : vector<64x64xf32>
    %cst_69 = arith.constant dense<0.000000e+00> : vector<64xf32>
    %102 = vector.multi_reduction <add>, %101, %cst_69 [1] : vector<64x64xf32> to vector<64xf32>
    %103 = vector.shape_cast %102 : vector<64xf32> to vector<64x1xf32>
    %104 = tpu.reciprocal %103 {approx = true} : vector<64x1xf32> -> vector<64x1xf32>
    %105 = vector.broadcast %104 : vector<64x1xf32> to vector<64x64xf32>
    %106 = arith.mulf %101, %105 : vector<64x64xf32>
    %107 = arith.truncf %106 : vector<64x64xf32> to vector<64x64xbf16>
    %108 = vector.extract_strided_slice %89 {offsets = [0, 0], sizes = [64, 8], strides = [1, 1]} : vector<64x32xbf16> to vector<64x8xbf16>
    %cst_70 = arith.constant dense<0.000000e+00> : vector<64x8xf32>
    %109 = tpu.matmul %107, %108, %cst_70 {dimension_numbers = #tpu.dot_dimension_numbers<[1], [0], [0], [1], [0, 0, 1, 1], [], []>} : vector<64x64xbf16>, vector<64x8xbf16>, vector<64x8xf32> -> vector<64x8xf32>
    %110 = arith.truncf %109 : vector<64x8xf32> to vector<64x8xbf16>
    %111 = vector.extract_strided_slice %91 {offsets = [0, 0], sizes = [8, 32], strides = [1, 1]} : vector<32x32xbf16> to vector<8x32xbf16>
    %cst_71 = arith.constant dense<0.000000e+00> : vector<64x32xf32>
    %112 = tpu.matmul %110, %111, %cst_71 {dimension_numbers = #tpu.dot_dimension_numbers<[1], [0], [0], [1], [0, 0, 1, 1], [], []>} : vector<64x8xbf16>, vector<8x32xbf16>, vector<64x32xf32> -> vector<64x32xf32>
    %113 = arith.addf %92, %112 : vector<64x32xf32>
    %114 = vector.extract_strided_slice %77 {offsets = [0, 8], sizes = [64, 8], strides = [1, 1]} : vector<64x32xbf16> to vector<64x8xbf16>
    %115 = vector.extract_strided_slice %87 {offsets = [0, 8], sizes = [64, 8], strides = [1, 1]} : vector<64x32xbf16> to vector<64x8xbf16>
    %cst_72 = arith.constant dense<0.000000e+00> : vector<64x64xf32>
    %116 = tpu.matmul %114, %115, %cst_72 {dimension_numbers = #tpu.dot_dimension_numbers<[1], [1], [0], [0], [0, 0, 1, 0], [], []>} : vector<64x8xbf16>, vector<64x8xbf16>, vector<64x64xf32> -> vector<64x64xf32>
    %117 = arith.addf %116, %0 : vector<64x64xf32>
    %cst_73 = arith.constant dense<0xFF800000> : vector<64xf32>
    %118 = vector.multi_reduction <maximumf>, %117, %cst_73 [1] : vector<64x64xf32> to vector<64xf32>
    %119 = vector.shape_cast %118 : vector<64xf32> to vector<64x1xf32>
    %120 = vector.broadcast %119 : vector<64x1xf32> to vector<64x64xf32>
    %121 = arith.subf %117, %120 : vector<64x64xf32>
    %122 = math.exp %121 : vector<64x64xf32>
    %cst_74 = arith.constant dense<0.000000e+00> : vector<64xf32>
    %123 = vector.multi_reduction <add>, %122, %cst_74 [1] : vector<64x64xf32> to vector<64xf32>
    %124 = vector.shape_cast %123 : vector<64xf32> to vector<64x1xf32>
    %125 = tpu.reciprocal %124 {approx = true} : vector<64x1xf32> -> vector<64x1xf32>
    %126 = vector.broadcast %125 : vector<64x1xf32> to vector<64x64xf32>
    %127 = arith.mulf %122, %126 : vector<64x64xf32>
    %128 = arith.truncf %127 : vector<64x64xf32> to vector<64x64xbf16>
    %129 = vector.extract_strided_slice %89 {offsets = [0, 8], sizes = [64, 8], strides = [1, 1]} : vector<64x32xbf16> to vector<64x8xbf16>
    %cst_75 = arith.constant dense<0.000000e+00> : vector<64x8xf32>
    %130 = tpu.matmul %128, %129, %cst_75 {dimension_numbers = #tpu.dot_dimension_numbers<[1], [0], [0], [1], [0, 0, 1, 1], [], []>} : vector<64x64xbf16>, vector<64x8xbf16>, vector<64x8xf32> -> vector<64x8xf32>
    %131 = arith.truncf %130 : vector<64x8xf32> to vector<64x8xbf16>
    %132 = vector.extract_strided_slice %91 {offsets = [8, 0], sizes = [8, 32], strides = [1, 1]} : vector<32x32xbf16> to vector<8x32xbf16>
    %cst_76 = arith.constant dense<0.000000e+00> : vector<64x32xf32>
    %133 = tpu.matmul %131, %132, %cst_76 {dimension_numbers = #tpu.dot_dimension_numbers<[1], [0], [0], [1], [0, 0, 1, 1], [], []>} : vector<64x8xbf16>, vector<8x32xbf16>, vector<64x32xf32> -> vector<64x32xf32>
    %134 = arith.addf %113, %133 : vector<64x32xf32>
    %135 = vector.extract_strided_slice %77 {offsets = [0, 16], sizes = [64, 8], strides = [1, 1]} : vector<64x32xbf16> to vector<64x8xbf16>
    %136 = vector.extract_strided_slice %87 {offsets = [0, 16], sizes = [64, 8], strides = [1, 1]} : vector<64x32xbf16> to vector<64x8xbf16>
    %cst_77 = arith.constant dense<0.000000e+00> : vector<64x64xf32>
    %137 = tpu.matmul %135, %136, %cst_77 {dimension_numbers = #tpu.dot_dimension_numbers<[1], [1], [0], [0], [0, 0, 1, 0], [], []>} : vector<64x8xbf16>, vector<64x8xbf16>, vector<64x64xf32> -> vector<64x64xf32>
    %138 = arith.addf %137, %0 : vector<64x64xf32>
    %cst_78 = arith.constant dense<0xFF800000> : vector<64xf32>
    %139 = vector.multi_reduction <maximumf>, %138, %cst_78 [1] : vector<64x64xf32> to vector<64xf32>
    %140 = vector.shape_cast %139 : vector<64xf32> to vector<64x1xf32>
    %141 = vector.broadcast %140 : vector<64x1xf32> to vector<64x64xf32>
    %142 = arith.subf %138, %141 : vector<64x64xf32>
    %143 = math.exp %142 : vector<64x64xf32>
    %cst_79 = arith.constant dense<0.000000e+00> : vector<64xf32>
    %144 = vector.multi_reduction <add>, %143, %cst_79 [1] : vector<64x64xf32> to vector<64xf32>
    %145 = vector.shape_cast %144 : vector<64xf32> to vector<64x1xf32>
    %146 = tpu.reciprocal %145 {approx = true} : vector<64x1xf32> -> vector<64x1xf32>
    %147 = vector.broadcast %146 : vector<64x1xf32> to vector<64x64xf32>
    %148 = arith.mulf %143, %147 : vector<64x64xf32>
    %149 = arith.truncf %148 : vector<64x64xf32> to vector<64x64xbf16>
    %150 = vector.extract_strided_slice %89 {offsets = [0, 16], sizes = [64, 8], strides = [1, 1]} : vector<64x32xbf16> to vector<64x8xbf16>
    %cst_80 = arith.constant dense<0.000000e+00> : vector<64x8xf32>
    %151 = tpu.matmul %149, %150, %cst_80 {dimension_numbers = #tpu.dot_dimension_numbers<[1], [0], [0], [1], [0, 0, 1, 1], [], []>} : vector<64x64xbf16>, vector<64x8xbf16>, vector<64x8xf32> -> vector<64x8xf32>
    %152 = arith.truncf %151 : vector<64x8xf32> to vector<64x8xbf16>
    %153 = vector.extract_strided_slice %91 {offsets = [16, 0], sizes = [8, 32], strides = [1, 1]} : vector<32x32xbf16> to vector<8x32xbf16>
    %cst_81 = arith.constant dense<0.000000e+00> : vector<64x32xf32>
    %154 = tpu.matmul %152, %153, %cst_81 {dimension_numbers = #tpu.dot_dimension_numbers<[1], [0], [0], [1], [0, 0, 1, 1], [], []>} : vector<64x8xbf16>, vector<8x32xbf16>, vector<64x32xf32> -> vector<64x32xf32>
    %155 = arith.addf %134, %154 : vector<64x32xf32>
    %156 = vector.extract_strided_slice %77 {offsets = [0, 24], sizes = [64, 8], strides = [1, 1]} : vector<64x32xbf16> to vector<64x8xbf16>
    %157 = vector.extract_strided_slice %87 {offsets = [0, 24], sizes = [64, 8], strides = [1, 1]} : vector<64x32xbf16> to vector<64x8xbf16>
    %cst_82 = arith.constant dense<0.000000e+00> : vector<64x64xf32>
    %158 = tpu.matmul %156, %157, %cst_82 {dimension_numbers = #tpu.dot_dimension_numbers<[1], [1], [0], [0], [0, 0, 1, 0], [], []>} : vector<64x8xbf16>, vector<64x8xbf16>, vector<64x64xf32> -> vector<64x64xf32>
    %159 = arith.addf %158, %0 : vector<64x64xf32>
    %cst_83 = arith.constant dense<0xFF800000> : vector<64xf32>
    %160 = vector.multi_reduction <maximumf>, %159, %cst_83 [1] : vector<64x64xf32> to vector<64xf32>
    %161 = vector.shape_cast %160 : vector<64xf32> to vector<64x1xf32>
    %162 = vector.broadcast %161 : vector<64x1xf32> to vector<64x64xf32>
    %163 = arith.subf %159, %162 : vector<64x64xf32>
    %164 = math.exp %163 : vector<64x64xf32>
    %cst_84 = arith.constant dense<0.000000e+00> : vector<64xf32>
    %165 = vector.multi_reduction <add>, %164, %cst_84 [1] : vector<64x64xf32> to vector<64xf32>
    %166 = vector.shape_cast %165 : vector<64xf32> to vector<64x1xf32>
    %167 = tpu.reciprocal %166 {approx = true} : vector<64x1xf32> -> vector<64x1xf32>
    %168 = vector.broadcast %167 : vector<64x1xf32> to vector<64x64xf32>
    %169 = arith.mulf %164, %168 : vector<64x64xf32>
    %170 = arith.truncf %169 : vector<64x64xf32> to vector<64x64xbf16>
    %171 = vector.extract_strided_slice %89 {offsets = [0, 24], sizes = [64, 8], strides = [1, 1]} : vector<64x32xbf16> to vector<64x8xbf16>
    %cst_85 = arith.constant dense<0.000000e+00> : vector<64x8xf32>
    %172 = tpu.matmul %170, %171, %cst_85 {dimension_numbers = #tpu.dot_dimension_numbers<[1], [0], [0], [1], [0, 0, 1, 1], [], []>} : vector<64x64xbf16>, vector<64x8xbf16>, vector<64x8xf32> -> vector<64x8xf32>
    %173 = arith.truncf %172 : vector<64x8xf32> to vector<64x8xbf16>
    %174 = vector.extract_strided_slice %91 {offsets = [24, 0], sizes = [8, 32], strides = [1, 1]} : vector<32x32xbf16> to vector<8x32xbf16>
    %cst_86 = arith.constant dense<0.000000e+00> : vector<64x32xf32>
    %175 = tpu.matmul %173, %174, %cst_86 {dimension_numbers = #tpu.dot_dimension_numbers<[1], [0], [0], [1], [0, 0, 1, 1], [], []>} : vector<64x8xbf16>, vector<8x32xbf16>, vector<64x32xf32> -> vector<64x32xf32>
    %176 = arith.addf %155, %175 : vector<64x32xf32>
    %c0_87 = arith.constant 0 : index
    %c0_88 = arith.constant 0 : index
    %c0_89 = arith.constant 0 : index
    %177 = vector.load %arg11[%c0_87, %c0_88, %c0_89] : memref<2x1x32xf32, #tpu.memory_space<vmem>>, vector<1x1x32xf32>
    %178 = vector.shape_cast %177 : vector<1x1x32xf32> to vector<1x32xf32>
    %179 = vector.broadcast %178 : vector<1x32xf32> to vector<64x32xf32>
    %180 = arith.addf %176, %179 : vector<64x32xf32>
    %181 = arith.addf %65, %180 : vector<64x32xf32>
    %cst_90 = arith.constant dense<0.000000e+00> : vector<64xf32>
    %182 = vector.multi_reduction <add>, %181, %cst_90 [1] : vector<64x32xf32> to vector<64xf32>
    %183 = vector.shape_cast %182 : vector<64xf32> to vector<64x1xf32>
    %cst_91 = arith.constant 3.200000e+01 : f32
    %184 = vector.broadcast %cst_91 : f32 to vector<64x1xf32>
    %185 = arith.divf %183, %184 : vector<64x1xf32>
    %186 = vector.broadcast %185 : vector<64x1xf32> to vector<64x32xf32>
    %187 = arith.subf %181, %186 : vector<64x32xf32>
    %188 = arith.mulf %187, %187 : vector<64x32xf32>
    %cst_92 = arith.constant dense<0.000000e+00> : vector<64xf32>
    %189 = vector.multi_reduction <add>, %188, %cst_92 [1] : vector<64x32xf32> to vector<64xf32>
    %190 = vector.shape_cast %189 : vector<64xf32> to vector<64x1xf32>
    %cst_93 = arith.constant 3.200000e+01 : f32
    %191 = vector.broadcast %cst_93 : f32 to vector<64x1xf32>
    %192 = arith.divf %190, %191 : vector<64x1xf32>
    %cst_94 = arith.constant 9.99999974E-6 : f32
    %193 = vector.broadcast %cst_94 : f32 to vector<64x1xf32>
    %194 = arith.addf %192, %193 : vector<64x1xf32>
    %195 = math.rsqrt %194 : vector<64x1xf32>
    %196 = vector.broadcast %195 : vector<64x1xf32> to vector<64x32xf32>
    %197 = arith.mulf %187, %196 : vector<64x32xf32>
    %198 = arith.truncf %197 : vector<64x32xf32> to vector<64x32xbf16>
    %c0_95 = arith.constant 0 : index
    %c0_96 = arith.constant 0 : index
    %c0_97 = arith.constant 0 : index
    %199 = vector.load %arg12[%c0_95, %c0_96, %c0_97] : memref<2x32x128xbf16, #tpu.memory_space<vmem>>, vector<1x32x128xbf16>
    %200 = vector.shape_cast %199 : vector<1x32x128xbf16> to vector<32x128xbf16>
    %cst_98 = arith.constant dense<0.000000e+00> : vector<64x128xf32>
    %201 = tpu.matmul %198, %200, %cst_98 {dimension_numbers = #tpu.dot_dimension_numbers<[1], [0], [0], [1], [0, 0, 1, 1], [], []>} : vector<64x32xbf16>, vector<32x128xbf16>, vector<64x128xf32> -> vector<64x128xf32>
    %c0_99 = arith.constant 0 : index
    %c0_100 = arith.constant 0 : index
    %c0_101 = arith.constant 0 : index
    %202 = vector.load %arg13[%c0_99, %c0_100, %c0_101] : memref<2x1x128xf32, #tpu.memory_space<vmem>>, vector<1x1x128xf32>
    %203 = vector.shape_cast %202 : vector<1x1x128xf32> to vector<1x128xf32>
    %204 = vector.broadcast %203 : vector<1x128xf32> to vector<64x128xf32>
    %205 = arith.addf %201, %204 : vector<64x128xf32>
    %206 = arith.mulf %205, %205 : vector<64x128xf32>
    %207 = arith.mulf %205, %206 : vector<64x128xf32>
    %cst_102 = arith.constant 4.471500e-02 : f32
    %208 = vector.broadcast %cst_102 : f32 to vector<64x128xf32>
    %209 = arith.mulf %208, %207 : vector<64x128xf32>
    %210 = arith.addf %205, %209 : vector<64x128xf32>
    %cst_103 = arith.constant 0.797884583 : f32
    %211 = vector.broadcast %cst_103 : f32 to vector<64x128xf32>
    %212 = arith.mulf %211, %210 : vector<64x128xf32>
    %213 = math.tanh %212 : vector<64x128xf32>
    %cst_104 = arith.constant 1.000000e+00 : f32
    %214 = vector.broadcast %cst_104 : f32 to vector<64x128xf32>
    %215 = arith.addf %214, %213 : vector<64x128xf32>
    %cst_105 = arith.constant 5.000000e-01 : f32
    %216 = vector.broadcast %cst_105 : f32 to vector<64x128xf32>
    %217 = arith.mulf %216, %215 : vector<64x128xf32>
    %218 = arith.mulf %205, %217 : vector<64x128xf32>
    %219 = arith.truncf %218 : vector<64x128xf32> to vector<64x128xbf16>
    %c0_106 = arith.constant 0 : index
    %c0_107 = arith.constant 0 : index
    %c0_108 = arith.constant 0 : index
    %220 = vector.load %arg14[%c0_106, %c0_107, %c0_108] : memref<2x128x32xbf16, #tpu.memory_space<vmem>>, vector<1x128x32xbf16>
    %221 = vector.shape_cast %220 : vector<1x128x32xbf16> to vector<128x32xbf16>
    %cst_109 = arith.constant dense<0.000000e+00> : vector<64x32xf32>
    %222 = tpu.matmul %219, %221, %cst_109 {dimension_numbers = #tpu.dot_dimension_numbers<[1], [0], [0], [1], [0, 0, 1, 1], [], []>} : vector<64x128xbf16>, vector<128x32xbf16>, vector<64x32xf32> -> vector<64x32xf32>
    %c0_110 = arith.constant 0 : index
    %c0_111 = arith.constant 0 : index
    %c0_112 = arith.constant 0 : index
    %223 = vector.load %arg15[%c0_110, %c0_111, %c0_112] : memref<2x1x32xf32, #tpu.memory_space<vmem>>, vector<1x1x32xf32>
    %224 = vector.shape_cast %223 : vector<1x1x32xf32> to vector<1x32xf32>
    %225 = vector.broadcast %224 : vector<1x32xf32> to vector<64x32xf32>
    %226 = arith.addf %222, %225 : vector<64x32xf32>
    %227 = arith.addf %181, %226 : vector<64x32xf32>
    %228 = arith.truncf %67 : vector<64x32xf32> to vector<64x32xbf16>
    %c1_113 = arith.constant 1 : index
    %c0_114 = arith.constant 0 : index
    %c0_115 = arith.constant 0 : index
    %229 = vector.load %arg6[%c1_113, %c0_114, %c0_115] : memref<2x32x32xbf16, #tpu.memory_space<vmem>>, vector<1x32x32xbf16>
    %230 = vector.shape_cast %229 : vector<1x32x32xbf16> to vector<32x32xbf16>
    %cst_116 = arith.constant dense<0.000000e+00> : vector<64x32xf32>
    %231 = tpu.matmul %228, %230, %cst_116 {dimension_numbers = #tpu.dot_dimension_numbers<[1], [0], [0], [1], [0, 0, 1, 1], [], []>} : vector<64x32xbf16>, vector<32x32xbf16>, vector<64x32xf32> -> vector<64x32xf32>
    %c1_117 = arith.constant 1 : index
    %c0_118 = arith.constant 0 : index
    %c0_119 = arith.constant 0 : index
    %232 = vector.load %arg7[%c1_117, %c0_118, %c0_119] : memref<2x1x32xf32, #tpu.memory_space<vmem>>, vector<1x1x32xf32>
    %233 = vector.shape_cast %232 : vector<1x1x32xf32> to vector<1x32xf32>
    %234 = vector.broadcast %233 : vector<1x32xf32> to vector<64x32xf32>
    %235 = arith.addf %231, %234 : vector<64x32xf32>
    %236 = arith.truncf %235 : vector<64x32xf32> to vector<64x32xbf16>
    %237 = arith.truncf %66 : vector<64x32xf32> to vector<64x32xbf16>
    %c1_120 = arith.constant 1 : index
    %c0_121 = arith.constant 0 : index
    %c0_122 = arith.constant 0 : index
    %238 = vector.load %arg8[%c1_120, %c0_121, %c0_122] : memref<2x32x64xbf16, #tpu.memory_space<vmem>>, vector<1x32x64xbf16>
    %239 = vector.shape_cast %238 : vector<1x32x64xbf16> to vector<32x64xbf16>
    %cst_123 = arith.constant dense<0.000000e+00> : vector<64x64xf32>
    %240 = tpu.matmul %237, %239, %cst_123 {dimension_numbers = #tpu.dot_dimension_numbers<[1], [0], [0], [1], [0, 0, 1, 1], [], []>} : vector<64x32xbf16>, vector<32x64xbf16>, vector<64x64xf32> -> vector<64x64xf32>
    %c1_124 = arith.constant 1 : index
    %c0_125 = arith.constant 0 : index
    %c0_126 = arith.constant 0 : index
    %241 = vector.load %arg9[%c1_124, %c0_125, %c0_126] : memref<2x1x64xf32, #tpu.memory_space<vmem>>, vector<1x1x64xf32>
    %242 = vector.shape_cast %241 : vector<1x1x64xf32> to vector<1x64xf32>
    %243 = vector.broadcast %242 : vector<1x64xf32> to vector<64x64xf32>
    %244 = arith.addf %240, %243 : vector<64x64xf32>
    %245 = vector.extract_strided_slice %244 {offsets = [0, 0], sizes = [64, 32], strides = [1, 1]} : vector<64x64xf32> to vector<64x32xf32>
    %246 = arith.truncf %245 : vector<64x32xf32> to vector<64x32xbf16>
    %247 = vector.extract_strided_slice %244 {offsets = [0, 32], sizes = [64, 32], strides = [1, 1]} : vector<64x64xf32> to vector<64x32xf32>
    %248 = arith.truncf %247 : vector<64x32xf32> to vector<64x32xbf16>
    %c1_127 = arith.constant 1 : index
    %c0_128 = arith.constant 0 : index
    %c0_129 = arith.constant 0 : index
    %249 = vector.load %arg10[%c1_127, %c0_128, %c0_129] : memref<2x32x32xbf16, #tpu.memory_space<vmem>>, vector<1x32x32xbf16>
    %250 = vector.shape_cast %249 : vector<1x32x32xbf16> to vector<32x32xbf16>
    %cst_130 = arith.constant 0.000000e+00 : f32
    %251 = vector.broadcast %cst_130 : f32 to vector<64x32xf32>
    %252 = vector.extract_strided_slice %236 {offsets = [0, 0], sizes = [64, 8], strides = [1, 1]} : vector<64x32xbf16> to vector<64x8xbf16>
    %253 = vector.extract_strided_slice %246 {offsets = [0, 0], sizes = [64, 8], strides = [1, 1]} : vector<64x32xbf16> to vector<64x8xbf16>
    %cst_131 = arith.constant dense<0.000000e+00> : vector<64x64xf32>
    %254 = tpu.matmul %252, %253, %cst_131 {dimension_numbers = #tpu.dot_dimension_numbers<[1], [1], [0], [0], [0, 0, 1, 0], [], []>} : vector<64x8xbf16>, vector<64x8xbf16>, vector<64x64xf32> -> vector<64x64xf32>
    %255 = arith.addf %254, %0 : vector<64x64xf32>
    %cst_132 = arith.constant dense<0xFF800000> : vector<64xf32>
    %256 = vector.multi_reduction <maximumf>, %255, %cst_132 [1] : vector<64x64xf32> to vector<64xf32>
    %257 = vector.shape_cast %256 : vector<64xf32> to vector<64x1xf32>
    %258 = vector.broadcast %257 : vector<64x1xf32> to vector<64x64xf32>
    %259 = arith.subf %255, %258 : vector<64x64xf32>
    %260 = math.exp %259 : vector<64x64xf32>
    %cst_133 = arith.constant dense<0.000000e+00> : vector<64xf32>
    %261 = vector.multi_reduction <add>, %260, %cst_133 [1] : vector<64x64xf32> to vector<64xf32>
    %262 = vector.shape_cast %261 : vector<64xf32> to vector<64x1xf32>
    %263 = tpu.reciprocal %262 {approx = true} : vector<64x1xf32> -> vector<64x1xf32>
    %264 = vector.broadcast %263 : vector<64x1xf32> to vector<64x64xf32>
    %265 = arith.mulf %260, %264 : vector<64x64xf32>
    %266 = arith.truncf %265 : vector<64x64xf32> to vector<64x64xbf16>
    %267 = vector.extract_strided_slice %248 {offsets = [0, 0], sizes = [64, 8], strides = [1, 1]} : vector<64x32xbf16> to vector<64x8xbf16>
    %cst_134 = arith.constant dense<0.000000e+00> : vector<64x8xf32>
    %268 = tpu.matmul %266, %267, %cst_134 {dimension_numbers = #tpu.dot_dimension_numbers<[1], [0], [0], [1], [0, 0, 1, 1], [], []>} : vector<64x64xbf16>, vector<64x8xbf16>, vector<64x8xf32> -> vector<64x8xf32>
    %269 = arith.truncf %268 : vector<64x8xf32> to vector<64x8xbf16>
    %270 = vector.extract_strided_slice %250 {offsets = [0, 0], sizes = [8, 32], strides = [1, 1]} : vector<32x32xbf16> to vector<8x32xbf16>
    %cst_135 = arith.constant dense<0.000000e+00> : vector<64x32xf32>
    %271 = tpu.matmul %269, %270, %cst_135 {dimension_numbers = #tpu.dot_dimension_numbers<[1], [0], [0], [1], [0, 0, 1, 1], [], []>} : vector<64x8xbf16>, vector<8x32xbf16>, vector<64x32xf32> -> vector<64x32xf32>
    %272 = arith.addf %251, %271 : vector<64x32xf32>
    %273 = vector.extract_strided_slice %236 {offsets = [0, 8], sizes = [64, 8], strides = [1, 1]} : vector<64x32xbf16> to vector<64x8xbf16>
    %274 = vector.extract_strided_slice %246 {offsets = [0, 8], sizes = [64, 8], strides = [1, 1]} : vector<64x32xbf16> to vector<64x8xbf16>
    %cst_136 = arith.constant dense<0.000000e+00> : vector<64x64xf32>
    %275 = tpu.matmul %273, %274, %cst_136 {dimension_numbers = #tpu.dot_dimension_numbers<[1], [1], [0], [0], [0, 0, 1, 0], [], []>} : vector<64x8xbf16>, vector<64x8xbf16>, vector<64x64xf32> -> vector<64x64xf32>
    %276 = arith.addf %275, %0 : vector<64x64xf32>
    %cst_137 = arith.constant dense<0xFF800000> : vector<64xf32>
    %277 = vector.multi_reduction <maximumf>, %276, %cst_137 [1] : vector<64x64xf32> to vector<64xf32>
    %278 = vector.shape_cast %277 : vector<64xf32> to vector<64x1xf32>
    %279 = vector.broadcast %278 : vector<64x1xf32> to vector<64x64xf32>
    %280 = arith.subf %276, %279 : vector<64x64xf32>
    %281 = math.exp %280 : vector<64x64xf32>
    %cst_138 = arith.constant dense<0.000000e+00> : vector<64xf32>
    %282 = vector.multi_reduction <add>, %281, %cst_138 [1] : vector<64x64xf32> to vector<64xf32>
    %283 = vector.shape_cast %282 : vector<64xf32> to vector<64x1xf32>
    %284 = tpu.reciprocal %283 {approx = true} : vector<64x1xf32> -> vector<64x1xf32>
    %285 = vector.broadcast %284 : vector<64x1xf32> to vector<64x64xf32>
    %286 = arith.mulf %281, %285 : vector<64x64xf32>
    %287 = arith.truncf %286 : vector<64x64xf32> to vector<64x64xbf16>
    %288 = vector.extract_strided_slice %248 {offsets = [0, 8], sizes = [64, 8], strides = [1, 1]} : vector<64x32xbf16> to vector<64x8xbf16>
    %cst_139 = arith.constant dense<0.000000e+00> : vector<64x8xf32>
    %289 = tpu.matmul %287, %288, %cst_139 {dimension_numbers = #tpu.dot_dimension_numbers<[1], [0], [0], [1], [0, 0, 1, 1], [], []>} : vector<64x64xbf16>, vector<64x8xbf16>, vector<64x8xf32> -> vector<64x8xf32>
    %290 = arith.truncf %289 : vector<64x8xf32> to vector<64x8xbf16>
    %291 = vector.extract_strided_slice %250 {offsets = [8, 0], sizes = [8, 32], strides = [1, 1]} : vector<32x32xbf16> to vector<8x32xbf16>
    %cst_140 = arith.constant dense<0.000000e+00> : vector<64x32xf32>
    %292 = tpu.matmul %290, %291, %cst_140 {dimension_numbers = #tpu.dot_dimension_numbers<[1], [0], [0], [1], [0, 0, 1, 1], [], []>} : vector<64x8xbf16>, vector<8x32xbf16>, vector<64x32xf32> -> vector<64x32xf32>
    %293 = arith.addf %272, %292 : vector<64x32xf32>
    %294 = vector.extract_strided_slice %236 {offsets = [0, 16], sizes = [64, 8], strides = [1, 1]} : vector<64x32xbf16> to vector<64x8xbf16>
    %295 = vector.extract_strided_slice %246 {offsets = [0, 16], sizes = [64, 8], strides = [1, 1]} : vector<64x32xbf16> to vector<64x8xbf16>
    %cst_141 = arith.constant dense<0.000000e+00> : vector<64x64xf32>
    %296 = tpu.matmul %294, %295, %cst_141 {dimension_numbers = #tpu.dot_dimension_numbers<[1], [1], [0], [0], [0, 0, 1, 0], [], []>} : vector<64x8xbf16>, vector<64x8xbf16>, vector<64x64xf32> -> vector<64x64xf32>
    %297 = arith.addf %296, %0 : vector<64x64xf32>
    %cst_142 = arith.constant dense<0xFF800000> : vector<64xf32>
    %298 = vector.multi_reduction <maximumf>, %297, %cst_142 [1] : vector<64x64xf32> to vector<64xf32>
    %299 = vector.shape_cast %298 : vector<64xf32> to vector<64x1xf32>
    %300 = vector.broadcast %299 : vector<64x1xf32> to vector<64x64xf32>
    %301 = arith.subf %297, %300 : vector<64x64xf32>
    %302 = math.exp %301 : vector<64x64xf32>
    %cst_143 = arith.constant dense<0.000000e+00> : vector<64xf32>
    %303 = vector.multi_reduction <add>, %302, %cst_143 [1] : vector<64x64xf32> to vector<64xf32>
    %304 = vector.shape_cast %303 : vector<64xf32> to vector<64x1xf32>
    %305 = tpu.reciprocal %304 {approx = true} : vector<64x1xf32> -> vector<64x1xf32>
    %306 = vector.broadcast %305 : vector<64x1xf32> to vector<64x64xf32>
    %307 = arith.mulf %302, %306 : vector<64x64xf32>
    %308 = arith.truncf %307 : vector<64x64xf32> to vector<64x64xbf16>
    %309 = vector.extract_strided_slice %248 {offsets = [0, 16], sizes = [64, 8], strides = [1, 1]} : vector<64x32xbf16> to vector<64x8xbf16>
    %cst_144 = arith.constant dense<0.000000e+00> : vector<64x8xf32>
    %310 = tpu.matmul %308, %309, %cst_144 {dimension_numbers = #tpu.dot_dimension_numbers<[1], [0], [0], [1], [0, 0, 1, 1], [], []>} : vector<64x64xbf16>, vector<64x8xbf16>, vector<64x8xf32> -> vector<64x8xf32>
    %311 = arith.truncf %310 : vector<64x8xf32> to vector<64x8xbf16>
    %312 = vector.extract_strided_slice %250 {offsets = [16, 0], sizes = [8, 32], strides = [1, 1]} : vector<32x32xbf16> to vector<8x32xbf16>
    %cst_145 = arith.constant dense<0.000000e+00> : vector<64x32xf32>
    %313 = tpu.matmul %311, %312, %cst_145 {dimension_numbers = #tpu.dot_dimension_numbers<[1], [0], [0], [1], [0, 0, 1, 1], [], []>} : vector<64x8xbf16>, vector<8x32xbf16>, vector<64x32xf32> -> vector<64x32xf32>
    %314 = arith.addf %293, %313 : vector<64x32xf32>
    %315 = vector.extract_strided_slice %236 {offsets = [0, 24], sizes = [64, 8], strides = [1, 1]} : vector<64x32xbf16> to vector<64x8xbf16>
    %316 = vector.extract_strided_slice %246 {offsets = [0, 24], sizes = [64, 8], strides = [1, 1]} : vector<64x32xbf16> to vector<64x8xbf16>
    %cst_146 = arith.constant dense<0.000000e+00> : vector<64x64xf32>
    %317 = tpu.matmul %315, %316, %cst_146 {dimension_numbers = #tpu.dot_dimension_numbers<[1], [1], [0], [0], [0, 0, 1, 0], [], []>} : vector<64x8xbf16>, vector<64x8xbf16>, vector<64x64xf32> -> vector<64x64xf32>
    %318 = arith.addf %317, %0 : vector<64x64xf32>
    %cst_147 = arith.constant dense<0xFF800000> : vector<64xf32>
    %319 = vector.multi_reduction <maximumf>, %318, %cst_147 [1] : vector<64x64xf32> to vector<64xf32>
    %320 = vector.shape_cast %319 : vector<64xf32> to vector<64x1xf32>
    %321 = vector.broadcast %320 : vector<64x1xf32> to vector<64x64xf32>
    %322 = arith.subf %318, %321 : vector<64x64xf32>
    %323 = math.exp %322 : vector<64x64xf32>
    %cst_148 = arith.constant dense<0.000000e+00> : vector<64xf32>
    %324 = vector.multi_reduction <add>, %323, %cst_148 [1] : vector<64x64xf32> to vector<64xf32>
    %325 = vector.shape_cast %324 : vector<64xf32> to vector<64x1xf32>
    %326 = tpu.reciprocal %325 {approx = true} : vector<64x1xf32> -> vector<64x1xf32>
    %327 = vector.broadcast %326 : vector<64x1xf32> to vector<64x64xf32>
    %328 = arith.mulf %323, %327 : vector<64x64xf32>
    %329 = arith.truncf %328 : vector<64x64xf32> to vector<64x64xbf16>
    %330 = vector.extract_strided_slice %248 {offsets = [0, 24], sizes = [64, 8], strides = [1, 1]} : vector<64x32xbf16> to vector<64x8xbf16>
    %cst_149 = arith.constant dense<0.000000e+00> : vector<64x8xf32>
    %331 = tpu.matmul %329, %330, %cst_149 {dimension_numbers = #tpu.dot_dimension_numbers<[1], [0], [0], [1], [0, 0, 1, 1], [], []>} : vector<64x64xbf16>, vector<64x8xbf16>, vector<64x8xf32> -> vector<64x8xf32>
    %332 = arith.truncf %331 : vector<64x8xf32> to vector<64x8xbf16>
    %333 = vector.extract_strided_slice %250 {offsets = [24, 0], sizes = [8, 32], strides = [1, 1]} : vector<32x32xbf16> to vector<8x32xbf16>
    %cst_150 = arith.constant dense<0.000000e+00> : vector<64x32xf32>
    %334 = tpu.matmul %332, %333, %cst_150 {dimension_numbers = #tpu.dot_dimension_numbers<[1], [0], [0], [1], [0, 0, 1, 1], [], []>} : vector<64x8xbf16>, vector<8x32xbf16>, vector<64x32xf32> -> vector<64x32xf32>
    %335 = arith.addf %314, %334 : vector<64x32xf32>
    %c1_151 = arith.constant 1 : index
    %c0_152 = arith.constant 0 : index
    %c0_153 = arith.constant 0 : index
    %336 = vector.load %arg11[%c1_151, %c0_152, %c0_153] : memref<2x1x32xf32, #tpu.memory_space<vmem>>, vector<1x1x32xf32>
    %337 = vector.shape_cast %336 : vector<1x1x32xf32> to vector<1x32xf32>
    %338 = vector.broadcast %337 : vector<1x32xf32> to vector<64x32xf32>
    %339 = arith.addf %335, %338 : vector<64x32xf32>
    %340 = arith.addf %67, %339 : vector<64x32xf32>
    %cst_154 = arith.constant dense<0.000000e+00> : vector<64xf32>
    %341 = vector.multi_reduction <add>, %340, %cst_154 [1] : vector<64x32xf32> to vector<64xf32>
    %342 = vector.shape_cast %341 : vector<64xf32> to vector<64x1xf32>
    %cst_155 = arith.constant 3.200000e+01 : f32
    %343 = vector.broadcast %cst_155 : f32 to vector<64x1xf32>
    %344 = arith.divf %342, %343 : vector<64x1xf32>
    %345 = vector.broadcast %344 : vector<64x1xf32> to vector<64x32xf32>
    %346 = arith.subf %340, %345 : vector<64x32xf32>
    %347 = arith.mulf %346, %346 : vector<64x32xf32>
    %cst_156 = arith.constant dense<0.000000e+00> : vector<64xf32>
    %348 = vector.multi_reduction <add>, %347, %cst_156 [1] : vector<64x32xf32> to vector<64xf32>
    %349 = vector.shape_cast %348 : vector<64xf32> to vector<64x1xf32>
    %cst_157 = arith.constant 3.200000e+01 : f32
    %350 = vector.broadcast %cst_157 : f32 to vector<64x1xf32>
    %351 = arith.divf %349, %350 : vector<64x1xf32>
    %cst_158 = arith.constant 9.99999974E-6 : f32
    %352 = vector.broadcast %cst_158 : f32 to vector<64x1xf32>
    %353 = arith.addf %351, %352 : vector<64x1xf32>
    %354 = math.rsqrt %353 : vector<64x1xf32>
    %355 = vector.broadcast %354 : vector<64x1xf32> to vector<64x32xf32>
    %356 = arith.mulf %346, %355 : vector<64x32xf32>
    %357 = arith.truncf %356 : vector<64x32xf32> to vector<64x32xbf16>
    %c1_159 = arith.constant 1 : index
    %c0_160 = arith.constant 0 : index
    %c0_161 = arith.constant 0 : index
    %358 = vector.load %arg12[%c1_159, %c0_160, %c0_161] : memref<2x32x128xbf16, #tpu.memory_space<vmem>>, vector<1x32x128xbf16>
    %359 = vector.shape_cast %358 : vector<1x32x128xbf16> to vector<32x128xbf16>
    %cst_162 = arith.constant dense<0.000000e+00> : vector<64x128xf32>
    %360 = tpu.matmul %357, %359, %cst_162 {dimension_numbers = #tpu.dot_dimension_numbers<[1], [0], [0], [1], [0, 0, 1, 1], [], []>} : vector<64x32xbf16>, vector<32x128xbf16>, vector<64x128xf32> -> vector<64x128xf32>
    %c1_163 = arith.constant 1 : index
    %c0_164 = arith.constant 0 : index
    %c0_165 = arith.constant 0 : index
    %361 = vector.load %arg13[%c1_163, %c0_164, %c0_165] : memref<2x1x128xf32, #tpu.memory_space<vmem>>, vector<1x1x128xf32>
    %362 = vector.shape_cast %361 : vector<1x1x128xf32> to vector<1x128xf32>
    %363 = vector.broadcast %362 : vector<1x128xf32> to vector<64x128xf32>
    %364 = arith.addf %360, %363 : vector<64x128xf32>
    %365 = arith.mulf %364, %364 : vector<64x128xf32>
    %366 = arith.mulf %364, %365 : vector<64x128xf32>
    %cst_166 = arith.constant 4.471500e-02 : f32
    %367 = vector.broadcast %cst_166 : f32 to vector<64x128xf32>
    %368 = arith.mulf %367, %366 : vector<64x128xf32>
    %369 = arith.addf %364, %368 : vector<64x128xf32>
    %cst_167 = arith.constant 0.797884583 : f32
    %370 = vector.broadcast %cst_167 : f32 to vector<64x128xf32>
    %371 = arith.mulf %370, %369 : vector<64x128xf32>
    %372 = math.tanh %371 : vector<64x128xf32>
    %cst_168 = arith.constant 1.000000e+00 : f32
    %373 = vector.broadcast %cst_168 : f32 to vector<64x128xf32>
    %374 = arith.addf %373, %372 : vector<64x128xf32>
    %cst_169 = arith.constant 5.000000e-01 : f32
    %375 = vector.broadcast %cst_169 : f32 to vector<64x128xf32>
    %376 = arith.mulf %375, %374 : vector<64x128xf32>
    %377 = arith.mulf %364, %376 : vector<64x128xf32>
    %378 = arith.truncf %377 : vector<64x128xf32> to vector<64x128xbf16>
    %c1_170 = arith.constant 1 : index
    %c0_171 = arith.constant 0 : index
    %c0_172 = arith.constant 0 : index
    %379 = vector.load %arg14[%c1_170, %c0_171, %c0_172] : memref<2x128x32xbf16, #tpu.memory_space<vmem>>, vector<1x128x32xbf16>
    %380 = vector.shape_cast %379 : vector<1x128x32xbf16> to vector<128x32xbf16>
    %cst_173 = arith.constant dense<0.000000e+00> : vector<64x32xf32>
    %381 = tpu.matmul %378, %380, %cst_173 {dimension_numbers = #tpu.dot_dimension_numbers<[1], [0], [0], [1], [0, 0, 1, 1], [], []>} : vector<64x128xbf16>, vector<128x32xbf16>, vector<64x32xf32> -> vector<64x32xf32>
    %c1_174 = arith.constant 1 : index
    %c0_175 = arith.constant 0 : index
    %c0_176 = arith.constant 0 : index
    %382 = vector.load %arg15[%c1_174, %c0_175, %c0_176] : memref<2x1x32xf32, #tpu.memory_space<vmem>>, vector<1x1x32xf32>
    %383 = vector.shape_cast %382 : vector<1x1x32xf32> to vector<1x32xf32>
    %384 = vector.broadcast %383 : vector<1x32xf32> to vector<64x32xf32>
    %385 = arith.addf %381, %384 : vector<64x32xf32>
    %386 = arith.addf %340, %385 : vector<64x32xf32>
    %c0_177 = arith.constant 0 : index
    %c0_178 = arith.constant 0 : index
    %387 = vector.load %arg16[%c0_177, %c0_178] : memref<64x64xf32, #tpu.memory_space<vmem>>, vector<64x32xf32>
    tpu.vector_store %arg16[%c0_177, %c0_178], %227 {strides = array<i32>} : memref<64x64xf32, #tpu.memory_space<vmem>>, vector<64x32xf32>,
    %c0_179 = arith.constant 0 : index
    %c32 = arith.constant 32 : index
    %388 = vector.load %arg16[%c0_179, %c32] : memref<64x64xf32, #tpu.memory_space<vmem>>, vector<64x32xf32>
    tpu.vector_store %arg16[%c0_179, %c32], %386 {strides = array<i32>} : memref<64x64xf32, #tpu.memory_space<vmem>>, vector<64x32xf32>,
    return
  }
  func.func @transform_0(%arg0: i32) -> (i32, i32, i32) {
    %c0_i32 = arith.constant 0 : i32
    %c0_i32_0 = arith.constant 0 : i32
    %c0_i32_1 = arith.constant 0 : i32
    return %arg0, %c0_i32, %c0_i32_0 : i32, i32, i32
  }
  func.func @transform_1(%arg0: i32) -> (i32, i32, i32) {
    %c0_i32 = arith.constant 0 : i32
    %c0_i32_0 = arith.constant 0 : i32
    %c0_i32_1 = arith.constant 0 : i32
    return %arg0, %c0_i32, %c0_i32_0 : i32, i32, i32
  }
  func.func @transform_2(%arg0: i32) -> (i32, i32) {
    %c0_i32 = arith.constant 0 : i32
    %c0_i32_0 = arith.constant 0 : i32
    %c0_i32_1 = arith.constant 0 : i32
    return %c0_i32, %c0_i32_0 : i32, i32
  }
  func.func @transform_3(%arg0: i32) -> (i32, i32, i32) {
    %c0_i32 = arith.constant 0 : i32
    %c0_i32_0 = arith.constant 0 : i32
    %c0_i32_1 = arith.constant 0 : i32
    %c0_i32_2 = arith.constant 0 : i32
    return %c0_i32, %c0_i32_0, %c0_i32_1 : i32, i32, i32
  }
  func.func @transform_4(%arg0: i32) -> (i32, i32, i32) {
    %c0_i32 = arith.constant 0 : i32
    %c0_i32_0 = arith.constant 0 : i32
    %c0_i32_1 = arith.constant 0 : i32
    %c0_i32_2 = arith.constant 0 : i32
    return %c0_i32, %c0_i32_0, %c0_i32_1 : i32, i32, i32
  }
  func.func @transform_5(%arg0: i32) -> (i32, i32, i32) {
    %c0_i32 = arith.constant 0 : i32
    %c0_i32_0 = arith.constant 0 : i32
    %c0_i32_1 = arith.constant 0 : i32
    %c0_i32_2 = arith.constant 0 : i32
    return %c0_i32, %c0_i32_0, %c0_i32_1 : i32, i32, i32
  }
  func.func @transform_6(%arg0: i32) -> (i32, i32, i32) {
    %c0_i32 = arith.constant 0 : i32
    %c0_i32_0 = arith.constant 0 : i32
    %c0_i32_1 = arith.constant 0 : i32
    %c0_i32_2 = arith.constant 0 : i32
    return %c0_i32, %c0_i32_0, %c0_i32_1 : i32, i32, i32
  }
  func.func @transform_7(%arg0: i32) -> (i32, i32, i32) {
    %c0_i32 = arith.constant 0 : i32
    %c0_i32_0 = arith.constant 0 : i32
    %c0_i32_1 = arith.constant 0 : i32
    %c0_i32_2 = arith.constant 0 : i32
    return %c0_i32, %c0_i32_0, %c0_i32_1 : i32, i32, i32
  }
  func.func @transform_8(%arg0: i32) -> (i32, i32, i32) {
    %c0_i32 = arith.constant 0 : i32
    %c0_i32_0 = arith.constant 0 : i32
    %c0_i32_1 = arith.constant 0 : i32
    %c0_i32_2 = arith.constant 0 : i32
    return %c0_i32, %c0_i32_0, %c0_i32_1 : i32, i32, i32
  }
  func.func @transform_9(%arg0: i32) -> (i32, i32, i32) {
    %c0_i32 = arith.constant 0 : i32
    %c0_i32_0 = arith.constant 0 : i32
    %c0_i32_1 = arith.constant 0 : i32
    %c0_i32_2 = arith.constant 0 : i32
    return %c0_i32, %c0_i32_0, %c0_i32_1 : i32, i32, i32
  }
  func.func @transform_10(%arg0: i32) -> (i32, i32, i32) {
    %c0_i32 = arith.constant 0 : i32
    %c0_i32_0 = arith.constant 0 : i32
    %c0_i32_1 = arith.constant 0 : i32
    %c0_i32_2 = arith.constant 0 : i32
    return %c0_i32, %c0_i32_0, %c0_i32_1 : i32, i32, i32
  }
  func.func @transform_11(%arg0: i32) -> (i32, i32, i32) {
    %c0_i32 = arith.constant 0 : i32
    %c0_i32_0 = arith.constant 0 : i32
    %c0_i32_1 = arith.constant 0 : i32
    %c0_i32_2 = arith.constant 0 : i32
    return %c0_i32, %c0_i32_0, %c0_i32_1 : i32, i32, i32
  }
  func.func @transform_12(%arg0: i32) -> (i32, i32, i32) {
    %c0_i32 = arith.constant 0 : i32
    %c0_i32_0 = arith.constant 0 : i32
    %c0_i32_1 = arith.constant 0 : i32
    %c0_i32_2 = arith.constant 0 : i32
    return %c0_i32, %c0_i32_0, %c0_i32_1 : i32, i32, i32
  }
  func.func @transform_13(%arg0: i32) -> (i32, i32, i32) {
    %c0_i32 = arith.constant 0 : i32
    %c0_i32_0 = arith.constant 0 : i32
    %c0_i32_1 = arith.constant 0 : i32
    %c0_i32_2 = arith.constant 0 : i32
    return %c0_i32, %c0_i32_0, %c0_i32_1 : i32, i32, i32
  }
  func.func @transform_14(%arg0: i32) -> (i32, i32, i32) {
    %c0_i32 = arith.constant 0 : i32
    %c0_i32_0 = arith.constant 0 : i32
    %c0_i32_1 = arith.constant 0 : i32
    %c0_i32_2 = arith.constant 0 : i32
    return %c0_i32, %c0_i32_0, %c0_i32_1 : i32, i32, i32
  }
  func.func @transform_15(%arg0: i32) -> (i32, i32) {
    %c0_i32 = arith.constant 0 : i32
    %c0_i32_0 = arith.constant 0 : i32
    return %arg0, %c0_i32 : i32, i32
  }
}

</mosaic_0001>

<bundles_post_ra>
// kernel: tpu_custom_call.1
= control target key start
LH: loop header
LB: loop body
LE: loop exit
PB: predicated region body
PF: predicated region fallthrough
CT: control target
= control target key end

     0   :  { %s5605_s18 = smov 0   ;;  %s7538_s0 = inlined_call_operand.vmem [shape: f32[8,32,16], index: 0, kind: input, shape index: {}]   ;;  %s7539_s1 = inlined_call_operand.vmem [shape: f32[8,32,16], index: 1, kind: input, shape index: {}]   ;;  %s7540_s2 = inlined_call_operand.vmem [shape: f32[64,64], index: 2, kind: input, shape index: {}]   ;;  %s7541_s3 = inlined_call_operand.vmem [shape: f32[2,32,64], index: 3, kind: input, shape index: {}]   ;;  %s7542_s4 = inlined_call_operand.vmem [shape: f32[2,1,64], index: 4, kind: input, shape index: {}]   ;;  %s7543_s5 = inlined_call_operand.vmem [shape: bf16[2,32,32], index: 5, kind: input, shape index: {}]   ;;  %s7544_s6 = inlined_call_operand.vmem [shape: f32[2,1,32], index: 6, kind: input, shape index: {}]   ;;  %s7545_s7 = inlined_call_operand.vmem [shape: bf16[2,32,64], index: 7, kind: input, shape index: {}]   ;;  %s7546_s8 = inlined_call_operand.vmem [shape: f32[2,1,64], index: 8, kind: input, shape index: {}]   ;;  %s7547_s9 = inlined_call_operand.vmem [shape: bf16[2,32,32], index: 9, kind: input, shape index: {}]   ;;  %s7548_s10 = inlined_call_operand.vmem [shape: f32[2,1,32], index: 10, kind: input, shape index: {}]   ;;  %s7549_s11 = inlined_call_operand.vmem [shape: bf16[2,32,128], index: 11, kind: input, shape index: {}]   ;;  %s7550_s12 = inlined_call_operand.vmem [shape: f32[2,1,128], index: 12, kind: input, shape index: {}]   ;;  %s7551_s13 = inlined_call_operand.vmem [shape: bf16[2,128,32], index: 13, kind: input, shape index: {}]   ;;  %s7552_s14 = inlined_call_operand.vmem [shape: f32[2,1,32], index: 14, kind: input, shape index: {}]   ;;  %s7553_s15 = inlined_call_operand.vmem [shape: f32[128,64], index: 15, kind: output, shape index: {}]  }
   0x1 LB: > { %s4753_s19 = sadd.s32 4294967295, %s5514_s18   ;;  %p4757_p0 = scmp.ge.s32.totalorder %s5514_s18, 1  ;;  %s5514_s18 = sphi %s5605_s18, %s25_s18  }
   0x2   : > { %p451_p1 = scmp.lt.s32.totalorder %s5514_s18, 3 }
   0x4   : > { %p452_p2 = pnand %p4757_p0, %p451_p1 }
   0x6   : > { %455 = sbr.rel (%p452_p2) target bundleno = 4844 (0x12ec), region = 80 }
   0xb   : > { %s4758_s20 = sshll.u32 %s4753_s19, 2  ;;  %v538_v24 = vld [vmem:[%s7541_s3 + $0x18] sm:$0xff]  ;;  %v537_v25 = vld [vmem:[%s7541_s3 + $0x10] sm:$0xff]  ;;  %v536_v26 = vld [vmem:[%s7541_s3 + $0x8] sm:$0xff]  ;;  %vm575_vm0 = vcmask 261120   ;;  %s5516_s26 = smov 96  }
   0xc   : > { %p507_p3 = scmp.lt.s32.totalorder %s4758_s20, 7  ;;  %594 = vmatpush.msra.mxu0 %v538_v24  ;;  %660 = vmatpush.msra.mxu1 %v538_v24  ;;  %v535_v27 = vld [vmem:[%s7541_s3] sm:$0xff]  ;;  %v4789_v36 = vld [vmem:[%s7541_s3 + $0x38] sm:$0xff]  ;;  %v4788_v37 = vld [vmem:[%s7541_s3 + $0x30] sm:$0xff]  ;;  %vm1442_vm1 = vcmask 64512   ;;  %vm1496_vm2 = vcmask 523264  }
   0xd   : > { %5112 = vmatpush.msra.mxu2 %v538_v24  ;;  %792 = vmatpush.msra.mxu3 %v538_v24  ;;  %v4787_v38 = vld [vmem:[%s7541_s3 + $0x28] sm:$0xff]  ;;  %v4786_v39 = vld [vmem:[%s7541_s3 + $0x20] sm:$0xff]  ;;  %s5517_s28 = smov 120   ;;  %s5518_s29 = smov 112   ;;  %vm1876_vm3 = vcmask 1043456  }
   0xe   : > { %s7593_s20 = smov (!%p507_p3, %s4758_s20), 7  ;;  %595 = vmatpush.msra.mxu0 %v537_v25  ;;  %661 = vmatpush.msra.mxu1 %v537_v25  ;;  %v5085_v57 = vld [vmem:[%s7543_s5 + $0x8] sm:$0xff]  ;;  %v5703_v58 = vld [vmem:[%s7542_s4] ss:$0 sm:$0xff]  ;;  %s5520_s17 = smov 88  }
   0xf   : > { %s5082_s21 = sshll.u32 %s7593_s20, 5  ;;  %5113 = vmatpush.msra.mxu2 %v537_v25  ;;  %793 = vmatpush.msra.mxu3 %v537_v25  ;;  %v5084_v59 = vld [vmem:[%s7543_s5] sm:$0xff]  ;;  %s7566_s20 = smov 80  }
  0x10   : > { %s5618_s24 = scalar_lea.vmem %s7538_s0, %s5082_s21  ;;  %s5635_s27 = scalar_lea.vmem %s7539_s1, %s5082_s21  ;;  %596 = vmatpush.msra.mxu0 %v536_v26  ;;  %662 = vmatpush.msra.mxu1 %v536_v26 }
  0x11   : > { %v4774_v0 = vld [vmem:[%s5618_s24 + $0x40] sm:$0xff]  ;;  %v4775_v3 = vld [vmem:[%s5618_s24 + $0x48] sm:$0xff]  ;;  %v4776_v6 = vld [vmem:[%s5618_s24 + $0x50] sm:$0xff]  ;;  %5114 = vmatpush.msra.mxu2 %v536_v26  ;;  %794 = vmatpush.msra.mxu3 %v536_v26  ;;  %s7564_s21 = smov 72  }
  0x12   : > { %v539_v1 = vld [vmem:[%s5618_s24] sm:$0xff]  ;;  %676 = vxpose.xlu1.b32.start [1/4] (short) (narrow) %v4774_v0, 16  ;;  %v540_v4 = vld [vmem:[%s5618_s24 + $0x8] sm:$0xff]  ;;  %v541_v7 = vld [vmem:[%s5618_s24 + $0x10] sm:$0xff]  ;;  %597 = vmatpush.msra.mxu0 %v535_v27 }
  0x13   : > { %543 = vxpose.xlu0.b32.start [1/4] (short) (narrow) %v539_v1, 16  ;;  %v4768_v2 = vld [vmem:[%s5618_s24 + $0x20] sm:$0xff]  ;;  %v4769_v5 = vld [vmem:[%s5618_s24 + $0x28] sm:$0xff]  ;;  %v4770_v8 = vld [vmem:[%s5618_s24 + $0x30] sm:$0xff]  ;;  %663 = vmatpush.msra.mxu1 %v535_v27 }
  0x14   : > { %610 = vxpose.xlu2.b32.start [1/4] (short) (narrow) %v4768_v2, 16  ;;  %v4777_v9 = vld [vmem:[%s5618_s24 + $0x58] sm:$0xff]  ;;  %v4792_v12 = vld [vmem:[%s5635_s27 + $0x20] sm:$0xff]  ;;  %v4793_v15 = vld [vmem:[%s5635_s27 + $0x28] sm:$0xff]  ;;  %726 = vmatpush.msrb.mxu0 %v538_v24 }
  0x15   : > { %v542_v10 = vld [vmem:[%s5618_s24 + $0x18] sm:$0xff]  ;;  %v892_v13 = vld [vmem:[%s5635_s27] sm:$0xff]  ;;  %v893_v16 = vld [vmem:[%s5635_s27 + $0x8] sm:$0xff]  ;;  %5115 = vmatpush.msra.mxu2 %v535_v27  ;;  %795 = vmatpush.msra.mxu3 %v535_v27 }
  0x16   : > { %v4771_v11 = vld [vmem:[%s5618_s24 + $0x38] sm:$0xff]  ;;  %v4780_v14 = vld [vmem:[%s5618_s24 + $0x60] sm:$0xff]  ;;  %v4781_v17 = vld [vmem:[%s5618_s24 + $0x68] sm:$0xff]  ;;  %727 = vmatpush.msrb.mxu0 %v537_v25  ;;  %1012 = vmatpush.msrb.mxu1 %v4789_v36 }
  0x17   : > { %v4794_v18 = vld [vmem:[%s5635_s27 + $0x30] sm:$0xff]  ;;  %v4795_v21 = vld [vmem:[%s5635_s27 + $0x38] sm:$0xff]  ;;  %v4798_v28 = vld [vmem:[%s5635_s27 + $0x40] sm:$0xff]  ;;  %1078 = vmatpush.msrb.mxu2 %v4789_v36  ;;  %1144 = vmatpush.msrb.mxu3 %v4789_v36 }
  0x18   : > { %v894_v19 = vld [vmem:[%s5635_s27 + $0x10] sm:$0xff]  ;;  %v895_v22 = vld [vmem:[%s5635_s27 + $0x18] sm:$0xff]  ;;  %v4804_v29 = vld [vmem:[%s5635_s27 + $0x60] sm:$0xff]  ;;  %728 = vmatpush.msrb.mxu0 %v536_v26  ;;  %1013 = vmatpush.msrb.mxu1 %v4788_v37 }
  0x19   : > { %v4782_v20 = vld [vmem:[%s5618_s24 + $0x70] sm:$0xff]  ;;  %v4783_v23 = vld [vmem:[%s5618_s24 + $0x78] sm:$0xff]  ;;  %v4799_v30 = vld [vmem:[%s5635_s27 + $0x48] sm:$0xff]  ;;  %1079 = vmatpush.msrb.mxu2 %v4788_v37  ;;  %1145 = vmatpush.msrb.mxu3 %v4788_v37 }
  0x1a   : > { %677 = vxpose.xlu1.b32.cont [2/4] (short) (narrow) %v4775_v3, 16  ;;  %v4805_v31 = vld [vmem:[%s5635_s27 + $0x68] sm:$0xff]  ;;  %729 = vmatpush.msrb.mxu0 %v535_v27  ;;  %v4800_v32 = vld [vmem:[%s5635_s27 + $0x50] sm:$0xff]  ;;  %v4801_v34 = vld [vmem:[%s5635_s27 + $0x58] sm:$0xff] }
  0x1b   : > { %544 = vxpose.xlu0.b32.cont [2/4] (short) (narrow) %v540_v4, 16  ;;  %v4806_v33 = vld [vmem:[%s5635_s27 + $0x70] sm:$0xff]  ;;  %v4807_v35 = vld [vmem:[%s5635_s27 + $0x78] sm:$0xff]  ;;  %1014 = vmatpush.msrb.mxu1 %v4787_v38  ;;  %s5519_s27 = smov 104  }
  0x1c   : > { %611 = vxpose.xlu2.b32.cont [2/4] (short) (narrow) %v4769_v5, 16  ;;  %1080 = vmatpush.msrb.mxu2 %v4787_v38 }
  0x1d   : > { %1146 = vmatpush.msrb.mxu3 %v4787_v38  ;;  %1015 = vmatpush.msrb.mxu1 %v4786_v39 }
  0x1e   : > { %1081 = vmatpush.msrb.mxu2 %v4786_v39 }
  0x1f   : > { %1147 = vmatpush.msrb.mxu3 %v4786_v39 }
  0x22   : > { %678 = vxpose.xlu1.b32.cont [3/4] (short) (narrow) %v4776_v6, 16 }
  0x23   : > { %545 = vxpose.xlu0.b32.cont [3/4] (short) (narrow) %v541_v7, 16 }
  0x24   : > { %612 = vxpose.xlu2.b32.cont [3/4] (short) (narrow) %v4770_v8, 16 }
  0x2a   : > { %679 = vxpose.xlu1.b32.end [4/4] (short) (narrow) %v4777_v9, 16 }
  0x2b   : > { %546 = vxpose.xlu0.b32.end [4/4] (short) (narrow) %v542_v10, 16 }
  0x2c   : > { %613 = vxpose.xlu2.b32.end [4/4] (short) (narrow) %v4771_v11, 16 }
  0x32   : > { %962 = vxpose.xlu1.b32.start [1/4] (short) (narrow) %v4792_v12, 16 }
  0x33   : > { %896 = vxpose.xlu0.b32.start [1/4] (short) (narrow) %v892_v13, 16 }
  0x34   : > { %742 = vxpose.xlu2.b32.start [1/4] (short) (narrow) %v4780_v14, 16 }
  0x3a   : > { %963 = vxpose.xlu1.b32.cont [2/4] (short) (narrow) %v4793_v15, 16 }
  0x3b   : > { %897 = vxpose.xlu0.b32.cont [2/4] (short) (narrow) %v893_v16, 16 }
  0x3c   : > { %743 = vxpose.xlu2.b32.cont [2/4] (short) (narrow) %v4781_v17, 16 }
  0x42   : > { %964 = vxpose.xlu1.b32.cont [3/4] (short) (narrow) %v4794_v18, 16 }
  0x43   : > { %898 = vxpose.xlu0.b32.cont [3/4] (short) (narrow) %v894_v19, 16 }
  0x44   : > { %744 = vxpose.xlu2.b32.cont [3/4] (short) (narrow) %v4782_v20, 16 }
  0x4a   : > { %965 = vxpose.xlu1.b32.end [4/4] (short) (narrow) %v4795_v21, 16 }
  0x4b   : > { %899 = vxpose.xlu0.b32.end [4/4] (short) (narrow) %v895_v22, 16 }
  0x4c   : > { %745 = vxpose.xlu2.b32.end [4/4] (short) (narrow) %v4783_v23, 16 }
  0x52   : > { %1094 = vxpose.xlu1.b32.start [1/4] (short) (narrow) %v4804_v29, 16 }
  0x53   : > { %1028 = vxpose.xlu0.b32.start [1/4] (short) (narrow) %v4798_v28, 16 }
  0x5a   : > { %1095 = vxpose.xlu1.b32.cont [2/4] (short) (narrow) %v4805_v31, 16 }
  0x5b   : > { %1029 = vxpose.xlu0.b32.cont [2/4] (short) (narrow) %v4799_v30, 16 }
  0x62   : > { %1096 = vxpose.xlu1.b32.cont [3/4] (short) (narrow) %v4806_v33, 16 }
  0x63   : > { %1030 = vxpose.xlu0.b32.cont [3/4] (short) (narrow) %v4800_v32, 16 }
  0x6a   : > { %1097 = vxpose.xlu1.b32.end [4/4] (short) (narrow) %v4807_v35, 16 }
  0x6b   : > { %1031 = vxpose.xlu0.b32.end [4/4] (short) (narrow) %v4801_v34, 16 }
  0xad   : > { %v626_v40 = vpop.trf.xlu2 }
  0xae   : > { %4772 = vmatmul.msk.f32.vlgmr.msra.gmra.mxu1 %vm575_vm0, %v626_v40 }
  0xb5   : > { %v627_v41 = vpop.trf.xlu2 }
  0xb6   : > { %v692_v43 = vpop.trf.xlu1  ;;  %4773 = vmatmul.msk.f32.gmra.mxu1 %vm575_vm0, %v627_v41 }
  0xb7   : > { %v559_v42 = vpop.trf.xlu0 }
  0xb8   : > { %4766 = vmatmul.msk.f32.vlgmr.msra.gmra.mxu0 %vm575_vm0, %v559_v42 }
  0xb9   : > { %946 = vmatpush.msra.mxu0 %v4789_v36  ;;  %v5739_v36 = vld [vmem:[%s7542_s4 + $0x1] ss:$0 sm:$0xff] }
  0xbb   : > { %947 = vmatpush.msra.mxu0 %v4788_v37 }
  0xbd   : > { %948 = vmatpush.msra.mxu0 %v4787_v38 }
  0xbe   : > { %v693_v45 = vpop.trf.xlu1 }
  0xbf   : > { %v560_v44 = vpop.trf.xlu0  ;;  %949 = vmatpush.msra.mxu0 %v4786_v39  ;;  %4779 = vmatmul.msk.f32.vlgmr.msra.gmra.mxu2 %vm575_vm0, %v693_v45 }
  0xc0   : > { %4767 = vmatmul.msk.f32.gmra.mxu0 %vm575_vm0, %v560_v44 }
  0xc8   : > { %4778 = vmatmul.msk.f32.vlgmr.msrb.gmra.mxu0 %vm575_vm0, %v692_v43 }
  0xc9   : > { %1282 = vmatpush.bf16.msrb.mxu0 %v5085_v57 }
  0xcd   : > { %v758_v46 = vpop.trf.xlu2  ;;  %1283 = vmatpush.bf16.msrb.mxu0 %v5084_v59 }
  0xce   : > { %4784 = vmatmul.msk.f32.vlgmr.msra.gmra.mxu3 %vm575_vm0, %v758_v46 }
  0xd5   : > { %v759_v47 = vpop.trf.xlu2 }
  0xd6   : > { %v978_v48 = vpop.trf.xlu1  ;;  %4785 = vmatmul.msk.f32.gmra.mxu3 %vm575_vm0, %v759_v47 }
  0xd7   : > { %v912_v49 = vpop.trf.xlu0  ;;  %4796 = vmatmul.msk.f32.vlgmr.msrb.gmra.mxu1 %vm575_vm0, %v978_v48 }
  0xd8   : > { %4790 = vmatmul.msk.f32.vlgmr.msra.gmra.mxu0 %vm575_vm0, %v912_v49 }
  0xde   : > { %v979_v50 = vpop.trf.xlu1 }
  0xdf   : > { %v913_v51 = vpop.trf.xlu0  ;;  %4797 = vmatmul.msk.f32.gmra.mxu1 %vm575_vm0, %v979_v50 }
  0xe0   : > { %4791 = vmatmul.msk.f32.gmra.mxu0 %vm575_vm0, %v913_v51 }
  0xf6   : > { %v1110_v53 = vpop.trf.xlu1 }
  0xf7   : > { %v1044_v52 = vpop.trf.xlu0  ;;  %4808 = vmatmul.msk.f32.vlgmr.msrb.gmra.mxu3 %vm575_vm0, %v1110_v53 }
  0xf8   : > { %4802 = vmatmul.msk.f32.vlgmr.msrb.gmra.mxu2 %vm575_vm0, %v1044_v52 }
  0xfe   : > { %v1111_v55 = vpop.trf.xlu1 }
  0xff   : > { %v1045_v54 = vpop.trf.xlu0  ;;  %4809 = vmatmul.msk.f32.gmra.mxu3 %vm575_vm0, %v1111_v55 }
 0x100   : > { %4803 = vmatmul.msk.f32.gmra.mxu2 %vm575_vm0, %v1045_v54 }
 0x12b   : > { %v665_v56 = vpop.f32.mrf.mxu1 }
 0x12c   : > { %v5710_v0 = vadd.f32 %v5703_v58, %v665_v56 }
 0x12e   : > { %v817_v5 = vmul.f32 %v5710_v0, %v5710_v0 }
 0x130   : > { %v825_v11 = vmul.f32 %v817_v5, %v5710_v0 }
 0x132   : > { %v833_v15 = vmul.f32 0.044715, %v825_v11 }
 0x133   : > { %v668_v62 = vpop.f32.mrf.mxu1 }
 0x134   : > { %v5713_v2 = vadd.f32 %v5703_v58, %v668_v62  ;;  %v841_v22 = vadd.f32 %v833_v15, %v5710_v0 }
 0x135   : > { %v599_v60 = vpop.f32.mrf.mxu0 }
 0x136   : > { %v807_v61 = vadd.f32 %v5703_v58, %v599_v60  ;;  %v818_v8 = vmul.f32 %v5713_v2, %v5713_v2  ;;  %v849_v27 = vmul.f32 0.7978846, %v841_v22 }
 0x138   : > { %v815_v63 = vmul.f32 %v807_v61, %v807_v61  ;;  %v826_v13 = vmul.f32 %v818_v8, %v5713_v2 }
 0x13a   : > { %v823_v1 = vmul.f32 %v815_v63, %v807_v61  ;;  %v834_v17 = vmul.f32 0.044715, %v826_v13 }
 0x13c   : > { %v831_v3 = vmul.f32 0.044715, %v823_v1  ;;  %v842_v25 = vadd.f32 %v834_v17, %v5713_v2 }
 0x13d   : > { %v602_v4 = vpop.f32.mrf.mxu0 }
 0x13e   : > { %v839_v6 = vadd.f32 %v831_v3, %v807_v61  ;;  %v808_v7 = vadd.f32 %v5703_v58, %v602_v4  ;;  %v850_v30 = vmul.f32 0.7978846, %v842_v25 }
 0x140   : > { %v847_v9 = vmul.f32 0.7978846, %v839_v6  ;;  %v816_v10 = vmul.f32 %v808_v7, %v808_v7 }
 0x142   : > { %5146 = vtanh.f32 %v847_v9  ;;  %v824_v12 = vmul.f32 %v816_v10, %v808_v7  ;;  %v734_v19 = vpop.f32.mrf.mxu2 }
 0x143   : > { %v5727_v24 = vadd.f32 %v5703_v58, %v734_v19 }
 0x144   : > { %v832_v14 = vmul.f32 0.044715, %v824_v12 }
 0x145   : > { %v731_v18 = vpop.f32.mrf.mxu0  ;;  %v820_v29 = vmul.f32 %v5727_v24, %v5727_v24 }
 0x146   : > { %v840_v16 = vadd.f32 %v832_v14, %v808_v7  ;;  %v5724_v23 = vadd.f32 %v5703_v58, %v731_v18 }
 0x147   : > { %v828_v35 = vmul.f32 %v820_v29, %v5727_v24 }
 0x148   : > { %v5147_v20 = vpop.eup %5146  ;;  %v848_v21 = vmul.f32 0.7978846, %v840_v16  ;;  %v819_v28 = vmul.f32 %v5724_v23, %v5724_v23 }
 0x149   : > { %v863_v26 = vadd.f32 1.0, %v5147_v20  ;;  %v836_v42 = vmul.f32 0.044715, %v828_v35 }
 0x14a   : > { %5148 = vtanh.f32 %v848_v21  ;;  %v827_v34 = vmul.f32 %v819_v28, %v5724_v23 }
 0x14b   : > { %v871_v31 = vmul.f32 0.5, %v863_v26  ;;  %5150 = vtanh.f32 %v849_v27  ;;  %v844_v54 = vadd.f32 %v836_v42, %v5727_v24 }
 0x14c   : > { %5152 = vtanh.f32 %v850_v30  ;;  %v835_v41 = vmul.f32 0.044715, %v827_v34 }
 0x14d   : > { %v5741_v38 = vmul.f32 %v871_v31, %v807_v61  ;;  %v852_v4 = vmul.f32 0.7978846, %v844_v54 }
 0x14e   : > { %v843_v53 = vadd.f32 %v835_v41, %v5724_v23 }
 0x14f   : > { %5154 = vtanh.f32 %v852_v4 }
 0x150   : > { %v5149_v32 = vpop.eup %5148  ;;  %v851_v3 = vmul.f32 0.7978846, %v843_v53 }
 0x151   : > { %v864_v33 = vadd.f32 1.0, %v5149_v32  ;;  %v797_v37 = vpop.f32.mrf.mxu3  ;;  %v5151_v47 = vpop.eup %5150 }
 0x152   : > { %v5756_v49 = vadd.f32 %v5703_v58, %v797_v37  ;;  %v5153_v50 = vpop.eup %5152  ;;  %v865_v59 = vadd.f32 1.0, %v5151_v47  ;;  %5156 = vtanh.f32 %v851_v3 }
 0x153   : > { %v872_v39 = vmul.f32 0.5, %v864_v33  ;;  %v866_v60 = vadd.f32 1.0, %v5153_v50 }
 0x154   : > { %v1017_v44 = vpop.f32.mrf.mxu1  ;;  %v821_v61 = vmul.f32 %v5756_v49, %v5756_v49  ;;  %v873_v12 = vmul.f32 0.5, %v865_v59 }
 0x155   : > { %v5743_v40 = vmul.f32 %v872_v39, %v808_v7  ;;  %v951_v43 = vpop.f32.mrf.mxu0  ;;  %v5749_v46 = vadd.f32 %v5739_v36, %v1017_v44  ;;  %v5155_v31 = vpop.eup %5154 }
 0x156   : > { %v5746_v45 = vadd.f32 %v5739_v36, %v951_v43  ;;  %v829_v13 = vmul.f32 %v821_v61, %v5756_v49  ;;  %v5782_v21 = vmul.f32 %v873_v12, %v5710_v0  ;;  %v868_v43 = vadd.f32 1.0, %v5155_v31 }
 0x157   : > { %v5753_v48 = vpack.c.bf16 %v5743_v40, %v5741_v38  ;;  %v1170_v52 = vmul.f32 %v5749_v46, %v5749_v46 }
 0x158   : > { %v1168_v51 = vmul.f32 %v5746_v45, %v5746_v45  ;;  %v837_v25 = vmul.f32 0.044715, %v829_v13  ;;  %v5157_v0 = vpop.eup %5156 }
 0x159   : > { %4819 = vmatmul.msk.bf16.vlgmr.msrb.gmra.mxu0 %vm575_vm0, %v5753_v48  ;;  %v1178_v56 = vmul.f32 %v1170_v52, %v5749_v46  ;;  %v800_v57 = vpop.f32.mrf.mxu3  ;;  %v867_v42 = vadd.f32 1.0, %v5157_v0  ;;  %v876_v52 = vmul.f32 0.5, %v868_v43 }
 0x15a   : > { %v1176_v55 = vmul.f32 %v1168_v51, %v5746_v45  ;;  %v5771_v62 = vadd.f32 %v5703_v58, %v800_v57  ;;  %v874_v58 = vmul.f32 0.5, %v866_v60  ;;  %v845_v33 = vadd.f32 %v837_v25, %v5756_v49 }
 0x15b   : > { %v1186_v1 = vmul.f32 0.044715, %v1178_v56  ;;  %v875_v51 = vmul.f32 0.5, %v867_v42 }
 0x15c   : > { %v1184_v63 = vmul.f32 0.044715, %v1176_v55  ;;  %v1020_v6 = vpop.f32.mrf.mxu1  ;;  %v822_v7 = vmul.f32 %v5771_v62, %v5771_v62  ;;  %v5785_v22 = vmul.f32 %v874_v58, %v5713_v2  ;;  %v853_v41 = vmul.f32 0.7978846, %v845_v33 }
 0x15d   : > { %v954_v5 = vpop.f32.mrf.mxu0  ;;  %v1194_v9 = vadd.f32 %v1186_v1, %v5749_v46  ;;  %v1163_v11 = vadd.f32 %v5739_v36, %v1020_v6  ;;  %v5796_v61 = vmul.f32 %v875_v51, %v5724_v23 }
 0x15e   : > { %v1192_v8 = vadd.f32 %v1184_v63, %v5746_v45  ;;  %v1161_v10 = vadd.f32 %v5739_v36, %v954_v5  ;;  %v830_v17 = vmul.f32 %v822_v7, %v5771_v62  ;;  %v5789_v32 = vpack.c.bf16 %v5785_v22, %v5782_v21 }
 0x15f   : > { %v1202_v14 = vmul.f32 0.7978846, %v1194_v9  ;;  %v1171_v16 = vmul.f32 %v1163_v11, %v1163_v11  ;;  %v5799_v63 = vmul.f32 %v876_v52, %v5727_v24 }
 0x160   : > { %v1169_v15 = vmul.f32 %v1161_v10, %v1161_v10  ;;  %v1200_v18 = vmul.f32 0.7978846, %v1192_v8  ;;  %v838_v28 = vmul.f32 0.044715, %v830_v17 }
 0x161   : > { %v1179_v20 = vmul.f32 %v1171_v16, %v1163_v11  ;;  %5158 = vtanh.f32 %v1202_v14  ;;  %v5817_v24 = vpack.c.bf16 %v5799_v63, %v5796_v61 }
 0x162   : > { %v1177_v19 = vmul.f32 %v1169_v15, %v1161_v10  ;;  %5160 = vtanh.f32 %v1200_v18  ;;  %v846_v2 = vadd.f32 %v838_v28, %v5771_v62  ;;  %v5086_v28 = vld [vmem:[%s7545_s7] sm:$0xff] }
 0x163   : > { %v1187_v27 = vmul.f32 0.044715, %v1179_v20 }
 0x164   : > { %v1185_v26 = vmul.f32 0.044715, %v1177_v19  ;;  %v854_v44 = vmul.f32 0.7978846, %v846_v2  ;;  %v5087_v19 = vld [vmem:[%s7545_s7 + $0x8] sm:$0xff] }
 0x165   : > { %v1195_v30 = vadd.f32 %v1187_v27, %v1163_v11  ;;  %1367 = vmatpush.bf16.msra.mxu1 %v5087_v19 }
 0x166   : > { %v1193_v29 = vadd.f32 %v1185_v26, %v1161_v10 }
 0x167   : > { %v1203_v35 = vmul.f32 0.7978846, %v1195_v30  ;;  %v5159_v37 = vpop.eup %5158 }
 0x168   : > { %v1201_v34 = vmul.f32 0.7978846, %v1193_v29  ;;  %v5161_v39 = vpop.eup %5160  ;;  %v1218_v47 = vadd.f32 1.0, %v5159_v37 }
 0x169   : > { %4820 = vmatmul.msk.bf16.gmra.mxu0 %vm575_vm0, %v5789_v32  ;;  %5162 = vtanh.f32 %v1203_v35  ;;  %v1216_v50 = vadd.f32 1.0, %v5161_v39  ;;  %1368 = vmatpush.bf16.msra.mxu1 %v5086_v28 }
 0x16a   : > { %5164 = vtanh.f32 %v1201_v34  ;;  %v1226_v56 = vmul.f32 0.5, %v1218_v47 }
 0x16b   : > { %5166 = vtanh.f32 %v853_v41  ;;  %v1224_v59 = vmul.f32 0.5, %v1216_v50 }
 0x16c   : > { %5168 = vtanh.f32 %v854_v44  ;;  %v5802_v4 = vmul.f32 %v1226_v56, %v5749_v46 }
 0x16d   : > { %v5807_v7 = vmul.f32 %v1224_v59, %v5746_v45 }
 0x16e   : > { %7568 = vst [vmem:[#allocation2_spill] sm:$0xff] %v5802_v4 }
 0x16f   : > { %v5163_v53 = vpop.eup %5162  ;;  %7570 = vst [vmem:[#allocation4_spill] sm:$0xff] %v5807_v7 }
 0x170   : > { %v5165_v54 = vpop.eup %5164  ;;  %v1219_v55 = vadd.f32 1.0, %v5163_v53 }
 0x171   : > { %v1217_v57 = vadd.f32 1.0, %v5165_v54  ;;  %v5167_v3 = vpop.eup %5166 }
 0x172   : > { %v1227_v60 = vmul.f32 0.5, %v1219_v55  ;;  %v5169_v6 = vpop.eup %5168  ;;  %v869_v45 = vadd.f32 1.0, %v5167_v3 }
 0x173   : > { %v1225_v1 = vmul.f32 0.5, %v1217_v57  ;;  %v870_v9 = vadd.f32 1.0, %v5169_v6 }
 0x174   : > { %v5804_v5 = vmul.f32 %v1227_v60, %v1163_v11  ;;  %v877_v13 = vmul.f32 0.5, %v869_v45 }
 0x175   : > { %v5809_v8 = vmul.f32 %v1225_v1, %v1161_v10  ;;  %v878_v14 = vmul.f32 0.5, %v870_v9 }
 0x176   : > { %7569 = vst [vmem:[#allocation3_spill] sm:$0xff] %v5804_v5  ;;  %v5813_v23 = vpack.c.bf16 %v5804_v5, %v5802_v4  ;;  %v5835_v20 = vmul.f32 %v877_v13, %v5756_v49 }
 0x177   : > { %7571 = vst [vmem:[#allocation5_spill] sm:$0xff] %v5809_v8  ;;  %v5821_v46 = vpack.c.bf16 %v5809_v8, %v5807_v7  ;;  %v5838_v25 = vmul.f32 %v878_v14, %v5771_v62 }
 0x178   : > { %1331 = vrot.lane.b32.xlu0 %v5813_v23, %s5516_s26  ;;  %7572 = vst [vmem:[#allocation6_spill] sm:$0xff] %v5835_v20 }
 0x179   : > { %4821 = vmatmul.msk.bf16.gmra.mxu0 %vm575_vm0, %v5817_v24  ;;  %1329 = vrot.lane.b32.xlu2 %v5821_v46, %s5516_s26  ;;  %7573 = vst [vmem:[#allocation7_spill] sm:$0xff] %v5838_v25  ;;  %v5847_v49 = vpack.c.bf16 %v5838_v25, %v5835_v20 }
 0x17a   : > { %v1149_v11 = vpop.f32.mrf.mxu3 }
 0x17b   : > { %v1083_v10 = vpop.f32.mrf.mxu2  ;;  %v1166_v58 = vadd.f32 %v5739_v36, %v1149_v11 }
 0x17c   : > { %v1164_v12 = vadd.f32 %v5739_v36, %v1083_v10 }
 0x17d   : > { %v1174_v16 = vmul.f32 %v1166_v58, %v1166_v58 }
 0x17e   : > { %v1172_v15 = vmul.f32 %v1164_v12, %v1164_v12 }
 0x17f   : > { %v1182_v18 = vmul.f32 %v1174_v16, %v1166_v58 }
 0x180   : > { %v1180_v17 = vmul.f32 %v1172_v15, %v1164_v12 }
 0x181   : > { %v1190_v27 = vmul.f32 0.044715, %v1182_v18 }
 0x182   : > { %v1188_v26 = vmul.f32 0.044715, %v1180_v17  ;;  %v1152_v30 = vpop.f32.mrf.mxu3 }
 0x183   : > { %v1086_v29 = vpop.f32.mrf.mxu2  ;;  %v1198_v0 = vadd.f32 %v1190_v27, %v1166_v58  ;;  %v1167_v34 = vadd.f32 %v5739_v36, %v1152_v30  ;;  %v5137_v30 = vld [vmem:[%s7546_s8] ss:$0 sm:$0xff] }
 0x184   : > { %v1196_v31 = vadd.f32 %v1188_v26, %v1164_v12  ;;  %v1165_v33 = vadd.f32 %v5739_v36, %v1086_v29 }
 0x185   : > { %v1206_v2 = vmul.f32 0.7978846, %v1198_v0  ;;  %v1175_v37 = vmul.f32 %v1167_v34, %v1167_v34 }
 0x186   : > { %v1204_v62 = vmul.f32 0.7978846, %v1196_v31  ;;  %v1173_v35 = vmul.f32 %v1165_v33, %v1165_v33 }
 0x187   : > { %v1183_v41 = vmul.f32 %v1175_v37, %v1167_v34  ;;  %5170 = vtanh.f32 %v1206_v2 }
 0x188   : > { %v1181_v39 = vmul.f32 %v1173_v35, %v1165_v33  ;;  %5172 = vtanh.f32 %v1204_v62 }
 0x189   : > { %4822 = vmatmul.msk.bf16.gmra.mxu0 %vm575_vm0, %v5847_v49  ;;  %v1191_v43 = vmul.f32 0.044715, %v1183_v41 }
 0x18a   : > { %v1189_v42 = vmul.f32 0.044715, %v1181_v39 }
 0x18b   : > { %v1199_v36 = vadd.f32 %v1191_v43, %v1167_v34 }
 0x18c   : > { %v1197_v44 = vadd.f32 %v1189_v42, %v1165_v33 }
 0x18d   : > { %v1207_v50 = vmul.f32 0.7978846, %v1199_v36  ;;  %v5171_v51 = vpop.eup %5170 }
 0x18e   : > { %v1205_v47 = vmul.f32 0.7978846, %v1197_v44  ;;  %v5173_v52 = vpop.eup %5172  ;;  %v1222_v53 = vadd.f32 1.0, %v5171_v51 }
 0x18f   : > { %v1220_v54 = vadd.f32 1.0, %v5173_v52 }
 0x190   : > { %5174 = vtanh.f32 %v1205_v47  ;;  %v1230_v56 = vmul.f32 0.5, %v1222_v53 }
 0x191   : > { %5176 = vtanh.f32 %v1207_v50  ;;  %v1228_v60 = vmul.f32 0.5, %v1220_v54 }
 0x192   : > { %v5851_v45 = vmul.f32 %v1230_v56, %v1166_v58 }
 0x193   : > { %v5853_v9 = vmul.f32 %v1228_v60, %v1164_v12 }
 0x194   : > { %7574 = vst [vmem:[#allocation8_spill] sm:$0xff] %v5851_v45 }
 0x195   : > { %7575 = vst [vmem:[#allocation9_spill] sm:$0xff] %v5853_v9 }
 0x196   : > { %v5175_v55 = vpop.eup %5174 }
 0x197   : > { %v5177_v57 = vpop.eup %5176  ;;  %v1221_v59 = vadd.f32 1.0, %v5175_v55 }
 0x198   : > { %v1223_v1 = vadd.f32 1.0, %v5177_v57 }
 0x199   : > { %v1229_v3 = vmul.f32 0.5, %v1221_v59 }
 0x19a   : > { %v1231_v6 = vmul.f32 0.5, %v1223_v1 }
 0x19b   : > { %v5855_v10 = vmul.f32 %v1229_v3, %v1165_v33 }
 0x19c   : > { %v5857_v11 = vmul.f32 %v1231_v6, %v1167_v34 }
 0x19d   : > { %7576 = vst [vmem:[#allocation10_spill] sm:$0xff] %v5855_v10  ;;  %v5861_v13 = vpack.c.bf16 %v5855_v10, %v5853_v9 }
 0x19e   : > { %7577 = vst [vmem:[#allocation11_spill] sm:$0xff] %v5857_v11  ;;  %v5865_v14 = vpack.c.bf16 %v5857_v11, %v5851_v45 }
 0x19f   : > { %1333 = vrot.lane.b32.xlu1 %v5861_v13, %s5516_s26 }
 0x1a0   : > { %1335 = vrot.lane.b32.xlu2 %v5865_v14, %s5516_s26 }
 0x1d3   : > { %v1330_v12 = vpop.permute.xlu2 %1329 }
 0x1d4   : > { %4831 = vmatmul.msk.bf16.vlgmr.msra.gmra.mxu1 %vm575_vm0, %v1330_v12 }
 0x1d6   : > { %v1285_v37 = vpop.f32.mrf.mxu0 }
 0x1de   : > { %v1287_v55 = vpop.f32.mrf.mxu0 }
 0x1ea   : > { %v1332_v58 = vpop.permute.xlu0 %1331 }
 0x1eb   : > { %4832 = vmatmul.msk.bf16.gmra.mxu1 %vm575_vm0, %v1332_v58 }
 0x1fa   : > { %v1336_v16 = vpop.permute.xlu2 %1335 }
 0x211   : > { %v1334_v15 = vpop.permute.xlu1 %1333 }
 0x212   : > { %4833 = vmatmul.msk.bf16.gmra.mxu1 %vm575_vm0, %v1334_v15  ;;  %v1290_v15 = vpop.f32.mrf.mxu0 }
 0x222   : > { %4834 = vmatmul.msk.bf16.gmra.mxu1 %vm575_vm0, %v1336_v16  ;;  %v5136_v16 = vld [vmem:[%s7544_s6] ss:$0 sm:$0xff] }
 0x251   : > { %v1370_v17 = vpop.f32.mrf.mxu1 }
 0x252   : > { %v1371_v1 = vadd.f32 %v5137_v30, %v1370_v17 }
 0x254   : > { %v1390_v58 = vpack.c.bf16 %v1371_v1, %v1371_v1 }
 0x259   : > { %v1372_v18 = vpop.f32.mrf.mxu1 }
 0x25a   : > { %v1373_v57 = vadd.f32 %v5137_v30, %v1372_v18 }
 0x25c   : > { %v1391_v6 = vpack.c.bf16 %v1373_v57, %v1373_v57 }
 0x268   : > { %v1375_v19 = vpop.f32.mrf.mxu1 }
 0x269   : > { %v1376_v51 = vadd.f32 %v5137_v30, %v1375_v19  ;;  %v1431_v19 = vunpack.c.l.b16 %v1391_v6 }
 0x26b   : > { %v1392_v56 = vpack.c.bf16 %v1376_v51, %v1376_v51 }
 0x26d   : > { %v1432_v3 = vunpack.c.l.b16 %v1392_v56 }
 0x270   : > { %v1377_v26 = vpop.f32.mrf.mxu1 }
 0x271   : > { %v1378_v36 = vadd.f32 %v5137_v30, %v1377_v26  ;;  %v1288_v26 = vadd.f32 %v5136_v16, %v1287_v55 }
 0x273   : > { %v1393_v53 = vpack.c.bf16 %v1378_v36, %v1378_v36  ;;  %v1306_v17 = vpack.c.bf16 %v1288_v26, %v1288_v26 }
 0x275   : > { %v1433_v59 = vunpack.c.l.b16 %v1393_v53 }
 0x277   : > { %v5888_v12 = vpack.c.b16 %v1433_v59, %v1432_v3 }
 0x279   : > { %v1459_v18 = vsel %vm1442_vm1, %v5888_v12, 0 }
 0x28f   : > { %v1380_v27 = vpop.f32.mrf.mxu1 }
 0x290   : > { %v1381_v35 = vadd.f32 %v5137_v30, %v1380_v27  ;;  %v1430_v27 = vunpack.c.l.b16 %v1390_v58 }
 0x292   : > { %v1394_v43 = vpack.c.bf16 %v1381_v35, %v1381_v35 }
 0x294   : > { %v1434_v52 = vunpack.c.l.b16 %v1394_v43 }
 0x297   : > { %v1382_v28 = vpop.f32.mrf.mxu1 }
 0x298   : > { %v1383_v0 = vadd.f32 %v5137_v30, %v1382_v28  ;;  %v1286_v28 = vadd.f32 %v5136_v16, %v1285_v37 }
 0x29a   : > { %v1395_v39 = vpack.c.bf16 %v1383_v0, %v1383_v0  ;;  %v1411_v0 = vunpack.c.l.b16 %v1306_v17 }
 0x29c   : > { %v1435_v47 = vunpack.c.l.b16 %v1395_v39  ;;  %v1291_v39 = vadd.f32 %v5136_v16, %v1290_v15 }
 0x29e   : > { %v5884_v54 = vpack.c.b16 %v1435_v47, %v1434_v52 }
 0x29f   : > { %v1385_v29 = vpop.f32.mrf.mxu1 }
 0x2a0   : > { %v1386_v31 = vadd.f32 %v5137_v30, %v1385_v29  ;;  %v1462_v60 = vsel %vm1442_vm1, %v5884_v54, 0  ;;  %v5895_v29 = vpack.c.b16 %v1431_v19, %v1430_v27  ;;  %v5918_v27 = vld [vmem:[%s7540_s2] sm:$0xff] }
 0x2a2   : > { %v1396_v34 = vpack.c.bf16 %v1386_v31, %v1386_v31  ;;  %v1456_v31 = vsel %vm1442_vm1, %v5895_v29, 0 }
 0x2a4   : > { %v1436_v41 = vunpack.c.l.b16 %v1396_v34 }
 0x2a7   : > { %v1387_v33 = vpop.f32.mrf.mxu1 }
 0x2a8   : > { %v1388_v62 = vadd.f32 %v5137_v30, %v1387_v33  ;;  %v1305_v30 = vpack.c.bf16 %v1286_v28, %v1286_v28  ;;  %v1292_v33 = vpop.f32.mrf.mxu0 }
 0x2a9   : > { %v1293_v35 = vadd.f32 %v5136_v16, %v1292_v33 }
 0x2aa   : > { %v1397_v2 = vpack.c.bf16 %v1388_v62, %v1388_v62  ;;  %v1410_v34 = vunpack.c.l.b16 %v1305_v30  ;;  %v5925_v30 = vld [vmem:[%s7540_s2 + $0x8] sm:$0xff] }
 0x2ab   : > { %v1308_v37 = vpack.c.bf16 %v1293_v35, %v1293_v35 }
 0x2ac   : > { %v1437_v42 = vunpack.c.l.b16 %v1397_v2  ;;  %v5899_v62 = vpack.c.b16 %v1411_v0, %v1410_v34  ;;  %v5932_v34 = vld [vmem:[%s7540_s2 + $0x10] sm:$0xff] }
 0x2ae   : > { %v5878_v44 = vpack.c.b16 %v1437_v42, %v1436_v41  ;;  %v1307_v41 = vpack.c.bf16 %v1291_v39, %v1291_v39  ;;  %v1413_v42 = vunpack.c.l.b16 %v1308_v37  ;;  %v5939_v37 = vld [vmem:[%s7540_s2 + $0x18] sm:$0xff] }
 0x2b0   : > { %1595 = vrot.lane.b32.xlu2 %v5878_v44, %s5516_s26  ;;  %v1465_v50 = vsel %vm1442_vm1, %v5878_v44, 0  ;;  %v1295_v2 = vpop.f32.mrf.mxu0  ;;  %v1412_v43 = vunpack.c.l.b16 %v1307_v41 }
 0x2b1   : > { %1471 = vmatpush.bf16.xpose.msra.mxu2 %v1465_v50  ;;  %v1296_v51 = vadd.f32 %v5136_v16, %v1295_v2 }
 0x2b2   : > { %v5903_v47 = vpack.c.b16 %v1413_v42, %v1412_v43 }
 0x2b3   : > { %v1309_v55 = vpack.c.bf16 %v1296_v51, %v1296_v51 }
 0x2b5   : > { %v1414_v57 = vunpack.c.l.b16 %v1309_v55 }
 0x2b8   : > { %v1297_v36 = vpop.f32.mrf.mxu0 }
 0x2b9   : > { %1472 = vmatpush.bf16.xpose.msra.mxu2 %v1462_v60  ;;  %v1298_v50 = vadd.f32 %v5136_v16, %v1297_v36  ;;  %v5946_v36 = vld [vmem:[%s7540_s2 + $0x20] sm:$0xff] }
 0x2bb   : > { %v1310_v53 = vpack.c.bf16 %v1298_v50, %v1298_v50 }
 0x2bd   : > { %v1415_v56 = vunpack.c.l.b16 %v1310_v53  ;;  %v5953_v53 = vld [vmem:[%s7540_s2 + $0x28] sm:$0xff] }
 0x2bf   : > { %v5907_v59 = vpack.c.b16 %v1415_v56, %v1414_v57 }
 0x2c0   : > { %v1300_v52 = vpop.f32.mrf.mxu0 }
 0x2c1   : > { %1473 = vmatpush.bf16.xpose.msra.mxu2 %v1459_v18  ;;  %v1301_v1 = vadd.f32 %v5136_v16, %v1300_v52 }
 0x2c3   : > { %v1311_v6 = vpack.c.bf16 %v1301_v1, %v1301_v1 }
 0x2c5   : > { %v1416_v15 = vunpack.c.l.b16 %v1311_v6 }
 0x2c8   : > { %v1302_v60 = vpop.f32.mrf.mxu0 }
 0x2c9   : > { %1474 = vmatpush.bf16.xpose.msra.mxu2 %v1456_v31  ;;  %v1303_v3 = vadd.f32 %v5136_v16, %v1302_v60  ;;  %v5960_v60 = vld [vmem:[%s7540_s2 + $0x30] sm:$0xff] }
 0x2cb   : > { %v1312_v58 = vpack.c.bf16 %v1303_v3, %v1303_v3 }
 0x2cd   : > { %v1417_v19 = vunpack.c.l.b16 %v1312_v58  ;;  %v5967_v58 = vld [vmem:[%s7540_s2 + $0x38] sm:$0xff] }
 0x2cf   : > { %v5911_v18 = vpack.c.b16 %v1417_v19, %v1416_v15 }
 0x2d0   : > { %4835 = vmatmul.msk.bf16.vlgmr.msra.gmra.mxu2 %vm1442_vm1, %v5899_v62 }
 0x2e0   : > { %4836 = vmatmul.msk.bf16.gmra.mxu2 %vm1442_vm1, %v5903_v47 }
 0x2f0   : > { %4837 = vmatmul.msk.bf16.gmra.mxu2 %vm1442_vm1, %v5907_v59 }
 0x300   : > { %4838 = vmatmul.msk.bf16.gmra.mxu2 %vm1442_vm1, %v5911_v18 }
 0x30a   : > { %v1596_v26 = vpop.permute.xlu2 %1595 }
 0x30b   : > { %1617 = vmatpush.bf16.msra.mxu3 %v1596_v26 }
 0x353   : > { %v1476_v28 = vpop.f32.mrf.mxu2 }
 0x354   : > { %v1477_v16 = vadd.f32 %v1476_v28, %v5918_v27 }
 0x356   : > { %v1497_v17 = vsel %vm1496_vm2, %v1477_v16, -inf }
 0x357   : > { %1498 = vmax.xlane.f32.xlu2 %v1497_v17 }
 0x35b   : > { %v1478_v31 = vpop.f32.mrf.mxu2 }
 0x35c   : > { %v1479_v33 = vadd.f32 %v1478_v31, %v5925_v30 }
 0x35e   : > { %v1500_v0 = vsel %vm1496_vm2, %v1479_v33, -inf }
 0x35f   : > { %1501 = vmax.xlane.f32.xlu1 %v1500_v0 }
 0x363   : > { %v1481_v35 = vpop.f32.mrf.mxu2 }
 0x364   : > { %v1482_v2 = vadd.f32 %v1481_v35, %v5932_v34 }
 0x366   : > { %v1503_v39 = vsel %vm1496_vm2, %v1482_v2, -inf }
 0x367   : > { %1504 = vmax.xlane.f32.xlu0 %v1503_v39 }
 0x36b   : > { %v1483_v41 = vpop.f32.mrf.mxu2 }
 0x36c   : > { %v1484_v42 = vadd.f32 %v1483_v41, %v5939_v37 }
 0x36e   : > { %v1506_v43 = vsel %vm1496_vm2, %v1484_v42, -inf }
 0x36f   : > { %1507 = vmax.xlane.f32.xlu2 %v1506_v43 }
 0x373   : > { %v1486_v50 = vpop.f32.mrf.mxu2 }
 0x374   : > { %v1487_v51 = vadd.f32 %v1486_v50, %v5946_v36 }
 0x376   : > { %v1509_v52 = vsel %vm1496_vm2, %v1487_v51, -inf }
 0x377   : > { %1510 = vmax.xlane.f32.xlu2 %v1509_v52 }
 0x37b   : > { %v1488_v55 = vpop.f32.mrf.mxu2 }
 0x37c   : > { %v1489_v56 = vadd.f32 %v1488_v55, %v5953_v53 }
 0x37e   : > { %v1512_v57 = vsel %vm1496_vm2, %v1489_v56, -inf }
 0x37f   : > { %1513 = vmax.xlane.f32.xlu1 %v1512_v57 }
 0x383   : > { %v1491_v1 = vpop.f32.mrf.mxu2 }
 0x384   : > { %v1492_v3 = vadd.f32 %v1491_v1, %v5960_v60 }
 0x386   : > { %v1515_v6 = vsel %vm1496_vm2, %v1492_v3, -inf }
 0x387   : > { %1516 = vmax.xlane.f32.xlu2 %v1515_v6 }
 0x38b   : > { %v1493_v15 = vpop.f32.mrf.mxu2 }
 0x38c   : > { %v1494_v19 = vadd.f32 %v1493_v15, %v5967_v58 }
 0x38e   : > { %v1518_v26 = vsel %vm1496_vm2, %v1494_v19, -inf }
 0x38f   : > { %1519 = vmax.xlane.f32.xlu1 %v1518_v26 }
 0x39f   : > { %1589 = vrot.lane.b32.xlu2 %v5895_v29, %s5516_s26 }
 0x3ca   : > { %v1499_v28 = vpop.xlane.xlu2 %1498 }
 0x3cb   : > { %v1521_v17 = vsub.f32 %v1477_v16, %v1499_v28 }
 0x3cd   : > { %v1529_v31 = vmul.f32 1.442695, %v1521_v17 }
 0x3cf   : > { %5178 = vpow2.f32 %v1529_v31 }
 0x3d2   : > { %v1502_v0 = vpop.xlane.xlu1 %1501 }
 0x3d3   : > { %v1522_v35 = vsub.f32 %v1479_v33, %v1502_v0 }
 0x3d5   : > { %v5973_v39 = vpop.eup %5178  ;;  %v1531_v41 = vmul.f32 1.442695, %v1522_v35 }
 0x3d6   : > { %v1545_v43 = vsel %vm1496_vm2, %v5973_v39, 0.0 }
 0x3d7   : > { %5180 = vpow2.f32 %v1531_v41  ;;  %1546 = vadd.xlane.f32.xlu1 %v1545_v43 }
 0x3da   : > { %v1505_v50 = vpop.xlane.xlu0 %1504 }
 0x3db   : > { %v1523_v52 = vsub.f32 %v1482_v2, %v1505_v50 }
 0x3dd   : > { %v5977_v55 = vpop.eup %5180  ;;  %v1533_v57 = vmul.f32 1.442695, %v1523_v52 }
 0x3de   : > { %v1548_v16 = vsel %vm1496_vm2, %v5977_v55, 0.0 }
 0x3df   : > { %5182 = vpow2.f32 %v1533_v57  ;;  %1549 = vadd.xlane.f32.xlu0 %v1548_v16 }
 0x3e2   : > { %v1508_v26 = vpop.xlane.xlu2 %1507 }
 0x3e3   : > { %v1524_v35 = vsub.f32 %v1484_v42, %v1508_v26 }
 0x3e5   : > { %v5981_v1 = vpop.eup %5182  ;;  %v1535_v50 = vmul.f32 1.442695, %v1524_v35 }
 0x3e6   : > { %v1551_v33 = vsel %vm1496_vm2, %v5981_v1, 0.0 }
 0x3e7   : > { %1552 = vadd.xlane.f32.xlu2 %v1551_v33 }
 0x3ea   : > { %v1511_v31 = vpop.xlane.xlu2 %1510 }
 0x3eb   : > { %v1525_v0 = vsub.f32 %v1487_v51, %v1511_v31 }
 0x3ed   : > { %v1537_v41 = vmul.f32 1.442695, %v1525_v0 }
 0x3f0   : > { %1593 = vrot.lane.b32.xlu1 %v5884_v54, %s5516_s26 }
 0x3f2   : > { %v1514_v6 = vpop.xlane.xlu1 %1513 }
 0x3f3   : > { %v1526_v15 = vsub.f32 %v1489_v56, %v1514_v6  ;;  %1591 = vrot.lane.b32.xlu0 %v5888_v12, %s5516_s26 }
 0x3f5   : > { %v1539_v2 = vmul.f32 1.442695, %v1526_v15 }
 0x3f7   : > { %5184 = vpow2.f32 %v1539_v2 }
 0x3f8   : > { %5186 = vpow2.f32 %v1537_v41 }
 0x3f9   : > { %5188 = vpow2.f32 %v1535_v50 }
 0x3fa   : > { %v1517_v56 = vpop.xlane.xlu2 %1516 }
 0x3fb   : > { %v1527_v57 = vsub.f32 %v1492_v3, %v1517_v56 }
 0x3fd   : > { %v5989_v28 = vpop.eup %5184  ;;  %v1541_v6 = vmul.f32 1.442695, %v1527_v57 }
 0x3fe   : > { %v1560_v17 = vsel %vm1496_vm2, %v5989_v28, 0.0  ;;  %v5993_v33 = vpop.eup %5186 }
 0x3ff   : > { %1561 = vadd.xlane.f32.xlu2 %v1560_v17  ;;  %v5997_v15 = vpop.eup %5188  ;;  %v1557_v42 = vsel %vm1496_vm2, %v5993_v33, 0.0 }
 0x400   : > { %v1554_v51 = vsel %vm1496_vm2, %v5997_v15, 0.0 }
 0x402   : > { %v1520_v43 = vpop.xlane.xlu1 %1519  ;;  %v1590_v0 = vpop.permute.xlu2 %1589 }
 0x403   : > { %v1528_v52 = vsub.f32 %v1494_v19, %v1520_v43 }
 0x405   : > { %v1543_v16 = vmul.f32 1.442695, %v1528_v52 }
 0x407   : > { %5190 = vpow2.f32 %v1543_v16 }
 0x408   : > { %5192 = vpow2.f32 %v1541_v6 }
 0x40d   : > { %v6003_v3 = vpop.eup %5190 }
 0x40e   : > { %v6007_v19 = vpop.eup %5192  ;;  %v1566_v2 = vsel %vm1496_vm2, %v6003_v3, 0.0 }
 0x40f   : > { %v1563_v26 = vsel %vm1496_vm2, %v6007_v19, 0.0 }
 0x417   : > { %1660 = vrot.lane.b32.xlu2 %v5878_v44, %s5517_s28 }
 0x41a   : > { %1558 = vadd.xlane.f32.xlu1 %v1557_v42 }
 0x41d   : > { %1555 = vadd.xlane.f32.xlu0 %v1554_v51 }
 0x41f   : > { %1646 = vrot.lane.b32.xlu2 %v5899_v62, %s5517_s28 }
 0x422   : > { %1567 = vadd.xlane.f32.xlu1 %v1566_v2 }
 0x425   : > { %1564 = vadd.xlane.f32.xlu0 %v1563_v26 }
 0x427   : > { %1967 = vrot.lane.b32.xlu2 %v5878_v44, %s5518_s29 }
 0x42f   : > { %2235 = vrot.lane.b32.xlu2 %v5884_v54, %s5519_s27 }
 0x437   : > { %2233 = vrot.lane.b32.xlu2 %v5888_v12, %s5519_s27 }
 0x439   : > { %1658 = vrot.lane.b32.xlu0 %v5884_v54, %s5517_s28 }
 0x43b   : > { %1656 = vrot.lane.b32.xlu1 %v5888_v12, %s5517_s28 }
 0x43f   : > { %1953 = vrot.lane.b32.xlu2 %v5899_v62, %s5518_s29 }
 0x441   : > { %1654 = vrot.lane.b32.xlu0 %v5895_v29, %s5517_s28 }
 0x443   : > { %1648 = vrot.lane.b32.xlu1 %v5903_v47, %s5517_s28 }
 0x447   : > { %2225 = vrot.lane.b32.xlu2 %v5903_v47, %s5519_s27 }
 0x449   : > { %1650 = vrot.lane.b32.xlu0 %v5907_v59, %s5517_s28 }
 0x44a   : > { %v1547_v17 = vpop.xlane.xlu1 %1546 }
 0x44b   : > { %2237 = vrot.lane.b32.xlu1 %v5878_v44, %s5519_s27 }
 0x44f   : > { %1959 = vrot.lane.b32.xlu2 %v5911_v18, %s5518_s29 }
 0x451   : > { %1965 = vrot.lane.b32.xlu0 %v5884_v54, %s5518_s29 }
 0x452   : > { %v1550_v31 = vpop.xlane.xlu0 %1549 }
 0x453   : > { %1652 = vrot.lane.b32.xlu1 %v5911_v18, %s5517_s28  ;;  %5194 = vrcp.f32 %v1550_v31 }
 0x454   : > { %5196 = vrcp.f32 %v1547_v17 }
 0x459   : > { %1963 = vrot.lane.b32.xlu0 %v5888_v12, %s5518_s29  ;;  %v5195_v41 = vpop.eup %5194 }
 0x45a   : > { %v5197_v50 = vpop.eup %5196  ;;  %v1578_v56 = vmul.f32 %v5195_v41, %v5977_v55  ;;  %v1553_v57 = vpop.xlane.xlu2 %1552 }
 0x45b   : > { %1961 = vrot.lane.b32.xlu1 %v5895_v29, %s5518_s29  ;;  %v1577_v52 = vmul.f32 %v5197_v50, %v5973_v39  ;;  %5198 = vrcp.f32 %v1553_v57 }
 0x45d   : > { %v1585_v16 = vpack.c.bf16 %v1578_v56, %v1577_v52 }
 0x461   : > { %2231 = vrot.lane.b32.xlu0 %v5895_v29, %s5519_s27  ;;  %v5199_v6 = vpop.eup %5198 }
 0x462   : > { %v1594_v35 = vpop.permute.xlu1 %1593  ;;  %v1579_v51 = vmul.f32 %v5199_v6, %v5981_v1 }
 0x463   : > { %1618 = vmatpush.bf16.msra.mxu3 %v1594_v35  ;;  %2223 = vrot.lane.b32.xlu1 %v5899_v62, %s5519_s27 }
 0x465   : > { %v1592_v43 = vpop.permute.xlu0 %1591 }
 0x467   : > { %1619 = vmatpush.bf16.msra.mxu3 %v1592_v43 }
 0x469   : > { %1955 = vrot.lane.b32.xlu0 %v5903_v47, %s5518_s29 }
 0x46b   : > { %1957 = vrot.lane.b32.xlu1 %v5907_v59, %s5518_s29  ;;  %1620 = vmatpush.bf16.msra.mxu3 %v1590_v0 }
 0x46e   : > { %4839 = vmatmul.msk.bf16.vlgmr.msra.gmra.mxu3 %vm1496_vm2, %v1585_v16 }
 0x471   : > { %2227 = vrot.lane.b32.xlu0 %v5907_v59, %s5519_s27  ;;  %v1398_v59 = vld [vmem:[%s7547_s9] sm:$0xf] }
 0x472   : > { %v1562_v62 = vpop.xlane.xlu2 %1561 }
 0x473   : > { %2229 = vrot.lane.b32.xlu1 %v5911_v18, %s5519_s27  ;;  %v1922_v18 = vsel %vm1876_vm3, %v1398_v59, 0 }
 0x474   : > { %1931 = vmatpush.bf16.msrb.mxu2 %v1922_v18 }
 0x47a   : > { %v1661_v55 = vpop.permute.xlu2 %1660 }
 0x47b   : > { %v1684_v47 = vsel %vm1442_vm1, %v1661_v55, 0 }
 0x47c   : > { %1690 = vmatpush.bf16.xpose.msra.mxu0 %v1684_v47 }
 0x482   : > { %v1647_v52 = vpop.permute.xlu2 %1646 }
 0x48d   : > { %v1559_v26 = vpop.xlane.xlu1 %1558 }
 0x490   : > { %v1556_v39 = vpop.xlane.xlu0 %1555 }
 0x491   : > { %5200 = vrcp.f32 %v1556_v39 }
 0x492   : > { %5202 = vrcp.f32 %v1559_v26 }
 0x493   : > { %5204 = vrcp.f32 %v1562_v62 }
 0x495   : > { %v1568_v1 = vpop.xlane.xlu1 %1567 }
 0x497   : > { %v5201_v42 = vpop.eup %5200 }
 0x498   : > { %v1580_v2 = vmul.f32 %v5201_v42, %v5997_v15  ;;  %v5203_v31 = vpop.eup %5202  ;;  %v1565_v0 = vpop.xlane.xlu0 %1564 }
 0x499   : > { %v5205_v35 = vpop.eup %5204  ;;  %v1581_v15 = vmul.f32 %v5203_v31, %v5993_v33  ;;  %5206 = vrcp.f32 %v1565_v0  ;;  %v1968_v33 = vpop.permute.xlu2 %1967 }
 0x49a   : > { %v1586_v17 = vpack.c.bf16 %v1580_v2, %v1579_v51  ;;  %v1582_v41 = vmul.f32 %v5205_v35, %v5989_v28  ;;  %5208 = vrcp.f32 %v1568_v1  ;;  %v1991_v26 = vsel %vm1442_vm1, %v1968_v33, 0 }
 0x49c   : > { %4840 = vmatmul.msk.bf16.gmra.mxu3 %vm1496_vm2, %v1586_v17  ;;  %v1587_v43 = vpack.c.bf16 %v1582_v41, %v1581_v15 }
 0x49f   : > { %v5207_v16 = vpop.eup %5206 }
 0x4a0   : > { %v5209_v47 = vpop.eup %5208  ;;  %v1583_v28 = vmul.f32 %v5207_v16, %v6007_v19 }
 0x4a1   : > { %v1584_v6 = vmul.f32 %v5209_v47, %v6003_v3  ;;  %v2236_v18 = vpop.permute.xlu2 %2235 }
 0x4a2   : > { %v2258_v19 = vsel %vm1442_vm1, %v2236_v18, 0 }
 0x4a3   : > { %v1588_v42 = vpack.c.bf16 %v1584_v6, %v1583_v28 }
 0x4a9   : > { %v2234_v35 = vpop.permute.xlu2 %2233 }
 0x4aa   : > { %v2255_v41 = vsel %vm1442_vm1, %v2234_v35, 0 }
 0x4ab   : > { %v1659_v50 = vpop.permute.xlu0 %1658 }
 0x4ac   : > { %4841 = vmatmul.msk.bf16.gmra.mxu3 %vm1496_vm2, %v1587_v43  ;;  %v1681_v56 = vsel %vm1442_vm1, %v1659_v50, 0 }
 0x4ad   : > { %v1657_v57 = vpop.permute.xlu1 %1656  ;;  %1691 = vmatpush.bf16.xpose.msra.mxu0 %v1681_v56 }
 0x4ae   : > { %v1678_v55 = vsel %vm1442_vm1, %v1657_v57, 0 }
 0x4b3   : > { %v1655_v62 = vpop.permute.xlu0 %1654 }
 0x4b4   : > { %v1675_v2 = vsel %vm1442_vm1, %v1655_v62, 0 }
 0x4b5   : > { %v1649_v39 = vpop.permute.xlu1 %1648  ;;  %1692 = vmatpush.bf16.xpose.msra.mxu0 %v1678_v55  ;;  %v1954_v55 = vpop.permute.xlu2 %1953 }
 0x4bb   : > { %v1651_v51 = vpop.permute.xlu0 %1650 }
 0x4bc   : > { %4842 = vmatmul.msk.bf16.gmra.mxu3 %vm1496_vm2, %v1588_v42 }
 0x4bd   : > { %v2238_v17 = vpop.permute.xlu1 %2237  ;;  %1693 = vmatpush.bf16.xpose.msra.mxu0 %v1675_v2 }
 0x4be   : > { %v2261_v59 = vsel %vm1442_vm1, %v2238_v17, 0 }
 0x4bf   : > { %2267 = vmatpush.bf16.xpose.msra.mxu2 %v2261_v59 }
 0x4c3   : > { %v1966_v31 = vpop.permute.xlu0 %1965 }
 0x4c4   : > { %4843 = vmatmul.msk.bf16.vlgmr.msra.gmra.mxu0 %vm1442_vm1, %v1647_v52  ;;  %v1988_v3 = vsel %vm1442_vm1, %v1966_v31, 0 }
 0x4c5   : > { %1997 = vmatpush.bf16.xpose.msrb.mxu0 %v1991_v26  ;;  %v1653_v0 = vpop.permute.xlu1 %1652 }
 0x4c7   : > { %2268 = vmatpush.bf16.xpose.msra.mxu2 %v2258_v19 }
 0x4cb   : > { %v1964_v1 = vpop.permute.xlu0 %1963 }
 0x4cc   : > { %v1985_v15 = vsel %vm1442_vm1, %v1964_v1, 0 }
 0x4cd   : > { %1998 = vmatpush.bf16.xpose.msrb.mxu0 %v1988_v3  ;;  %v1962_v43 = vpop.permute.xlu1 %1961 }
 0x4ce   : > { %v1982_v56 = vsel %vm1442_vm1, %v1962_v43, 0 }
 0x4cf   : > { %2269 = vmatpush.bf16.xpose.msra.mxu2 %v2255_v41 }
 0x4d3   : > { %v2232_v50 = vpop.permute.xlu0 %2231 }
 0x4d4   : > { %4844 = vmatmul.msk.bf16.gmra.mxu0 %vm1442_vm1, %v1649_v39  ;;  %v2252_v52 = vsel %vm1442_vm1, %v2232_v50, 0 }
 0x4d5   : > { %1999 = vmatpush.bf16.xpose.msrb.mxu0 %v1985_v15  ;;  %v2224_v39 = vpop.permute.xlu1 %2223 }
 0x4d7   : > { %2270 = vmatpush.bf16.xpose.msra.mxu2 %v2252_v52 }
 0x4db   : > { %v1956_v47 = vpop.permute.xlu0 %1955 }
 0x4dd   : > { %2000 = vmatpush.bf16.xpose.msrb.mxu0 %v1982_v56  ;;  %v1958_v33 = vpop.permute.xlu1 %1957 }
 0x4e4   : > { %4845 = vmatmul.msk.bf16.gmra.mxu0 %vm1442_vm1, %v1651_v51  ;;  %v2226_v51 = vpop.permute.xlu2 %2225 }
 0x4ec   : > { %v1960_v26 = vpop.permute.xlu2 %1959 }
 0x4f1   : > { %v1622_v57 = vpop.f32.mrf.mxu3 }
 0x4f4   : > { %4846 = vmatmul.msk.bf16.gmra.mxu0 %vm1442_vm1, %v1653_v0 }
 0x4f9   : > { %v1624_v16 = vpop.f32.mrf.mxu3 }
 0x4fa   : > { %v1642_v62 = vpack.c.bf16 %v1624_v16, %v1622_v57 }
 0x4fc   : > { %4855 = vmatmul.msk.bf16.vlgmr.msrb.gmra.mxu2 %vm1442_vm1, %v1642_v62 }
 0x504   : > { %4859 = vmatmul.msk.bf16.vlgmr.msrb.gmra.mxu0 %vm1442_vm1, %v1954_v55 }
 0x514   : > { %4860 = vmatmul.msk.bf16.gmra.mxu0 %vm1442_vm1, %v1956_v47 }
 0x51f   : > { %v1627_v28 = vpop.f32.mrf.mxu3 }
 0x524   : > { %4861 = vmatmul.msk.bf16.gmra.mxu0 %vm1442_vm1, %v1958_v33 }
 0x527   : > { %v1629_v6 = vpop.f32.mrf.mxu3 }
 0x528   : > { %v1643_v42 = vpack.c.bf16 %v1629_v6, %v1627_v28 }
 0x52a   : > { %4856 = vmatmul.msk.bf16.gmra.mxu2 %vm1442_vm1, %v1643_v42 }
 0x52f   : > { %v1632_v2 = vpop.f32.mrf.mxu3 }
 0x534   : > { %4862 = vmatmul.msk.bf16.gmra.mxu0 %vm1442_vm1, %v1960_v26  ;;  %v2228_v26 = vpop.permute.xlu0 %2227 }
 0x537   : > { %v1634_v17 = vpop.f32.mrf.mxu3 }
 0x538   : > { %v1644_v59 = vpack.c.bf16 %v1634_v17, %v1632_v2 }
 0x53a   : > { %4857 = vmatmul.msk.bf16.gmra.mxu2 %vm1442_vm1, %v1644_v59 }
 0x53f   : > { %v1637_v18 = vpop.f32.mrf.mxu3 }
 0x541   : > { %v1695_v31 = vpop.f32.mrf.mxu0 }
 0x542   : > { %v6097_v3 = vadd.f32 %v1695_v31, %v5918_v27  ;;  %v2230_v31 = vpop.permute.xlu1 %2229 }
 0x544   : > { %v1715_v19 = vsel %vm1496_vm2, %v6097_v3, -inf }
 0x545   : > { %1716 = vmax.xlane.f32.xlu0 %v1715_v19 }
 0x547   : > { %v1639_v0 = vpop.f32.mrf.mxu3 }
 0x548   : > { %v1645_v35 = vpack.c.bf16 %v1639_v0, %v1637_v18 }
 0x549   : > { %v1697_v1 = vpop.f32.mrf.mxu0 }
 0x54a   : > { %v6102_v15 = vadd.f32 %v1697_v1, %v5925_v30  ;;  %4858 = vmatmul.msk.bf16.gmra.mxu2 %vm1442_vm1, %v1645_v35 }
 0x54c   : > { %v1718_v41 = vsel %vm1496_vm2, %v6102_v15, -inf }
 0x54d   : > { %1719 = vmax.xlane.f32.xlu2 %v1718_v41 }
 0x551   : > { %v1700_v43 = vpop.f32.mrf.mxu0 }
 0x552   : > { %v6108_v50 = vadd.f32 %v1700_v43, %v5932_v34 }
 0x554   : > { %v1721_v56 = vsel %vm1496_vm2, %v6108_v50, -inf }
 0x555   : > { %1722 = vmax.xlane.f32.xlu1 %v1721_v56 }
 0x559   : > { %v1702_v52 = vpop.f32.mrf.mxu0 }
 0x55a   : > { %v6113_v57 = vadd.f32 %v1702_v52, %v5939_v37  ;;  %4871 = vmatmul.msk.bf16.vlgmr.msra.gmra.mxu2 %vm1442_vm1, %v2224_v39 }
 0x55c   : > { %v1724_v16 = vsel %vm1496_vm2, %v6113_v57, -inf }
 0x55d   : > { %1725 = vmax.xlane.f32.xlu0 %v1724_v16 }
 0x561   : > { %v1705_v62 = vpop.f32.mrf.mxu0 }
 0x562   : > { %v6119_v55 = vadd.f32 %v1705_v62, %v5946_v36 }
 0x564   : > { %v1727_v47 = vsel %vm1496_vm2, %v6119_v55, -inf }
 0x565   : > { %1728 = vmax.xlane.f32.xlu2 %v1727_v47 }
 0x569   : > { %v1707_v28 = vpop.f32.mrf.mxu0 }
 0x56a   : > { %v6124_v33 = vadd.f32 %v1707_v28, %v5953_v53  ;;  %4872 = vmatmul.msk.bf16.gmra.mxu2 %vm1442_vm1, %v2226_v51 }
 0x56c   : > { %v1730_v39 = vsel %vm1496_vm2, %v6124_v33, -inf }
 0x56d   : > { %1731 = vmax.xlane.f32.xlu1 %v1730_v39 }
 0x571   : > { %v1710_v6 = vpop.f32.mrf.mxu0 }
 0x572   : > { %v6130_v42 = vadd.f32 %v1710_v6, %v5960_v60 }
 0x574   : > { %v1733_v2 = vsel %vm1496_vm2, %v6130_v42, -inf }
 0x575   : > { %1734 = vmax.xlane.f32.xlu0 %v1733_v2 }
 0x579   : > { %v1712_v17 = vpop.f32.mrf.mxu0 }
 0x57a   : > { %v6135_v59 = vadd.f32 %v1712_v17, %v5967_v58  ;;  %4873 = vmatmul.msk.bf16.gmra.mxu2 %vm1442_vm1, %v2228_v26 }
 0x57c   : > { %v1736_v51 = vsel %vm1496_vm2, %v6135_v59, -inf }
 0x57d   : > { %1737 = vmax.xlane.f32.xlu2 %v1736_v51 }
 0x57f   : > { %v6149_v35 = vpop.f32.mrf.mxu2 }
 0x581   : > { %v2002_v18 = vpop.f32.mrf.mxu0 }
 0x582   : > { %v6158_v52 = vadd.f32 %v2002_v18, %v5918_v27 }
 0x584   : > { %v2022_v16 = vsel %vm1496_vm2, %v6158_v52, -inf }
 0x586   : > { %1813 = vrot.lane.b32.xlu1 %v5878_v44, %s5520_s17 }
 0x587   : > { %v6153_v41 = vpop.f32.mrf.mxu2 }
 0x589   : > { %1811 = vrot.lane.b32.xlu0 %v5884_v54, %s5520_s17  ;;  %v2004_v19 = vpop.f32.mrf.mxu0 }
 0x58a   : > { %4874 = vmatmul.msk.bf16.gmra.mxu2 %vm1442_vm1, %v2230_v31  ;;  %v6163_v62 = vadd.f32 %v2004_v19, %v5925_v30 }
 0x58c   : > { %v2025_v6 = vsel %vm1496_vm2, %v6163_v62, -inf }
 0x58e   : > { %1807 = vrot.lane.b32.xlu1 %v5895_v29, %s5520_s17 }
 0x591   : > { %v2007_v0 = vpop.f32.mrf.mxu0 }
 0x592   : > { %v6168_v39 = vadd.f32 %v2007_v0, %v5932_v34 }
 0x594   : > { %v2028_v2 = vsel %vm1496_vm2, %v6168_v39, -inf }
 0x595   : > { %1809 = vrot.lane.b32.xlu2 %v5888_v12, %s5520_s17 }
 0x599   : > { %v2009_v1 = vpop.f32.mrf.mxu0 }
 0x59a   : > { %v6175_v26 = vadd.f32 %v2009_v1, %v5939_v37 }
 0x59c   : > { %v2031_v19 = vsel %vm1496_vm2, %v6175_v26, -inf }
 0x59d   : > { %2120 = vrot.lane.b32.xlu2 %v5878_v44, %s7566_s20 }
 0x5a1   : > { %v2012_v43 = vpop.f32.mrf.mxu0 }
 0x5a2   : > { %v6180_v51 = vadd.f32 %v2012_v43, %v5946_v36 }
 0x5a4   : > { %v2034_v1 = vsel %vm1496_vm2, %v6180_v51, -inf }
 0x5a9   : > { %v2014_v47 = vpop.f32.mrf.mxu0 }
 0x5ad   : > { %v6155_v56 = vpop.f32.mrf.mxu2 }
 0x5b1   : > { %v2017_v18 = vpop.f32.mrf.mxu0 }
 0x5b2   : > { %v6194_v10 = vadd.f32 %v2017_v18, %v5960_v60 }
 0x5b3   : > { %2023 = vmax.xlane.f32.xlu0 %v2022_v16 }
 0x5b5   : > { %v6165_v28 = vpop.f32.mrf.mxu2 }
 0x5b8   : > { %2026 = vmax.xlane.f32.xlu1 %v2025_v6  ;;  %v1717_v31 = vpop.xlane.xlu0 %1716 }
 0x5b9   : > { %v1739_v16 = vsub.f32 %v6097_v3, %v1717_v31  ;;  %v2019_v31 = vpop.f32.mrf.mxu0 }
 0x5bb   : > { %2029 = vmax.xlane.f32.xlu0 %v2028_v2  ;;  %v6189_v2 = vadd.f32 %v2014_v47, %v5953_v53  ;;  %v1747_v43 = vmul.f32 1.442695, %v1739_v16  ;;  %v2040_v47 = vsel %vm1496_vm2, %v6194_v10, -inf }
 0x5bd   : > { %v6177_v17 = vpop.f32.mrf.mxu2  ;;  %v2037_v3 = vsel %vm1496_vm2, %v6189_v2, -inf }
 0x5c0   : > { %2032 = vmax.xlane.f32.xlu1 %v2031_v19  ;;  %v1720_v0 = vpop.xlane.xlu2 %1719 }
 0x5c1   : > { %v1740_v6 = vsub.f32 %v6102_v15, %v1720_v0 }
 0x5c3   : > { %v1749_v11 = vmul.f32 1.442695, %v1740_v6  ;;  %2035 = vmax.xlane.f32.xlu0 %v2034_v1 }
 0x5c5   : > { %5210 = vpow2.f32 %v1749_v11  ;;  %v6191_v45 = vpop.f32.mrf.mxu2  ;;  %v6204_v11 = vadd.f32 %v2019_v31, %v5967_v58 }
 0x5c6   : > { %5212 = vpow2.f32 %v1747_v43 }
 0x5c8   : > { %v1723_v15 = vpop.xlane.xlu1 %1722  ;;  %2038 = vmax.xlane.f32.xlu1 %v2037_v3 }
 0x5c9   : > { %v1741_v19 = vsub.f32 %v6108_v50, %v1723_v15  ;;  %v2043_v50 = vsel %vm1496_vm2, %v6204_v11, -inf }
 0x5cb   : > { %v6201_v0 = vpop.eup %5210  ;;  %v1751_v16 = vmul.f32 1.442695, %v1741_v19  ;;  %2041 = vmax.xlane.f32.xlu0 %v2040_v47 }
 0x5cc   : > { %v1766_v18 = vsel %vm1496_vm2, %v6201_v0, 0.0  ;;  %v6210_v1 = vpop.eup %5212 }
 0x5cd   : > { %5214 = vpow2.f32 %v1751_v16  ;;  %v6208_v6 = vpop.f32.mrf.mxu2  ;;  %1767 = vadd.xlane.f32.xlu2 %v1766_v18  ;;  %v1763_v31 = vsel %vm1496_vm2, %v6210_v1, 0.0 }
 0x5d0   : > { %v1726_v43 = vpop.xlane.xlu0 %1725  ;;  %2044 = vmax.xlane.f32.xlu1 %v2043_v50 }
 0x5d1   : > { %v1742_v3 = vsub.f32 %v6113_v57, %v1726_v43 }
 0x5d3   : > { %v6217_v15 = vpop.eup %5214  ;;  %v1753_v19 = vmul.f32 1.442695, %v1742_v3  ;;  %1764 = vadd.xlane.f32.xlu0 %v1763_v31 }
 0x5d4   : > { %v1769_v47 = vsel %vm1496_vm2, %v6217_v15, 0.0 }
 0x5d5   : > { %5216 = vpow2.f32 %v1753_v19  ;;  %v6221_v16 = vpop.f32.mrf.mxu2  ;;  %1770 = vadd.xlane.f32.xlu2 %v1769_v47 }
 0x5d6   : > { %7578 = vst [vmem:[#allocation12_spill] sm:$0xff] %v6221_v16 }
 0x5d8   : > { %v1729_v18 = vpop.xlane.xlu2 %1728 }
 0x5d9   : > { %v1743_v9 = vsub.f32 %v6119_v55, %v1729_v18 }
 0x5db   : > { %v6224_v50 = vpop.eup %5216  ;;  %v1755_v57 = vmul.f32 1.442695, %v1743_v9 }
 0x5dc   : > { %v1772_v43 = vsel %vm1496_vm2, %v6224_v50, 0.0 }
 0x5dd   : > { %5218 = vpow2.f32 %v1755_v57  ;;  %v6228_v5 = vpop.f32.mrf.mxu2  ;;  %1773 = vadd.xlane.f32.xlu0 %v1772_v43 }
 0x5e0   : > { %v1732_v3 = vpop.xlane.xlu1 %1731 }
 0x5e1   : > { %v1744_v31 = vsub.f32 %v6124_v33, %v1732_v3 }
 0x5e3   : > { %v6231_v19 = vpop.eup %5218  ;;  %v1757_v4 = vmul.f32 1.442695, %v1744_v31 }
 0x5e4   : > { %v1775_v47 = vsel %vm1496_vm2, %v6231_v19, 0.0 }
 0x5e5   : > { %5220 = vpow2.f32 %v1757_v4  ;;  %v2274_v55 = vpop.f32.mrf.mxu2  ;;  %1776 = vadd.xlane.f32.xlu2 %v1775_v47 }
 0x5e8   : > { %v1735_v9 = vpop.xlane.xlu0 %1734 }
 0x5e9   : > { %v1745_v18 = vsub.f32 %v6130_v42, %v1735_v9  ;;  %v6246_v9 = vadd.f32 %v2274_v55, %v5925_v30 }
 0x5eb   : > { %v6236_v8 = vpop.eup %5220  ;;  %v1759_v57 = vmul.f32 1.442695, %v1745_v18 }
 0x5ec   : > { %v1778_v43 = vsel %vm1496_vm2, %v6236_v8, 0.0 }
 0x5ed   : > { %5222 = vpow2.f32 %v1759_v57  ;;  %v2277_v33 = vpop.f32.mrf.mxu2  ;;  %1779 = vadd.xlane.f32.xlu0 %v1778_v43 }
 0x5f0   : > { %v1738_v3 = vpop.xlane.xlu2 %1737 }
 0x5f1   : > { %v1746_v31 = vsub.f32 %v6135_v59, %v1738_v3  ;;  %v2295_v59 = vsel %vm1496_vm2, %v6246_v9, -inf }
 0x5f3   : > { %v6241_v7 = vpop.eup %5222  ;;  %v1761_v4 = vmul.f32 1.442695, %v1746_v31 }
 0x5f4   : > { %v1781_v47 = vsel %vm1496_vm2, %v6241_v7, 0.0 }
 0x5f5   : > { %5224 = vpow2.f32 %v1761_v4  ;;  %v2279_v42 = vpop.f32.mrf.mxu2  ;;  %1782 = vadd.xlane.f32.xlu2 %v1781_v47 }
 0x5f6   : > { %v6255_v4 = vadd.f32 %v2279_v42, %v5939_v37 }
 0x5f8   : > { %v1814_v18 = vpop.permute.xlu1 %1813  ;;  %v1810_v43 = vpop.permute.xlu2 %1809  ;;  %v2301_v55 = vsel %vm1496_vm2, %v6255_v4, -inf }
 0x5f9   : > { %1835 = vmatpush.bf16.msrb.mxu1 %v1814_v18 }
 0x5fb   : > { %v6248_v57 = vpop.eup %5224  ;;  %v1812_v25 = vpop.permute.xlu0 %1811 }
 0x5fc   : > { %v1784_v3 = vsel %vm1496_vm2, %v6248_v57, 0.0 }
 0x5fd   : > { %1836 = vmatpush.bf16.msrb.mxu1 %v1812_v25  ;;  %v2282_v31 = vpop.f32.mrf.mxu2  ;;  %2296 = vmax.xlane.f32.xlu2 %v2295_v59 }
 0x5fe   : > { %1785 = vadd.xlane.f32.xlu0 %v1784_v3 }
 0x600   : > { %v1808_v30 = vpop.permute.xlu1 %1807  ;;  %v2121_v47 = vpop.permute.xlu2 %2120 }
 0x601   : > { %1837 = vmatpush.bf16.msrb.mxu1 %v1810_v43 }
 0x605   : > { %v2284_v18 = vpop.f32.mrf.mxu2  ;;  %2302 = vmax.xlane.f32.xlu2 %v2301_v55  ;;  %1838 = vmatpush.bf16.msrb.mxu1 %v1808_v30 }
 0x606   : > { %v6260_v16 = vadd.f32 %v2284_v18, %v5953_v53 }
 0x608   : > { %v2307_v25 = vsel %vm1496_vm2, %v6260_v16, -inf }
 0x609   : > { %2142 = vmatpush.bf16.msra.mxu1 %v2121_v47 }
 0x60d   : > { %2308 = vmax.xlane.f32.xlu2 %v2307_v25 }
 0x612   : > { %2118 = vrot.lane.b32.xlu0 %v5884_v54, %s7566_s20 }
 0x625   : > { %2116 = vrot.lane.b32.xlu2 %v5888_v12, %s7566_s20 }
 0x626   : > { %v2024_v37 = vpop.xlane.xlu0 %2023 }
 0x627   : > { %v2046_v42 = vsub.f32 %v6158_v52, %v2024_v37  ;;  %v6282_v52 = vadd.f32 %v6228_v5, %v5918_v27 }
 0x629   : > { %v2054_v3 = vmul.f32 1.442695, %v2046_v42  ;;  %v2292_v42 = vsel %vm1496_vm2, %v6282_v52, -inf }
 0x62b   : > { %v2027_v43 = vpop.xlane.xlu1 %2026 }
 0x62c   : > { %v2047_v59 = vsub.f32 %v6163_v62, %v2027_v43 }
 0x62e   : > { %v2056_v30 = vmul.f32 1.442695, %v2047_v59  ;;  %v6270_v53 = vpop.xlane.xlu0 %2029  ;;  %v6291_v59 = vadd.f32 %v2277_v33, %v5932_v34 }
 0x630   : > { %5226 = vpow2.f32 %v2056_v30  ;;  %v2298_v5 = vsel %vm1496_vm2, %v6291_v59, -inf  ;;  %v6296_v30 = vadd.f32 %v2282_v31, %v5946_v36 }
 0x631   : > { %5228 = vpow2.f32 %v2054_v3 }
 0x632   : > { %v2304_v34 = vsel %vm1496_vm2, %v6296_v30, -inf }
 0x636   : > { %v6272_v55 = vpop.eup %5226  ;;  %v6274_v47 = vpop.xlane.xlu0 %2035 }
 0x637   : > { %v2073_v18 = vsel %vm1496_vm2, %v6272_v55, 0.0  ;;  %v6278_v25 = vpop.eup %5228 }
 0x638   : > { %2074 = vadd.xlane.f32.xlu1 %v2073_v18  ;;  %v2070_v62 = vsel %vm1496_vm2, %v6278_v25, 0.0 }
 0x63c   : > { %2071 = vadd.xlane.f32.xlu0 %v2070_v62 }
 0x63e   : > { %v6286_v37 = vpop.xlane.xlu0 %2041 }
 0x640   : > { %2293 = vmax.xlane.f32.xlu1 %v2292_v42  ;;  %v1768_v43 = vpop.xlane.xlu2 %1767 }
 0x641   : > { %5230 = vrcp.f32 %v1768_v43 }
 0x646   : > { %v1765_v3 = vpop.xlane.xlu0 %1764 }
 0x647   : > { %5232 = vrcp.f32 %v1765_v3  ;;  %v5231_v27 = vpop.eup %5230 }
 0x648   : > { %2299 = vmax.xlane.f32.xlu1 %v2298_v5  ;;  %v1796_v62 = vmul.f32 %v5231_v27, %v6201_v0  ;;  %v1771_v3 = vpop.xlane.xlu2 %1770 }
 0x64d   : > { %v5233_v18 = vpop.eup %5232 }
 0x64e   : > { %v1795_v42 = vmul.f32 %v5233_v18, %v6210_v1 }
 0x650   : > { %v1803_v33 = vpack.c.bf16 %v1796_v62, %v1795_v42  ;;  %2305 = vmax.xlane.f32.xlu1 %v2304_v34  ;;  %v1774_v43 = vpop.xlane.xlu0 %1773 }
 0x651   : > { %5234 = vrcp.f32 %v1774_v43 }
 0x652   : > { %4847 = vmatmul.msk.bf16.vlgmr.msrb.gmra.mxu1 %vm1496_vm2, %v1803_v33  ;;  %5236 = vrcp.f32 %v1771_v3  ;;  %v2033_v33 = vpop.xlane.xlu1 %2032 }
 0x657   : > { %v5235_v5 = vpop.eup %5234 }
 0x658   : > { %v5237_v20 = vpop.eup %5236  ;;  %v1798_v36 = vmul.f32 %v5235_v5, %v6224_v50  ;;  %v1777_v0 = vpop.xlane.xlu2 %1776  ;;  %v2049_v5 = vsub.f32 %v6175_v26, %v2033_v33 }
 0x659   : > { %v1797_v31 = vmul.f32 %v5237_v20, %v6217_v15 }
 0x65a   : > { %v2039_v33 = vpop.xlane.xlu1 %2038 }
 0x65b   : > { %v1804_v1 = vpack.c.bf16 %v1798_v36, %v1797_v31 }
 0x660   : > { %v1780_v27 = vpop.xlane.xlu0 %1779 }
 0x661   : > { %5238 = vrcp.f32 %v1780_v27 }
 0x662   : > { %4848 = vmatmul.msk.bf16.gmra.mxu1 %vm1496_vm2, %v1804_v1  ;;  %5240 = vrcp.f32 %v1777_v0 }
 0x667   : > { %v5239_v62 = vpop.eup %5238 }
 0x668   : > { %v1783_v18 = vpop.xlane.xlu2 %1782  ;;  %v5241_v42 = vpop.eup %5240  ;;  %v1800_v34 = vmul.f32 %v5239_v62, %v6236_v8  ;;  %v2060_v8 = vmul.f32 1.442695, %v2049_v5 }
 0x669   : > { %2390 = vrot.lane.b32.xlu1 %v5878_v44, %s7564_s21  ;;  %v1799_v50 = vmul.f32 %v5241_v42, %v6231_v19 }
 0x66b   : > { %v1805_v15 = vpack.c.bf16 %v1800_v34, %v1799_v50 }
 0x670   : > { %v2297_v20 = vpop.xlane.xlu2 %2296 }
 0x671   : > { %v1786_v43 = vpop.xlane.xlu0 %1785  ;;  %v2317_v3 = vsub.f32 %v6246_v9, %v2297_v20  ;;  %2114 = vrot.lane.b32.xlu1 %v5895_v29, %s7566_s20  ;;  %v2287_v20 = vpop.f32.mrf.mxu2  ;;  %s4764_s20 = sshll.u32 %s4753_s19, 3 }
 0x672   : > { %4849 = vmatmul.msk.bf16.gmra.mxu1 %vm1496_vm2, %v1805_v15  ;;  %5242 = vrcp.f32 %v1786_v43  ;;  %v6338_v15 = vadd.f32 %v2287_v20, %v5960_v60  ;;  %v2048_v60 = vsub.f32 %v6168_v39, %v6270_v53  ;;  %p521_p4 = scmp.lt.s32.totalorder %s4764_s20, 15 }
 0x673   : > { %v2326_v44 = vmul.f32 1.442695, %v2317_v3  ;;  %5244 = vrcp.f32 %v1783_v18 }
 0x674   : > { %v2310_v43 = vsel %vm1496_vm2, %v6338_v15, -inf  ;;  %s7595_s20 = smov (!%p521_p4, %s4764_s20), 15 }
 0x675   : > { %5246 = vpow2.f32 %v2326_v44  ;;  %s4765_s30 = sshll.u32 %s7595_s20, 3 }
 0x676   : > { %5248 = vpow2.f32 %v2060_v8  ;;  %s6780_s22 = scalar_lea.vmem %s7553_s15, %s4765_s30  ;;  %s5524_s30 = smov 32  }
 0x678   : > { %v2303_v36 = vpop.xlane.xlu2 %2302  ;;  %v5243_v19 = vpop.eup %5242 }
 0x679   : > { %2388 = vrot.lane.b32.xlu1 %v5884_v54, %s7564_s21  ;;  %v5245_v31 = vpop.eup %5244  ;;  %v2319_v9 = vsub.f32 %v6255_v4, %v2303_v36  ;;  %v1802_v26 = vmul.f32 %v5243_v19, %v6248_v57  ;;  %v2289_v3 = vpop.f32.mrf.mxu2 }
 0x67a   : > { %v1801_v1 = vmul.f32 %v5245_v31, %v6241_v7  ;;  %v6343_v44 = vadd.f32 %v2289_v3, %v5967_v58  ;;  %v2058_v58 = vmul.f32 1.442695, %v2048_v60 }
 0x67b   : > { %v6317_v0 = vpop.eup %5246  ;;  %v2330_v18 = vmul.f32 1.442695, %v2319_v9  ;;  %v1399_v9 = vld [vmem:[%s7547_s9 + $0x4] sm:$0xf] }
 0x67c   : > { %v2343_v27 = vsel %vm1496_vm2, %v6317_v0, 0.0  ;;  %v1806_v42 = vpack.c.bf16 %v1802_v26, %v1801_v1  ;;  %v6326_v34 = vpop.eup %5248  ;;  %v2313_v8 = vsel %vm1496_vm2, %v6343_v44, -inf }
 0x67d   : > { %2344 = vadd.xlane.f32.xlu0 %v2343_v27  ;;  %5250 = vpow2.f32 %v2330_v18  ;;  %v2079_v4 = vsel %vm1496_vm2, %v6326_v34, 0.0  ;;  %v1878_v27 = vsel %vm1876_vm3, %v1399_v9, 0 }
 0x67e   : > { %1887 = vmatpush.bf16.msrb.mxu3 %v1878_v27 }
 0x680   : > { %v6324_v62 = vpop.xlane.xlu2 %2308 }
 0x681   : > { %2386 = vrot.lane.b32.xlu1 %v5888_v12, %s7564_s21  ;;  %v2045_v12 = vpop.xlane.xlu1 %2044 }
 0x682   : > { %4850 = vmatmul.msk.bf16.gmra.mxu1 %vm1496_vm2, %v1806_v42  ;;  %v2053_v60 = vsub.f32 %v6204_v11, %v2045_v12 }
 0x683   : > { %v6333_v7 = vpop.eup %5250 }
 0x684   : > { %v2119_v54 = vpop.permute.xlu0 %2118  ;;  %v2349_v50 = vsel %vm1496_vm2, %v6333_v7, 0.0  ;;  %v2068_v27 = vmul.f32 1.442695, %v2053_v60 }
 0x685   : > { %2143 = vmatpush.bf16.msra.mxu1 %v2119_v54  ;;  %2080 = vadd.xlane.f32.xlu0 %v2079_v4  ;;  %v2051_v4 = vsub.f32 %v6189_v2, %v2039_v33 }
 0x687   : > { %v2064_v20 = vmul.f32 1.442695, %v2051_v4  ;;  %v2050_v4 = vsub.f32 %v6180_v51, %v6274_v47 }
 0x688   : > { %v2117_v57 = vpop.permute.xlu2 %2116 }
 0x689   : > { %2144 = vmatpush.bf16.msra.mxu1 %v2117_v57  ;;  %v2052_v57 = vsub.f32 %v6194_v10, %v6286_v37  ;;  %v2321_v10 = vsub.f32 %v6260_v16, %v6324_v62 }
 0x68d   : > { %2350 = vadd.xlane.f32.xlu0 %v2349_v50 }
 0x6ab   : > { %2311 = vmax.xlane.f32.xlu1 %v2310_v43  ;;  %v2075_v5 = vpop.xlane.xlu1 %2074  ;;  %v2066_v43 = vmul.f32 1.442695, %v2052_v57 }
 0x6b3   : > { %2314 = vmax.xlane.f32.xlu1 %v2313_v8  ;;  %v2294_v36 = vpop.xlane.xlu1 %2293  ;;  %v2334_v8 = vmul.f32 1.442695, %v2321_v10 }
 0x6b4   : > { %v2316_v19 = vsub.f32 %v6282_v52, %v2294_v36 }
 0x6b6   : > { %v2324_v31 = vmul.f32 1.442695, %v2316_v19  ;;  %v2072_v19 = vpop.xlane.xlu0 %2071 }
 0x6b8   : > { %5252 = vpow2.f32 %v2324_v31 }
 0x6b9   : > { %5254 = vpow2.f32 %v2058_v58 }
 0x6bb   : > { %v2300_v26 = vpop.xlane.xlu1 %2299 }
 0x6bc   : > { %v2318_v18 = vsub.f32 %v6291_v59, %v2300_v26 }
 0x6be   : > { %v6354_v1 = vpop.eup %5252  ;;  %v2328_v39 = vmul.f32 1.442695, %v2318_v18 }
 0x6bf   : > { %v2340_v52 = vsel %vm1496_vm2, %v6354_v1, 0.0  ;;  %v6359_v42 = vpop.eup %5254 }
 0x6c0   : > { %2341 = vadd.xlane.f32.xlu2 %v2340_v52  ;;  %5256 = vpow2.f32 %v2328_v39  ;;  %v2076_v59 = vsel %vm1496_vm2, %v6359_v42, 0.0 }
 0x6c3   : > { %v2306_v53 = vpop.xlane.xlu1 %2305 }
 0x6c4   : > { %v2320_v54 = vsub.f32 %v6296_v30, %v2306_v53 }
 0x6c6   : > { %v2332_v50 = vmul.f32 1.442695, %v2320_v54  ;;  %v6367_v3 = vpop.eup %5256 }
 0x6c7   : > { %v2346_v37 = vsel %vm1496_vm2, %v6367_v3, 0.0 }
 0x6c8   : > { %5258 = vpow2.f32 %v2332_v50  ;;  %2077 = vadd.xlane.f32.xlu2 %v2076_v59 }
 0x6c9   : > { %5260 = vpow2.f32 %v2064_v20  ;;  %v2062_v20 = vmul.f32 1.442695, %v2050_v4 }
 0x6ca   : > { %5262 = vpow2.f32 %v2066_v43 }
 0x6cb   : > { %5264 = vpow2.f32 %v2334_v8 }
 0x6cc   : > { %2384 = vrot.lane.b32.xlu1 %v5895_v29, %s7564_s21  ;;  %5266 = vrcp.f32 %v2072_v19 }
 0x6cd   : > { %5268 = vrcp.f32 %v2075_v5 }
 0x6ce   : > { %v6371_v30 = vpop.eup %5258  ;;  %5270 = vpow2.f32 %v2068_v27 }
 0x6cf   : > { %v1840_v2 = vpop.f32.mrf.mxu1  ;;  %v2352_v33 = vsel %vm1496_vm2, %v6371_v30, 0.0  ;;  %v6379_v36 = vpop.eup %5260  ;;  %5272 = vpow2.f32 %v2062_v20 }
 0x6d0   : > { %2347 = vadd.xlane.f32.xlu2 %v2346_v37  ;;  %2353 = vadd.xlane.f32.xlu0 %v2352_v33  ;;  %v6381_v29 = vpop.eup %5262  ;;  %v2085_v16 = vsel %vm1496_vm2, %v6379_v36, 0.0 }
 0x6d1   : > { %v2088_v62 = vsel %vm1496_vm2, %v6381_v29, 0.0  ;;  %v6389_v26 = vpop.eup %5264 }
 0x6d2   : > { %v5267_v11 = vpop.eup %5266  ;;  %v2355_v18 = vsel %vm1496_vm2, %v6389_v26, 0.0 }
 0x6d3   : > { %v5269_v52 = vpop.eup %5268  ;;  %v2102_v39 = vmul.f32 %v5267_v11, %v6278_v25 }
 0x6d4   : > { %v2103_v53 = vmul.f32 %v5269_v52, %v6272_v55  ;;  %v6395_v5 = vpop.eup %5270 }
 0x6d5   : > { %v2091_v59 = vsel %vm1496_vm2, %v6395_v5, 0.0  ;;  %v6403_v10 = vpop.eup %5272 }
 0x6d6   : > { %v2110_v57 = vpack.c.bf16 %v2103_v53, %v2102_v39  ;;  %v2082_v47 = vsel %vm1496_vm2, %v6403_v10, 0.0 }
 0x6d7   : > { %v1842_v31 = vpop.f32.mrf.mxu1 }
 0x6d8   : > { %v1860_v9 = vpack.c.bf16 %v1842_v31, %v1840_v2  ;;  %2086 = vadd.xlane.f32.xlu2 %v2085_v16  ;;  %2089 = vadd.xlane.f32.xlu0 %v2088_v62 }
 0x6da   : > { %4851 = vmatmul.msk.bf16.vlgmr.msrb.gmra.mxu3 %vm1442_vm1, %v1860_v9 }
 0x6db   : > { %v2391_v58 = vpop.permute.xlu1 %2390 }
 0x6dc   : > { %2412 = vmatpush.bf16.msra.mxu0 %v2391_v58 }
 0x6df   : > { %v1845_v12 = vpop.f32.mrf.mxu1 }
 0x6e0   : > { %2356 = vadd.xlane.f32.xlu2 %v2355_v18 }
 0x6e3   : > { %v2115_v54 = vpop.permute.xlu1 %2114 }
 0x6e4   : > { %2145 = vmatpush.bf16.msra.mxu1 %v2115_v54 }
 0x6e7   : > { %v1847_v50 = vpop.f32.mrf.mxu1  ;;  %4863 = vmatmul.msk.bf16.vlgmr.msra.gmra.mxu1 %vm1496_vm2, %v2110_v57 }
 0x6e8   : > { %v1861_v43 = vpack.c.bf16 %v1847_v50, %v1845_v12  ;;  %2092 = vadd.xlane.f32.xlu2 %v2091_v59 }
 0x6ea   : > { %4852 = vmatmul.msk.bf16.gmra.mxu3 %vm1442_vm1, %v1861_v43 }
 0x6eb   : > { %v2389_v55 = vpop.permute.xlu1 %2388 }
 0x6ec   : > { %2413 = vmatpush.bf16.msra.mxu0 %v2389_v55 }
 0x6ef   : > { %v1850_v25 = vpop.f32.mrf.mxu1 }
 0x6f0   : > { %v2345_v12 = vpop.xlane.xlu0 %2344 }
 0x6f3   : > { %v2387_v51 = vpop.permute.xlu1 %2386 }
 0x6f4   : > { %2414 = vmatpush.bf16.msra.mxu0 %v2387_v51 }
 0x6f6   : > { %2083 = vadd.xlane.f32.xlu1 %v2082_v47 }
 0x6f7   : > { %v1852_v2 = vpop.f32.mrf.mxu1 }
 0x6f8   : > { %v1862_v37 = vpack.c.bf16 %v1852_v2, %v1850_v25  ;;  %v2081_v52 = vpop.xlane.xlu0 %2080 }
 0x6fa   : > { %4853 = vmatmul.msk.bf16.gmra.mxu3 %vm1442_vm1, %v1862_v37 }
 0x6ff   : > { %v1855_v33 = vpop.f32.mrf.mxu1 }
 0x700   : > { %v2351_v20 = vpop.xlane.xlu0 %2350 }
 0x707   : > { %v1857_v8 = vpop.f32.mrf.mxu1 }
 0x708   : > { %v1863_v19 = vpack.c.bf16 %v1857_v8, %v1855_v33 }
 0x70a   : > { %4854 = vmatmul.msk.bf16.gmra.mxu3 %vm1442_vm1, %v1863_v19 }
 0x70f   : > { %3031 = vrot.lane.b32.xlu1 %v5817_v24, %s5516_s26 }
 0x71e   : > { %v2312_v60 = vpop.xlane.xlu1 %2311 }
 0x71f   : > { %v2322_v31 = vsub.f32 %v6338_v15, %v2312_v60 }
 0x721   : > { %v2336_v16 = vmul.f32 1.442695, %v2322_v31 }
 0x723   : > { %5274 = vpow2.f32 %v2336_v16 }
 0x726   : > { %v2315_v62 = vpop.xlane.xlu1 %2314 }
 0x727   : > { %v2323_v9 = vsub.f32 %v6343_v44, %v2315_v62 }
 0x729   : > { %v6413_v27 = vpop.eup %5274  ;;  %v2338_v58 = vmul.f32 1.442695, %v2323_v9 }
 0x72a   : > { %v2358_v11 = vsel %vm1496_vm2, %v6413_v27, 0.0 }
 0x72b   : > { %5276 = vpow2.f32 %v2338_v58  ;;  %2359 = vadd.xlane.f32.xlu0 %v2358_v11 }
 0x731   : > { %v6417_v18 = vpop.eup %5276 }
 0x732   : > { %v2361_v24 = vsel %vm1496_vm2, %v6417_v18, 0.0 }
 0x733   : > { %2362 = vadd.xlane.f32.xlu2 %v2361_v24  ;;  %v2342_v15 = vpop.xlane.xlu2 %2341 }
 0x734   : > { %5278 = vrcp.f32 %v2342_v15 }
 0x735   : > { %5280 = vrcp.f32 %v2345_v12 }
 0x736   : > { %5282 = vrcp.f32 %v2081_v52 }
 0x73a   : > { %v5279_v44 = vpop.eup %5278 }
 0x73b   : > { %v5281_v39 = vpop.eup %5280  ;;  %v2078_v53 = vpop.xlane.xlu2 %2077  ;;  %v2372_v54 = vmul.f32 %v5279_v44, %v6354_v1 }
 0x73c   : > { %5284 = vrcp.f32 %v2078_v53  ;;  %v2373_v4 = vmul.f32 %v5281_v39, %v6317_v0  ;;  %v5283_v50 = vpop.eup %5282 }
 0x73d   : > { %v2105_v51 = vmul.f32 %v5283_v50, %v6326_v34  ;;  %5286 = vrcp.f32 %v2351_v20 }
 0x73e   : > { %v2385_v57 = vpop.permute.xlu1 %2384  ;;  %v2380_v59 = vpack.c.bf16 %v2373_v4, %v2372_v54  ;;  %v5099_v4 = vld [vmem:[%s7543_s5 + $0x18] sm:$0xff] }
 0x73f   : > { %2415 = vmatpush.bf16.msra.mxu0 %v2385_v57  ;;  %3027 = vrot.lane.b32.xlu0 %v5753_v48, %s5516_s26 }
 0x742   : > { %v5285_v43 = vpop.eup %5284  ;;  %4875 = vmatmul.msk.bf16.vlgmr.msra.gmra.mxu0 %vm1496_vm2, %v2380_v59 }
 0x743   : > { %v2348_v55 = vpop.xlane.xlu2 %2347  ;;  %v2104_v25 = vmul.f32 %v5285_v43, %v6359_v42  ;;  %v5287_v48 = vpop.eup %5286  ;;  %v1400_v42 = vld [vmem:[%s7547_s9 + $0x8] sm:$0xf]  ;;  %2982 = vmatpush.bf16.msrb.mxu0 %v5099_v4 }
 0x744   : > { %5288 = vrcp.f32 %v2348_v55  ;;  %v2184_v2 = vsel %vm1876_vm3, %v1400_v42, 0  ;;  %v2375_v37 = vmul.f32 %v5287_v48, %v6333_v7  ;;  %v2354_v33 = vpop.xlane.xlu0 %2353 }
 0x745   : > { %v2111_v1 = vpack.c.bf16 %v2105_v51, %v2104_v25  ;;  %2193 = vmatpush.bf16.msra.mxu3 %v2184_v2 }
 0x747   : > { %3033 = vrot.lane.b32.xlu0 %v5847_v49, %s5516_s26  ;;  %4864 = vmatmul.msk.bf16.gmra.mxu1 %vm1496_vm2, %v2111_v1 }
 0x74a   : > { %v5289_v0 = vpop.eup %5288 }
 0x74b   : > { %3029 = vrot.lane.b32.xlu2 %v5789_v32, %s5516_s26  ;;  %v2087_v47 = vpop.xlane.xlu2 %2086  ;;  %v2374_v34 = vmul.f32 %v5289_v0, %v6367_v3 }
 0x74d   : > { %v2381_v49 = vpack.c.bf16 %v2375_v37, %v2374_v34 }
 0x752   : > { %4876 = vmatmul.msk.bf16.gmra.mxu0 %vm1496_vm2, %v2381_v49 }
 0x753   : > { %v2357_v8 = vpop.xlane.xlu2 %2356 }
 0x754   : > { %5290 = vrcp.f32 %v2357_v8 }
 0x755   : > { %5292 = vrcp.f32 %v2354_v33 }
 0x756   : > { %5294 = vrcp.f32 %v2087_v47 }
 0x75a   : > { %v5291_v32 = vpop.eup %5290 }
 0x75b   : > { %v5293_v19 = vpop.eup %5292  ;;  %v2377_v60 = vmul.f32 %v5291_v32, %v6389_v26  ;;  %v2093_v26 = vpop.xlane.xlu2 %2092 }
 0x75c   : > { %v2376_v31 = vmul.f32 %v5293_v19, %v6371_v30  ;;  %v5295_v58 = vpop.eup %5294  ;;  %v2090_v30 = vpop.xlane.xlu0 %2089 }
 0x75d   : > { %v2107_v12 = vmul.f32 %v5295_v58, %v6379_v36  ;;  %v1401_v36 = vld [vmem:[%s7547_s9 + $0xc] sm:$0xf]  ;;  %v1889_v37 = vpop.f32.mrf.mxu3 }
 0x75e   : > { %v2382_v16 = vpack.c.bf16 %v2377_v60, %v2376_v31 }
 0x762   : > { %4877 = vmatmul.msk.bf16.gmra.mxu0 %vm1496_vm2, %v2382_v16 }
 0x764   : > { %v2147_v3 = vpop.f32.mrf.mxu1 }
 0x769   : > { %v2084_v62 = vpop.xlane.xlu1 %2083 }
 0x76a   : > { %5296 = vrcp.f32 %v2084_v62 }
 0x76b   : > { %5298 = vrcp.f32 %v2093_v26  ;;  %v1934_v26 = vadd.f32 %v6149_v35, %v1889_v37 }
 0x76c   : > { %v2149_v7 = vpop.f32.mrf.mxu1  ;;  %5300 = vrcp.f32 %v2090_v30  ;;  %v6492_v30 = vld [vmem:[%s7548_s10] ss:$0 sm:$0xff] }
 0x76d   : > { %v2167_v9 = vpack.c.bf16 %v2149_v7, %v2147_v3  ;;  %v5101_v3 = vld [vmem:[%s7545_s7 + $0x18] sm:$0xff] }
 0x76f   : > { %4867 = vmatmul.msk.bf16.vlgmr.msra.gmra.mxu3 %vm1442_vm1, %v2167_v9 }
 0x770   : > { %v5297_v11 = vpop.eup %5296 }
 0x771   : > { %v2106_v24 = vmul.f32 %v5297_v11, %v6403_v10  ;;  %v5299_v52 = vpop.eup %5298  ;;  %v2454_v10 = vsel %vm1876_vm3, %v1401_v36, 0 }
 0x772   : > { %v5301_v44 = vpop.eup %5300  ;;  %v2109_v39 = vmul.f32 %v5299_v52, %v6395_v5  ;;  %2463 = vmatpush.bf16.msrb.mxu1 %v2454_v10  ;;  %v5098_v5 = vld [vmem:[%s7543_s5 + $0x10] sm:$0xff] }
 0x773   : > { %v2112_v15 = vpack.c.bf16 %v2107_v12, %v2106_v24  ;;  %v2108_v53 = vmul.f32 %v5301_v44, %v6381_v29  ;;  %2983 = vmatpush.bf16.msrb.mxu0 %v5098_v5 }
 0x775   : > { %4865 = vmatmul.msk.bf16.gmra.mxu1 %vm1496_vm2, %v2112_v15  ;;  %v2113_v54 = vpack.c.bf16 %v2109_v39, %v2108_v53 }
 0x776   : > { %3065 = vmatpush.bf16.msra.mxu1 %v5101_v3 }
 0x785   : > { %4866 = vmatmul.msk.bf16.gmra.mxu1 %vm1496_vm2, %v2113_v54 }
 0x79e   : > { %v2360_v29 = vpop.xlane.xlu0 %2359 }
 0x79f   : > { %5302 = vrcp.f32 %v2360_v29 }
 0x7a5   : > { %v5303_v50 = vpop.eup %5302 }
 0x7a6   : > { %v2363_v57 = vpop.xlane.xlu2 %2362  ;;  %v2378_v20 = vmul.f32 %v5303_v50, %v6413_v27 }
 0x7a7   : > { %5304 = vrcp.f32 %v2363_v57 }
 0x7ad   : > { %v5305_v59 = vpop.eup %5304 }
 0x7ae   : > { %v2379_v43 = vmul.f32 %v5305_v59, %v6417_v18 }
 0x7b0   : > { %v2383_v55 = vpack.c.bf16 %v2379_v43, %v2378_v20 }
 0x7b1   : > { %v3028_v39 = vpop.permute.xlu0 %3027 }
 0x7b2   : > { %4878 = vmatmul.msk.bf16.gmra.mxu0 %vm1496_vm2, %v2383_v55 }
 0x7bf   : > { %v2417_v25 = vpop.f32.mrf.mxu0 }
 0x7c2   : > { %4940 = vmatmul.msk.bf16.vlgmr.msrb.gmra.mxu0 %vm575_vm0, %v5821_v46 }
 0x7c4   : > { %v2152_v51 = vpop.f32.mrf.mxu1 }
 0x7c7   : > { %v2419_v1 = vpop.f32.mrf.mxu0 }
 0x7c8   : > { %v2437_v48 = vpack.c.bf16 %v2419_v1, %v2417_v25  ;;  %v3030_v25 = vpop.permute.xlu2 %3029 }
 0x7ca   : > { %4879 = vmatmul.msk.bf16.vlgmr.msrb.gmra.mxu1 %vm1442_vm1, %v2437_v48 }
 0x7cc   : > { %v2154_v0 = vpop.f32.mrf.mxu1 }
 0x7cd   : > { %v2168_v47 = vpack.c.bf16 %v2154_v0, %v2152_v51 }
 0x7cf   : > { %4868 = vmatmul.msk.bf16.gmra.mxu3 %vm1442_vm1, %v2168_v47  ;;  %v2422_v42 = vpop.f32.mrf.mxu0 }
 0x7d2   : > { %4941 = vmatmul.msk.bf16.gmra.mxu0 %vm575_vm0, %v5813_v23  ;;  %v1891_v23 = vpop.f32.mrf.mxu3 }
 0x7d3   : > { %v1936_v36 = vadd.f32 %v6153_v41, %v1891_v23 }
 0x7d7   : > { %v2424_v27 = vpop.f32.mrf.mxu0 }
 0x7d8   : > { %v2438_v18 = vpack.c.bf16 %v2424_v27, %v2422_v42 }
 0x7da   : > { %4880 = vmatmul.msk.bf16.gmra.mxu1 %vm1442_vm1, %v2438_v18  ;;  %v1894_v19 = vpop.f32.mrf.mxu3 }
 0x7db   : > { %v1939_v59 = vadd.f32 %v6155_v56, %v1894_v19 }
 0x7df   : > { %v2427_v34 = vpop.f32.mrf.mxu0 }
 0x7e2   : > { %4942 = vmatmul.msk.bf16.gmra.mxu0 %vm575_vm0, %v5861_v13  ;;  %v1896_v13 = vpop.f32.mrf.mxu3 }
 0x7e3   : > { %v1941_v48 = vadd.f32 %v6165_v28, %v1896_v13  ;;  %v3032_v28 = vpop.permute.xlu1 %3031 }
 0x7e7   : > { %v2429_v46 = vpop.f32.mrf.mxu0 }
 0x7e8   : > { %v2439_v2 = vpack.c.bf16 %v2429_v46, %v2427_v34 }
 0x7ea   : > { %4881 = vmatmul.msk.bf16.gmra.mxu1 %vm1442_vm1, %v2439_v2  ;;  %v1899_v16 = vpop.f32.mrf.mxu3 }
 0x7eb   : > { %v1944_v46 = vadd.f32 %v6177_v17, %v1899_v16 }
 0x7f2   : > { %v2157_v49 = vpop.f32.mrf.mxu1  ;;  %4943 = vmatmul.msk.bf16.gmra.mxu0 %vm575_vm0, %v5865_v14  ;;  %v1901_v62 = vpop.f32.mrf.mxu3  ;;  %v5100_v14 = vld [vmem:[%s7545_s7 + $0x10] sm:$0xff] }
 0x7f3   : > { %3066 = vmatpush.bf16.msra.mxu1 %v5100_v14 }
 0x7fa   : > { %v2159_v33 = vpop.f32.mrf.mxu1  ;;  %v6483_v7 = vpop.f32.mrf.mxu3 }
 0x7fb   : > { %v2169_v8 = vpack.c.bf16 %v2159_v33, %v2157_v49 }
 0x7fd   : > { %4869 = vmatmul.msk.bf16.gmra.mxu3 %vm1442_vm1, %v2169_v8 }
 0x802   : > { %v2162_v32 = vpop.f32.mrf.mxu1  ;;  %v6485_v11 = vpop.f32.mrf.mxu3 }
 0x80a   : > { %v2164_v60 = vpop.f32.mrf.mxu1  ;;  %v2195_v24 = vpop.f32.mrf.mxu3 }
 0x80b   : > { %v2170_v31 = vpack.c.bf16 %v2164_v60, %v2162_v32  ;;  %v2215_v15 = vadd.f32 %v2195_v24, %v1934_v26 }
 0x80d   : > { %4870 = vmatmul.msk.bf16.gmra.mxu3 %vm1442_vm1, %v2170_v31 }
 0x812   : > { %v2197_v53 = vpop.f32.mrf.mxu3 }
 0x813   : > { %v2216_v35 = vadd.f32 %v2197_v53, %v1936_v36 }
 0x82f   : > { %v2432_v9 = vpop.f32.mrf.mxu0 }
 0x837   : > { %v2434_v58 = vpop.f32.mrf.mxu0 }
 0x838   : > { %v2440_v12 = vpack.c.bf16 %v2434_v58, %v2432_v9  ;;  %v1949_v9 = vadd.f32 %v6208_v6, %v6483_v7  ;;  %v7580_v6 = vld [vmem:[#allocation12_spill] sm:$0xff] }
 0x839   : > { %v1951_v7 = vadd.f32 %v7580_v6, %v6485_v11 }
 0x83a   : > { %4882 = vmatmul.msk.bf16.gmra.mxu1 %vm1442_vm1, %v2440_v12 }
 0x847   : > { %v2465_v52 = vpop.f32.mrf.mxu1 }
 0x848   : > { %v2485_v44 = vadd.f32 %v2465_v52, %v2215_v15  ;;  %v7579_v52 = vld [vmem:[#allocation6_spill] sm:$0xff] }
 0x84a   : > { %v2497_v54 = vadd.f32 %v6492_v30, %v2485_v44  ;;  %4957 = vmatmul.msk.bf16.vlgmr.msra.gmra.mxu1 %vm575_vm0, %v3028_v39 }
 0x84c   : > { %v6498_v10 = vadd.f32 %v2497_v54, %v5741_v38 }
 0x84e   : > { %v2513_v4 = vsel %vm575_vm0, %v6498_v10, 0.0 }
 0x84f   : > { %2514 = vadd.xlane.f32.xlu0 %v2513_v4  ;;  %v2467_v5 = vpop.f32.mrf.mxu1 }
 0x850   : > { %v2486_v29 = vadd.f32 %v2467_v5, %v2216_v35 }
 0x852   : > { %v2498_v57 = vadd.f32 %v6492_v30, %v2486_v29  ;;  %v2200_v50 = vpop.f32.mrf.mxu3 }
 0x853   : > { %v2217_v43 = vadd.f32 %v2200_v50, %v1939_v59 }
 0x854   : > { %v6505_v20 = vadd.f32 %v2498_v57, %v5743_v40 }
 0x856   : > { %v2516_v38 = vsel %vm575_vm0, %v6505_v20, 0.0 }
 0x857   : > { %2517 = vadd.xlane.f32.xlu2 %v2516_v38  ;;  %v2470_v41 = vpop.f32.mrf.mxu1 }
 0x858   : > { %v2487_v55 = vadd.f32 %v2470_v41, %v2217_v43 }
 0x85a   : > { %v2499_v51 = vadd.f32 %v6492_v30, %v2487_v55  ;;  %4958 = vmatmul.msk.bf16.gmra.mxu1 %vm575_vm0, %v3030_v25  ;;  %v2202_v1 = vpop.f32.mrf.mxu3 }
 0x85b   : > { %v2218_v40 = vadd.f32 %v2202_v1, %v1941_v48 }
 0x85c   : > { %v6513_v56 = vadd.f32 %v2499_v51, %v5782_v21  ;;  %v3034_v21 = vpop.permute.xlu0 %3033  ;;  %v7581_v51 = vld [vmem:[#allocation7_spill] sm:$0xff] }
 0x85e   : > { %v2519_v0 = vsel %vm575_vm0, %v6513_v56, 0.0 }
 0x85f   : > { %2520 = vadd.xlane.f32.xlu1 %v2519_v0  ;;  %v2472_v47 = vpop.f32.mrf.mxu1 }
 0x860   : > { %v2488_v42 = vadd.f32 %v2472_v47, %v2218_v40 }
 0x862   : > { %v2500_v27 = vadd.f32 %v6492_v30, %v2488_v42 }
 0x864   : > { %v6519_v18 = vadd.f32 %v2500_v27, %v5785_v22  ;;  %v1946_v22 = vadd.f32 %v6191_v45, %v1901_v62  ;;  %v5523_v45 = vmov 32.0  }
 0x865   : > { %5306 = vrcp.f32 %v5523_v45 }
 0x866   : > { %v2522_v34 = vsel %vm575_vm0, %v6519_v18, 0.0 }
 0x867   : > { %2523 = vadd.xlane.f32.xlu0 %v2522_v34  ;;  %v2475_v2 = vpop.f32.mrf.mxu1 }
 0x86a   : > { %4959 = vmatmul.msk.bf16.gmra.mxu1 %vm575_vm0, %v3032_v28 }
 0x86f   : > { %v2477_v31 = vpop.f32.mrf.mxu1 }
 0x87a   : > { %4960 = vmatmul.msk.bf16.gmra.mxu1 %vm575_vm0, %v3034_v21 }
 0x880   : > { %v2205_v37 = vpop.f32.mrf.mxu3 }
 0x881   : > { %v2219_v49 = vadd.f32 %v2205_v37, %v1944_v46 }
 0x883   : > { %v2489_v33 = vadd.f32 %v2475_v2, %v2219_v49 }
 0x885   : > { %v2501_v8 = vadd.f32 %v6492_v30, %v2489_v33 }
 0x887   : > { %v6529_v23 = vadd.f32 %v2501_v8, %v5796_v61  ;;  %v5307_v61 = vpop.eup %5306 }
 0x888   : > { %v2207_v32 = vpop.f32.mrf.mxu3  ;;  %v2538_v62 = vmul.f32 32.0, %v5307_v61  ;;  %vm2542_vm4 = vweird.f32 %v5307_v61 }
 0x889   : > { %v2220_v19 = vadd.f32 %v2207_v32, %v1946_v22  ;;  %v2525_v60 = vsel %vm575_vm0, %v6529_v23, 0.0  ;;  %v5089_v22 = vld [vmem:[%s7549_s11 + $0x8] sm:$0xff] }
 0x88a   : > { %2526 = vadd.xlane.f32.xlu2 %v2525_v60  ;;  %v2539_v58 = vsub.f32 1.0, %v2538_v62  ;;  %2738 = vmatpush.bf16.msrb.mxu3 %v5089_v22 }
 0x88b   : > { %v2490_v13 = vadd.f32 %v2477_v31, %v2220_v19  ;;  %v5088_v19 = vld [vmem:[%s7549_s11] sm:$0xff] }
 0x88c   : > { %v2540_v15 = vmul.f32 %v5307_v61, %v2539_v58 }
 0x88d   : > { %v2502_v17 = vadd.f32 %v6492_v30, %v2490_v13  ;;  %v5140_v13 = vld [vmem:[%s7546_s8 + $0x1] ss:$0 sm:$0xff] }
 0x88e   : > { %v2541_v39 = vadd.f32 %v5307_v61, %v2540_v15  ;;  %2739 = vmatpush.bf16.msrb.mxu3 %v5088_v19 }
 0x88f   : > { %v6535_v16 = vadd.f32 %v2502_v17, %v5799_v63 }
 0x890   : > { %v2210_v14 = vpop.f32.mrf.mxu3  ;;  %v6547_v35 = vsel %vm2542_vm4, %v5307_v61, %v2541_v39 }
 0x891   : > { %v2528_v3 = vsel %vm575_vm0, %v6535_v16, 0.0  ;;  %v2221_v12 = vadd.f32 %v2210_v14, %v1949_v9 }
 0x892   : > { %2529 = vadd.xlane.f32.xlu0 %v2528_v3 }
 0x898   : > { %v2212_v36 = vpop.f32.mrf.mxu3 }
 0x899   : > { %v2222_v5 = vadd.f32 %v2212_v36, %v1951_v7 }
 0x8b7   : > { %v2480_v24 = vpop.f32.mrf.mxu1 }
 0x8b8   : > { %v2491_v26 = vadd.f32 %v2480_v24, %v2221_v12 }
 0x8ba   : > { %v2503_v63 = vadd.f32 %v6492_v30, %v2491_v26 }
 0x8bc   : > { %v6543_v44 = vadd.f32 %v2503_v63, %v7579_v52 }
 0x8be   : > { %v2531_v53 = vsel %vm575_vm0, %v6543_v44, 0.0 }
 0x8bf   : > { %2532 = vadd.xlane.f32.xlu0 %v2531_v53  ;;  %v2482_v54 = vpop.f32.mrf.mxu1 }
 0x8c0   : > { %v2492_v57 = vadd.f32 %v2482_v54, %v2222_v5 }
 0x8c2   : > { %v2515_v4 = vpop.xlane.xlu0 %2514  ;;  %v2504_v38 = vadd.f32 %v6492_v30, %v2492_v57 }
 0x8c3   : > { %v2544_v29 = vmul.f32 %v6547_v35, %v2515_v4 }
 0x8c4   : > { %v6566_v1 = vadd.f32 %v2504_v38, %v7581_v51 }
 0x8c5   : > { %v6553_v50 = vsub.f32 %v6498_v10, %v2544_v29 }
 0x8c6   : > { %v2534_v0 = vsel %vm575_vm0, %v6566_v1, 0.0 }
 0x8c7   : > { %v6555_v59 = vpop.f32.mrf.mxu1  ;;  %v2560_v43 = vmul.f32 %v6553_v50, %v6553_v50 }
 0x8c9   : > { %v2568_v41 = vsel %vm575_vm0, %v2560_v43, 0.0 }
 0x8ca   : > { %2569 = vadd.xlane.f32.xlu2 %v2568_v41  ;;  %v2518_v55 = vpop.xlane.xlu2 %2517 }
 0x8cb   : > { %v2545_v11 = vmul.f32 %v6547_v35, %v2518_v55 }
 0x8cd   : > { %v6563_v25 = vsub.f32 %v6505_v20, %v2545_v11 }
 0x8cf   : > { %v3070_v48 = vpop.f32.mrf.mxu1  ;;  %v2561_v40 = vmul.f32 %v6563_v25, %v6563_v25 }
 0x8d1   : > { %v2571_v30 = vsel %vm575_vm0, %v2561_v40, 0.0  ;;  %v3071_v40 = vadd.f32 %v5140_v13, %v3070_v48 }
 0x8d2   : > { %v2521_v47 = vpop.xlane.xlu1 %2520  ;;  %2535 = vadd.xlane.f32.xlu2 %v2534_v0  ;;  %2572 = vadd.xlane.f32.xlu1 %v2571_v30 }
 0x8d3   : > { %v2546_v42 = vmul.f32 %v6547_v35, %v2521_v47  ;;  %v3069_v47 = vadd.f32 %v5140_v13, %v6555_v59 }
 0x8d5   : > { %v6575_v27 = vsub.f32 %v6513_v56, %v2546_v42 }
 0x8d7   : > { %v3073_v34 = vpop.f32.mrf.mxu1  ;;  %v2562_v28 = vmul.f32 %v6575_v27, %v6575_v27 }
 0x8d8   : > { %v3074_v57 = vadd.f32 %v5140_v13, %v3073_v34  ;;  %v3089_v34 = vpack.c.bf16 %v3071_v40, %v3071_v40 }
 0x8d9   : > { %v2574_v21 = vsel %vm575_vm0, %v2562_v28, 0.0 }
 0x8da   : > { %v2524_v46 = vpop.xlane.xlu0 %2523  ;;  %2575 = vadd.xlane.f32.xlu1 %v2574_v21  ;;  %v3090_v51 = vpack.c.bf16 %v3074_v57, %v3074_v57  ;;  %v3088_v21 = vpack.c.bf16 %v3069_v47, %v3069_v47 }
 0x8db   : > { %v2547_v2 = vmul.f32 %v6547_v35, %v2524_v46  ;;  %v3130_v46 = vunpack.c.l.b16 %v3089_v34 }
 0x8dc   : > { %v3131_v42 = vunpack.c.l.b16 %v3090_v51 }
 0x8dd   : > { %v6582_v37 = vsub.f32 %v6519_v18, %v2547_v2 }
 0x8df   : > { %v3075_v49 = vpop.f32.mrf.mxu1  ;;  %v2563_v33 = vmul.f32 %v6582_v37, %v6582_v37 }
 0x8e0   : > { %v3076_v7 = vadd.f32 %v5140_v13, %v3075_v49  ;;  %v3129_v49 = vunpack.c.l.b16 %v3088_v21 }
 0x8e1   : > { %v2577_v8 = vsel %vm575_vm0, %v2563_v33, 0.0 }
 0x8e2   : > { %2578 = vadd.xlane.f32.xlu0 %v2577_v8  ;;  %v3091_v41 = vpack.c.bf16 %v3076_v7, %v3076_v7  ;;  %v6623_v33 = vpack.c.b16 %v3130_v46, %v3129_v49 }
 0x8e4   : > { %v3132_v0 = vunpack.c.l.b16 %v3091_v41  ;;  %v3154_v48 = vsel %vm1442_vm1, %v6623_v33, 0 }
 0x8e6   : > { %v6619_v28 = vpack.c.b16 %v3132_v0, %v3131_v42 }
 0x8e7   : > { %v3078_v32 = vpop.f32.mrf.mxu1 }
 0x8e8   : > { %v3079_v12 = vadd.f32 %v5140_v13, %v3078_v32  ;;  %v3157_v2 = vsel %vm1442_vm1, %v6619_v28, 0 }
 0x8ea   : > { %v3092_v54 = vpack.c.bf16 %v3079_v12, %v3079_v12 }
 0x8ec   : > { %v3133_v43 = vunpack.c.l.b16 %v3092_v54 }
 0x8ef   : > { %v3080_v60 = vpop.f32.mrf.mxu1 }
 0x8f0   : > { %v3081_v62 = vadd.f32 %v5140_v13, %v3080_v60 }
 0x8f2   : > { %v3093_v15 = vpack.c.bf16 %v3081_v62, %v3081_v62 }
 0x8f4   : > { %v3134_v4 = vunpack.c.l.b16 %v3093_v15 }
 0x8f6   : > { %v6613_v55 = vpack.c.b16 %v3134_v4, %v3133_v43 }
 0x8f7   : > { %v3083_v31 = vpop.f32.mrf.mxu1 }
 0x8f8   : > { %v3084_v17 = vadd.f32 %v5140_v13, %v3083_v31  ;;  %v3160_v30 = vsel %vm1442_vm1, %v6613_v55, 0 }
 0x8fa   : > { %v3094_v14 = vpack.c.bf16 %v3084_v17, %v3084_v17 }
 0x8fc   : > { %v3135_v63 = vunpack.c.l.b16 %v3094_v14 }
 0x8fd   : > { %v2527_v3 = vpop.xlane.xlu2 %2526 }
 0x8fe   : > { %v2548_v45 = vmul.f32 %v6547_v35, %v2527_v3 }
 0x8ff   : > { %v3085_v61 = vpop.f32.mrf.mxu1 }
 0x900   : > { %v6598_v9 = vsub.f32 %v6529_v23, %v2548_v45  ;;  %v3086_v58 = vadd.f32 %v5140_v13, %v3085_v61 }
 0x902   : > { %v3095_v24 = vpack.c.bf16 %v3086_v58, %v3086_v58  ;;  %v2564_v26 = vmul.f32 %v6598_v9, %v6598_v9 }
 0x904   : > { %v3136_v52 = vunpack.c.l.b16 %v3095_v24  ;;  %v2580_v39 = vsel %vm575_vm0, %v2564_v26, 0.0 }
 0x905   : > { %v2530_v53 = vpop.xlane.xlu0 %2529  ;;  %2581 = vadd.xlane.f32.xlu2 %v2580_v39 }
 0x906   : > { %v6603_v36 = vpack.c.b16 %v3136_v52, %v3135_v63  ;;  %v2549_v6 = vmul.f32 %v6547_v35, %v2530_v53 }
 0x908   : > { %v6607_v5 = vsub.f32 %v6535_v16, %v2549_v6  ;;  %v3163_v29 = vsel %vm1442_vm1, %v6603_v36, 0 }
 0x909   : > { %3169 = vmatpush.bf16.xpose.msra.mxu3 %v3163_v29 }
 0x90a   : > { %v2565_v38 = vmul.f32 %v6607_v5, %v6607_v5 }
 0x90c   : > { %v2583_v11 = vsel %vm575_vm0, %v2565_v38, 0.0 }
 0x90d   : > { %2584 = vadd.xlane.f32.xlu1 %v2583_v11 }
 0x911   : > { %3170 = vmatpush.bf16.xpose.msra.mxu3 %v3160_v30 }
 0x919   : > { %3171 = vmatpush.bf16.xpose.msra.mxu3 %v3157_v2 }
 0x921   : > { %3172 = vmatpush.bf16.xpose.msra.mxu3 %v3154_v48 }
 0x932   : > { %v2533_v8 = vpop.xlane.xlu0 %2532 }
 0x933   : > { %v2550_v59 = vmul.f32 %v6547_v35, %v2533_v8 }
 0x935   : > { %v6629_v22 = vsub.f32 %v6543_v44, %v2550_v59 }
 0x937   : > { %v2566_v32 = vmul.f32 %v6629_v22, %v6629_v22 }
 0x939   : > { %v2586_v19 = vsel %vm575_vm0, %v2566_v32, 0.0 }
 0x93a   : > { %2587 = vadd.xlane.f32.xlu0 %v2586_v19 }
 0x93d   : > { %v2570_v60 = vpop.xlane.xlu2 %2569 }
 0x93e   : > { %v2592_v31 = vmul.f32 %v2570_v60, %v6547_v35 }
 0x940   : > { %v2600_v13 = vadd.f32 1e-05, %v2592_v31 }
 0x942   : > { %5308 = vrsqrt.f32 %v2600_v13  ;;  %vm2614_vm6 = vweird.f32 %v2600_v13 }
 0x945   : > { %v2573_v17 = vpop.xlane.xlu1 %2572  ;;  %v2536_v3 = vpop.xlane.xlu2 %2535 }
 0x946   : > { %v2593_v45 = vmul.f32 %v2573_v17, %v6547_v35  ;;  %v2551_v61 = vmul.f32 %v6547_v35, %v2536_v3 }
 0x948   : > { %v5309_v62 = vpop.eup %5308  ;;  %v2601_v14 = vadd.f32 1e-05, %v2593_v45  ;;  %v6638_v58 = vsub.f32 %v6566_v1, %v2551_v61 }
 0x949   : > { %v2609_v12 = vmul.f32 %v5309_v62, %v2600_v13  ;;  %vm2615_vm5 = vweird.f32 %v5309_v62 }
 0x94a   : > { %5310 = vrsqrt.f32 %v2601_v14  ;;  %v2567_v24 = vmul.f32 %v6638_v58, %v6638_v58  ;;  %vm2616_vm8 = vmor %vm2614_vm6, %vm2615_vm5  ;;  %vm2624_vm9 = vweird.f32 %v2601_v14 }
 0x94b   : > { %v2610_v26 = vmul.f32 %v5309_v62, %v2609_v12 }
 0x94c   : > { %v2589_v15 = vsel %vm575_vm0, %v2567_v24, 0.0 }
 0x94d   : > { %v2611_v63 = vmul.f32 0.5, %v2610_v26  ;;  %v2576_v52 = vpop.xlane.xlu1 %2575  ;;  %2590 = vadd.xlane.f32.xlu2 %v2589_v15 }
 0x94e   : > { %v2594_v39 = vmul.f32 %v2576_v52, %v6547_v35 }
 0x94f   : > { %v2612_v6 = vsub.f32 1.5, %v2611_v63 }
 0x950   : > { %v5311_v53 = vpop.eup %5310  ;;  %v2602_v54 = vadd.f32 1e-05, %v2594_v39 }
 0x951   : > { %v2619_v7 = vmul.f32 %v5311_v53, %v2601_v14  ;;  %v2613_v29 = vmul.f32 %v5309_v62, %v2612_v6  ;;  %vm2625_vm7 = vweird.f32 %v5311_v53  ;;  %v5097_v14 = vld [vmem:[%s7551_s13 + $0x38] sm:$0xff]  ;;  %v5096_v6 = vld [vmem:[%s7551_s13 + $0x30] sm:$0xff] }
 0x952   : > { %5312 = vrsqrt.f32 %v2602_v54  ;;  %vm2626_vm10 = vmor %vm2624_vm9, %vm2625_vm7  ;;  %vm2634_vm12 = vweird.f32 %v2602_v54  ;;  %2905 = vmatpush.bf16.msrb.mxu2 %v5097_v14 }
 0x953   : > { %v2620_v4 = vmul.f32 %v5311_v53, %v2619_v7  ;;  %v2617_v40 = vsel %vm2616_vm8, %v5309_v62, %v2613_v29 }
 0x954   : > { %v2688_v34 = vmul.f32 %v2617_v40, %v6553_v50  ;;  %v5094_v40 = vld [vmem:[%s7551_s13 + $0x20] sm:$0xff] }
 0x955   : > { %v2621_v57 = vmul.f32 0.5, %v2620_v4  ;;  %v2579_v43 = vpop.xlane.xlu0 %2578 }
 0x956   : > { %v2595_v38 = vmul.f32 %v2579_v43, %v6547_v35  ;;  %2906 = vmatpush.bf16.msrb.mxu2 %v5096_v6 }
 0x957   : > { %v2622_v41 = vsub.f32 1.5, %v2621_v57  ;;  %v5095_v57 = vld [vmem:[%s7551_s13 + $0x28] sm:$0xff] }
 0x958   : > { %v5313_v11 = vpop.eup %5312  ;;  %v2603_v51 = vadd.f32 1e-05, %v2595_v38 }
 0x959   : > { %v2623_v0 = vmul.f32 %v5311_v53, %v2622_v41  ;;  %v2629_v30 = vmul.f32 %v5313_v11, %v2602_v54  ;;  %vm2635_vm11 = vweird.f32 %v5313_v11 }
 0x95a   : > { %5314 = vrsqrt.f32 %v2603_v51  ;;  %vm2636_vm14 = vmor %vm2634_vm12, %vm2635_vm11  ;;  %vm2644_vm15 = vweird.f32 %v2603_v51  ;;  %2907 = vmatpush.bf16.msrb.mxu2 %v5095_v57 }
 0x95b   : > { %v2627_v47 = vsel %vm2626_vm10, %v5311_v53, %v2623_v0  ;;  %v2630_v42 = vmul.f32 %v5313_v11, %v2629_v30  ;;  %v5093_v30 = vld [vmem:[%s7551_s13 + $0x18] sm:$0xff] }
 0x95c   : > { %v2689_v21 = vmul.f32 %v2627_v47, %v6563_v25  ;;  %v5092_v47 = vld [vmem:[%s7551_s13 + $0x10] sm:$0xff] }
 0x95d   : > { %v2631_v46 = vmul.f32 0.5, %v2630_v42 }
 0x95e   : > { %v2696_v2 = vpack.c.bf16 %v2689_v21, %v2688_v34  ;;  %2908 = vmatpush.bf16.msrb.mxu2 %v5094_v40 }
 0x95f   : > { %v2632_v48 = vsub.f32 1.5, %v2631_v46 }
 0x960   : > { %v5315_v49 = vpop.eup %5314  ;;  %4891 = vmatmul.msk.bf16.vlgmr.msrb.gmra.mxu3 %vm575_vm0, %v2696_v2 }
 0x961   : > { %v2639_v8 = vmul.f32 %v5315_v49, %v2603_v51  ;;  %v2633_v32 = vmul.f32 %v5313_v11, %v2632_v48  ;;  %vm2645_vm13 = vweird.f32 %v5315_v49 }
 0x962   : > { %vm2646_vm4 = vmor %vm2644_vm15, %vm2645_vm13  ;;  %2909 = vmatpush.bf16.msrb.mxu2 %v5093_v30 }
 0x963   : > { %v2640_v59 = vmul.f32 %v5315_v49, %v2639_v8  ;;  %v2637_v50 = vsel %vm2636_vm14, %v5313_v11, %v2633_v32 }
 0x964   : > { %v2690_v13 = vmul.f32 %v2637_v50, %v6575_v27 }
 0x965   : > { %v2641_v19 = vmul.f32 0.5, %v2640_v59  ;;  %3292 = vrot.lane.b32.xlu2 %v6603_v36, %s5516_s26  ;;  %v2985_v59 = vpop.f32.mrf.mxu0 }
 0x966   : > { %2910 = vmatpush.bf16.msrb.mxu2 %v5092_v47 }
 0x967   : > { %v2642_v60 = vsub.f32 1.5, %v2641_v19 }
 0x969   : > { %v2643_v25 = vmul.f32 %v5315_v49, %v2642_v60 }
 0x96b   : > { %v2647_v31 = vsel %vm2646_vm4, %v5315_v49, %v2643_v25 }
 0x96c   : > { %v2691_v17 = vmul.f32 %v2647_v31, %v6582_v37 }
 0x96e   : > { %v2697_v3 = vpack.c.bf16 %v2691_v17, %v2690_v13  ;;  %v2987_v13 = vpop.f32.mrf.mxu0 }
 0x970   : > { %4892 = vmatmul.msk.bf16.gmra.mxu3 %vm575_vm0, %v2697_v3 }
 0x978   : > { %v2582_v45 = vpop.xlane.xlu2 %2581 }
 0x979   : > { %v2596_v61 = vmul.f32 %v2582_v45, %v6547_v35 }
 0x97b   : > { %v2604_v62 = vadd.f32 1e-05, %v2596_v61 }
 0x97d   : > { %5316 = vrsqrt.f32 %v2604_v62  ;;  %vm2654_vm6 = vweird.f32 %v2604_v62 }
 0x980   : > { %v2585_v12 = vpop.xlane.xlu1 %2584 }
 0x981   : > { %v2597_v24 = vmul.f32 %v2585_v12, %v6547_v35 }
 0x983   : > { %v5317_v26 = vpop.eup %5316  ;;  %v2605_v27 = vadd.f32 1e-05, %v2597_v24 }
 0x984   : > { %v2649_v15 = vmul.f32 %v5317_v26, %v2604_v62  ;;  %vm2655_vm5 = vweird.f32 %v5317_v26 }
 0x985   : > { %5318 = vrsqrt.f32 %v2605_v27  ;;  %vm2656_vm8 = vmor %vm2654_vm6, %vm2655_vm5  ;;  %vm2664_vm9 = vweird.f32 %v2605_v27 }
 0x986   : > { %v2650_v37 = vmul.f32 %v5317_v26, %v2649_v15 }
 0x988   : > { %v2651_v63 = vmul.f32 0.5, %v2650_v37  ;;  %v6689_v37 = vld [vmem:[%s7544_s6 + $0x1] ss:$0 sm:$0xff] }
 0x98a   : > { %v2652_v39 = vsub.f32 1.5, %v2651_v63  ;;  %v2988_v63 = vadd.f32 %v6689_v37, %v2987_v13 }
 0x98b   : > { %v5319_v52 = vpop.eup %5318 }
 0x98c   : > { %v2659_v53 = vmul.f32 %v5319_v52, %v2605_v27  ;;  %v2653_v7 = vmul.f32 %v5317_v26, %v2652_v39  ;;  %vm2665_vm7 = vweird.f32 %v5319_v52  ;;  %v2990_v27 = vpop.f32.mrf.mxu0  ;;  %v6697_v39 = vld [vmem:[%s7550_s12] ss:$0 sm:$0xff] }
 0x98d   : > { %vm2666_vm10 = vmor %vm2664_vm9, %vm2665_vm7 }
 0x98e   : > { %v2660_v54 = vmul.f32 %v5319_v52, %v2659_v53  ;;  %v2657_v43 = vsel %vm2656_vm8, %v5317_v26, %v2653_v7 }
 0x98f   : > { %v2692_v11 = vmul.f32 %v2657_v43, %v6598_v9  ;;  %v5091_v9 = vld [vmem:[%s7551_s13 + $0x8] sm:$0xff] }
 0x990   : > { %v2661_v4 = vmul.f32 0.5, %v2660_v54  ;;  %2911 = vmatpush.bf16.msrb.mxu2 %v5091_v9  ;;  %v2991_v9 = vadd.f32 %v6689_v37, %v2990_v27 }
 0x992   : > { %v2662_v29 = vsub.f32 1.5, %v2661_v4 }
 0x994   : > { %v2663_v38 = vmul.f32 %v5319_v52, %v2662_v29 }
 0x996   : > { %v2667_v41 = vsel %vm2666_vm10, %v5319_v52, %v2663_v38  ;;  %v2986_v52 = vadd.f32 %v6689_v37, %v2985_v59 }
 0x997   : > { %v2693_v51 = vmul.f32 %v2667_v41, %v6607_v5  ;;  %v5090_v5 = vld [vmem:[%s7551_s13] sm:$0xff] }
 0x998   : > { %2912 = vmatpush.bf16.msrb.mxu2 %v5090_v5  ;;  %v3005_v53 = vpack.c.bf16 %v2986_v52, %v2986_v52 }
 0x999   : > { %v2698_v0 = vpack.c.bf16 %v2693_v51, %v2692_v11 }
 0x99a   : > { %v3109_v29 = vunpack.c.l.b16 %v3005_v53 }
 0x99b   : > { %4893 = vmatmul.msk.bf16.gmra.mxu3 %vm575_vm0, %v2698_v0 }
 0x9ad   : > { %v2588_v42 = vpop.xlane.xlu0 %2587 }
 0x9ae   : > { %v2598_v34 = vmul.f32 %v2588_v42, %v6547_v35 }
 0x9b0   : > { %v2606_v21 = vadd.f32 1e-05, %v2598_v34 }
 0x9b2   : > { %5320 = vrsqrt.f32 %v2606_v21  ;;  %vm2674_vm12 = vweird.f32 %v2606_v21 }
 0x9b8   : > { %v5321_v46 = vpop.eup %5320 }
 0x9b9   : > { %v2669_v2 = vmul.f32 %v5321_v46, %v2606_v21  ;;  %vm2675_vm11 = vweird.f32 %v5321_v46  ;;  %v3007_v21 = vpack.c.bf16 %v2991_v9, %v2991_v9 }
 0x9ba   : > { %vm2676_vm14 = vmor %vm2674_vm12, %vm2675_vm11 }
 0x9bb   : > { %v2670_v32 = vmul.f32 %v5321_v46, %v2669_v2 }
 0x9bd   : > { %v2671_v19 = vmul.f32 0.5, %v2670_v32 }
 0x9bf   : > { %v2672_v25 = vsub.f32 1.5, %v2671_v19  ;;  %v3111_v19 = vunpack.c.l.b16 %v3007_v21 }
 0x9c0   : > { %v2591_v49 = vpop.xlane.xlu2 %2590 }
 0x9c1   : > { %v2599_v48 = vmul.f32 %v2591_v49, %v6547_v35  ;;  %v2673_v3 = vmul.f32 %v5321_v46, %v2672_v25 }
 0x9c3   : > { %v2607_v8 = vadd.f32 1e-05, %v2599_v48  ;;  %v2677_v62 = vsel %vm2676_vm14, %v5321_v46, %v2673_v3 }
 0x9c4   : > { %v2694_v24 = vmul.f32 %v2677_v62, %v6629_v22  ;;  %v3006_v22 = vpack.c.bf16 %v2988_v63, %v2988_v63 }
 0x9c5   : > { %5322 = vrsqrt.f32 %v2607_v8  ;;  %vm2684_vm15 = vweird.f32 %v2607_v8 }
 0x9c6   : > { %v3110_v7 = vunpack.c.l.b16 %v3006_v22 }
 0x9c8   : > { %v3293_v60 = vpop.permute.xlu2 %3292  ;;  %v6700_v43 = vpack.c.b16 %v3110_v7, %v3109_v29 }
 0x9c9   : > { %3314 = vmatpush.bf16.msra.mxu2 %v3293_v60 }
 0x9cb   : > { %v5323_v50 = vpop.eup %5322 }
 0x9cc   : > { %v2679_v31 = vmul.f32 %v5323_v50, %v2607_v8  ;;  %vm2685_vm13 = vweird.f32 %v5323_v50 }
 0x9cd   : > { %vm2686_vm4 = vmor %vm2684_vm15, %vm2685_vm13 }
 0x9ce   : > { %v2680_v17 = vmul.f32 %v5323_v50, %v2679_v31 }
 0x9d0   : > { %v2681_v45 = vmul.f32 0.5, %v2680_v17 }
 0x9d2   : > { %v2682_v61 = vsub.f32 1.5, %v2681_v45 }
 0x9d4   : > { %v2683_v14 = vmul.f32 %v5323_v50, %v2682_v61 }
 0x9d6   : > { %v2687_v12 = vsel %vm2686_vm4, %v5323_v50, %v2683_v14 }
 0x9d7   : > { %v2695_v26 = vmul.f32 %v2687_v12, %v6638_v58  ;;  %v2992_v58 = vpop.f32.mrf.mxu0 }
 0x9d8   : > { %v2993_v0 = vadd.f32 %v6689_v37, %v2992_v58 }
 0x9d9   : > { %v2699_v15 = vpack.c.bf16 %v2695_v26, %v2694_v24 }
 0x9da   : > { %v3008_v42 = vpack.c.bf16 %v2993_v0, %v2993_v0 }
 0x9db   : > { %4894 = vmatmul.msk.bf16.gmra.mxu3 %vm575_vm0, %v2699_v15 }
 0x9dc   : > { %v3112_v48 = vunpack.c.l.b16 %v3008_v42 }
 0x9de   : > { %v6708_v25 = vpack.c.b16 %v3112_v48, %v3111_v19 }
 0x9df   : > { %v2995_v11 = vpop.f32.mrf.mxu0 }
 0x9e0   : > { %v2996_v24 = vadd.f32 %v6689_v37, %v2995_v11 }
 0x9e2   : > { %v3009_v53 = vpack.c.bf16 %v2996_v24, %v2996_v24 }
 0x9e3   : > { %v2741_v54 = vpop.f32.mrf.mxu3 }
 0x9e4   : > { %v2742_v6 = vadd.f32 %v6697_v39, %v2741_v54 }
 0x9e6   : > { %v2761_v4 = vmul.f32 %v2742_v6, %v2742_v6 }
 0x9e7   : > { %v2997_v8 = vpop.f32.mrf.mxu0 }
 0x9e8   : > { %v2769_v57 = vmul.f32 %v2761_v4, %v2742_v6  ;;  %v2998_v61 = vadd.f32 %v6689_v37, %v2997_v8 }
 0x9ea   : > { %v2777_v38 = vmul.f32 0.044715, %v2769_v57  ;;  %v3010_v52 = vpack.c.bf16 %v2998_v61, %v2998_v61 }
 0x9eb   : > { %v2743_v41 = vpop.f32.mrf.mxu3  ;;  %4965 = vmatmul.msk.bf16.vlgmr.msra.gmra.mxu3 %vm1442_vm1, %v6700_v43 }
 0x9ec   : > { %v2785_v51 = vadd.f32 %v2777_v38, %v2742_v6  ;;  %v2744_v40 = vadd.f32 %v6697_v39, %v2743_v41  ;;  %v3114_v29 = vunpack.c.l.b16 %v3010_v52  ;;  %v3113_v41 = vunpack.c.l.b16 %v3009_v53 }
 0x9ee   : > { %v2793_v30 = vmul.f32 0.7978846, %v2785_v51  ;;  %v2762_v47 = vmul.f32 %v2744_v40, %v2744_v40  ;;  %v6715_v11 = vpack.c.b16 %v3114_v29, %v3113_v41 }
 0x9ef   : > { %v3000_v15 = vpop.f32.mrf.mxu0 }
 0x9f0   : > { %v2770_v5 = vmul.f32 %v2762_v47, %v2744_v40  ;;  %5324 = vtanh.f32 %v2793_v30 }
 0x9f2   : > { %v2778_v34 = vmul.f32 0.044715, %v2770_v5 }
 0x9f3   : > { %v2746_v46 = vpop.f32.mrf.mxu3 }
 0x9f4   : > { %v2786_v2 = vadd.f32 %v2778_v34, %v2744_v40  ;;  %v2747_v49 = vadd.f32 %v6697_v39, %v2746_v46 }
 0x9f6   : > { %v2794_v59 = vmul.f32 0.7978846, %v2786_v2  ;;  %v2763_v32 = vmul.f32 %v2747_v49, %v2747_v49  ;;  %v5325_v60 = vpop.eup %5324 }
 0x9f7   : > { %v2809_v13 = vadd.f32 1.0, %v5325_v60  ;;  %v3002_v0 = vpop.f32.mrf.mxu0 }
 0x9f8   : > { %5326 = vtanh.f32 %v2794_v59  ;;  %v2771_v50 = vmul.f32 %v2763_v32, %v2747_v49  ;;  %v3003_v47 = vadd.f32 %v6689_v37, %v3002_v0 }
 0x9f9   : > { %v2817_v26 = vmul.f32 0.5, %v2809_v13 }
 0x9fa   : > { %v2779_v31 = vmul.f32 0.044715, %v2771_v50  ;;  %v3012_v42 = vpack.c.bf16 %v3003_v47, %v3003_v47 }
 0x9fb   : > { %v2748_v17 = vpop.f32.mrf.mxu3  ;;  %4966 = vmatmul.msk.bf16.gmra.mxu3 %vm1442_vm1, %v6708_v25  ;;  %v2825_v54 = vmul.f32 %v2817_v26, %v2742_v6  ;;  %v3001_v6 = vadd.f32 %v6689_v37, %v3000_v15 }
 0x9fc   : > { %v2787_v3 = vadd.f32 %v2779_v31, %v2747_v49  ;;  %v2749_v45 = vadd.f32 %v6697_v39, %v2748_v17  ;;  %v3116_v48 = vunpack.c.l.b16 %v3012_v42 }
 0x9fd   : > { %v3011_v21 = vpack.c.bf16 %v3001_v6, %v3001_v6 }
 0x9fe   : > { %v5327_v62 = vpop.eup %5326  ;;  %v2795_v14 = vmul.f32 0.7978846, %v2787_v3  ;;  %v2764_v12 = vmul.f32 %v2749_v45, %v2749_v45 }
 0x9ff   : > { %v2810_v27 = vadd.f32 1.0, %v5327_v62  ;;  %v3115_v59 = vunpack.c.l.b16 %v3011_v21 }
 0xa00   : > { %v2772_v63 = vmul.f32 %v2764_v12, %v2749_v45  ;;  %5328 = vtanh.f32 %v2795_v14 }
 0xa01   : > { %v2818_v22 = vmul.f32 0.5, %v2810_v27  ;;  %v6721_v32 = vpack.c.b16 %v3116_v48, %v3115_v59  ;;  %v6742_v48 = vld [vmem:[%s7540_s2 + $0x8] sm:$0xff] }
 0xa02   : > { %v2780_v58 = vmul.f32 0.044715, %v2772_v63 }
 0xa03   : > { %v2826_v7 = vmul.f32 %v2818_v22, %v2744_v40 }
 0xa04   : > { %v2788_v4 = vadd.f32 %v2780_v58, %v2749_v45 }
 0xa05   : > { %v2833_v57 = vpack.c.bf16 %v2826_v7, %v2825_v54 }
 0xa06   : > { %v2796_v38 = vmul.f32 0.7978846, %v2788_v4  ;;  %v5329_v51 = vpop.eup %5328 }
 0xa07   : > { %2913 = vmatmul.bf16.vlgmr.msrb.gmra.mxu2 %v2833_v57  ;;  %v2811_v30 = vadd.f32 1.0, %v5329_v51 }
 0xa08   : > { %5330 = vtanh.f32 %v2796_v38 }
 0xa09   : > { %v2819_v5 = vmul.f32 0.5, %v2811_v30 }
 0xa0b   : > { %4967 = vmatmul.msk.bf16.gmra.mxu3 %vm1442_vm1, %v6715_v11  ;;  %v2827_v46 = vmul.f32 %v2819_v5, %v2747_v49  ;;  %v6732_v5 = vld [vmem:[%s7540_s2] sm:$0xff] }
 0xa0e   : > { %v5331_v9 = vpop.eup %5330 }
 0xa0f   : > { %v2812_v40 = vadd.f32 1.0, %v5331_v9 }
 0xa11   : > { %v2820_v34 = vmul.f32 0.5, %v2812_v40 }
 0xa13   : > { %v2828_v2 = vmul.f32 %v2820_v34, %v2749_v45 }
 0xa15   : > { %v2834_v8 = vpack.c.bf16 %v2828_v2, %v2827_v46 }
 0xa17   : > { %2918 = vmatmul.bf16.gmra.mxu2 %v2834_v8 }
 0xa1b   : > { %4968 = vmatmul.msk.bf16.gmra.mxu3 %vm1442_vm1, %v6721_v32 }
 0xa1e   : > { %v2751_v19 = vpop.f32.mrf.mxu3 }
 0xa1f   : > { %v2752_v60 = vadd.f32 %v6697_v39, %v2751_v19 }
 0xa21   : > { %v2765_v37 = vmul.f32 %v2752_v60, %v2752_v60 }
 0xa23   : > { %v2773_v50 = vmul.f32 %v2765_v37, %v2752_v60 }
 0xa25   : > { %v2781_v31 = vmul.f32 0.044715, %v2773_v50 }
 0xa26   : > { %v2753_v13 = vpop.f32.mrf.mxu3 }
 0xa27   : > { %v2789_v17 = vadd.f32 %v2781_v31, %v2752_v60  ;;  %v2754_v49 = vadd.f32 %v6697_v39, %v2753_v13 }
 0xa29   : > { %v2797_v3 = vmul.f32 0.7978846, %v2789_v17  ;;  %v2766_v45 = vmul.f32 %v2754_v49, %v2754_v49 }
 0xa2b   : > { %v2774_v61 = vmul.f32 %v2766_v45, %v2754_v49  ;;  %5332 = vtanh.f32 %v2797_v3 }
 0xa2d   : > { %v2782_v62 = vmul.f32 0.044715, %v2774_v61 }
 0xa2f   : > { %v2790_v14 = vadd.f32 %v2782_v62, %v2754_v49 }
 0xa31   : > { %v2798_v12 = vmul.f32 0.7978846, %v2790_v14  ;;  %v5333_v24 = vpop.eup %5332  ;;  %v6764_v14 = vld [vmem:[%s7540_s2 + $0x18] sm:$0xff] }
 0xa32   : > { %v2813_v26 = vadd.f32 1.0, %v5333_v24  ;;  %v6772_v24 = vld [vmem:[%s7552_s14] ss:$0 sm:$0xff] }
 0xa33   : > { %5334 = vtanh.f32 %v2798_v12 }
 0xa34   : > { %v2821_v63 = vmul.f32 0.5, %v2813_v26 }
 0xa36   : > { %v2829_v22 = vmul.f32 %v2821_v63, %v2752_v60 }
 0xa39   : > { %v5335_v27 = vpop.eup %5334 }
 0xa3a   : > { %v2814_v15 = vadd.f32 1.0, %v5335_v27 }
 0xa3c   : > { %v2822_v52 = vmul.f32 0.5, %v2814_v15 }
 0xa3e   : > { %v2830_v58 = vmul.f32 %v2822_v52, %v2754_v49  ;;  %v6754_v49 = vld [vmem:[%s7540_s2 + $0x10] sm:$0xff] }
 0xa40   : > { %v2835_v53 = vpack.c.bf16 %v2830_v58, %v2829_v22  ;;  %v6788_v22 = vld [vmem:[%s7540_s2 + $0x20] sm:$0xff] }
 0xa42   : > { %2923 = vmatmul.bf16.gmra.mxu2 %v2835_v53 }
 0xa5e   : > { %v2756_v54 = vpop.f32.mrf.mxu3 }
 0xa5f   : > { %v2757_v7 = vadd.f32 %v6697_v39, %v2756_v54 }
 0xa61   : > { %v2767_v4 = vmul.f32 %v2757_v7, %v2757_v7 }
 0xa63   : > { %v2775_v29 = vmul.f32 %v2767_v4, %v2757_v7 }
 0xa65   : > { %v2783_v57 = vmul.f32 0.044715, %v2775_v29  ;;  %v6802_v29 = vld [vmem:[%s7540_s2 + $0x28] sm:$0xff] }
 0xa66   : > { %v2758_v38 = vpop.f32.mrf.mxu3 }
 0xa67   : > { %v2791_v41 = vadd.f32 %v2783_v57, %v2757_v7  ;;  %v2759_v51 = vadd.f32 %v6697_v39, %v2758_v38 }
 0xa69   : > { %v2799_v0 = vmul.f32 0.7978846, %v2791_v41  ;;  %v2768_v30 = vmul.f32 %v2759_v51, %v2759_v51 }
 0xa6b   : > { %v2776_v47 = vmul.f32 %v2768_v30, %v2759_v51  ;;  %5336 = vtanh.f32 %v2799_v0  ;;  %v6813_v30 = vld [vmem:[%s7540_s2 + $0x30] sm:$0xff] }
 0xa6d   : > { %v2784_v9 = vmul.f32 0.044715, %v2776_v47 }
 0xa6e   : > { %v3174_v6 = vpop.f32.mrf.mxu3 }
 0xa6f   : > { %v2792_v40 = vadd.f32 %v2784_v9, %v2759_v51  ;;  %v6735_v42 = vadd.f32 %v6732_v5, %v3174_v6 }
 0xa71   : > { %v2800_v34 = vmul.f32 0.7978846, %v2792_v40  ;;  %v3194_v21 = vsel %vm1496_vm2, %v6735_v42, -inf  ;;  %v5337_v39 = vpop.eup %5336 }
 0xa72   : > { %3195 = vmax.xlane.f32.xlu1 %v3194_v21  ;;  %v2815_v2 = vadd.f32 1.0, %v5337_v39  ;;  %v6827_v21 = vld [vmem:[%s7540_s2 + $0x38] sm:$0xff] }
 0xa73   : > { %5338 = vtanh.f32 %v2800_v34 }
 0xa74   : > { %v2823_v37 = vmul.f32 0.5, %v2815_v2 }
 0xa76   : > { %v3176_v46 = vpop.f32.mrf.mxu3  ;;  %v2831_v13 = vmul.f32 %v2823_v37, %v2757_v7 }
 0xa77   : > { %v6745_v8 = vadd.f32 %v6742_v48, %v3176_v46 }
 0xa79   : > { %v5339_v59 = vpop.eup %5338  ;;  %v3197_v19 = vsel %vm1496_vm2, %v6745_v8, -inf }
 0xa7a   : > { %3198 = vmax.xlane.f32.xlu0 %v3197_v19  ;;  %v2816_v60 = vadd.f32 1.0, %v5339_v59 }
 0xa7c   : > { %v2824_v50 = vmul.f32 0.5, %v2816_v60 }
 0xa7e   : > { %v3179_v31 = vpop.f32.mrf.mxu3  ;;  %v2832_v17 = vmul.f32 %v2824_v50, %v2759_v51 }
 0xa7f   : > { %v6757_v3 = vadd.f32 %v6754_v49, %v3179_v31 }
 0xa80   : > { %v2836_v45 = vpack.c.bf16 %v2832_v17, %v2831_v13 }
 0xa81   : > { %v3200_v61 = vsel %vm1496_vm2, %v6757_v3, -inf }
 0xa82   : > { %3201 = vmax.xlane.f32.xlu2 %v3200_v61  ;;  %2928 = vmatmul.bf16.gmra.mxu2 %v2836_v45 }
 0xa86   : > { %v3181_v62 = vpop.f32.mrf.mxu3 }
 0xa87   : > { %v6767_v12 = vadd.f32 %v6764_v14, %v3181_v62 }
 0xa89   : > { %v3203_v26 = vsel %vm1496_vm2, %v6767_v12, -inf }
 0xa8a   : > { %v2914_v27 = vpop.f32.mrf.mxu2  ;;  %3204 = vmax.xlane.f32.xlu1 %v3203_v26 }
 0xa8b   : > { %v2915_v15 = vadd.f32 %v6772_v24, %v2914_v27 }
 0xa8d   : > { %v2934_v63 = vadd.f32 %v2915_v15, %v6498_v10 }
 0xa8e   : > { %v3184_v52 = vpop.f32.mrf.mxu3 }
 0xa8f   : > { %4636 = vst.msk [vmem:[%s6780_s22] sm:$0xff] %vm575_vm0, %v2934_v63  ;;  %v6791_v58 = vadd.f32 %v6788_v22, %v3184_v52 }
 0xa91   : > { %v3206_v53 = vsel %vm1496_vm2, %v6791_v58, -inf }
 0xa92   : > { %v2916_v54 = vpop.f32.mrf.mxu2  ;;  %3207 = vmax.xlane.f32.xlu0 %v3206_v53 }
 0xa93   : > { %v2917_v7 = vadd.f32 %v6772_v24, %v2916_v54 }
 0xa95   : > { %v2935_v10 = vadd.f32 %v2917_v7, %v6505_v20 }
 0xa96   : > { %v3186_v4 = vpop.f32.mrf.mxu3 }
 0xa97   : > { %4637 = vst.msk [vmem:[%s6780_s22 + $0x8] sm:$0xff] %vm575_vm0, %v2935_v10  ;;  %v3187_v57 = vadd.f32 %v6802_v29, %v3186_v4 }
 0xa99   : > { %v3209_v38 = vsel %vm1496_vm2, %v3187_v57, -inf }
 0xa9a   : > { %v2919_v41 = vpop.f32.mrf.mxu2  ;;  %3210 = vmax.xlane.f32.xlu2 %v3209_v38 }
 0xa9b   : > { %v2920_v51 = vadd.f32 %v6772_v24, %v2919_v41 }
 0xa9d   : > { %v2936_v0 = vadd.f32 %v2920_v51, %v6513_v56 }
 0xa9e   : > { %v3189_v20 = vpop.f32.mrf.mxu3 }
 0xa9f   : > { %4638 = vst.msk [vmem:[%s6780_s22 + $0x10] sm:$0xff] %vm575_vm0, %v2936_v0  ;;  %v6816_v47 = vadd.f32 %v6813_v30, %v3189_v20 }
 0xaa1   : > { %v3212_v9 = vsel %vm1496_vm2, %v6816_v47, -inf }
 0xaa2   : > { %v2921_v6 = vpop.f32.mrf.mxu2  ;;  %3213 = vmax.xlane.f32.xlu1 %v3212_v9 }
 0xaa3   : > { %v2922_v40 = vadd.f32 %v6772_v24, %v2921_v6 }
 0xaa5   : > { %v2937_v56 = vadd.f32 %v2922_v40, %v6519_v18 }
 0xaa6   : > { %v3191_v34 = vpop.f32.mrf.mxu3 }
 0xaa7   : > { %4639 = vst.msk [vmem:[%s6780_s22 + $0x18] sm:$0xff] %vm575_vm0, %v2937_v56  ;;  %v3192_v39 = vadd.f32 %v6827_v21, %v3191_v34 }
 0xaa9   : > { %v3215_v46 = vsel %vm1496_vm2, %v3192_v39, -inf }
 0xaaa   : > { %3216 = vmax.xlane.f32.xlu0 %v3215_v46 }
 0xab2   : > { %3286 = vrot.lane.b32.xlu2 %v6623_v33, %s5516_s26 }
 0xac5   : > { %v2924_v2 = vpop.f32.mrf.mxu2 }
 0xac6   : > { %v2925_v59 = vadd.f32 %v6772_v24, %v2924_v2 }
 0xac8   : > { %v2938_v18 = vadd.f32 %v2925_v59, %v6529_v23 }
 0xaca   : > { %4640 = vst.msk [vmem:[%s6780_s22 + $0x20] sm:$0xff] %vm575_vm0, %v2938_v18 }
 0xacd   : > { %v2926_v19 = vpop.f32.mrf.mxu2 }
 0xace   : > { %v2927_v60 = vadd.f32 %v6772_v24, %v2926_v19 }
 0xad0   : > { %v2939_v37 = vadd.f32 %v2927_v60, %v6535_v16 }
 0xad2   : > { %4641 = vst.msk [vmem:[%s6780_s22 + $0x28] sm:$0xff] %vm575_vm0, %v2939_v37 }
 0xae5   : > { %v3196_v50 = vpop.xlane.xlu1 %3195 }
 0xae6   : > { %v3218_v31 = vsub.f32 %v6735_v42, %v3196_v50 }
 0xae8   : > { %v3226_v13 = vmul.f32 1.442695, %v3218_v31 }
 0xaea   : > { %5340 = vpow2.f32 %v3226_v13 }
 0xaed   : > { %v3199_v17 = vpop.xlane.xlu0 %3198 }
 0xaee   : > { %v3219_v45 = vsub.f32 %v6745_v8, %v3199_v17 }
 0xaf0   : > { %v6843_v61 = vpop.eup %5340  ;;  %v3228_v23 = vmul.f32 1.442695, %v3219_v45 }
 0xaf1   : > { %v3242_v62 = vsel %vm1496_vm2, %v6843_v61, 0.0 }
 0xaf2   : > { %5342 = vpow2.f32 %v3228_v23  ;;  %3243 = vadd.xlane.f32.xlu1 %v3242_v62 }
 0xaf5   : > { %v3202_v16 = vpop.xlane.xlu2 %3201 }
 0xaf6   : > { %v3220_v26 = vsub.f32 %v6757_v3, %v3202_v16 }
 0xaf8   : > { %v6848_v27 = vpop.eup %5342  ;;  %v3230_v42 = vmul.f32 1.442695, %v3220_v26 }
 0xaf9   : > { %v3245_v15 = vsel %vm1496_vm2, %v6848_v27, 0.0 }
 0xafa   : > { %5344 = vpow2.f32 %v3230_v42  ;;  %3246 = vadd.xlane.f32.xlu0 %v3245_v15 }
 0xafd   : > { %v3205_v20 = vpop.xlane.xlu1 %3204 }
 0xb00   : > { %v6852_v8 = vpop.eup %5344 }
 0xb01   : > { %v3248_v63 = vsel %vm1496_vm2, %v6852_v8, 0.0 }
 0xb02   : > { %3249 = vadd.xlane.f32.xlu2 %v3248_v63 }
 0xb05   : > { %v2929_v52 = vpop.f32.mrf.mxu2  ;;  %v3208_v0 = vpop.xlane.xlu0 %3207 }
 0xb06   : > { %v2930_v53 = vadd.f32 %v6772_v24, %v2929_v52 }
 0xb08   : > { %v2940_v3 = vadd.f32 %v2930_v53, %v6543_v44 }
 0xb0a   : > { %4642 = vst.msk [vmem:[%s6780_s22 + $0x30] sm:$0xff] %vm575_vm0, %v2940_v3 }
 0xb0b   : > { %3290 = vrot.lane.b32.xlu1 %v6613_v55, %s5516_s26 }
 0xb0d   : > { %v2931_v54 = vpop.f32.mrf.mxu2  ;;  %v3211_v7 = vpop.xlane.xlu2 %3210 }
 0xb0e   : > { %v2932_v10 = vadd.f32 %v6772_v24, %v2931_v54  ;;  %v3223_v4 = vsub.f32 %v3187_v57, %v3211_v7  ;;  %3288 = vrot.lane.b32.xlu0 %v6619_v28, %s5516_s26  ;;  %v3222_v24 = vsub.f32 %v6791_v58, %v3208_v0  ;;  %v3221_v57 = vsub.f32 %v6767_v12, %v3205_v20 }
 0xb10   : > { %v2941_v38 = vadd.f32 %v2932_v10, %v6566_v1  ;;  %v3236_v41 = vmul.f32 1.442695, %v3223_v4  ;;  %v3234_v9 = vmul.f32 1.442695, %v3222_v24  ;;  %v3232_v40 = vmul.f32 1.442695, %v3221_v57 }
 0xb12   : > { %4643 = vst.msk [vmem:[%s6780_s22 + $0x38] sm:$0xff] %vm575_vm0, %v2941_v38  ;;  %5346 = vpow2.f32 %v3236_v41 }
 0xb13   : > { %5348 = vpow2.f32 %v3234_v9 }
 0xb14   : > { %5350 = vpow2.f32 %v3232_v40 }
 0xb15   : > { %v3214_v1 = vpop.xlane.xlu1 %3213  ;;  %v3287_v31 = vpop.permute.xlu2 %3286 }
 0xb16   : > { %v3224_v34 = vsub.f32 %v6816_v47, %v3214_v1 }
 0xb18   : > { %v6868_v44 = vpop.eup %5346  ;;  %v3238_v59 = vmul.f32 1.442695, %v3224_v34 }
 0xb19   : > { %v3257_v51 = vsel %vm1496_vm2, %v6868_v44, 0.0  ;;  %v6875_v2 = vpop.eup %5348 }
 0xb1a   : > { %3258 = vadd.xlane.f32.xlu2 %v3257_v51  ;;  %v5351_v58 = vpop.eup %5350  ;;  %v3254_v12 = vsel %vm1496_vm2, %v6875_v2, 0.0 }
 0xb1b   : > { %v3251_v18 = vsel %vm1496_vm2, %v5351_v58, 0.0 }
 0xb1d   : > { %v3217_v6 = vpop.xlane.xlu0 %3216 }
 0xb1e   : > { %v3225_v56 = vsub.f32 %v3192_v39, %v3217_v6 }
 0xb20   : > { %v3240_v46 = vmul.f32 1.442695, %v3225_v56 }
 0xb22   : > { %5352 = vpow2.f32 %v3240_v46 }
 0xb23   : > { %5354 = vpow2.f32 %v3238_v59 }
 0xb28   : > { %v6882_v39 = vpop.eup %5352 }
 0xb29   : > { %v6886_v47 = vpop.eup %5354  ;;  %v3263_v19 = vsel %vm1496_vm2, %v6882_v39, 0.0 }
 0xb2a   : > { %v3260_v60 = vsel %vm1496_vm2, %v6886_v47, 0.0 }
 0xb32   : > { %3357 = vrot.lane.b32.xlu2 %v6603_v36, %s5517_s28 }
 0xb35   : > { %3255 = vadd.xlane.f32.xlu1 %v3254_v12 }
 0xb38   : > { %3252 = vadd.xlane.f32.xlu0 %v3251_v18 }
 0xb3a   : > { %3343 = vrot.lane.b32.xlu2 %v6700_v43, %s5517_s28 }
 0xb3d   : > { %3264 = vadd.xlane.f32.xlu1 %v3263_v19 }
 0xb40   : > { %3261 = vadd.xlane.f32.xlu0 %v3260_v60 }
 0xb42   : > { %3663 = vrot.lane.b32.xlu2 %v6603_v36, %s5518_s29 }
 0xb4a   : > { %3931 = vrot.lane.b32.xlu2 %v6613_v55, %s5519_s27 }
 0xb52   : > { %3929 = vrot.lane.b32.xlu2 %v6619_v28, %s5519_s27 }
 0xb54   : > { %3355 = vrot.lane.b32.xlu0 %v6613_v55, %s5517_s28 }
 0xb56   : > { %3353 = vrot.lane.b32.xlu1 %v6619_v28, %s5517_s28 }
 0xb5a   : > { %3649 = vrot.lane.b32.xlu2 %v6700_v43, %s5518_s29 }
 0xb5c   : > { %3351 = vrot.lane.b32.xlu0 %v6623_v33, %s5517_s28 }
 0xb5e   : > { %3345 = vrot.lane.b32.xlu1 %v6708_v25, %s5517_s28 }
 0xb62   : > { %3921 = vrot.lane.b32.xlu2 %v6708_v25, %s5519_s27 }
 0xb64   : > { %3347 = vrot.lane.b32.xlu0 %v6715_v11, %s5517_s28 }
 0xb65   : > { %v3244_v37 = vpop.xlane.xlu1 %3243 }
 0xb66   : > { %3933 = vrot.lane.b32.xlu1 %v6603_v36, %s5519_s27 }
 0xb6a   : > { %3655 = vrot.lane.b32.xlu2 %v6721_v32, %s5518_s29 }
 0xb6c   : > { %3661 = vrot.lane.b32.xlu0 %v6613_v55, %s5518_s29 }
 0xb6d   : > { %v3247_v50 = vpop.xlane.xlu0 %3246 }
 0xb6e   : > { %3349 = vrot.lane.b32.xlu1 %v6721_v32, %s5517_s28  ;;  %5356 = vrcp.f32 %v3247_v50 }
 0xb6f   : > { %5358 = vrcp.f32 %v3244_v37 }
 0xb74   : > { %3659 = vrot.lane.b32.xlu0 %v6619_v28, %s5518_s29  ;;  %v5357_v17 = vpop.eup %5356 }
 0xb75   : > { %v5359_v23 = vpop.eup %5358  ;;  %v3275_v62 = vmul.f32 %v5357_v17, %v6848_v27  ;;  %v3250_v26 = vpop.xlane.xlu2 %3249 }
 0xb76   : > { %3657 = vrot.lane.b32.xlu1 %v6623_v33, %s5518_s29  ;;  %v3274_v16 = vmul.f32 %v5359_v23, %v6843_v61  ;;  %5360 = vrcp.f32 %v3250_v26 }
 0xb78   : > { %v3282_v42 = vpack.c.bf16 %v3275_v62, %v3274_v16 }
 0xb7c   : > { %3927 = vrot.lane.b32.xlu0 %v6623_v33, %s5519_s27  ;;  %v5361_v15 = vpop.eup %5360 }
 0xb7d   : > { %v3291_v13 = vpop.permute.xlu1 %3290  ;;  %v3276_v52 = vmul.f32 %v5361_v15, %v6852_v8 }
 0xb7e   : > { %3919 = vrot.lane.b32.xlu1 %v6700_v43, %s5519_s27  ;;  %3315 = vmatpush.bf16.msra.mxu2 %v3291_v13 }
 0xb80   : > { %v3289_v45 = vpop.permute.xlu0 %3288 }
 0xb82   : > { %3316 = vmatpush.bf16.msra.mxu2 %v3289_v45 }
 0xb84   : > { %3651 = vrot.lane.b32.xlu0 %v6708_v25, %s5518_s29 }
 0xb86   : > { %3653 = vrot.lane.b32.xlu1 %v6715_v11, %s5518_s29  ;;  %3317 = vmatpush.bf16.msra.mxu2 %v3287_v31  ;;  %s7582_s29 = smov 80  }
 0xb89   : > { %4969 = vmatmul.msk.bf16.vlgmr.msra.gmra.mxu2 %vm1496_vm2, %v3282_v42 }
 0xb8c   : > { %3923 = vrot.lane.b32.xlu0 %v6715_v11, %s5519_s27  ;;  %v4961_v11 = vld [vmem:[%s7547_s9 + $0x10] sm:$0xf] }
 0xb8d   : > { %v3259_v43 = vpop.xlane.xlu2 %3258 }
 0xb8e   : > { %3925 = vrot.lane.b32.xlu1 %v6721_v32, %s5519_s27  ;;  %v3618_v32 = vsel %vm1876_vm3, %v4961_v11, 0  ;;  %s7583_s27 = smov 72  }
 0xb8f   : > { %3627 = vmatpush.bf16.msrb.mxu2 %v3618_v32 }
 0xb95   : > { %v3358_v27 = vpop.permute.xlu2 %3357 }
 0xb96   : > { %v3381_v25 = vsel %vm1442_vm1, %v3358_v27, 0 }
 0xb97   : > { %3387 = vmatpush.bf16.xpose.msra.mxu0 %v3381_v25 }
 0xb9d   : > { %v3344_v24 = vpop.permute.xlu2 %3343 }
 0xba5   : > { %v3664_v34 = vpop.permute.xlu2 %3663 }
 0xba6   : > { %v3687_v12 = vsel %vm1442_vm1, %v3664_v34, 0 }
 0xba8   : > { %v3256_v3 = vpop.xlane.xlu1 %3255 }
 0xbab   : > { %v3253_v61 = vpop.xlane.xlu0 %3252 }
 0xbac   : > { %5362 = vrcp.f32 %v3253_v61 }
 0xbad   : > { %5364 = vrcp.f32 %v3256_v3  ;;  %v3932_v60 = vpop.permute.xlu2 %3931 }
 0xbae   : > { %5366 = vrcp.f32 %v3259_v43 }
 0xbb0   : > { %v3265_v38 = vpop.xlane.xlu1 %3264 }
 0xbb2   : > { %v5363_v63 = vpop.eup %5362 }
 0xbb3   : > { %v3277_v53 = vmul.f32 %v5363_v63, %v5351_v58  ;;  %v5365_v7 = vpop.eup %5364  ;;  %v3262_v10 = vpop.xlane.xlu0 %3261 }
 0xbb4   : > { %v5367_v4 = vpop.eup %5366  ;;  %v3278_v8 = vmul.f32 %v5365_v7, %v6875_v2  ;;  %5368 = vrcp.f32 %v3262_v10 }
 0xbb5   : > { %v3283_v54 = vpack.c.bf16 %v3277_v53, %v3276_v52  ;;  %v3279_v41 = vmul.f32 %v5367_v4, %v6868_v44  ;;  %5370 = vrcp.f32 %v3265_v38  ;;  %v3930_v31 = vpop.permute.xlu2 %3929 }
 0xbb6   : > { %v3951_v45 = vsel %vm1442_vm1, %v3930_v31, 0 }
 0xbb7   : > { %4970 = vmatmul.msk.bf16.gmra.mxu2 %vm1496_vm2, %v3283_v54  ;;  %v3284_v51 = vpack.c.bf16 %v3279_v41, %v3278_v8 }
 0xbba   : > { %v5369_v9 = vpop.eup %5368 }
 0xbbb   : > { %v5371_v1 = vpop.eup %5370  ;;  %v3280_v44 = vmul.f32 %v5369_v9, %v6886_v47 }
 0xbbc   : > { %v3281_v46 = vmul.f32 %v5371_v1, %v6882_v39  ;;  %v3954_v39 = vsel %vm1442_vm1, %v3932_v60, 0 }
 0xbbd   : > { %v3650_v25 = vpop.permute.xlu2 %3649 }
 0xbbe   : > { %v3285_v2 = vpack.c.bf16 %v3281_v46, %v3280_v44 }
 0xbc5   : > { %v3922_v54 = vpop.permute.xlu2 %3921 }
 0xbc6   : > { %v3356_v0 = vpop.permute.xlu0 %3355 }
 0xbc7   : > { %v3378_v20 = vsel %vm1442_vm1, %v3356_v0, 0  ;;  %4971 = vmatmul.msk.bf16.gmra.mxu2 %vm1496_vm2, %v3284_v51 }
 0xbc8   : > { %v3354_v57 = vpop.permute.xlu1 %3353  ;;  %3388 = vmatpush.bf16.xpose.msra.mxu0 %v3378_v20 }
 0xbc9   : > { %v3375_v40 = vsel %vm1442_vm1, %v3354_v57, 0 }
 0xbcd   : > { %v3656_v32 = vpop.permute.xlu2 %3655 }
 0xbce   : > { %v3352_v6 = vpop.permute.xlu0 %3351 }
 0xbcf   : > { %v3372_v58 = vsel %vm1442_vm1, %v3352_v6, 0 }
 0xbd0   : > { %v3346_v56 = vpop.permute.xlu1 %3345  ;;  %3389 = vmatpush.bf16.xpose.msra.mxu0 %v3375_v40 }
 0xbd6   : > { %v3348_v59 = vpop.permute.xlu0 %3347 }
 0xbd7   : > { %4972 = vmatmul.msk.bf16.gmra.mxu2 %vm1496_vm2, %v3285_v2 }
 0xbd8   : > { %v3934_v18 = vpop.permute.xlu1 %3933  ;;  %3390 = vmatpush.bf16.xpose.msra.mxu0 %v3372_v58 }
 0xbd9   : > { %v3957_v19 = vsel %vm1442_vm1, %v3934_v18, 0 }
 0xbda   : > { %3963 = vmatpush.bf16.xpose.msra.mxu2 %v3957_v19 }
 0xbde   : > { %v3662_v37 = vpop.permute.xlu0 %3661 }
 0xbdf   : > { %v3684_v47 = vsel %vm1442_vm1, %v3662_v37, 0  ;;  %4973 = vmatmul.msk.bf16.vlgmr.msra.gmra.mxu0 %vm1442_vm1, %v3344_v24 }
 0xbe0   : > { %3693 = vmatpush.bf16.xpose.msrb.mxu0 %v3687_v12  ;;  %v3350_v50 = vpop.permute.xlu1 %3349 }
 0xbe2   : > { %3964 = vmatpush.bf16.xpose.msra.mxu2 %v3954_v39 }
 0xbe6   : > { %v3660_v13 = vpop.permute.xlu0 %3659 }
 0xbe7   : > { %v3681_v17 = vsel %vm1442_vm1, %v3660_v13, 0 }
 0xbe8   : > { %3694 = vmatpush.bf16.xpose.msrb.mxu0 %v3684_v47  ;;  %v3658_v23 = vpop.permute.xlu1 %3657 }
 0xbe9   : > { %v3678_v16 = vsel %vm1442_vm1, %v3658_v23, 0 }
 0xbea   : > { %3965 = vmatpush.bf16.xpose.msra.mxu2 %v3951_v45 }
 0xbee   : > { %v3928_v62 = vpop.permute.xlu0 %3927 }
 0xbef   : > { %4974 = vmatmul.msk.bf16.gmra.mxu0 %vm1442_vm1, %v3346_v56  ;;  %v3948_v26 = vsel %vm1442_vm1, %v3928_v62, 0 }
 0xbf0   : > { %3695 = vmatpush.bf16.xpose.msrb.mxu0 %v3681_v17  ;;  %v3920_v15 = vpop.permute.xlu1 %3919 }
 0xbf2   : > { %3966 = vmatpush.bf16.xpose.msra.mxu2 %v3948_v26 }
 0xbf6   : > { %v3652_v61 = vpop.permute.xlu0 %3651 }
 0xbf8   : > { %3696 = vmatpush.bf16.xpose.msrb.mxu0 %v3678_v16  ;;  %v3654_v52 = vpop.permute.xlu1 %3653 }
 0xbfe   : > { %v3924_v37 = vpop.permute.xlu0 %3923 }
 0xbff   : > { %4975 = vmatmul.msk.bf16.gmra.mxu0 %vm1442_vm1, %v3348_v59 }
 0xc00   : > { %v3926_v31 = vpop.permute.xlu1 %3925 }
 0xc0c   : > { %v3319_v42 = vpop.f32.mrf.mxu2 }
 0xc0f   : > { %4976 = vmatmul.msk.bf16.gmra.mxu0 %vm1442_vm1, %v3350_v50 }
 0xc14   : > { %v3321_v43 = vpop.f32.mrf.mxu2 }
 0xc15   : > { %v3339_v27 = vpack.c.bf16 %v3321_v43, %v3319_v42 }
 0xc17   : > { %4985 = vmatmul.msk.bf16.vlgmr.msrb.gmra.mxu2 %vm1442_vm1, %v3339_v27 }
 0xc1f   : > { %4989 = vmatmul.msk.bf16.vlgmr.msrb.gmra.mxu0 %vm1442_vm1, %v3650_v25 }
 0xc2f   : > { %4990 = vmatmul.msk.bf16.gmra.mxu0 %vm1442_vm1, %v3652_v61 }
 0xc3a   : > { %v3324_v63 = vpop.f32.mrf.mxu2 }
 0xc3f   : > { %4991 = vmatmul.msk.bf16.gmra.mxu0 %vm1442_vm1, %v3654_v52 }
 0xc42   : > { %v3326_v53 = vpop.f32.mrf.mxu2 }
 0xc43   : > { %v3340_v3 = vpack.c.bf16 %v3326_v53, %v3324_v63 }
 0xc45   : > { %4986 = vmatmul.msk.bf16.gmra.mxu2 %vm1442_vm1, %v3340_v3 }
 0xc4a   : > { %v3329_v11 = vpop.f32.mrf.mxu2 }
 0xc4f   : > { %4992 = vmatmul.msk.bf16.gmra.mxu0 %vm1442_vm1, %v3656_v32 }
 0xc52   : > { %v3331_v7 = vpop.f32.mrf.mxu2 }
 0xc53   : > { %v3341_v10 = vpack.c.bf16 %v3331_v7, %v3329_v11 }
 0xc55   : > { %4987 = vmatmul.msk.bf16.gmra.mxu2 %vm1442_vm1, %v3341_v10 }
 0xc5a   : > { %v3334_v4 = vpop.f32.mrf.mxu2 }
 0xc5c   : > { %v3392_v38 = vpop.f32.mrf.mxu0 }
 0xc5d   : > { %v3393_v8 = vadd.f32 %v6732_v5, %v3392_v38 }
 0xc5f   : > { %v3412_v41 = vsel %vm1496_vm2, %v3393_v8, -inf }
 0xc60   : > { %3413 = vmax.xlane.f32.xlu0 %v3412_v41 }
 0xc62   : > { %v3336_v51 = vpop.f32.mrf.mxu2 }
 0xc63   : > { %v3342_v0 = vpack.c.bf16 %v3336_v51, %v3334_v4 }
 0xc64   : > { %v3394_v20 = vpop.f32.mrf.mxu0 }
 0xc65   : > { %v3395_v24 = vadd.f32 %v6742_v48, %v3394_v20  ;;  %4988 = vmatmul.msk.bf16.gmra.mxu2 %vm1442_vm1, %v3342_v0 }
 0xc67   : > { %v3415_v57 = vsel %vm1496_vm2, %v3395_v24, -inf }
 0xc68   : > { %3416 = vmax.xlane.f32.xlu2 %v3415_v57 }
 0xc6c   : > { %v3397_v9 = vpop.f32.mrf.mxu0 }
 0xc6d   : > { %v3398_v6 = vadd.f32 %v6754_v49, %v3397_v9 }
 0xc6f   : > { %v3418_v40 = vsel %vm1496_vm2, %v3398_v6, -inf }
 0xc70   : > { %3419 = vmax.xlane.f32.xlu1 %v3418_v40 }
 0xc74   : > { %v3399_v1 = vpop.f32.mrf.mxu0 }
 0xc75   : > { %v6982_v56 = vadd.f32 %v6764_v14, %v3399_v1  ;;  %5001 = vmatmul.msk.bf16.vlgmr.msra.gmra.mxu2 %vm1442_vm1, %v3920_v15 }
 0xc77   : > { %v3421_v44 = vsel %vm1496_vm2, %v6982_v56, -inf }
 0xc78   : > { %3422 = vmax.xlane.f32.xlu2 %v3421_v44 }
 0xc7c   : > { %v3402_v34 = vpop.f32.mrf.mxu0 }
 0xc7d   : > { %v3403_v46 = vadd.f32 %v6788_v22, %v3402_v34 }
 0xc7f   : > { %v3424_v2 = vsel %vm1496_vm2, %v3403_v46, -inf }
 0xc80   : > { %3425 = vmax.xlane.f32.xlu0 %v3424_v2 }
 0xc84   : > { %v3404_v59 = vpop.f32.mrf.mxu0 }
 0xc85   : > { %v6990_v58 = vadd.f32 %v6802_v29, %v3404_v59  ;;  %5002 = vmatmul.msk.bf16.gmra.mxu2 %vm1442_vm1, %v3922_v54 }
 0xc87   : > { %v3427_v12 = vsel %vm1496_vm2, %v6990_v58, -inf }
 0xc88   : > { %3428 = vmax.xlane.f32.xlu1 %v3427_v12 }
 0xc8c   : > { %v3407_v18 = vpop.f32.mrf.mxu0 }
 0xc8d   : > { %v3408_v19 = vadd.f32 %v6813_v30, %v3407_v18 }
 0xc8f   : > { %v3430_v60 = vsel %vm1496_vm2, %v3408_v19, -inf }
 0xc90   : > { %3431 = vmax.xlane.f32.xlu2 %v3430_v60 }
 0xc94   : > { %v3409_v47 = vpop.f32.mrf.mxu0 }
 0xc95   : > { %v6998_v39 = vadd.f32 %v6827_v21, %v3409_v47  ;;  %5003 = vmatmul.msk.bf16.gmra.mxu2 %vm1442_vm1, %v3924_v37 }
 0xc97   : > { %v3433_v50 = vsel %vm1496_vm2, %v6998_v39, -inf }
 0xc98   : > { %3434 = vmax.xlane.f32.xlu0 %v3433_v50 }
 0xc9a   : > { %v7008_v23 = vpop.f32.mrf.mxu2 }
 0xc9c   : > { %v3698_v53 = vpop.f32.mrf.mxu0 }
 0xc9d   : > { %v7055_v50 = vadd.f32 %v6732_v5, %v3698_v53 }
 0xca1   : > { %3510 = vrot.lane.b32.xlu1 %v6603_v36, %s5520_s17 }
 0xca2   : > { %v7014_v61 = vpop.f32.mrf.mxu2 }
 0xca4   : > { %v3700_v10 = vpop.f32.mrf.mxu0 }
 0xca5   : > { %5004 = vmatmul.msk.bf16.gmra.mxu2 %vm1442_vm1, %v3926_v31  ;;  %v7047_v12 = vadd.f32 %v6742_v48, %v3700_v10 }
 0xca7   : > { %v3721_v47 = vsel %vm1496_vm2, %v7047_v12, -inf }
 0xca9   : > { %3504 = vrot.lane.b32.xlu1 %v6623_v33, %s5520_s17 }
 0xcac   : > { %v3703_v51 = vpop.f32.mrf.mxu0 }
 0xcc8   : > { %v7020_v3 = vpop.f32.mrf.mxu2 }
 0xcd0   : > { %v7026_v38 = vpop.f32.mrf.mxu2 }
 0xcd3   : > { %v3414_v13 = vpop.xlane.xlu0 %3413 }
 0xcd4   : > { %v3436_v17 = vsub.f32 %v3393_v8, %v3414_v13  ;;  %v3718_v13 = vsel %vm1496_vm2, %v7055_v50, -inf }
 0xcd6   : > { %v3444_v45 = vmul.f32 1.442695, %v3436_v17 }
 0xcd8   : > { %5372 = vpow2.f32 %v3444_v45  ;;  %v7036_v20 = vpop.f32.mrf.mxu2 }
 0xcdb   : > { %v3417_v62 = vpop.xlane.xlu2 %3416 }
 0xcdc   : > { %v3437_v16 = vsub.f32 %v3395_v24, %v3417_v62 }
 0xcde   : > { %v7010_v26 = vpop.eup %5372  ;;  %v3446_v42 = vmul.f32 1.442695, %v3437_v16 }
 0xcdf   : > { %v3460_v43 = vsel %vm1496_vm2, %v7010_v26, 0.0 }
 0xce0   : > { %5374 = vpow2.f32 %v3446_v42  ;;  %3461 = vadd.xlane.f32.xlu2 %v3460_v43  ;;  %v7038_v40 = vpop.f32.mrf.mxu2 }
 0xce3   : > { %v3420_v27 = vpop.xlane.xlu1 %3419 }
 0xce4   : > { %v3438_v25 = vsub.f32 %v3398_v6, %v3420_v27  ;;  %v3705_v6 = vpop.f32.mrf.mxu0 }
 0xce5   : > { %v7058_v31 = vadd.f32 %v6764_v14, %v3705_v6 }
 0xce6   : > { %v7016_v15 = vpop.eup %5374  ;;  %v3448_v63 = vmul.f32 1.442695, %v3438_v25 }
 0xce7   : > { %v3463_v52 = vsel %vm1496_vm2, %v7016_v15, 0.0  ;;  %v3727_v17 = vsel %vm1496_vm2, %v7058_v31, -inf }
 0xce8   : > { %5376 = vpow2.f32 %v3448_v63  ;;  %3464 = vadd.xlane.f32.xlu0 %v3463_v52  ;;  %v7044_v59 = vpop.f32.mrf.mxu2  ;;  %v7079_v63 = vadd.f32 %v6754_v49, %v3703_v51 }
 0xceb   : > { %v3423_v8 = vpop.xlane.xlu2 %3422 }
 0xcec   : > { %v3439_v18 = vsub.f32 %v6982_v56, %v3423_v8 }
 0xcee   : > { %v7022_v54 = vpop.eup %5376  ;;  %v3450_v37 = vmul.f32 1.442695, %v3439_v18 }
 0xcef   : > { %v3466_v11 = vsel %vm1496_vm2, %v7022_v54, 0.0 }
 0xcf0   : > { %3467 = vadd.xlane.f32.xlu1 %v3466_v11  ;;  %v7050_v60 = vpop.f32.mrf.mxu2 }
 0xcf3   : > { %v3426_v32 = vpop.xlane.xlu0 %3425 }
 0xcf4   : > { %v3440_v7 = vsub.f32 %v3403_v46, %v3426_v32  ;;  %v3708_v46 = vpop.f32.mrf.mxu0 }
 0xcf6   : > { %v3452_v4 = vmul.f32 1.442695, %v3440_v7 }
 0xcf8   : > { %5378 = vpow2.f32 %v3452_v4  ;;  %3508 = vrot.lane.b32.xlu2 %v6613_v55, %s5520_s17  ;;  %v7064_v45 = vpop.f32.mrf.mxu2 }
 0xcfb   : > { %v3429_v1 = vpop.xlane.xlu1 %3428 }
 0xcfc   : > { %3506 = vrot.lane.b32.xlu0 %v6619_v28, %s5520_s17  ;;  %v3441_v42 = vsub.f32 %v6990_v58, %v3429_v1  ;;  %v3724_v58 = vsel %vm1496_vm2, %v7079_v63, -inf }
 0xcfe   : > { %v7032_v41 = vpop.eup %5378  ;;  %v3454_v27 = vmul.f32 1.442695, %v3441_v42 }
 0xcff   : > { %v3472_v0 = vsel %vm1496_vm2, %v7032_v41, 0.0 }
 0xd00   : > { %3473 = vadd.xlane.f32.xlu1 %v3472_v0  ;;  %v3970_v53 = vpop.f32.mrf.mxu2 }
 0xd01   : > { %v7105_v1 = vadd.f32 %v6742_v48, %v3970_v53 }
 0xd03   : > { %v3432_v24 = vpop.xlane.xlu2 %3431 }
 0xd04   : > { %v3442_v57 = vsub.f32 %v3408_v19, %v3432_v24  ;;  %v3710_v19 = vpop.f32.mrf.mxu0  ;;  %v7096_v24 = vadd.f32 %v6788_v22, %v3708_v46 }
 0xd05   : > { %v7071_v16 = vadd.f32 %v6802_v29, %v3710_v19 }
 0xd06   : > { %v3456_v9 = vmul.f32 1.442695, %v3442_v57  ;;  %v3730_v57 = vsel %vm1496_vm2, %v7096_v24, -inf }
 0xd07   : > { %v3733_v25 = vsel %vm1496_vm2, %v7071_v16, -inf }
 0xd08   : > { %5380 = vpow2.f32 %v3456_v9  ;;  %v7091_v8 = vpop.f32.mrf.mxu2 }
 0xd09   : > { %5382 = vpow2.f32 %v3450_v37 }
 0xd0a   : > { %5384 = vpow2.f32 %v3454_v27 }
 0xd0b   : > { %v3435_v7 = vpop.xlane.xlu0 %3434 }
 0xd0c   : > { %v3713_v56 = vpop.f32.mrf.mxu0  ;;  %v3443_v4 = vsub.f32 %v6998_v39, %v3435_v7 }
 0xd0e   : > { %v7040_v44 = vpop.eup %5380  ;;  %v3458_v0 = vmul.f32 1.442695, %v3443_v4 }
 0xd0f   : > { %v3478_v34 = vsel %vm1496_vm2, %v7040_v44, 0.0  ;;  %v7068_v62 = vpop.eup %5382 }
 0xd10   : > { %3479 = vadd.xlane.f32.xlu1 %v3478_v34  ;;  %v3469_v43 = vsel %vm1496_vm2, %v7068_v62, 0.0  ;;  %v7088_v10 = vpop.eup %5384  ;;  %5386 = vpow2.f32 %v3458_v0  ;;  %v3975_v9 = vpop.f32.mrf.mxu2  ;;  %v7108_v34 = vadd.f32 %v6813_v30, %v3713_v56 }
 0xd11   : > { %v3475_v51 = vsel %vm1496_vm2, %v7088_v10, 0.0  ;;  %v7117_v37 = vadd.f32 %v6764_v14, %v3975_v9 }
 0xd12   : > { %v3736_v19 = vsel %vm1496_vm2, %v7108_v34, -inf }
 0xd13   : > { %v3511_v2 = vpop.permute.xlu1 %3510  ;;  %v3997_v48 = vsel %vm1496_vm2, %v7117_v37, -inf }
 0xd14   : > { %3532 = vmatpush.bf16.msrb.mxu1 %v3511_v2  ;;  %v3715_v52 = vpop.f32.mrf.mxu0  ;;  %v3991_v2 = vsel %vm1496_vm2, %v7105_v1, -inf }
 0xd15   : > { %v7082_v11 = vadd.f32 %v6827_v21, %v3715_v52 }
 0xd16   : > { %v7100_v6 = vpop.eup %5386 }
 0xd17   : > { %v3739_v32 = vsel %vm1496_vm2, %v7082_v11, -inf  ;;  %v3481_v39 = vsel %vm1496_vm2, %v7100_v6, 0.0 }
 0xd18   : > { %v7110_v46 = vpop.f32.mrf.mxu2 }
 0xd1b   : > { %v3505_v52 = vpop.permute.xlu1 %3504 }
 0xd21   : > { %3722 = vmax.xlane.f32.xlu2 %v3721_v47  ;;  %v3980_v47 = vpop.f32.mrf.mxu2 }
 0xd22   : > { %v7122_v56 = vadd.f32 %v6802_v29, %v3980_v47 }
 0xd26   : > { %3719 = vmax.xlane.f32.xlu0 %v3718_v13 }
 0xd29   : > { %3728 = vmax.xlane.f32.xlu2 %v3727_v17  ;;  %3816 = vrot.lane.b32.xlu1 %v6603_v36, %s7582_s29  ;;  %v4003_v17 = vsel %vm1496_vm2, %v7122_v56, -inf }
 0xd2e   : > { %3470 = vadd.xlane.f32.xlu0 %v3469_v43 }
 0xd31   : > { %3734 = vmax.xlane.f32.xlu2 %v3733_v25 }
 0xd36   : > { %3725 = vmax.xlane.f32.xlu0 %v3724_v58 }
 0xd39   : > { %3740 = vmax.xlane.f32.xlu2 %v3739_v32 }
 0xd3e   : > { %3476 = vadd.xlane.f32.xlu0 %v3475_v51 }
 0xd46   : > { %3731 = vmax.xlane.f32.xlu0 %v3730_v57 }
 0xd4e   : > { %3482 = vadd.xlane.f32.xlu0 %v3481_v39 }
 0xd53   : > { %3992 = vmax.xlane.f32.xlu1 %v3991_v2  ;;  %v3462_v18 = vpop.xlane.xlu2 %3461 }
 0xd56   : > { %3737 = vmax.xlane.f32.xlu0 %v3736_v19 }
 0xd5b   : > { %3998 = vmax.xlane.f32.xlu1 %v3997_v48  ;;  %v3509_v13 = vpop.permute.xlu2 %3508  ;;  %v3465_v42 = vpop.xlane.xlu0 %3464 }
 0xd5c   : > { %3533 = vmatpush.bf16.msrb.mxu1 %v3509_v13  ;;  %5388 = vrcp.f32 %v3465_v42 }
 0xd5d   : > { %5390 = vrcp.f32 %v3462_v18 }
 0xd62   : > { %v5389_v14 = vpop.eup %5388 }
 0xd63   : > { %4004 = vmax.xlane.f32.xlu1 %v4003_v17  ;;  %v5391_v27 = vpop.eup %5390  ;;  %v3493_v25 = vmul.f32 %v5389_v14, %v7016_v15  ;;  %v3468_v29 = vpop.xlane.xlu1 %3467 }
 0xd64   : > { %v3492_v53 = vmul.f32 %v5391_v27, %v7010_v26 }
 0xd66   : > { %v3500_v58 = vpack.c.bf16 %v3493_v25, %v3492_v53 }
 0xd6e   : > { %v3507_v43 = vpop.permute.xlu0 %3506 }
 0xd6f   : > { %3534 = vmatpush.bf16.msrb.mxu1 %v3507_v43 }
 0xd73   : > { %3535 = vmatpush.bf16.msrb.mxu1 %v3505_v52  ;;  %v3474_v32 = vpop.xlane.xlu1 %3473 }
 0xd76   : > { %4977 = vmatmul.msk.bf16.vlgmr.msrb.gmra.mxu1 %vm1496_vm2, %v3500_v58 }
 0xd7c   : > { %3812 = vrot.lane.b32.xlu1 %v6619_v28, %s7582_s29 }
 0xd83   : > { %v3480_v7 = vpop.xlane.xlu1 %3479 }
 0xd94   : > { %v3723_v4 = vpop.xlane.xlu2 %3722 }
 0xd95   : > { %v3743_v51 = vsub.f32 %v7047_v12, %v3723_v4  ;;  %v7141_v12 = vadd.f32 %v6732_v5, %v7064_v45  ;;  %v7153_v5 = vadd.f32 %v6754_v49, %v7091_v8 }
 0xd97   : > { %v3752_v0 = vmul.f32 1.442695, %v3743_v51  ;;  %v3988_v13 = vsel %vm1496_vm2, %v7141_v12, -inf  ;;  %v3994_v45 = vsel %vm1496_vm2, %v7153_v5, -inf }
 0xd99   : > { %5392 = vpow2.f32 %v3752_v0  ;;  %v3720_v57 = vpop.xlane.xlu0 %3719 }
 0xd9a   : > { %v3742_v15 = vsub.f32 %v7055_v50, %v3720_v57 }
 0xd9b   : > { %v3817_v9 = vpop.permute.xlu1 %3816 }
 0xd9c   : > { %v3750_v26 = vmul.f32 1.442695, %v3742_v15  ;;  %3838 = vmatpush.bf16.msra.mxu1 %v3817_v9 }
 0xd9e   : > { %5394 = vpow2.f32 %v3750_v26 }
 0xd9f   : > { %v7133_v39 = vpop.eup %5392  ;;  %5396 = vrcp.f32 %v3468_v29  ;;  %v3729_v29 = vpop.xlane.xlu2 %3728 }
 0xda0   : > { %v3769_v2 = vsel %vm1496_vm2, %v7133_v39, 0.0  ;;  %v3745_v51 = vsub.f32 %v7058_v31, %v3729_v29 }
 0xda1   : > { %v3471_v18 = vpop.xlane.xlu0 %3470  ;;  %3770 = vadd.xlane.f32.xlu2 %v3769_v2 }
 0xda2   : > { %5398 = vrcp.f32 %v3471_v18  ;;  %v3756_v9 = vmul.f32 1.442695, %v3745_v51 }
 0xda3   : > { %5400 = vrcp.f32 %v3474_v32 }
 0xda4   : > { %v7137_v19 = vpop.eup %5394 }
 0xda5   : > { %v3766_v50 = vsel %vm1496_vm2, %v7137_v19, 0.0  ;;  %v5397_v48 = vpop.eup %5396 }
 0xda6   : > { %3767 = vadd.xlane.f32.xlu0 %v3766_v50  ;;  %v3494_v17 = vmul.f32 %v5397_v48, %v7022_v54  ;;  %v7160_v54 = vadd.f32 %v6788_v22, %v7110_v46 }
 0xda8   : > { %v5399_v47 = vpop.eup %5398  ;;  %v4000_v52 = vsel %vm1496_vm2, %v7160_v54, -inf }
 0xda9   : > { %v3495_v42 = vmul.f32 %v5399_v47, %v7068_v62  ;;  %v7149_v14 = vpop.xlane.xlu0 %3725  ;;  %3989 = vmax.xlane.f32.xlu2 %v3988_v13  ;;  %v5401_v62 = vpop.eup %5400 }
 0xdaa   : > { %v3496_v49 = vmul.f32 %v5401_v62, %v7032_v41 }
 0xdab   : > { %v3501_v43 = vpack.c.bf16 %v3495_v42, %v3494_v17  ;;  %v3735_v17 = vpop.xlane.xlu2 %3734  ;;  %v3983_v42 = vpop.f32.mrf.mxu2 }
 0xdad   : > { %4978 = vmatmul.msk.bf16.gmra.mxu1 %vm1496_vm2, %v3501_v43 }
 0xdb1   : > { %v3477_v27 = vpop.xlane.xlu0 %3476  ;;  %3995 = vmax.xlane.f32.xlu2 %v3994_v45  ;;  %v7205_v45 = vadd.f32 %v6813_v30, %v3983_v42  ;;  %v3744_v30 = vsub.f32 %v7079_v63, %v7149_v14 }
 0xdb2   : > { %5402 = vrcp.f32 %v3477_v27 }
 0xdb3   : > { %5404 = vrcp.f32 %v3480_v7  ;;  %v7202_v43 = vpop.xlane.xlu2 %3740  ;;  %v3985_v27 = vpop.f32.mrf.mxu2 }
 0xdb8   : > { %v5403_v25 = vpop.eup %5402 }
 0xdb9   : > { %v3497_v8 = vmul.f32 %v5403_v25, %v7088_v10  ;;  %v7166_v53 = vpop.xlane.xlu0 %3731  ;;  %4001 = vmax.xlane.f32.xlu2 %v4000_v52  ;;  %v5405_v46 = vpop.eup %5404 }
 0xdba   : > { %3814 = vrot.lane.b32.xlu0 %v6613_v55, %s7582_s29  ;;  %v3498_v10 = vmul.f32 %v5405_v46, %v7040_v44 }
 0xdbb   : > { %v3502_v58 = vpack.c.bf16 %v3497_v8, %v3496_v49 }
 0xdbd   : > { %4979 = vmatmul.msk.bf16.gmra.mxu1 %vm1496_vm2, %v3502_v58 }
 0xdc1   : > { %v3483_v22 = vpop.xlane.xlu0 %3482 }
 0xdc2   : > { %5406 = vrcp.f32 %v3483_v22  ;;  %v3754_v22 = vmul.f32 1.442695, %v3744_v30 }
 0xdc6   : > { %v3993_v32 = vpop.xlane.xlu1 %3992 }
 0xdc7   : > { %v4013_v4 = vsub.f32 %v7105_v1, %v3993_v32 }
 0xdc8   : > { %v5407_v41 = vpop.eup %5406 }
 0xdc9   : > { %v3499_v0 = vmul.f32 %v5407_v41, %v7100_v6  ;;  %v4022_v57 = vmul.f32 1.442695, %v4013_v4  ;;  %v3738_v52 = vpop.xlane.xlu0 %3737 }
 0xdcb   : > { %5408 = vpow2.f32 %v4022_v57  ;;  %v3503_v15 = vpack.c.bf16 %v3499_v0, %v3498_v10  ;;  %v3747_v57 = vsub.f32 %v7071_v16, %v3735_v17 }
 0xdcc   : > { %5410 = vpow2.f32 %v3756_v9 }
 0xdcd   : > { %4980 = vmatmul.msk.bf16.gmra.mxu1 %vm1496_vm2, %v3503_v15  ;;  %v3748_v15 = vsub.f32 %v7108_v34, %v3738_v52 }
 0xdce   : > { %v3999_v7 = vpop.xlane.xlu1 %3998 }
 0xdcf   : > { %v4015_v2 = vsub.f32 %v7117_v37, %v3999_v7  ;;  %v4962_v37 = vld [vmem:[%s7547_s9 + $0x14] sm:$0xf] }
 0xdd1   : > { %v7176_v26 = vpop.eup %5408  ;;  %4086 = vrot.lane.b32.xlu2 %v6603_v36, %s7583_s27  ;;  %v4026_v31 = vmul.f32 1.442695, %v4015_v2  ;;  %v3574_v36 = vsel %vm1876_vm3, %v4962_v37, 0  ;;  %v3760_v2 = vmul.f32 1.442695, %v3747_v57 }
 0xdd2   : > { %v4039_v44 = vsel %vm1496_vm2, %v7176_v26, 0.0  ;;  %v7183_v6 = vpop.eup %5410  ;;  %3583 = vmatpush.bf16.msrb.mxu3 %v3574_v36 }
 0xdd3   : > { %4040 = vadd.xlane.f32.xlu1 %v4039_v44  ;;  %5412 = vpow2.f32 %v4026_v31  ;;  %v3775_v1 = vsel %vm1496_vm2, %v7183_v6, 0.0 }
 0xdd6   : > { %v4005_v4 = vpop.xlane.xlu1 %4004 }
 0xdd7   : > { %v4017_v36 = vsub.f32 %v7122_v56, %v4005_v4 }
 0xdd9   : > { %3810 = vrot.lane.b32.xlu2 %v6623_v33, %s7582_s29  ;;  %v7193_v18 = vpop.eup %5412  ;;  %v4030_v17 = vmul.f32 1.442695, %v4017_v36 }
 0xdda   : > { %v4045_v50 = vsel %vm1496_vm2, %v7193_v18, 0.0 }
 0xddb   : > { %3776 = vadd.xlane.f32.xlu1 %v3775_v1 }
 0xde1   : > { %4084 = vrot.lane.b32.xlu2 %v6613_v55, %s7583_s27  ;;  %v4006_v55 = vsel %vm1496_vm2, %v7205_v45, -inf }
 0xde3   : > { %4046 = vadd.xlane.f32.xlu1 %v4045_v50 }
 0xde9   : > { %4082 = vrot.lane.b32.xlu2 %v6619_v28, %s7583_s27  ;;  %v7210_v28 = vadd.f32 %v6827_v21, %v3985_v27 }
 0xdeb   : > { %v4009_v25 = vsel %vm1496_vm2, %v7210_v28, -inf }
 0xdee   : > { %v3813_v9 = vpop.permute.xlu1 %3812 }
 0xdf3   : > { %v3537_v48 = vpop.f32.mrf.mxu1 }
 0xdfb   : > { %v3539_v47 = vpop.f32.mrf.mxu1 }
 0xdfc   : > { %v3557_v13 = vpack.c.bf16 %v3539_v47, %v3537_v48 }
 0xdfe   : > { %4981 = vmatmul.msk.bf16.vlgmr.msrb.gmra.mxu3 %vm1442_vm1, %v3557_v13 }
 0xe12   : > { %4007 = vmax.xlane.f32.xlu2 %v4006_v55 }
 0xe14   : > { %v3771_v62 = vpop.xlane.xlu2 %3770 }
 0xe19   : > { %v3768_v46 = vpop.xlane.xlu0 %3767 }
 0xe1a   : > { %4010 = vmax.xlane.f32.xlu2 %v4009_v25  ;;  %v3749_v25 = vsub.f32 %v7082_v11, %v7202_v43  ;;  %v3746_v43 = vsub.f32 %v7096_v24, %v7166_v53 }
 0xe1c   : > { %v3990_v49 = vpop.xlane.xlu2 %3989 }
 0xe1d   : > { %v4012_v8 = vsub.f32 %v7141_v12, %v3990_v49  ;;  %v3764_v49 = vmul.f32 1.442695, %v3749_v25 }
 0xe1f   : > { %v4020_v58 = vmul.f32 1.442695, %v4012_v8 }
 0xe21   : > { %5414 = vpow2.f32 %v4020_v58 }
 0xe22   : > { %5416 = vpow2.f32 %v3754_v22 }
 0xe24   : > { %v3996_v29 = vpop.xlane.xlu2 %3995 }
 0xe25   : > { %v4014_v21 = vsub.f32 %v7153_v5, %v3996_v29 }
 0xe27   : > { %v7217_v32 = vpop.eup %5414  ;;  %v4024_v12 = vmul.f32 1.442695, %v4014_v21  ;;  %v3758_v21 = vmul.f32 1.442695, %v3746_v43 }
 0xe28   : > { %v4036_v41 = vsel %vm1496_vm2, %v7217_v32, 0.0  ;;  %v7222_v63 = vpop.eup %5416 }
 0xe29   : > { %4037 = vadd.xlane.f32.xlu0 %v4036_v41  ;;  %5418 = vpow2.f32 %v4024_v12  ;;  %v3772_v7 = vsel %vm1496_vm2, %v7222_v63, 0.0 }
 0xe2a   : > { %v3542_v10 = vpop.f32.mrf.mxu1  ;;  %5420 = vrcp.f32 %v3768_v46 }
 0xe2c   : > { %v3815_v51 = vpop.permute.xlu0 %3814  ;;  %v4002_v0 = vpop.xlane.xlu2 %4001 }
 0xe2d   : > { %v4016_v14 = vsub.f32 %v7160_v54, %v4002_v0  ;;  %3839 = vmatpush.bf16.msra.mxu1 %v3815_v51  ;;  %v3762_v54 = vmul.f32 1.442695, %v3748_v15 }
 0xe2f   : > { %v4028_v5 = vmul.f32 1.442695, %v4016_v14  ;;  %v7231_v34 = vpop.eup %5418 }
 0xe30   : > { %v5421_v1 = vpop.eup %5420  ;;  %v4042_v50 = vsel %vm1496_vm2, %v7231_v34, 0.0 }
 0xe31   : > { %5422 = vpow2.f32 %v4028_v5  ;;  %3840 = vmatpush.bf16.msra.mxu1 %v3813_v9  ;;  %3773 = vadd.xlane.f32.xlu0 %v3772_v7  ;;  %v3798_v47 = vmul.f32 %v5421_v1, %v7137_v19 }
 0xe32   : > { %v3544_v44 = vpop.f32.mrf.mxu1  ;;  %4080 = vrot.lane.b32.xlu2 %v6623_v33, %s7583_s27  ;;  %5424 = vrcp.f32 %v3771_v62 }
 0xe33   : > { %v3558_v16 = vpack.c.bf16 %v3544_v44, %v3542_v10  ;;  %5426 = vpow2.f32 %v3760_v2 }
 0xe34   : > { %v4087_v31 = vpop.permute.xlu2 %4086  ;;  %5428 = vpow2.f32 %v3762_v54 }
 0xe35   : > { %4982 = vmatmul.msk.bf16.gmra.mxu3 %vm1442_vm1, %v3558_v16  ;;  %4108 = vmatpush.bf16.msra.mxu0 %v4087_v31  ;;  %5430 = vpow2.f32 %v4030_v17 }
 0xe36   : > { %5432 = vpow2.f32 %v3764_v49 }
 0xe37   : > { %v7234_v37 = vpop.eup %5422  ;;  %5434 = vpow2.f32 %v3758_v21 }
 0xe38   : > { %v4048_v33 = vsel %vm1496_vm2, %v7234_v37, 0.0  ;;  %v5425_v48 = vpop.eup %5424 }
 0xe39   : > { %4043 = vadd.xlane.f32.xlu0 %v4042_v50  ;;  %4049 = vadd.xlane.f32.xlu1 %v4048_v33  ;;  %v7242_v42 = vpop.eup %5426  ;;  %v3799_v55 = vmul.f32 %v5425_v48, %v7133_v39  ;;  %v4963_v33 = vld [vmem:[%s7547_s9 + $0x18] sm:$0xf] }
 0xe3a   : > { %v3547_v13 = vpop.f32.mrf.mxu1  ;;  %v7245_v62 = vpop.eup %5428  ;;  %v3781_v19 = vsel %vm1496_vm2, %v7242_v42, 0.0  ;;  %v3880_v48 = vsel %vm1876_vm3, %v4963_v33, 0 }
 0xe3b   : > { %v3806_v56 = vpack.c.bf16 %v3799_v55, %v3798_v47  ;;  %v3784_v52 = vsel %vm1496_vm2, %v7245_v62, 0.0  ;;  %v7254_v58 = vpop.eup %5430  ;;  %3889 = vmatpush.bf16.msra.mxu3 %v3880_v48 }
 0xe3c   : > { %v3811_v27 = vpop.permute.xlu2 %3810  ;;  %v4051_v11 = vsel %vm1496_vm2, %v7254_v58, 0.0  ;;  %v7261_v29 = vpop.eup %5432 }
 0xe3d   : > { %3841 = vmatpush.bf16.msra.mxu1 %v3811_v27  ;;  %v3787_v4 = vsel %vm1496_vm2, %v7261_v29, 0.0  ;;  %v7266_v12 = vpop.eup %5434 }
 0xe3e   : > { %v3778_v24 = vsel %vm1496_vm2, %v7266_v12, 0.0 }
 0xe40   : > { %4993 = vmatmul.msk.bf16.vlgmr.msra.gmra.mxu1 %vm1496_vm2, %v3806_v56 }
 0xe41   : > { %3782 = vadd.xlane.f32.xlu0 %v3781_v19  ;;  %3785 = vadd.xlane.f32.xlu1 %v3784_v52 }
 0xe42   : > { %v3549_v39 = vpop.f32.mrf.mxu1 }
 0xe43   : > { %v3559_v8 = vpack.c.bf16 %v3549_v39, %v3547_v13 }
 0xe44   : > { %v4085_v30 = vpop.permute.xlu2 %4084 }
 0xe45   : > { %4983 = vmatmul.msk.bf16.gmra.mxu3 %vm1442_vm1, %v3559_v8  ;;  %4109 = vmatpush.bf16.msra.mxu0 %v4085_v30 }
 0xe46   : > { %v4041_v7 = vpop.xlane.xlu1 %4040 }
 0xe49   : > { %4052 = vadd.xlane.f32.xlu0 %v4051_v11 }
 0xe4a   : > { %v3552_v22 = vpop.f32.mrf.mxu1 }
 0xe4c   : > { %v4083_v46 = vpop.permute.xlu2 %4082 }
 0xe4d   : > { %4110 = vmatpush.bf16.msra.mxu0 %v4083_v46 }
 0xe51   : > { %3788 = vadd.xlane.f32.xlu0 %v3787_v4 }
 0xe52   : > { %v3554_v41 = vpop.f32.mrf.mxu1 }
 0xe53   : > { %v3560_v10 = vpack.c.bf16 %v3554_v41, %v3552_v22 }
 0xe55   : > { %4984 = vmatmul.msk.bf16.gmra.mxu3 %vm1442_vm1, %v3560_v10 }
 0xe5b   : > { %3779 = vadd.xlane.f32.xlu2 %v3778_v24 }
 0xe85   : > { %v4008_v53 = vpop.xlane.xlu2 %4007 }
 0xe86   : > { %v4018_v51 = vsub.f32 %v7205_v45, %v4008_v53 }
 0xe88   : > { %v4032_v0 = vmul.f32 1.442695, %v4018_v51 }
 0xe8a   : > { %5436 = vpow2.f32 %v4032_v0 }
 0xe8d   : > { %v4011_v14 = vpop.xlane.xlu2 %4010 }
 0xe8e   : > { %v4019_v57 = vsub.f32 %v7210_v28, %v4011_v14  ;;  %v3777_v28 = vpop.xlane.xlu1 %3776 }
 0xe90   : > { %v7272_v15 = vpop.eup %5436  ;;  %v4034_v5 = vmul.f32 1.442695, %v4019_v57 }
 0xe91   : > { %v4054_v9 = vsel %vm1496_vm2, %v7272_v15, 0.0 }
 0xe92   : > { %5438 = vpow2.f32 %v4034_v5  ;;  %4055 = vadd.xlane.f32.xlu1 %v4054_v9 }
 0xe93   : > { %5440 = vrcp.f32 %v4041_v7 }
 0xe95   : > { %v4081_v2 = vpop.permute.xlu2 %4080 }
 0xe96   : > { %4111 = vmatpush.bf16.msra.mxu0 %v4081_v2  ;;  %v4047_v13 = vpop.xlane.xlu1 %4046 }
 0xe98   : > { %v7276_v44 = vpop.eup %5438 }
 0xe99   : > { %v4057_v45 = vsel %vm1496_vm2, %v7276_v44, 0.0  ;;  %v5441_v16 = vpop.eup %5440 }
 0xe9a   : > { %4058 = vadd.xlane.f32.xlu0 %v4057_v45  ;;  %v4069_v1 = vmul.f32 %v5441_v16, %v7176_v26 }
 0xe9c   : > { %v4038_v54 = vpop.xlane.xlu0 %4037 }
 0xe9d   : > { %5442 = vrcp.f32 %v4038_v54 }
 0xe9e   : > { %5444 = vrcp.f32 %v3777_v28 }
 0xea3   : > { %v5443_v31 = vpop.eup %5442 }
 0xea4   : > { %v4068_v36 = vmul.f32 %v5443_v31, %v7217_v32  ;;  %v3774_v50 = vpop.xlane.xlu0 %3773  ;;  %v5445_v17 = vpop.eup %5444 }
 0xea5   : > { %5446 = vrcp.f32 %v3774_v50  ;;  %v3801_v26 = vmul.f32 %v5445_v17, %v7183_v6 }
 0xea6   : > { %v4076_v47 = vpack.c.bf16 %v4069_v1, %v4068_v36  ;;  %5448 = vrcp.f32 %v4047_v13 }
 0xea8   : > { %5005 = vmatmul.msk.bf16.vlgmr.msra.gmra.mxu0 %vm1496_vm2, %v4076_v47 }
 0xeab   : > { %v5447_v55 = vpop.eup %5446 }
 0xeac   : > { %v3800_v32 = vmul.f32 %v5447_v55, %v7222_v63  ;;  %v4044_v27 = vpop.xlane.xlu0 %4043  ;;  %v5449_v25 = vpop.eup %5448 }
 0xead   : > { %5450 = vrcp.f32 %v4044_v27  ;;  %v4071_v52 = vmul.f32 %v5449_v25, %v7193_v18  ;;  %v4050_v30 = vpop.xlane.xlu1 %4049 }
 0xeae   : > { %v3807_v56 = vpack.c.bf16 %v3801_v26, %v3800_v32  ;;  %5452 = vrcp.f32 %v4050_v30  ;;  %v3585_v26 = vpop.f32.mrf.mxu3 }
 0xeb0   : > { %4994 = vmatmul.msk.bf16.gmra.mxu1 %vm1496_vm2, %v3807_v56 }
 0xeb3   : > { %v5451_v19 = vpop.eup %5450 }
 0xeb4   : > { %v4070_v39 = vmul.f32 %v5451_v19, %v7231_v34  ;;  %v3783_v49 = vpop.xlane.xlu0 %3782  ;;  %v5453_v11 = vpop.eup %5452 }
 0xeb5   : > { %v4072_v22 = vmul.f32 %v5453_v11, %v7234_v37  ;;  %v3786_v0 = vpop.xlane.xlu1 %3785 }
 0xeb6   : > { %v4077_v8 = vpack.c.bf16 %v4071_v52, %v4070_v39  ;;  %v3587_v56 = vpop.f32.mrf.mxu3 }
 0xeb8   : > { %5006 = vmatmul.msk.bf16.gmra.mxu0 %vm1496_vm2, %v4077_v8 }
 0xebc   : > { %v4053_v6 = vpop.xlane.xlu0 %4052 }
 0xebd   : > { %5454 = vrcp.f32 %v4053_v6  ;;  %v3843_v63 = vpop.f32.mrf.mxu1 }
 0xebe   : > { %5456 = vrcp.f32 %v3783_v49  ;;  %v3590_v19 = vpop.f32.mrf.mxu3 }
 0xec3   : > { %v5455_v43 = vpop.eup %5454 }
 0xec4   : > { %v4073_v46 = vmul.f32 %v5455_v43, %v7254_v58  ;;  %v5457_v41 = vpop.eup %5456  ;;  %v3789_v51 = vpop.xlane.xlu0 %3788 }
 0xec5   : > { %v3845_v21 = vpop.f32.mrf.mxu1  ;;  %v3803_v24 = vmul.f32 %v5457_v41, %v7242_v42  ;;  %v4964_v42 = vld [vmem:[%s7547_s9 + $0x1c] sm:$0xf] }
 0xec6   : > { %v3863_v4 = vpack.c.bf16 %v3845_v21, %v3843_v63  ;;  %v4078_v18 = vpack.c.bf16 %v4073_v46, %v4072_v22  ;;  %v3592_v49 = vpop.f32.mrf.mxu3  ;;  %v3630_v21 = vadd.f32 %v7008_v23, %v3585_v26 }
 0xec8   : > { %4997 = vmatmul.msk.bf16.vlgmr.msra.gmra.mxu3 %vm1442_vm1, %v3863_v4  ;;  %5007 = vmatmul.msk.bf16.gmra.mxu0 %vm1496_vm2, %v4078_v18  ;;  %v7323_v18 = vld [vmem:[%s7548_s10 + $0x1] ss:$0 sm:$0xff] }
 0xece   : > { %v3780_v34 = vpop.xlane.xlu2 %3779  ;;  %v3595_v8 = vpop.f32.mrf.mxu3 }
 0xecf   : > { %5458 = vrcp.f32 %v3780_v34 }
 0xed0   : > { %5460 = vrcp.f32 %v3789_v51  ;;  %v7584_v51 = vld [vmem:[#allocation4_spill] sm:$0xff] }
 0xed1   : > { %5462 = vrcp.f32 %v3786_v0 }
 0xed5   : > { %v5459_v10 = vpop.eup %5458 }
 0xed6   : > { %v3802_v53 = vmul.f32 %v5459_v10, %v7266_v12  ;;  %v5461_v58 = vpop.eup %5460  ;;  %v4150_v12 = vsel %vm1876_vm3, %v4964_v42, 0  ;;  %v3597_v30 = vpop.f32.mrf.mxu3 }
 0xed7   : > { %v5463_v14 = vpop.eup %5462  ;;  %v3805_v57 = vmul.f32 %v5461_v58, %v7261_v29  ;;  %4159 = vmatpush.bf16.msrb.mxu1 %v4150_v12  ;;  %v3642_v26 = vadd.f32 %v7038_v40, %v3597_v30 }
 0xed8   : > { %v3808_v37 = vpack.c.bf16 %v3803_v24, %v3802_v53  ;;  %v3804_v5 = vmul.f32 %v5463_v14, %v7245_v62  ;;  %v3632_v53 = vadd.f32 %v7014_v61, %v3587_v56 }
 0xeda   : > { %4995 = vmatmul.msk.bf16.gmra.mxu1 %vm1496_vm2, %v3808_v37  ;;  %v3809_v9 = vpack.c.bf16 %v3805_v57, %v3804_v5  ;;  %v3635_v5 = vadd.f32 %v7020_v3, %v3590_v19 }
 0xede   : > { %v3600_v6 = vpop.f32.mrf.mxu3 }
 0xedf   : > { %v3645_v30 = vadd.f32 %v7044_v59, %v3600_v6 }
 0xee6   : > { %v7316_v43 = vpop.f32.mrf.mxu3 }
 0xeea   : > { %4996 = vmatmul.msk.bf16.gmra.mxu1 %vm1496_vm2, %v3809_v9  ;;  %v7585_v9 = vld [vmem:[#allocation5_spill] sm:$0xff] }
 0xf05   : > { %v4056_v7 = vpop.xlane.xlu1 %4055 }
 0xf06   : > { %5464 = vrcp.f32 %v4056_v7 }
 0xf0c   : > { %v5465_v45 = vpop.eup %5464 }
 0xf0d   : > { %v4059_v2 = vpop.xlane.xlu0 %4058  ;;  %v4074_v29 = vmul.f32 %v5465_v45, %v7272_v15 }
 0xf0e   : > { %5466 = vrcp.f32 %v4059_v2 }
 0xf14   : > { %v5467_v54 = vpop.eup %5466 }
 0xf15   : > { %v4075_v62 = vmul.f32 %v5467_v54, %v7276_v44 }
 0xf17   : > { %v4079_v28 = vpack.c.bf16 %v4075_v62, %v4074_v29  ;;  %v3637_v29 = vadd.f32 %v7026_v38, %v3592_v49  ;;  %v7586_v62 = vld [vmem:[#allocation2_spill] sm:$0xff]  ;;  %v3640_v38 = vadd.f32 %v7036_v20, %v3595_v8 }
 0xf18   : > { %v7589_v49 = vld [vmem:[#allocation10_spill] sm:$0xff] }
 0xf19   : > { %5008 = vmatmul.msk.bf16.gmra.mxu0 %vm1496_vm2, %v4079_v28 }
 0xf25   : > { %v4113_v16 = vpop.f32.mrf.mxu0 }
 0xf2d   : > { %v3848_v31 = vpop.f32.mrf.mxu1  ;;  %v4115_v1 = vpop.f32.mrf.mxu0 }
 0xf2e   : > { %v4133_v36 = vpack.c.bf16 %v4115_v1, %v4113_v16 }
 0xf30   : > { %5009 = vmatmul.msk.bf16.vlgmr.msrb.gmra.mxu1 %vm1442_vm1, %v4133_v36 }
 0xf35   : > { %v3850_v50 = vpop.f32.mrf.mxu1  ;;  %v4118_v33 = vpop.f32.mrf.mxu0 }
 0xf36   : > { %v3864_v48 = vpack.c.bf16 %v3850_v50, %v3848_v31 }
 0xf38   : > { %4998 = vmatmul.msk.bf16.gmra.mxu3 %vm1442_vm1, %v3864_v48 }
 0xf3d   : > { %v4120_v47 = vpop.f32.mrf.mxu0 }
 0xf3e   : > { %v4134_v13 = vpack.c.bf16 %v4120_v47, %v4118_v33  ;;  %v7587_v33 = vld [vmem:[#allocation3_spill] sm:$0xff] }
 0xf40   : > { %5010 = vmatmul.msk.bf16.gmra.mxu1 %vm1442_vm1, %v4134_v13 }
 0xf45   : > { %v4123_v15 = vpop.f32.mrf.mxu0 }
 0xf4b   : > { %v3891_v46 = vpop.f32.mrf.mxu3 }
 0xf4c   : > { %v3911_v4 = vadd.f32 %v3891_v46, %v3630_v21 }
 0xf4d   : > { %v4125_v44 = vpop.f32.mrf.mxu0 }
 0xf4e   : > { %v4135_v17 = vpack.c.bf16 %v4125_v44, %v4123_v15 }
 0xf50   : > { %5011 = vmatmul.msk.bf16.gmra.mxu1 %vm1442_vm1, %v4135_v17 }
 0xf53   : > { %v3893_v24 = vpop.f32.mrf.mxu3 }
 0xf54   : > { %v3912_v0 = vadd.f32 %v3893_v24, %v3632_v53  ;;  %v3647_v24 = vadd.f32 %v7050_v60, %v7316_v43  ;;  %v7591_v43 = vld [vmem:[#allocation11_spill] sm:$0xff] }
 0xf57   : > { %v3853_v55 = vpop.f32.mrf.mxu1 }
 0xf5f   : > { %v3855_v32 = vpop.f32.mrf.mxu1 }
 0xf60   : > { %v3865_v27 = vpack.c.bf16 %v3855_v32, %v3853_v55  ;;  %v7588_v32 = vld [vmem:[#allocation9_spill] sm:$0xff] }
 0xf62   : > { %4999 = vmatmul.msk.bf16.gmra.mxu3 %vm1442_vm1, %v3865_v27 }
 0xf67   : > { %v3858_v25 = vpop.f32.mrf.mxu1 }
 0xf6f   : > { %v3860_v52 = vpop.f32.mrf.mxu1 }
 0xf70   : > { %v3866_v39 = vpack.c.bf16 %v3860_v52, %v3858_v25 }
 0xf72   : > { %5000 = vmatmul.msk.bf16.gmra.mxu3 %vm1442_vm1, %v3866_v39 }
 0xf96   : > { %v4128_v63 = vpop.f32.mrf.mxu0 }
 0xf9e   : > { %v4130_v11 = vpop.f32.mrf.mxu0 }
 0xf9f   : > { %v4136_v22 = vpack.c.bf16 %v4130_v11, %v4128_v63 }
 0xfa1   : > { %5012 = vmatmul.msk.bf16.gmra.mxu1 %vm1442_vm1, %v4136_v22 }
 0xfad   : > { %v4161_v34 = vpop.f32.mrf.mxu1 }
 0xfae   : > { %v4181_v41 = vadd.f32 %v4161_v34, %v3911_v4  ;;  %v7590_v4 = vld [vmem:[#allocation8_spill] sm:$0xff] }
 0xfb0   : > { %v4194_v10 = vadd.f32 %v7323_v18, %v4181_v41 }
 0xfb2   : > { %v7328_v37 = vadd.f32 %v4194_v10, %v7584_v51 }
 0xfb4   : > { %v4210_v23 = vsel %vm575_vm0, %v7328_v37, 0.0 }
 0xfb5   : > { %4211 = vadd.xlane.f32.xlu1 %v4210_v23  ;;  %v4163_v58 = vpop.f32.mrf.mxu1 }
 0xfb6   : > { %v4182_v14 = vadd.f32 %v4163_v58, %v3912_v0 }
 0xfb8   : > { %v4195_v57 = vadd.f32 %v7323_v18, %v4182_v14 }
 0xfba   : > { %v7335_v42 = vadd.f32 %v4195_v57, %v7585_v9 }
 0xfbb   : > { %v3896_v12 = vpop.f32.mrf.mxu3 }
 0xfbc   : > { %v3913_v7 = vadd.f32 %v3896_v12, %v3635_v5  ;;  %v4213_v61 = vsel %vm575_vm0, %v7335_v42, 0.0 }
 0xfbd   : > { %4214 = vadd.xlane.f32.xlu0 %v4213_v61  ;;  %v4166_v2 = vpop.f32.mrf.mxu1 }
 0xfbe   : > { %v4183_v45 = vadd.f32 %v4166_v2, %v3913_v7 }
 0xfc0   : > { %v4196_v54 = vadd.f32 %v7323_v18, %v4183_v45 }
 0xfc2   : > { %v7342_v28 = vadd.f32 %v4196_v54, %v7586_v62 }
 0xfc3   : > { %v3898_v16 = vpop.f32.mrf.mxu3 }
 0xfc4   : > { %v3914_v3 = vadd.f32 %v3898_v16, %v3637_v29  ;;  %v4216_v31 = vsel %vm575_vm0, %v7342_v28, 0.0 }
 0xfc5   : > { %4217 = vadd.xlane.f32.xlu1 %v4216_v31  ;;  %v4168_v1 = vpop.f32.mrf.mxu1 }
 0xfc6   : > { %v4184_v36 = vadd.f32 %v4168_v1, %v3914_v3 }
 0xfc8   : > { %v4197_v50 = vadd.f32 %v7323_v18, %v4184_v36 }
 0xfca   : > { %v7348_v48 = vadd.f32 %v4197_v50, %v7587_v33 }
 0xfcc   : > { %v4219_v47 = vsel %vm575_vm0, %v7348_v48, 0.0 }
 0xfcd   : > { %4220 = vadd.xlane.f32.xlu2 %v4219_v47  ;;  %v4171_v13 = vpop.f32.mrf.mxu1 }
 0xfd5   : > { %v4173_v52 = vpop.f32.mrf.mxu1 }
 0xfe5   : > { %v3901_v15 = vpop.f32.mrf.mxu3 }
 0xfe6   : > { %v3915_v44 = vadd.f32 %v3901_v15, %v3640_v38 }
 0xfe8   : > { %v4185_v17 = vadd.f32 %v4171_v13, %v3915_v44 }
 0xfea   : > { %v4198_v55 = vadd.f32 %v7323_v18, %v4185_v17 }
 0xfec   : > { %v7356_v27 = vadd.f32 %v4198_v55, %v7588_v32 }
 0xfed   : > { %v3903_v56 = vpop.f32.mrf.mxu3 }
 0xfee   : > { %v3916_v25 = vadd.f32 %v3903_v56, %v3642_v26  ;;  %v4222_v19 = vsel %vm575_vm0, %v7356_v27, 0.0 }
 0xfef   : > { %4223 = vadd.xlane.f32.xlu0 %v4222_v19 }
 0xff0   : > { %v4186_v39 = vadd.f32 %v4173_v52, %v3916_v25  ;;  %v5103_v52 = vld [vmem:[%s7549_s11 + $0x18] sm:$0xff] }
 0xff1   : > { %4430 = vmatpush.bf16.msrb.mxu3 %v5103_v52 }
 0xff2   : > { %v4199_v20 = vadd.f32 %v7323_v18, %v4186_v39 }
 0xff4   : > { %v7362_v8 = vadd.f32 %v4199_v20, %v7589_v49  ;;  %v5102_v20 = vld [vmem:[%s7549_s11 + $0x10] sm:$0xff] }
 0xff5   : > { %v3906_v40 = vpop.f32.mrf.mxu3  ;;  %4431 = vmatpush.bf16.msrb.mxu3 %v5102_v20 }
 0xff6   : > { %v4225_v63 = vsel %vm575_vm0, %v7362_v8, 0.0  ;;  %v3917_v11 = vadd.f32 %v3906_v40, %v3645_v30 }
 0xff7   : > { %4226 = vadd.xlane.f32.xlu1 %v4225_v63 }
 0xffd   : > { %v3908_v10 = vpop.f32.mrf.mxu3 }
 0xffe   : > { %v3918_v0 = vadd.f32 %v3908_v10, %v3647_v24 }
0x101e   : > { %v4176_v22 = vpop.f32.mrf.mxu1 }
0x101f   : > { %v4187_v46 = vadd.f32 %v4176_v22, %v3917_v11 }
0x1021   : > { %v4200_v21 = vadd.f32 %v7323_v18, %v4187_v46 }
0x1023   : > { %v7369_v34 = vadd.f32 %v4200_v21, %v7590_v4 }
0x1025   : > { %v4228_v41 = vsel %vm575_vm0, %v7369_v34, 0.0 }
0x1026   : > { %4229 = vadd.xlane.f32.xlu1 %v4228_v41  ;;  %v4178_v53 = vpop.f32.mrf.mxu1 }
0x1027   : > { %v4188_v6 = vadd.f32 %v4178_v53, %v3918_v0 }
0x1028   : > { %v4212_v51 = vpop.xlane.xlu1 %4211 }
0x1029   : > { %v4234_v59 = vmul.f32 %v4212_v51, %v6547_v35  ;;  %v4201_v14 = vadd.f32 %v7323_v18, %v4188_v6 }
0x102b   : > { %v7377_v23 = vsub.f32 %v7328_v37, %v4234_v59  ;;  %v7385_v9 = vadd.f32 %v4201_v14, %v7591_v43 }
0x102d   : > { %v4250_v58 = vmul.f32 %v7377_v23, %v7377_v23  ;;  %v4231_v18 = vsel %vm575_vm0, %v7385_v9, 0.0 }
0x102f   : > { %v4258_v57 = vsel %vm575_vm0, %v4250_v58, 0.0 }
0x1030   : > { %v4215_v5 = vpop.xlane.xlu0 %4214  ;;  %4259 = vadd.xlane.f32.xlu2 %v4258_v57 }
0x1031   : > { %v4235_v60 = vmul.f32 %v4215_v5, %v6547_v35 }
0x1033   : > { %v7388_v12 = vsub.f32 %v7335_v42, %v4235_v60 }
0x1035   : > { %v4251_v7 = vmul.f32 %v7388_v12, %v7388_v12 }
0x1037   : > { %v4261_v61 = vsel %vm575_vm0, %v4251_v7, 0.0 }
0x1038   : > { %v4218_v2 = vpop.xlane.xlu1 %4217  ;;  %4262 = vadd.xlane.f32.xlu0 %v4261_v61  ;;  %4232 = vadd.xlane.f32.xlu2 %v4231_v18 }
0x1039   : > { %v4236_v45 = vmul.f32 %v4218_v2, %v6547_v35 }
0x103b   : > { %v7397_v54 = vsub.f32 %v7342_v28, %v4236_v45 }
0x103d   : > { %v4252_v29 = vmul.f32 %v7397_v54, %v7397_v54 }
0x103f   : > { %v4264_v62 = vsel %vm575_vm0, %v4252_v29, 0.0 }
0x1040   : > { %v4221_v16 = vpop.xlane.xlu2 %4220  ;;  %4265 = vadd.xlane.f32.xlu0 %v4264_v62 }
0x1041   : > { %v4237_v3 = vmul.f32 %v4221_v16, %v6547_v35 }
0x1043   : > { %v7404_v31 = vsub.f32 %v7348_v48, %v4237_v3 }
0x1045   : > { %v4253_v1 = vmul.f32 %v7404_v31, %v7404_v31 }
0x1047   : > { %v4267_v36 = vsel %vm575_vm0, %v4253_v1, 0.0 }
0x1048   : > { %4268 = vadd.xlane.f32.xlu1 %v4267_v36 }
0x1062   : > { %v4224_v50 = vpop.xlane.xlu0 %4223 }
0x1063   : > { %v4238_v33 = vmul.f32 %v4224_v50, %v6547_v35 }
0x1065   : > { %v7411_v47 = vsub.f32 %v7356_v27, %v4238_v33 }
0x1067   : > { %v4254_v38 = vmul.f32 %v7411_v47, %v7411_v47 }
0x1069   : > { %v4270_v13 = vsel %vm575_vm0, %v4254_v38, 0.0 }
0x106a   : > { %v4227_v15 = vpop.xlane.xlu1 %4226  ;;  %4271 = vadd.xlane.f32.xlu2 %v4270_v13 }
0x106b   : > { %v4239_v44 = vmul.f32 %v4227_v15, %v6547_v35 }
0x106d   : > { %v7418_v17 = vsub.f32 %v7362_v8, %v4239_v44 }
0x106f   : > { %v4255_v55 = vmul.f32 %v7418_v17, %v7418_v17 }
0x1071   : > { %v4273_v26 = vsel %vm575_vm0, %v4255_v55, 0.0 }
0x1072   : > { %4274 = vadd.xlane.f32.xlu0 %v4273_v26 }
0x1099   : > { %v4230_v32 = vpop.xlane.xlu1 %4229 }
0x109a   : > { %v4240_v56 = vmul.f32 %v4230_v32, %v6547_v35 }
0x109c   : > { %v7425_v25 = vsub.f32 %v7369_v34, %v4240_v56 }
0x109e   : > { %v4256_v19 = vmul.f32 %v7425_v25, %v7425_v25 }
0x10a0   : > { %v4276_v39 = vsel %vm575_vm0, %v4256_v19, 0.0 }
0x10a1   : > { %4277 = vadd.xlane.f32.xlu1 %v4276_v39 }
0x10a3   : > { %v4260_v49 = vpop.xlane.xlu2 %4259 }
0x10a4   : > { %v4282_v63 = vmul.f32 %v4260_v49, %v6547_v35 }
0x10a6   : > { %v4290_v40 = vadd.f32 1e-05, %v4282_v63 }
0x10a8   : > { %5468 = vrsqrt.f32 %v4290_v40  ;;  %vm4304_vm2 = vweird.f32 %v4290_v40 }
0x10ab   : > { %v4263_v30 = vpop.xlane.xlu0 %4262  ;;  %v4233_v11 = vpop.xlane.xlu2 %4232 }
0x10ac   : > { %v4283_v22 = vmul.f32 %v4263_v30, %v6547_v35  ;;  %v4241_v46 = vmul.f32 %v4233_v11, %v6547_v35 }
0x10ae   : > { %v5469_v21 = vpop.eup %5468  ;;  %v4291_v4 = vadd.f32 1e-05, %v4283_v22  ;;  %v7440_v41 = vsub.f32 %v7385_v9, %v4241_v46 }
0x10af   : > { %v4299_v10 = vmul.f32 %v5469_v21, %v4290_v40  ;;  %vm4305_vm1 = vweird.f32 %v5469_v21 }
0x10b0   : > { %5470 = vrsqrt.f32 %v4291_v4  ;;  %v4257_v24 = vmul.f32 %v7440_v41, %v7440_v41  ;;  %vm4306_vm5 = vmor %vm4304_vm2, %vm4305_vm1  ;;  %vm4314_vm6 = vweird.f32 %v4291_v4 }
0x10b1   : > { %v4300_v53 = vmul.f32 %v5469_v21, %v4299_v10 }
0x10b2   : > { %v4279_v51 = vsel %vm575_vm0, %v4257_v24, 0.0 }
0x10b3   : > { %v4301_v0 = vmul.f32 0.5, %v4300_v53  ;;  %v4266_v59 = vpop.xlane.xlu0 %4265  ;;  %4280 = vadd.xlane.f32.xlu2 %v4279_v51 }
0x10b4   : > { %v4284_v6 = vmul.f32 %v4266_v59, %v6547_v35 }
0x10b5   : > { %v4302_v57 = vsub.f32 1.5, %v4301_v0 }
0x10b6   : > { %v5471_v58 = vpop.eup %5470  ;;  %v4292_v14 = vadd.f32 1e-05, %v4284_v6 }
0x10b7   : > { %v4309_v5 = vmul.f32 %v5471_v58, %v4291_v4  ;;  %v4303_v43 = vmul.f32 %v5469_v21, %v4302_v57  ;;  %vm4315_vm3 = vweird.f32 %v5471_v58 }
0x10b8   : > { %5472 = vrsqrt.f32 %v4292_v14  ;;  %vm4316_vm7 = vmor %vm4314_vm6, %vm4315_vm3  ;;  %vm4324_vm9 = vweird.f32 %v4292_v14 }
0x10b9   : > { %v4310_v60 = vmul.f32 %v5471_v58, %v4309_v5  ;;  %v4307_v62 = vsel %vm4306_vm5, %v5469_v21, %v4303_v43 }
0x10ba   : > { %v4378_v50 = vmul.f32 %v4307_v62, %v7377_v23 }
0x10bb   : > { %v4311_v7 = vmul.f32 0.5, %v4310_v60  ;;  %v4269_v61 = vpop.xlane.xlu1 %4268 }
0x10bc   : > { %v4285_v18 = vmul.f32 %v4269_v61, %v6547_v35 }
0x10bd   : > { %v4312_v2 = vsub.f32 1.5, %v4311_v7 }
0x10be   : > { %v5473_v45 = vpop.eup %5472  ;;  %v4293_v29 = vadd.f32 1e-05, %v4285_v18 }
0x10bf   : > { %v4313_v16 = vmul.f32 %v5471_v58, %v4312_v2  ;;  %v4319_v3 = vmul.f32 %v5473_v45, %v4292_v14  ;;  %vm4325_vm8 = vweird.f32 %v5473_v45 }
0x10c0   : > { %5474 = vrsqrt.f32 %v4293_v29  ;;  %vm4326_vm11 = vmor %vm4324_vm9, %vm4325_vm8  ;;  %vm4334_vm12 = vweird.f32 %v4293_v29 }
0x10c1   : > { %v4317_v1 = vsel %vm4316_vm7, %v5471_v58, %v4313_v16  ;;  %v4320_v36 = vmul.f32 %v5473_v45, %v4319_v3 }
0x10c2   : > { %v4379_v33 = vmul.f32 %v4317_v1, %v7388_v12 }
0x10c3   : > { %v4321_v38 = vmul.f32 0.5, %v4320_v36  ;;  %v5110_v36 = vld [vmem:[%s7551_s13 + $0x70] sm:$0xff] }
0x10c4   : > { %v4386_v13 = vpack.c.bf16 %v4379_v33, %v4378_v50 }
0x10c5   : > { %v4322_v44 = vsub.f32 1.5, %v4321_v38 }
0x10c6   : > { %v5475_v15 = vpop.eup %5474  ;;  %5027 = vmatmul.msk.bf16.vlgmr.msrb.gmra.mxu3 %vm575_vm0, %v4386_v13 }
0x10c7   : > { %v4329_v55 = vmul.f32 %v5475_v15, %v4293_v29  ;;  %v4323_v32 = vmul.f32 %v5473_v45, %v4322_v44  ;;  %vm4335_vm10 = vweird.f32 %v5475_v15 }
0x10c8   : > { %vm4336_vm13 = vmor %vm4334_vm12, %vm4335_vm10 }
0x10c9   : > { %v4330_v26 = vmul.f32 %v5475_v15, %v4329_v55  ;;  %v4327_v52 = vsel %vm4326_vm11, %v5473_v45, %v4323_v32  ;;  %v5108_v55 = vld [vmem:[%s7551_s13 + $0x60] sm:$0xff] }
0x10ca   : > { %v4380_v12 = vmul.f32 %v4327_v52, %v7397_v54 }
0x10cb   : > { %v4331_v56 = vmul.f32 0.5, %v4330_v26 }
0x10cd   : > { %v4332_v19 = vsub.f32 1.5, %v4331_v56 }
0x10cf   : > { %v4333_v39 = vmul.f32 %v5475_v15, %v4332_v19 }
0x10d1   : > { %v4337_v23 = vsel %vm4336_vm13, %v5475_v15, %v4333_v39  ;;  %v5107_v39 = vld [vmem:[%s7551_s13 + $0x58] sm:$0xff] }
0x10d2   : > { %v4381_v20 = vmul.f32 %v4337_v23, %v7404_v31 }
0x10d4   : > { %v4387_v49 = vpack.c.bf16 %v4381_v20, %v4380_v12  ;;  %v5106_v12 = vld [vmem:[%s7551_s13 + $0x50] sm:$0xff]  ;;  %v5105_v20 = vld [vmem:[%s7551_s13 + $0x48] sm:$0xff] }
0x10d6   : > { %5028 = vmatmul.msk.bf16.gmra.mxu3 %vm575_vm0, %v4387_v49  ;;  %v5104_v49 = vld [vmem:[%s7551_s13 + $0x40] sm:$0xff] }
0x10dd   : > { %v4272_v63 = vpop.xlane.xlu2 %4271 }
0x10de   : > { %v4286_v40 = vmul.f32 %v4272_v63, %v6547_v35 }
0x10e0   : > { %v4294_v30 = vadd.f32 1e-05, %v4286_v40 }
0x10e2   : > { %5476 = vrsqrt.f32 %v4294_v30  ;;  %vm4344_vm15 = vweird.f32 %v4294_v30 }
0x10e5   : > { %v4275_v11 = vpop.xlane.xlu0 %4274 }
0x10e6   : > { %v4287_v22 = vmul.f32 %v4275_v11, %v6547_v35 }
0x10e8   : > { %v5477_v46 = vpop.eup %5476  ;;  %v4295_v21 = vadd.f32 1e-05, %v4287_v22 }
0x10e9   : > { %v4339_v4 = vmul.f32 %v5477_v46, %v4294_v30  ;;  %vm4345_vm14 = vweird.f32 %v5477_v46 }
0x10ea   : > { %5478 = vrsqrt.f32 %v4295_v21  ;;  %vm4346_vm1 = vmor %vm4344_vm15, %vm4345_vm14  ;;  %vm4354_vm2 = vweird.f32 %v4295_v21 }
0x10eb   : > { %v4340_v10 = vmul.f32 %v5477_v46, %v4339_v4 }
0x10ed   : > { %v4341_v24 = vmul.f32 0.5, %v4340_v10 }
0x10ef   : > { %v4342_v53 = vsub.f32 1.5, %v4341_v24 }
0x10f0   : > { %v5479_v54 = vpop.eup %5478 }
0x10f1   : > { %v4349_v31 = vmul.f32 %v5479_v54, %v4295_v21  ;;  %v4343_v0 = vmul.f32 %v5477_v46, %v4342_v53  ;;  %vm4355_vm4 = vweird.f32 %v5479_v54 }
0x10f2   : > { %vm4356_vm3 = vmor %vm4354_vm2, %vm4355_vm4 }
0x10f3   : > { %v4350_v51 = vmul.f32 %v5479_v54, %v4349_v31  ;;  %v4347_v58 = vsel %vm4346_vm1, %v5477_v46, %v4343_v0 }
0x10f4   : > { %v4382_v5 = vmul.f32 %v4347_v58, %v7411_v47  ;;  %v5111_v47 = vld [vmem:[%s7551_s13 + $0x78] sm:$0xff] }
0x10f5   : > { %v4351_v59 = vmul.f32 0.5, %v4350_v51  ;;  %4599 = vmatpush.bf16.msrb.mxu2 %v5111_v47 }
0x10f7   : > { %v4352_v6 = vsub.f32 1.5, %v4351_v59 }
0x10f9   : > { %v4353_v14 = vmul.f32 %v5479_v54, %v4352_v6  ;;  %4600 = vmatpush.bf16.msrb.mxu2 %v5110_v36 }
0x10fb   : > { %v4357_v57 = vsel %vm4356_vm3, %v5479_v54, %v4353_v14 }
0x10fc   : > { %v4383_v60 = vmul.f32 %v4357_v57, %v7418_v17 }
0x10fe   : > { %v4388_v43 = vpack.c.bf16 %v4383_v60, %v4382_v5 }
0x1100   : > { %5029 = vmatmul.msk.bf16.gmra.mxu3 %vm575_vm0, %v4388_v43 }
0x1114   : > { %v4278_v7 = vpop.xlane.xlu1 %4277 }
0x1115   : > { %v4288_v61 = vmul.f32 %v4278_v7, %v6547_v35 }
0x1117   : > { %v4296_v18 = vadd.f32 1e-05, %v4288_v61 }
0x1119   : > { %5480 = vrsqrt.f32 %v4296_v18  ;;  %vm4364_vm6 = vweird.f32 %v4296_v18 }
0x111f   : > { %v5481_v2 = vpop.eup %5480 }
0x1120   : > { %v4359_v45 = vmul.f32 %v5481_v2, %v4296_v18  ;;  %vm4365_vm5 = vweird.f32 %v5481_v2 }
0x1121   : > { %vm4366_vm8 = vmor %vm4364_vm6, %vm4365_vm5 }
0x1122   : > { %v4360_v3 = vmul.f32 %v5481_v2, %v4359_v45 }
0x1124   : > { %v4361_v17 = vmul.f32 0.5, %v4360_v3 }
0x1126   : > { %v4281_v29 = vpop.xlane.xlu2 %4280  ;;  %v4362_v50 = vsub.f32 1.5, %v4361_v17 }
0x1127   : > { %v4289_v62 = vmul.f32 %v4281_v29, %v6547_v35  ;;  %v5109_v35 = vld [vmem:[%s7551_s13 + $0x68] sm:$0xff] }
0x1128   : > { %v4363_v13 = vmul.f32 %v5481_v2, %v4362_v50  ;;  %4601 = vmatpush.bf16.msrb.mxu2 %v5109_v35 }
0x1129   : > { %v4297_v16 = vadd.f32 1e-05, %v4289_v62 }
0x112a   : > { %v4367_v26 = vsel %vm4366_vm8, %v5481_v2, %v4363_v13 }
0x112b   : > { %5482 = vrsqrt.f32 %v4297_v16  ;;  %vm4374_vm9 = vweird.f32 %v4297_v16  ;;  %v4384_v19 = vmul.f32 %v4367_v26, %v7425_v25  ;;  %v7487_v25 = vld [vmem:[%s7550_s12 + $0x1] ss:$0 sm:$0xff] }
0x112c   : > { %4602 = vmatpush.bf16.msrb.mxu2 %v5108_v55 }
0x1130   : > { %4603 = vmatpush.bf16.msrb.mxu2 %v5107_v39 }
0x1131   : > { %v5483_v1 = vpop.eup %5482 }
0x1132   : > { %v4369_v33 = vmul.f32 %v5483_v1, %v4297_v16  ;;  %vm4375_vm7 = vweird.f32 %v5483_v1 }
0x1133   : > { %vm4376_vm10 = vmor %vm4374_vm9, %vm4375_vm7 }
0x1134   : > { %v4370_v38 = vmul.f32 %v5483_v1, %v4369_v33  ;;  %4604 = vmatpush.bf16.msrb.mxu2 %v5106_v12 }
0x1136   : > { %v4371_v15 = vmul.f32 0.5, %v4370_v38 }
0x1138   : > { %v4372_v44 = vsub.f32 1.5, %v4371_v15  ;;  %4605 = vmatpush.bf16.msrb.mxu2 %v5105_v20 }
0x113a   : > { %v4373_v32 = vmul.f32 %v5483_v1, %v4372_v44 }
0x113c   : > { %v4377_v56 = vsel %vm4376_vm10, %v5483_v1, %v4373_v32  ;;  %4606 = vmatpush.bf16.msrb.mxu2 %v5104_v49 }
0x113d   : > { %v4385_v52 = vmul.f32 %v4377_v56, %v7440_v41 }
0x113f   : > { %v4389_v23 = vpack.c.bf16 %v4385_v52, %v4384_v19 }
0x1141   : > { %5030 = vmatmul.msk.bf16.gmra.mxu3 %vm575_vm0, %v4389_v23  ;;  %vm4676_vm0 = vcmask 523520  }
0x1149   : > { %v4433_v41 = vpop.f32.mrf.mxu3 }
0x114a   : > { %v4434_v63 = vadd.f32 %v7487_v25, %v4433_v41 }
0x114c   : > { %v4453_v40 = vmul.f32 %v4434_v63, %v4434_v63 }
0x114e   : > { %v4461_v30 = vmul.f32 %v4453_v40, %v4434_v63 }
0x1150   : > { %v4469_v11 = vmul.f32 0.044715, %v4461_v30 }
0x1151   : > { %v4435_v22 = vpop.f32.mrf.mxu3 }
0x1152   : > { %v4477_v46 = vadd.f32 %v4469_v11, %v4434_v63  ;;  %v4436_v21 = vadd.f32 %v7487_v25, %v4435_v22 }
0x1154   : > { %v4485_v4 = vmul.f32 0.7978846, %v4477_v46  ;;  %v4454_v10 = vmul.f32 %v4436_v21, %v4436_v21 }
0x1156   : > { %v4462_v24 = vmul.f32 %v4454_v10, %v4436_v21  ;;  %5484 = vtanh.f32 %v4485_v4 }
0x1158   : > { %v4470_v54 = vmul.f32 0.044715, %v4462_v24 }
0x1159   : > { %v4438_v53 = vpop.f32.mrf.mxu3 }
0x115a   : > { %v4478_v31 = vadd.f32 %v4470_v54, %v4436_v21  ;;  %v4439_v51 = vadd.f32 %v7487_v25, %v4438_v53 }
0x115c   : > { %v4486_v0 = vmul.f32 0.7978846, %v4478_v31  ;;  %v4455_v59 = vmul.f32 %v4439_v51, %v4439_v51  ;;  %v5485_v6 = vpop.eup %5484 }
0x115d   : > { %v4501_v57 = vadd.f32 1.0, %v5485_v6 }
0x115e   : > { %5486 = vtanh.f32 %v4486_v0  ;;  %v4463_v58 = vmul.f32 %v4455_v59, %v4439_v51 }
0x115f   : > { %v4509_v2 = vmul.f32 0.5, %v4501_v57 }
0x1160   : > { %v4471_v14 = vmul.f32 0.044715, %v4463_v58 }
0x1161   : > { %v4440_v5 = vpop.f32.mrf.mxu3  ;;  %v4517_v3 = vmul.f32 %v4509_v2, %v4434_v63 }
0x1162   : > { %v4479_v60 = vadd.f32 %v4471_v14, %v4439_v51  ;;  %v4441_v43 = vadd.f32 %v7487_v25, %v4440_v5 }
0x1164   : > { %v5487_v7 = vpop.eup %5486  ;;  %v4487_v61 = vmul.f32 0.7978846, %v4479_v60  ;;  %v4456_v18 = vmul.f32 %v4441_v43, %v4441_v43 }
0x1165   : > { %v4502_v45 = vadd.f32 1.0, %v5487_v7 }
0x1166   : > { %v4464_v29 = vmul.f32 %v4456_v18, %v4441_v43  ;;  %5488 = vtanh.f32 %v4487_v61 }
0x1167   : > { %v4510_v62 = vmul.f32 0.5, %v4502_v45 }
0x1168   : > { %v4472_v16 = vmul.f32 0.044715, %v4464_v29 }
0x1169   : > { %v4518_v47 = vmul.f32 %v4510_v62, %v4436_v21 }
0x116a   : > { %v4480_v17 = vadd.f32 %v4472_v16, %v4441_v43 }
0x116b   : > { %v4525_v1 = vpack.c.bf16 %v4518_v47, %v4517_v3 }
0x116c   : > { %v4488_v36 = vmul.f32 0.7978846, %v4480_v17  ;;  %v5489_v50 = vpop.eup %5488 }
0x116d   : > { %4607 = vmatmul.bf16.vlgmr.msrb.gmra.mxu2 %v4525_v1  ;;  %v4503_v33 = vadd.f32 1.0, %v5489_v50 }
0x116e   : > { %5490 = vtanh.f32 %v4488_v36 }
0x116f   : > { %v4511_v13 = vmul.f32 0.5, %v4503_v33 }
0x1171   : > { %v4519_v44 = vmul.f32 %v4511_v13, %v4439_v51 }
0x1174   : > { %v5491_v38 = vpop.eup %5490 }
0x1175   : > { %v4504_v35 = vadd.f32 1.0, %v5491_v38 }
0x1177   : > { %v4512_v15 = vmul.f32 0.5, %v4504_v35 }
0x1179   : > { %v4520_v55 = vmul.f32 %v4512_v15, %v4441_v43 }
0x117b   : > { %v4526_v26 = vpack.c.bf16 %v4520_v55, %v4519_v44 }
0x117d   : > { %4612 = vmatmul.bf16.gmra.mxu2 %v4526_v26 }
0x1183   : > { %v4443_v32 = vpop.f32.mrf.mxu3 }
0x1184   : > { %v4444_v56 = vadd.f32 %v7487_v25, %v4443_v32 }
0x1186   : > { %v4457_v19 = vmul.f32 %v4444_v56, %v4444_v56 }
0x1188   : > { %v4465_v52 = vmul.f32 %v4457_v19, %v4444_v56 }
0x118a   : > { %v4473_v39 = vmul.f32 0.044715, %v4465_v52 }
0x118b   : > { %v4445_v23 = vpop.f32.mrf.mxu3 }
0x118c   : > { %v4481_v12 = vadd.f32 %v4473_v39, %v4444_v56  ;;  %v4446_v20 = vadd.f32 %v7487_v25, %v4445_v23 }
0x118e   : > { %v4489_v41 = vmul.f32 0.7978846, %v4481_v12  ;;  %v4458_v49 = vmul.f32 %v4446_v20, %v4446_v20 }
0x1190   : > { %v4466_v63 = vmul.f32 %v4458_v49, %v4446_v20  ;;  %5492 = vtanh.f32 %v4489_v41 }
0x1192   : > { %v4474_v40 = vmul.f32 0.044715, %v4466_v63 }
0x1194   : > { %v4482_v30 = vadd.f32 %v4474_v40, %v4446_v20 }
0x1196   : > { %v4490_v11 = vmul.f32 0.7978846, %v4482_v30  ;;  %v5493_v22 = vpop.eup %5492 }
0x1197   : > { %v4505_v46 = vadd.f32 1.0, %v5493_v22 }
0x1198   : > { %5494 = vtanh.f32 %v4490_v11 }
0x1199   : > { %v4513_v10 = vmul.f32 0.5, %v4505_v46 }
0x119b   : > { %v4521_v54 = vmul.f32 %v4513_v10, %v4444_v56 }
0x119e   : > { %v5495_v21 = vpop.eup %5494 }
0x119f   : > { %v4506_v4 = vadd.f32 1.0, %v5495_v21 }
0x11a1   : > { %v4514_v24 = vmul.f32 0.5, %v4506_v4 }
0x11a3   : > { %v4522_v53 = vmul.f32 %v4514_v24, %v4446_v20 }
0x11a5   : > { %v4527_v31 = vpack.c.bf16 %v4522_v53, %v4521_v54 }
0x11a7   : > { %4617 = vmatmul.bf16.gmra.mxu2 %v4527_v31 }
0x11c4   : > { %v4448_v51 = vpop.f32.mrf.mxu3 }
0x11c5   : > { %v4449_v0 = vadd.f32 %v7487_v25, %v4448_v51 }
0x11c7   : > { %v4459_v59 = vmul.f32 %v4449_v0, %v4449_v0 }
0x11c9   : > { %v4467_v6 = vmul.f32 %v4459_v59, %v4449_v0 }
0x11cb   : > { %v4475_v58 = vmul.f32 0.044715, %v4467_v6 }
0x11cc   : > { %v4450_v14 = vpop.f32.mrf.mxu3 }
0x11cd   : > { %v4483_v57 = vadd.f32 %v4475_v58, %v4449_v0  ;;  %v4451_v5 = vadd.f32 %v7487_v25, %v4450_v14  ;;  %v5145_v25 = vld [vmem:[%s7552_s14 + $0x1] ss:$0 sm:$0xff] }
0x11cf   : > { %v4491_v60 = vmul.f32 0.7978846, %v4483_v57  ;;  %v4460_v43 = vmul.f32 %v4451_v5, %v4451_v5 }
0x11d1   : > { %v4468_v7 = vmul.f32 %v4460_v43, %v4451_v5  ;;  %5496 = vtanh.f32 %v4491_v60 }
0x11d3   : > { %v4476_v61 = vmul.f32 0.044715, %v4468_v7 }
0x11d5   : > { %v4484_v18 = vadd.f32 %v4476_v61, %v4451_v5 }
0x11d7   : > { %v4492_v2 = vmul.f32 0.7978846, %v4484_v18  ;;  %v5497_v45 = vpop.eup %5496 }
0x11d8   : > { %v4507_v29 = vadd.f32 1.0, %v5497_v45 }
0x11d9   : > { %5498 = vtanh.f32 %v4492_v2 }
0x11da   : > { %v4515_v3 = vmul.f32 0.5, %v4507_v29 }
0x11dc   : > { %v4523_v17 = vmul.f32 %v4515_v3, %v4449_v0 }
0x11df   : > { %v5499_v62 = vpop.eup %5498 }
0x11e0   : > { %v4508_v16 = vadd.f32 1.0, %v5499_v62 }
0x11e2   : > { %v4516_v47 = vmul.f32 0.5, %v4508_v16 }
0x11e4   : > { %v4524_v1 = vmul.f32 %v4516_v47, %v4451_v5 }
0x11e6   : > { %v4528_v36 = vpack.c.bf16 %v4524_v1, %v4523_v17 }
0x11e8   : > { %4622 = vmatmul.bf16.gmra.mxu2 %v4528_v36 }
0x11f0   : > { %v4608_v50 = vpop.f32.mrf.mxu2 }
0x11f1   : > { %v4609_v33 = vadd.f32 %v5145_v25, %v4608_v50 }
0x11f3   : > { %v4628_v38 = vadd.f32 %v4609_v33, %v7328_v37 }
0x11f5   : > { %4652 = vrot.lane.b32.xlu0 %v4628_v38, %s5524_s30 }
0x11f8   : > { %v4610_v35 = vpop.f32.mrf.mxu2 }
0x11f9   : > { %v4611_v13 = vadd.f32 %v5145_v25, %v4610_v35 }
0x11fb   : > { %v4629_v15 = vadd.f32 %v4611_v13, %v7335_v42 }
0x11fd   : > { %4654 = vrot.lane.b32.xlu1 %v4629_v15, %s5524_s30 }
0x1200   : > { %v4613_v44 = vpop.f32.mrf.mxu2 }
0x1201   : > { %v4614_v55 = vadd.f32 %v5145_v25, %v4613_v44 }
0x1203   : > { %v4630_v26 = vadd.f32 %v4614_v55, %v7342_v28 }
0x1205   : > { %4656 = vrot.lane.b32.xlu2 %v4630_v26, %s5524_s30 }
0x1208   : > { %v4615_v32 = vpop.f32.mrf.mxu2 }
0x1209   : > { %v4616_v56 = vadd.f32 %v5145_v25, %v4615_v32 }
0x120b   : > { %v4631_v37 = vadd.f32 %v4616_v56, %v7348_v48 }
0x120d   : > { %4658 = vrot.lane.b32.xlu0 %v4631_v37, %s5524_s30 }
0x122a   : > { %v4618_v19 = vpop.f32.mrf.mxu2 }
0x122b   : > { %v4619_v52 = vadd.f32 %v5145_v25, %v4618_v19 }
0x122d   : > { %v4632_v42 = vadd.f32 %v4619_v52, %v7356_v27 }
0x122f   : > { %4660 = vrot.lane.b32.xlu1 %v4632_v42, %s5524_s30 }
0x1232   : > { %v4620_v39 = vpop.f32.mrf.mxu2 }
0x1233   : > { %v4621_v23 = vadd.f32 %v5145_v25, %v4620_v39 }
0x1235   : > { %v4633_v28 = vadd.f32 %v4621_v23, %v7362_v8 }
0x1237   : > { %4662 = vrot.lane.b32.xlu0 %v4633_v28, %s5524_s30 }
0x125f   : > { %v4657_v12 = vpop.permute.xlu2 %4656 }
0x1260   : > { %4679 = vst.msk [vmem:[%s6780_s22 + $0x10] sm:$0xff] %vm4676_vm0, %v4657_v12 }
0x1267   : > { %v4653_v48 = vpop.permute.xlu0 %4652 }
0x1268   : > { %4677 = vst.msk [vmem:[%s6780_s22] sm:$0xff] %vm4676_vm0, %v4653_v48 }
0x126b   : > { %v4623_v20 = vpop.f32.mrf.mxu2 }
0x126c   : > { %v4624_v27 = vadd.f32 %v5145_v25, %v4623_v20 }
0x126e   : > { %v4634_v41 = vadd.f32 %v4624_v27, %v7369_v34 }
0x126f   : > { %v4655_v49 = vpop.permute.xlu1 %4654 }
0x1270   : > { %4678 = vst.msk [vmem:[%s6780_s22 + $0x8] sm:$0xff] %vm4676_vm0, %v4655_v49  ;;  %4664 = vrot.lane.b32.xlu2 %v4634_v41, %s5524_s30 }
0x1273   : > { %v4625_v8 = vpop.f32.mrf.mxu2 }
0x1274   : > { %v4626_v63 = vadd.f32 %v5145_v25, %v4625_v8 }
0x1276   : > { %v4635_v40 = vadd.f32 %v4626_v63, %v7385_v9 }
0x1278   : > { %4666 = vrot.lane.b32.xlu1 %v4635_v40, %s5524_s30 }
0x127f   : > { %v4659_v30 = vpop.permute.xlu0 %4658 }
0x1280   : > { %4680 = vst.msk [vmem:[%s6780_s22 + $0x18] sm:$0xff] %vm4676_vm0, %v4659_v30 }
0x12a1   : > { %v4661_v11 = vpop.permute.xlu1 %4660 }
0x12a2   : > { %4681 = vst.msk [vmem:[%s6780_s22 + $0x20] sm:$0xff] %vm4676_vm0, %v4661_v11 }
0x12a9   : > { %v4663_v22 = vpop.permute.xlu0 %4662 }
0x12aa   : > { %4682 = vst.msk [vmem:[%s6780_s22 + $0x28] sm:$0xff] %vm4676_vm0, %v4663_v22 }
0x12ca   : > { %v4665_v34 = vpop.permute.xlu2 %4664 }
0x12cb   : > { %4683 = vst.msk [vmem:[%s6780_s22 + $0x30] sm:$0xff] %vm4676_vm0, %v4665_v34 }
0x12ea   : > { %v4667_v46 = vpop.permute.xlu1 %4666 }
0x12eb   : > { %4684 = vst.msk [vmem:[%s6780_s22 + $0x38] sm:$0xff] %vm4676_vm0, %v4667_v46 }
0x12ec PF: > { %s25_s18 = sadd.s32 1, %s5514_s18  }
0x12ed   : > { %p22_p5 = scmp.ge.s32.totalorder %s25_s18, 4  }
0x12ef   :  { %24 = sbr.rel (!%p22_p5) target bundleno = 1 (0x1), region = 131 }

// kernel: tpu_custom_call.1
= control target key start
LH: loop header
LB: loop body
LE: loop exit
PB: predicated region body
PF: predicated region fallthrough
CT: control target
= control target key end

     0   :  { %s5605_s18 = smov 0   ;;  %s7538_s0 = inlined_call_operand.vmem [shape: f32[8,32,16], index: 0, kind: input, shape index: {}]   ;;  %s7539_s1 = inlined_call_operand.vmem [shape: f32[8,32,16], index: 1, kind: input, shape index: {}]   ;;  %s7540_s2 = inlined_call_operand.vmem [shape: f32[64,64], index: 2, kind: input, shape index: {}]   ;;  %s7541_s3 = inlined_call_operand.vmem [shape: f32[2,32,64], index: 3, kind: input, shape index: {}]   ;;  %s7542_s4 = inlined_call_operand.vmem [shape: f32[2,1,64], index: 4, kind: input, shape index: {}]   ;;  %s7543_s5 = inlined_call_operand.vmem [shape: bf16[2,32,32], index: 5, kind: input, shape index: {}]   ;;  %s7544_s6 = inlined_call_operand.vmem [shape: f32[2,1,32], index: 6, kind: input, shape index: {}]   ;;  %s7545_s7 = inlined_call_operand.vmem [shape: bf16[2,32,64], index: 7, kind: input, shape index: {}]   ;;  %s7546_s8 = inlined_call_operand.vmem [shape: f32[2,1,64], index: 8, kind: input, shape index: {}]   ;;  %s7547_s9 = inlined_call_operand.vmem [shape: bf16[2,32,32], index: 9, kind: input, shape index: {}]   ;;  %s7548_s10 = inlined_call_operand.vmem [shape: f32[2,1,32], index: 10, kind: input, shape index: {}]   ;;  %s7549_s11 = inlined_call_operand.vmem [shape: bf16[2,32,128], index: 11, kind: input, shape index: {}]   ;;  %s7550_s12 = inlined_call_operand.vmem [shape: f32[2,1,128], index: 12, kind: input, shape index: {}]   ;;  %s7551_s13 = inlined_call_operand.vmem [shape: bf16[2,128,32], index: 13, kind: input, shape index: {}]   ;;  %s7552_s14 = inlined_call_operand.vmem [shape: f32[2,1,32], index: 14, kind: input, shape index: {}]   ;;  %s7553_s15 = inlined_call_operand.vmem [shape: f32[128,64], index: 15, kind: output, shape index: {}]  }
   0x1 LB: > { %s4753_s19 = sadd.s32 4294967295, %s5514_s18   ;;  %p4757_p0 = scmp.ge.s32.totalorder %s5514_s18, 1  ;;  %s5514_s18 = sphi %s5605_s18, %s25_s18  }
   0x2   : > { %p451_p1 = scmp.lt.s32.totalorder %s5514_s18, 3 }
   0x4   : > { %p452_p2 = pnand %p4757_p0, %p451_p1 }
   0x6   : > { %455 = sbr.rel (%p452_p2) target bundleno = 4844 (0x12ec), region = 80 }
   0xb   : > { %s4758_s20 = sshll.u32 %s4753_s19, 2  ;;  %v538_v24 = vld [vmem:[%s7541_s3 + $0x18] sm:$0xff]  ;;  %v537_v25 = vld [vmem:[%s7541_s3 + $0x10] sm:$0xff]  ;;  %v536_v26 = vld [vmem:[%s7541_s3 + $0x8] sm:$0xff]  ;;  %vm575_vm0 = vcmask 261120   ;;  %s5516_s26 = smov 96  }
   0xc   : > { %p507_p3 = scmp.lt.s32.totalorder %s4758_s20, 7  ;;  %594 = vmatpush.msra.mxu0 %v538_v24  ;;  %660 = vmatpush.msra.mxu1 %v538_v24  ;;  %v535_v27 = vld [vmem:[%s7541_s3] sm:$0xff]  ;;  %v4789_v36 = vld [vmem:[%s7541_s3 + $0x38] sm:$0xff]  ;;  %v4788_v37 = vld [vmem:[%s7541_s3 + $0x30] sm:$0xff]  ;;  %vm1442_vm1 = vcmask 64512   ;;  %vm1496_vm2 = vcmask 523264  }
   0xd   : > { %5112 = vmatpush.msra.mxu2 %v538_v24  ;;  %792 = vmatpush.msra.mxu3 %v538_v24  ;;  %v4787_v38 = vld [vmem:[%s7541_s3 + $0x28] sm:$0xff]  ;;  %v4786_v39 = vld [vmem:[%s7541_s3 + $0x20] sm:$0xff]  ;;  %s5517_s28 = smov 120   ;;  %s5518_s29 = smov 112   ;;  %vm1876_vm3 = vcmask 1043456  }
   0xe   : > { %s7593_s20 = smov (!%p507_p3, %s4758_s20), 7  ;;  %595 = vmatpush.msra.mxu0 %v537_v25  ;;  %661 = vmatpush.msra.mxu1 %v537_v25  ;;  %v5085_v57 = vld [vmem:[%s7543_s5 + $0x8] sm:$0xff]  ;;  %v5703_v58 = vld [vmem:[%s7542_s4] ss:$0 sm:$0xff]  ;;  %s5520_s17 = smov 88  }
   0xf   : > { %s5082_s21 = sshll.u32 %s7593_s20, 5  ;;  %5113 = vmatpush.msra.mxu2 %v537_v25  ;;  %793 = vmatpush.msra.mxu3 %v537_v25  ;;  %v5084_v59 = vld [vmem:[%s7543_s5] sm:$0xff]  ;;  %s7566_s20 = smov 80  }
  0x10   : > { %s5618_s24 = scalar_lea.vmem %s7538_s0, %s5082_s21  ;;  %s5635_s27 = scalar_lea.vmem %s7539_s1, %s5082_s21  ;;  %596 = vmatpush.msra.mxu0 %v536_v26  ;;  %662 = vmatpush.msra.mxu1 %v536_v26 }
  0x11   : > { %v4774_v0 = vld [vmem:[%s5618_s24 + $0x40] sm:$0xff]  ;;  %v4775_v3 = vld [vmem:[%s5618_s24 + $0x48] sm:$0xff]  ;;  %v4776_v6 = vld [vmem:[%s5618_s24 + $0x50] sm:$0xff]  ;;  %5114 = vmatpush.msra.mxu2 %v536_v26  ;;  %794 = vmatpush.msra.mxu3 %v536_v26  ;;  %s7564_s21 = smov 72  }
  0x12   : > { %v539_v1 = vld [vmem:[%s5618_s24] sm:$0xff]  ;;  %676 = vxpose.xlu1.b32.start [1/4] (short) (narrow) %v4774_v0, 16  ;;  %v540_v4 = vld [vmem:[%s5618_s24 + $0x8] sm:$0xff]  ;;  %v541_v7 = vld [vmem:[%s5618_s24 + $0x10] sm:$0xff]  ;;  %597 = vmatpush.msra.mxu0 %v535_v27 }
  0x13   : > { %543 = vxpose.xlu0.b32.start [1/4] (short) (narrow) %v539_v1, 16  ;;  %v4768_v2 = vld [vmem:[%s5618_s24 + $0x20] sm:$0xff]  ;;  %v4769_v5 = vld [vmem:[%s5618_s24 + $0x28] sm:$0xff]  ;;  %v4770_v8 = vld [vmem:[%s5618_s24 + $0x30] sm:$0xff]  ;;  %663 = vmatpush.msra.mxu1 %v535_v27 }
  0x14   : > { %610 = vxpose.xlu2.b32.start [1/4] (short) (narrow) %v4768_v2, 16  ;;  %v4777_v9 = vld [vmem:[%s5618_s24 + $0x58] sm:$0xff]  ;;  %v4792_v12 = vld [vmem:[%s5635_s27 + $0x20] sm:$0xff]  ;;  %v4793_v15 = vld [vmem:[%s5635_s27 + $0x28] sm:$0xff]  ;;  %726 = vmatpush.msrb.mxu0 %v538_v24 }
  0x15   : > { %v542_v10 = vld [vmem:[%s5618_s24 + $0x18] sm:$0xff]  ;;  %v892_v13 = vld [vmem:[%s5635_s27] sm:$0xff]  ;;  %v893_v16 = vld [vmem:[%s5635_s27 + $0x8] sm:$0xff]  ;;  %5115 = vmatpush.msra.mxu2 %v535_v27  ;;  %795 = vmatpush.msra.mxu3 %v535_v27 }
  0x16   : > { %v4771_v11 = vld [vmem:[%s5618_s24 + $0x38] sm:$0xff]  ;;  %v4780_v14 = vld [vmem:[%s5618_s24 + $0x60] sm:$0xff]  ;;  %v4781_v17 = vld [vmem:[%s5618_s24 + $0x68] sm:$0xff]  ;;  %727 = vmatpush.msrb.mxu0 %v537_v25  ;;  %1012 = vmatpush.msrb.mxu1 %v4789_v36 }
  0x17   : > { %v4794_v18 = vld [vmem:[%s5635_s27 + $0x30] sm:$0xff]  ;;  %v4795_v21 = vld [vmem:[%s5635_s27 + $0x38] sm:$0xff]  ;;  %v4798_v28 = vld [vmem:[%s5635_s27 + $0x40] sm:$0xff]  ;;  %1078 = vmatpush.msrb.mxu2 %v4789_v36  ;;  %1144 = vmatpush.msrb.mxu3 %v4789_v36 }
  0x18   : > { %v894_v19 = vld [vmem:[%s5635_s27 + $0x10] sm:$0xff]  ;;  %v895_v22 = vld [vmem:[%s5635_s27 + $0x18] sm:$0xff]  ;;  %v4804_v29 = vld [vmem:[%s5635_s27 + $0x60] sm:$0xff]  ;;  %728 = vmatpush.msrb.mxu0 %v536_v26  ;;  %1013 = vmatpush.msrb.mxu1 %v4788_v37 }
  0x19   : > { %v4782_v20 = vld [vmem:[%s5618_s24 + $0x70] sm:$0xff]  ;;  %v4783_v23 = vld [vmem:[%s5618_s24 + $0x78] sm:$0xff]  ;;  %v4799_v30 = vld [vmem:[%s5635_s27 + $0x48] sm:$0xff]  ;;  %1079 = vmatpush.msrb.mxu2 %v4788_v37  ;;  %1145 = vmatpush.msrb.mxu3 %v4788_v37 }
  0x1a   : > { %677 = vxpose.xlu1.b32.cont [2/4] (short) (narrow) %v4775_v3, 16  ;;  %v4805_v31 = vld [vmem:[%s5635_s27 + $0x68] sm:$0xff]  ;;  %729 = vmatpush.msrb.mxu0 %v535_v27  ;;  %v4800_v32 = vld [vmem:[%s5635_s27 + $0x50] sm:$0xff]  ;;  %v4801_v34 = vld [vmem:[%s5635_s27 + $0x58] sm:$0xff] }
  0x1b   : > { %544 = vxpose.xlu0.b32.cont [2/4] (short) (narrow) %v540_v4, 16  ;;  %v4806_v33 = vld [vmem:[%s5635_s27 + $0x70] sm:$0xff]  ;;  %v4807_v35 = vld [vmem:[%s5635_s27 + $0x78] sm:$0xff]  ;;  %1014 = vmatpush.msrb.mxu1 %v4787_v38  ;;  %s5519_s27 = smov 104  }
  0x1c   : > { %611 = vxpose.xlu2.b32.cont [2/4] (short) (narrow) %v4769_v5, 16  ;;  %1080 = vmatpush.msrb.mxu2 %v4787_v38 }
  0x1d   : > { %1146 = vmatpush.msrb.mxu3 %v4787_v38  ;;  %1015 = vmatpush.msrb.mxu1 %v4786_v39 }
  0x1e   : > { %1081 = vmatpush.msrb.mxu2 %v4786_v39 }
  0x1f   : > { %1147 = vmatpush.msrb.mxu3 %v4786_v39 }
  0x22   : > { %678 = vxpose.xlu1.b32.cont [3/4] (short) (narrow) %v4776_v6, 16 }
  0x23   : > { %545 = vxpose.xlu0.b32.cont [3/4] (short) (narrow) %v541_v7, 16 }
  0x24   : > { %612 = vxpose.xlu2.b32.cont [3/4] (short) (narrow) %v4770_v8, 16 }
  0x2a   : > { %679 = vxpose.xlu1.b32.end [4/4] (short) (narrow) %v4777_v9, 16 }
  0x2b   : > { %546 = vxpose.xlu0.b32.end [4/4] (short) (narrow) %v542_v10, 16 }
  0x2c   : > { %613 = vxpose.xlu2.b32.end [4/4] (short) (narrow) %v4771_v11, 16 }
  0x32   : > { %962 = vxpose.xlu1.b32.start [1/4] (short) (narrow) %v4792_v12, 16 }
  0x33   : > { %896 = vxpose.xlu0.b32.start [1/4] (short) (narrow) %v892_v13, 16 }
  0x34   : > { %742 = vxpose.xlu2.b32.start [1/4] (short) (narrow) %v4780_v14, 16 }
  0x3a   : > { %963 = vxpose.xlu1.b32.cont [2/4] (short) (narrow) %v4793_v15, 16 }
  0x3b   : > { %897 = vxpose.xlu0.b32.cont [2/4] (short) (narrow) %v893_v16, 16 }
  0x3c   : > { %743 = vxpose.xlu2.b32.cont [2/4] (short) (narrow) %v4781_v17, 16 }
  0x42   : > { %964 = vxpose.xlu1.b32.cont [3/4] (short) (narrow) %v4794_v18, 16 }
  0x43   : > { %898 = vxpose.xlu0.b32.cont [3/4] (short) (narrow) %v894_v19, 16 }
  0x44   : > { %744 = vxpose.xlu2.b32.cont [3/4] (short) (narrow) %v4782_v20, 16 }
  0x4a   : > { %965 = vxpose.xlu1.b32.end [4/4] (short) (narrow) %v4795_v21, 16 }
  0x4b   : > { %899 = vxpose.xlu0.b32.end [4/4] (short) (narrow) %v895_v22, 16 }
  0x4c   : > { %745 = vxpose.xlu2.b32.end [4/4] (short) (narrow) %v4783_v23, 16 }
  0x52   : > { %1094 = vxpose.xlu1.b32.start [1/4] (short) (narrow) %v4804_v29, 16 }
  0x53   : > { %1028 = vxpose.xlu0.b32.start [1/4] (short) (narrow) %v4798_v28, 16 }
  0x5a   : > { %1095 = vxpose.xlu1.b32.cont [2/4] (short) (narrow) %v4805_v31, 16 }
  0x5b   : > { %1029 = vxpose.xlu0.b32.cont [2/4] (short) (narrow) %v4799_v30, 16 }
  0x62   : > { %1096 = vxpose.xlu1.b32.cont [3/4] (short) (narrow) %v4806_v33, 16 }
  0x63   : > { %1030 = vxpose.xlu0.b32.cont [3/4] (short) (narrow) %v4800_v32, 16 }
  0x6a   : > { %1097 = vxpose.xlu1.b32.end [4/4] (short) (narrow) %v4807_v35, 16 }
  0x6b   : > { %1031 = vxpose.xlu0.b32.end [4/4] (short) (narrow) %v4801_v34, 16 }
  0xad   : > { %v626_v40 = vpop.trf.xlu2 }
  0xae   : > { %4772 = vmatmul.msk.f32.vlgmr.msra.gmra.mxu1 %vm575_vm0, %v626_v40 }
  0xb5   : > { %v627_v41 = vpop.trf.xlu2 }
  0xb6   : > { %v692_v43 = vpop.trf.xlu1  ;;  %4773 = vmatmul.msk.f32.gmra.mxu1 %vm575_vm0, %v627_v41 }
  0xb7   : > { %v559_v42 = vpop.trf.xlu0 }
  0xb8   : > { %4766 = vmatmul.msk.f32.vlgmr.msra.gmra.mxu0 %vm575_vm0, %v559_v42 }
  0xb9   : > { %946 = vmatpush.msra.mxu0 %v4789_v36  ;;  %v5739_v36 = vld [vmem:[%s7542_s4 + $0x1] ss:$0 sm:$0xff] }
  0xbb   : > { %947 = vmatpush.msra.mxu0 %v4788_v37 }
  0xbd   : > { %948 = vmatpush.msra.mxu0 %v4787_v38 }
  0xbe   : > { %v693_v45 = vpop.trf.xlu1 }
  0xbf   : > { %v560_v44 = vpop.trf.xlu0  ;;  %949 = vmatpush.msra.mxu0 %v4786_v39  ;;  %4779 = vmatmul.msk.f32.vlgmr.msra.gmra.mxu2 %vm575_vm0, %v693_v45 }
  0xc0   : > { %4767 = vmatmul.msk.f32.gmra.mxu0 %vm575_vm0, %v560_v44 }
  0xc8   : > { %4778 = vmatmul.msk.f32.vlgmr.msrb.gmra.mxu0 %vm575_vm0, %v692_v43 }
  0xc9   : > { %1282 = vmatpush.bf16.msrb.mxu0 %v5085_v57 }
  0xcd   : > { %v758_v46 = vpop.trf.xlu2  ;;  %1283 = vmatpush.bf16.msrb.mxu0 %v5084_v59 }
  0xce   : > { %4784 = vmatmul.msk.f32.vlgmr.msra.gmra.mxu3 %vm575_vm0, %v758_v46 }
  0xd5   : > { %v759_v47 = vpop.trf.xlu2 }
  0xd6   : > { %v978_v48 = vpop.trf.xlu1  ;;  %4785 = vmatmul.msk.f32.gmra.mxu3 %vm575_vm0, %v759_v47 }
  0xd7   : > { %v912_v49 = vpop.trf.xlu0  ;;  %4796 = vmatmul.msk.f32.vlgmr.msrb.gmra.mxu1 %vm575_vm0, %v978_v48 }
  0xd8   : > { %4790 = vmatmul.msk.f32.vlgmr.msra.gmra.mxu0 %vm575_vm0, %v912_v49 }
  0xde   : > { %v979_v50 = vpop.trf.xlu1 }
  0xdf   : > { %v913_v51 = vpop.trf.xlu0  ;;  %4797 = vmatmul.msk.f32.gmra.mxu1 %vm575_vm0, %v979_v50 }
  0xe0   : > { %4791 = vmatmul.msk.f32.gmra.mxu0 %vm575_vm0, %v913_v51 }
  0xf6   : > { %v1110_v53 = vpop.trf.xlu1 }
  0xf7   : > { %v1044_v52 = vpop.trf.xlu0  ;;  %4808 = vmatmul.msk.f32.vlgmr.msrb.gmra.mxu3 %vm575_vm0, %v1110_v53 }
  0xf8   : > { %4802 = vmatmul.msk.f32.vlgmr.msrb.gmra.mxu2 %vm575_vm0, %v1044_v52 }
  0xfe   : > { %v1111_v55 = vpop.trf.xlu1 }
  0xff   : > { %v1045_v54 = vpop.trf.xlu0  ;;  %4809 = vmatmul.msk.f32.gmra.mxu3 %vm575_vm0, %v1111_v55 }
 0x100   : > { %4803 = vmatmul.msk.f32.gmra.mxu2 %vm575_vm0, %v1045_v54 }
 0x12b   : > { %v665_v56 = vpop.f32.mrf.mxu1 }
 0x12c   : > { %v5710_v0 = vadd.f32 %v5703_v58, %v665_v56 }
 0x12e   : > { %v817_v5 = vmul.f32 %v5710_v0, %v5710_v0 }
 0x130   : > { %v825_v11 = vmul.f32 %v817_v5, %v5710_v0 }
 0x132   : > { %v833_v15 = vmul.f32 0.044715, %v825_v11 }
 0x133   : > { %v668_v62 = vpop.f32.mrf.mxu1 }
 0x134   : > { %v5713_v2 = vadd.f32 %v5703_v58, %v668_v62  ;;  %v841_v22 = vadd.f32 %v833_v15, %v5710_v0 }
 0x135   : > { %v599_v60 = vpop.f32.mrf.mxu0 }
 0x136   : > { %v807_v61 = vadd.f32 %v5703_v58, %v599_v60  ;;  %v818_v8 = vmul.f32 %v5713_v2, %v5713_v2  ;;  %v849_v27 = vmul.f32 0.7978846, %v841_v22 }
 0x138   : > { %v815_v63 = vmul.f32 %v807_v61, %v807_v61  ;;  %v826_v13 = vmul.f32 %v818_v8, %v5713_v2 }
 0x13a   : > { %v823_v1 = vmul.f32 %v815_v63, %v807_v61  ;;  %v834_v17 = vmul.f32 0.044715, %v826_v13 }
 0x13c   : > { %v831_v3 = vmul.f32 0.044715, %v823_v1  ;;  %v842_v25 = vadd.f32 %v834_v17, %v5713_v2 }
 0x13d   : > { %v602_v4 = vpop.f32.mrf.mxu0 }
 0x13e   : > { %v839_v6 = vadd.f32 %v831_v3, %v807_v61  ;;  %v808_v7 = vadd.f32 %v5703_v58, %v602_v4  ;;  %v850_v30 = vmul.f32 0.7978846, %v842_v25 }
 0x140   : > { %v847_v9 = vmul.f32 0.7978846, %v839_v6  ;;  %v816_v10 = vmul.f32 %v808_v7, %v808_v7 }
 0x142   : > { %5146 = vtanh.f32 %v847_v9  ;;  %v824_v12 = vmul.f32 %v816_v10, %v808_v7  ;;  %v734_v19 = vpop.f32.mrf.mxu2 }
 0x143   : > { %v5727_v24 = vadd.f32 %v5703_v58, %v734_v19 }
 0x144   : > { %v832_v14 = vmul.f32 0.044715, %v824_v12 }
 0x145   : > { %v731_v18 = vpop.f32.mrf.mxu0  ;;  %v820_v29 = vmul.f32 %v5727_v24, %v5727_v24 }
 0x146   : > { %v840_v16 = vadd.f32 %v832_v14, %v808_v7  ;;  %v5724_v23 = vadd.f32 %v5703_v58, %v731_v18 }
 0x147   : > { %v828_v35 = vmul.f32 %v820_v29, %v5727_v24 }
 0x148   : > { %v5147_v20 = vpop.eup %5146  ;;  %v848_v21 = vmul.f32 0.7978846, %v840_v16  ;;  %v819_v28 = vmul.f32 %v5724_v23, %v5724_v23 }
 0x149   : > { %v863_v26 = vadd.f32 1.0, %v5147_v20  ;;  %v836_v42 = vmul.f32 0.044715, %v828_v35 }
 0x14a   : > { %5148 = vtanh.f32 %v848_v21  ;;  %v827_v34 = vmul.f32 %v819_v28, %v5724_v23 }
 0x14b   : > { %v871_v31 = vmul.f32 0.5, %v863_v26  ;;  %5150 = vtanh.f32 %v849_v27  ;;  %v844_v54 = vadd.f32 %v836_v42, %v5727_v24 }
 0x14c   : > { %5152 = vtanh.f32 %v850_v30  ;;  %v835_v41 = vmul.f32 0.044715, %v827_v34 }
 0x14d   : > { %v5741_v38 = vmul.f32 %v871_v31, %v807_v61  ;;  %v852_v4 = vmul.f32 0.7978846, %v844_v54 }
 0x14e   : > { %v843_v53 = vadd.f32 %v835_v41, %v5724_v23 }
 0x14f   : > { %5154 = vtanh.f32 %v852_v4 }
 0x150   : > { %v5149_v32 = vpop.eup %5148  ;;  %v851_v3 = vmul.f32 0.7978846, %v843_v53 }
 0x151   : > { %v864_v33 = vadd.f32 1.0, %v5149_v32  ;;  %v797_v37 = vpop.f32.mrf.mxu3  ;;  %v5151_v47 = vpop.eup %5150 }
 0x152   : > { %v5756_v49 = vadd.f32 %v5703_v58, %v797_v37  ;;  %v5153_v50 = vpop.eup %5152  ;;  %v865_v59 = vadd.f32 1.0, %v5151_v47  ;;  %5156 = vtanh.f32 %v851_v3 }
 0x153   : > { %v872_v39 = vmul.f32 0.5, %v864_v33  ;;  %v866_v60 = vadd.f32 1.0, %v5153_v50 }
 0x154   : > { %v1017_v44 = vpop.f32.mrf.mxu1  ;;  %v821_v61 = vmul.f32 %v5756_v49, %v5756_v49  ;;  %v873_v12 = vmul.f32 0.5, %v865_v59 }
 0x155   : > { %v5743_v40 = vmul.f32 %v872_v39, %v808_v7  ;;  %v951_v43 = vpop.f32.mrf.mxu0  ;;  %v5749_v46 = vadd.f32 %v5739_v36, %v1017_v44  ;;  %v5155_v31 = vpop.eup %5154 }
 0x156   : > { %v5746_v45 = vadd.f32 %v5739_v36, %v951_v43  ;;  %v829_v13 = vmul.f32 %v821_v61, %v5756_v49  ;;  %v5782_v21 = vmul.f32 %v873_v12, %v5710_v0  ;;  %v868_v43 = vadd.f32 1.0, %v5155_v31 }
 0x157   : > { %v5753_v48 = vpack.c.bf16 %v5743_v40, %v5741_v38  ;;  %v1170_v52 = vmul.f32 %v5749_v46, %v5749_v46 }
 0x158   : > { %v1168_v51 = vmul.f32 %v5746_v45, %v5746_v45  ;;  %v837_v25 = vmul.f32 0.044715, %v829_v13  ;;  %v5157_v0 = vpop.eup %5156 }
 0x159   : > { %4819 = vmatmul.msk.bf16.vlgmr.msrb.gmra.mxu0 %vm575_vm0, %v5753_v48  ;;  %v1178_v56 = vmul.f32 %v1170_v52, %v5749_v46  ;;  %v800_v57 = vpop.f32.mrf.mxu3  ;;  %v867_v42 = vadd.f32 1.0, %v5157_v0  ;;  %v876_v52 = vmul.f32 0.5, %v868_v43 }
 0x15a   : > { %v1176_v55 = vmul.f32 %v1168_v51, %v5746_v45  ;;  %v5771_v62 = vadd.f32 %v5703_v58, %v800_v57  ;;  %v874_v58 = vmul.f32 0.5, %v866_v60  ;;  %v845_v33 = vadd.f32 %v837_v25, %v5756_v49 }
 0x15b   : > { %v1186_v1 = vmul.f32 0.044715, %v1178_v56  ;;  %v875_v51 = vmul.f32 0.5, %v867_v42 }
 0x15c   : > { %v1184_v63 = vmul.f32 0.044715, %v1176_v55  ;;  %v1020_v6 = vpop.f32.mrf.mxu1  ;;  %v822_v7 = vmul.f32 %v5771_v62, %v5771_v62  ;;  %v5785_v22 = vmul.f32 %v874_v58, %v5713_v2  ;;  %v853_v41 = vmul.f32 0.7978846, %v845_v33 }
 0x15d   : > { %v954_v5 = vpop.f32.mrf.mxu0  ;;  %v1194_v9 = vadd.f32 %v1186_v1, %v5749_v46  ;;  %v1163_v11 = vadd.f32 %v5739_v36, %v1020_v6  ;;  %v5796_v61 = vmul.f32 %v875_v51, %v5724_v23 }
 0x15e   : > { %v1192_v8 = vadd.f32 %v1184_v63, %v5746_v45  ;;  %v1161_v10 = vadd.f32 %v5739_v36, %v954_v5  ;;  %v830_v17 = vmul.f32 %v822_v7, %v5771_v62  ;;  %v5789_v32 = vpack.c.bf16 %v5785_v22, %v5782_v21 }
 0x15f   : > { %v1202_v14 = vmul.f32 0.7978846, %v1194_v9  ;;  %v1171_v16 = vmul.f32 %v1163_v11, %v1163_v11  ;;  %v5799_v63 = vmul.f32 %v876_v52, %v5727_v24 }
 0x160   : > { %v1169_v15 = vmul.f32 %v1161_v10, %v1161_v10  ;;  %v1200_v18 = vmul.f32 0.7978846, %v1192_v8  ;;  %v838_v28 = vmul.f32 0.044715, %v830_v17 }
 0x161   : > { %v1179_v20 = vmul.f32 %v1171_v16, %v1163_v11  ;;  %5158 = vtanh.f32 %v1202_v14  ;;  %v5817_v24 = vpack.c.bf16 %v5799_v63, %v5796_v61 }
 0x162   : > { %v1177_v19 = vmul.f32 %v1169_v15, %v1161_v10  ;;  %5160 = vtanh.f32 %v1200_v18  ;;  %v846_v2 = vadd.f32 %v838_v28, %v5771_v62  ;;  %v5086_v28 = vld [vmem:[%s7545_s7] sm:$0xff] }
 0x163   : > { %v1187_v27 = vmul.f32 0.044715, %v1179_v20 }
 0x164   : > { %v1185_v26 = vmul.f32 0.044715, %v1177_v19  ;;  %v854_v44 = vmul.f32 0.7978846, %v846_v2  ;;  %v5087_v19 = vld [vmem:[%s7545_s7 + $0x8] sm:$0xff] }
 0x165   : > { %v1195_v30 = vadd.f32 %v1187_v27, %v1163_v11  ;;  %1367 = vmatpush.bf16.msra.mxu1 %v5087_v19 }
 0x166   : > { %v1193_v29 = vadd.f32 %v1185_v26, %v1161_v10 }
 0x167   : > { %v1203_v35 = vmul.f32 0.7978846, %v1195_v30  ;;  %v5159_v37 = vpop.eup %5158 }
 0x168   : > { %v1201_v34 = vmul.f32 0.7978846, %v1193_v29  ;;  %v5161_v39 = vpop.eup %5160  ;;  %v1218_v47 = vadd.f32 1.0, %v5159_v37 }
 0x169   : > { %4820 = vmatmul.msk.bf16.gmra.mxu0 %vm575_vm0, %v5789_v32  ;;  %5162 = vtanh.f32 %v1203_v35  ;;  %v1216_v50 = vadd.f32 1.0, %v5161_v39  ;;  %1368 = vmatpush.bf16.msra.mxu1 %v5086_v28 }
 0x16a   : > { %5164 = vtanh.f32 %v1201_v34  ;;  %v1226_v56 = vmul.f32 0.5, %v1218_v47 }
 0x16b   : > { %5166 = vtanh.f32 %v853_v41  ;;  %v1224_v59 = vmul.f32 0.5, %v1216_v50 }
 0x16c   : > { %5168 = vtanh.f32 %v854_v44  ;;  %v5802_v4 = vmul.f32 %v1226_v56, %v5749_v46 }
 0x16d   : > { %v5807_v7 = vmul.f32 %v1224_v59, %v5746_v45 }
 0x16e   : > { %7568 = vst [vmem:[#allocation2_spill] sm:$0xff] %v5802_v4 }
 0x16f   : > { %v5163_v53 = vpop.eup %5162  ;;  %7570 = vst [vmem:[#allocation4_spill] sm:$0xff] %v5807_v7 }
 0x170   : > { %v5165_v54 = vpop.eup %5164  ;;  %v1219_v55 = vadd.f32 1.0, %v5163_v53 }
 0x171   : > { %v1217_v57 = vadd.f32 1.0, %v5165_v54  ;;  %v5167_v3 = vpop.eup %5166 }
 0x172   : > { %v1227_v60 = vmul.f32 0.5, %v1219_v55  ;;  %v5169_v6 = vpop.eup %5168  ;;  %v869_v45 = vadd.f32 1.0, %v5167_v3 }
 0x173   : > { %v1225_v1 = vmul.f32 0.5, %v1217_v57  ;;  %v870_v9 = vadd.f32 1.0, %v5169_v6 }
 0x174   : > { %v5804_v5 = vmul.f32 %v1227_v60, %v1163_v11  ;;  %v877_v13 = vmul.f32 0.5, %v869_v45 }
 0x175   : > { %v5809_v8 = vmul.f32 %v1225_v1, %v1161_v10  ;;  %v878_v14 = vmul.f32 0.5, %v870_v9 }
 0x176   : > { %7569 = vst [vmem:[#allocation3_spill] sm:$0xff] %v5804_v5  ;;  %v5813_v23 = vpack.c.bf16 %v5804_v5, %v5802_v4  ;;  %v5835_v20 = vmul.f32 %v877_v13, %v5756_v49 }
 0x177   : > { %7571 = vst [vmem:[#allocation5_spill] sm:$0xff] %v5809_v8  ;;  %v5821_v46 = vpack.c.bf16 %v5809_v8, %v5807_v7  ;;  %v5838_v25 = vmul.f32 %v878_v14, %v5771_v62 }
 0x178   : > { %1331 = vrot.lane.b32.xlu0 %v5813_v23, %s5516_s26  ;;  %7572 = vst [vmem:[#allocation6_spill] sm:$0xff] %v5835_v20 }
 0x179   : > { %4821 = vmatmul.msk.bf16.gmra.mxu0 %vm575_vm0, %v5817_v24  ;;  %1329 = vrot.lane.b32.xlu2 %v5821_v46, %s5516_s26  ;;  %7573 = vst [vmem:[#allocation7_spill] sm:$0xff] %v5838_v25  ;;  %v5847_v49 = vpack.c.bf16 %v5838_v25, %v5835_v20 }
 0x17a   : > { %v1149_v11 = vpop.f32.mrf.mxu3 }
 0x17b   : > { %v1083_v10 = vpop.f32.mrf.mxu2  ;;  %v1166_v58 = vadd.f32 %v5739_v36, %v1149_v11 }
 0x17c   : > { %v1164_v12 = vadd.f32 %v5739_v36, %v1083_v10 }
 0x17d   : > { %v1174_v16 = vmul.f32 %v1166_v58, %v1166_v58 }
 0x17e   : > { %v1172_v15 = vmul.f32 %v1164_v12, %v1164_v12 }
 0x17f   : > { %v1182_v18 = vmul.f32 %v1174_v16, %v1166_v58 }
 0x180   : > { %v1180_v17 = vmul.f32 %v1172_v15, %v1164_v12 }
 0x181   : > { %v1190_v27 = vmul.f32 0.044715, %v1182_v18 }
 0x182   : > { %v1188_v26 = vmul.f32 0.044715, %v1180_v17  ;;  %v1152_v30 = vpop.f32.mrf.mxu3 }
 0x183   : > { %v1086_v29 = vpop.f32.mrf.mxu2  ;;  %v1198_v0 = vadd.f32 %v1190_v27, %v1166_v58  ;;  %v1167_v34 = vadd.f32 %v5739_v36, %v1152_v30  ;;  %v5137_v30 = vld [vmem:[%s7546_s8] ss:$0 sm:$0xff] }
 0x184   : > { %v1196_v31 = vadd.f32 %v1188_v26, %v1164_v12  ;;  %v1165_v33 = vadd.f32 %v5739_v36, %v1086_v29 }
 0x185   : > { %v1206_v2 = vmul.f32 0.7978846, %v1198_v0  ;;  %v1175_v37 = vmul.f32 %v1167_v34, %v1167_v34 }
 0x186   : > { %v1204_v62 = vmul.f32 0.7978846, %v1196_v31  ;;  %v1173_v35 = vmul.f32 %v1165_v33, %v1165_v33 }
 0x187   : > { %v1183_v41 = vmul.f32 %v1175_v37, %v1167_v34  ;;  %5170 = vtanh.f32 %v1206_v2 }
 0x188   : > { %v1181_v39 = vmul.f32 %v1173_v35, %v1165_v33  ;;  %5172 = vtanh.f32 %v1204_v62 }
 0x189   : > { %4822 = vmatmul.msk.bf16.gmra.mxu0 %vm575_vm0, %v5847_v49  ;;  %v1191_v43 = vmul.f32 0.044715, %v1183_v41 }
 0x18a   : > { %v1189_v42 = vmul.f32 0.044715, %v1181_v39 }
 0x18b   : > { %v1199_v36 = vadd.f32 %v1191_v43, %v1167_v34 }
 0x18c   : > { %v1197_v44 = vadd.f32 %v1189_v42, %v1165_v33 }
 0x18d   : > { %v1207_v50 = vmul.f32 0.7978846, %v1199_v36  ;;  %v5171_v51 = vpop.eup %5170 }
 0x18e   : > { %v1205_v47 = vmul.f32 0.7978846, %v1197_v44  ;;  %v5173_v52 = vpop.eup %5172  ;;  %v1222_v53 = vadd.f32 1.0, %v5171_v51 }
 0x18f   : > { %v1220_v54 = vadd.f32 1.0, %v5173_v52 }
 0x190   : > { %5174 = vtanh.f32 %v1205_v47  ;;  %v1230_v56 = vmul.f32 0.5, %v1222_v53 }
 0x191   : > { %5176 = vtanh.f32 %v1207_v50  ;;  %v1228_v60 = vmul.f32 0.5, %v1220_v54 }
 0x192   : > { %v5851_v45 = vmul.f32 %v1230_v56, %v1166_v58 }
 0x193   : > { %v5853_v9 = vmul.f32 %v1228_v60, %v1164_v12 }
 0x194   : > { %7574 = vst [vmem:[#allocation8_spill] sm:$0xff] %v5851_v45 }
 0x195   : > { %7575 = vst [vmem:[#allocation9_spill] sm:$0xff] %v5853_v9 }
 0x196   : > { %v5175_v55 = vpop.eup %5174 }
 0x197   : > { %v5177_v57 = vpop.eup %5176  ;;  %v1221_v59 = vadd.f32 1.0, %v5175_v55 }
 0x198   : > { %v1223_v1 = vadd.f32 1.0, %v5177_v57 }
 0x199   : > { %v1229_v3 = vmul.f32 0.5, %v1221_v59 }
 0x19a   : > { %v1231_v6 = vmul.f32 0.5, %v1223_v1 }
 0x19b   : > { %v5855_v10 = vmul.f32 %v1229_v3, %v1165_v33 }
 0x19c   : > { %v5857_v11 = vmul.f32 %v1231_v6, %v1167_v34 }
 0x19d   : > { %7576 = vst [vmem:[#allocation10_spill] sm:$0xff] %v5855_v10  ;;  %v5861_v13 = vpack.c.bf16 %v5855_v10, %v5853_v9 }
 0x19e   : > { %7577 = vst [vmem:[#allocation11_spill] sm:$0xff] %v5857_v11  ;;  %v5865_v14 = vpack.c.bf16 %v5857_v11, %v5851_v45 }
 0x19f   : > { %1333 = vrot.lane.b32.xlu1 %v5861_v13, %s5516_s26 }
 0x1a0   : > { %1335 = vrot.lane.b32.xlu2 %v5865_v14, %s5516_s26 }
 0x1d3   : > { %v1330_v12 = vpop.permute.xlu2 %1329 }
 0x1d4   : > { %4831 = vmatmul.msk.bf16.vlgmr.msra.gmra.mxu1 %vm575_vm0, %v1330_v12 }
 0x1d6   : > { %v1285_v37 = vpop.f32.mrf.mxu0 }
 0x1de   : > { %v1287_v55 = vpop.f32.mrf.mxu0 }
 0x1ea   : > { %v1332_v58 = vpop.permute.xlu0 %1331 }
 0x1eb   : > { %4832 = vmatmul.msk.bf16.gmra.mxu1 %vm575_vm0, %v1332_v58 }
 0x1fa   : > { %v1336_v16 = vpop.permute.xlu2 %1335 }
 0x211   : > { %v1334_v15 = vpop.permute.xlu1 %1333 }
 0x212   : > { %4833 = vmatmul.msk.bf16.gmra.mxu1 %vm575_vm0, %v1334_v15  ;;  %v1290_v15 = vpop.f32.mrf.mxu0 }
 0x222   : > { %4834 = vmatmul.msk.bf16.gmra.mxu1 %vm575_vm0, %v1336_v16  ;;  %v5136_v16 = vld [vmem:[%s7544_s6] ss:$0 sm:$0xff] }
 0x251   : > { %v1370_v17 = vpop.f32.mrf.mxu1 }
 0x252   : > { %v1371_v1 = vadd.f32 %v5137_v30, %v1370_v17 }
 0x254   : > { %v1390_v58 = vpack.c.bf16 %v1371_v1, %v1371_v1 }
 0x259   : > { %v1372_v18 = vpop.f32.mrf.mxu1 }
 0x25a   : > { %v1373_v57 = vadd.f32 %v5137_v30, %v1372_v18 }
 0x25c   : > { %v1391_v6 = vpack.c.bf16 %v1373_v57, %v1373_v57 }
 0x268   : > { %v1375_v19 = vpop.f32.mrf.mxu1 }
 0x269   : > { %v1376_v51 = vadd.f32 %v5137_v30, %v1375_v19  ;;  %v1431_v19 = vunpack.c.l.b16 %v1391_v6 }
 0x26b   : > { %v1392_v56 = vpack.c.bf16 %v1376_v51, %v1376_v51 }
 0x26d   : > { %v1432_v3 = vunpack.c.l.b16 %v1392_v56 }
 0x270   : > { %v1377_v26 = vpop.f32.mrf.mxu1 }
 0x271   : > { %v1378_v36 = vadd.f32 %v5137_v30, %v1377_v26  ;;  %v1288_v26 = vadd.f32 %v5136_v16, %v1287_v55 }
 0x273   : > { %v1393_v53 = vpack.c.bf16 %v1378_v36, %v1378_v36  ;;  %v1306_v17 = vpack.c.bf16 %v1288_v26, %v1288_v26 }
 0x275   : > { %v1433_v59 = vunpack.c.l.b16 %v1393_v53 }
 0x277   : > { %v5888_v12 = vpack.c.b16 %v1433_v59, %v1432_v3 }
 0x279   : > { %v1459_v18 = vsel %vm1442_vm1, %v5888_v12, 0 }
 0x28f   : > { %v1380_v27 = vpop.f32.mrf.mxu1 }
 0x290   : > { %v1381_v35 = vadd.f32 %v5137_v30, %v1380_v27  ;;  %v1430_v27 = vunpack.c.l.b16 %v1390_v58 }
 0x292   : > { %v1394_v43 = vpack.c.bf16 %v1381_v35, %v1381_v35 }
 0x294   : > { %v1434_v52 = vunpack.c.l.b16 %v1394_v43 }
 0x297   : > { %v1382_v28 = vpop.f32.mrf.mxu1 }
 0x298   : > { %v1383_v0 = vadd.f32 %v5137_v30, %v1382_v28  ;;  %v1286_v28 = vadd.f32 %v5136_v16, %v1285_v37 }
 0x29a   : > { %v1395_v39 = vpack.c.bf16 %v1383_v0, %v1383_v0  ;;  %v1411_v0 = vunpack.c.l.b16 %v1306_v17 }
 0x29c   : > { %v1435_v47 = vunpack.c.l.b16 %v1395_v39  ;;  %v1291_v39 = vadd.f32 %v5136_v16, %v1290_v15 }
 0x29e   : > { %v5884_v54 = vpack.c.b16 %v1435_v47, %v1434_v52 }
 0x29f   : > { %v1385_v29 = vpop.f32.mrf.mxu1 }
 0x2a0   : > { %v1386_v31 = vadd.f32 %v5137_v30, %v1385_v29  ;;  %v1462_v60 = vsel %vm1442_vm1, %v5884_v54, 0  ;;  %v5895_v29 = vpack.c.b16 %v1431_v19, %v1430_v27  ;;  %v5918_v27 = vld [vmem:[%s7540_s2] sm:$0xff] }
 0x2a2   : > { %v1396_v34 = vpack.c.bf16 %v1386_v31, %v1386_v31  ;;  %v1456_v31 = vsel %vm1442_vm1, %v5895_v29, 0 }
 0x2a4   : > { %v1436_v41 = vunpack.c.l.b16 %v1396_v34 }
 0x2a7   : > { %v1387_v33 = vpop.f32.mrf.mxu1 }
 0x2a8   : > { %v1388_v62 = vadd.f32 %v5137_v30, %v1387_v33  ;;  %v1305_v30 = vpack.c.bf16 %v1286_v28, %v1286_v28  ;;  %v1292_v33 = vpop.f32.mrf.mxu0 }
 0x2a9   : > { %v1293_v35 = vadd.f32 %v5136_v16, %v1292_v33 }
 0x2aa   : > { %v1397_v2 = vpack.c.bf16 %v1388_v62, %v1388_v62  ;;  %v1410_v34 = vunpack.c.l.b16 %v1305_v30  ;;  %v5925_v30 = vld [vmem:[%s7540_s2 + $0x8] sm:$0xff] }
 0x2ab   : > { %v1308_v37 = vpack.c.bf16 %v1293_v35, %v1293_v35 }
 0x2ac   : > { %v1437_v42 = vunpack.c.l.b16 %v1397_v2  ;;  %v5899_v62 = vpack.c.b16 %v1411_v0, %v1410_v34  ;;  %v5932_v34 = vld [vmem:[%s7540_s2 + $0x10] sm:$0xff] }
 0x2ae   : > { %v5878_v44 = vpack.c.b16 %v1437_v42, %v1436_v41  ;;  %v1307_v41 = vpack.c.bf16 %v1291_v39, %v1291_v39  ;;  %v1413_v42 = vunpack.c.l.b16 %v1308_v37  ;;  %v5939_v37 = vld [vmem:[%s7540_s2 + $0x18] sm:$0xff] }
 0x2b0   : > { %1595 = vrot.lane.b32.xlu2 %v5878_v44, %s5516_s26  ;;  %v1465_v50 = vsel %vm1442_vm1, %v5878_v44, 0  ;;  %v1295_v2 = vpop.f32.mrf.mxu0  ;;  %v1412_v43 = vunpack.c.l.b16 %v1307_v41 }
 0x2b1   : > { %1471 = vmatpush.bf16.xpose.msra.mxu2 %v1465_v50  ;;  %v1296_v51 = vadd.f32 %v5136_v16, %v1295_v2 }
 0x2b2   : > { %v5903_v47 = vpack.c.b16 %v1413_v42, %v1412_v43 }
 0x2b3   : > { %v1309_v55 = vpack.c.bf16 %v1296_v51, %v1296_v51 }
 0x2b5   : > { %v1414_v57 = vunpack.c.l.b16 %v1309_v55 }
 0x2b8   : > { %v1297_v36 = vpop.f32.mrf.mxu0 }
 0x2b9   : > { %1472 = vmatpush.bf16.xpose.msra.mxu2 %v1462_v60  ;;  %v1298_v50 = vadd.f32 %v5136_v16, %v1297_v36  ;;  %v5946_v36 = vld [vmem:[%s7540_s2 + $0x20] sm:$0xff] }
 0x2bb   : > { %v1310_v53 = vpack.c.bf16 %v1298_v50, %v1298_v50 }
 0x2bd   : > { %v1415_v56 = vunpack.c.l.b16 %v1310_v53  ;;  %v5953_v53 = vld [vmem:[%s7540_s2 + $0x28] sm:$0xff] }
 0x2bf   : > { %v5907_v59 = vpack.c.b16 %v1415_v56, %v1414_v57 }
 0x2c0   : > { %v1300_v52 = vpop.f32.mrf.mxu0 }
 0x2c1   : > { %1473 = vmatpush.bf16.xpose.msra.mxu2 %v1459_v18  ;;  %v1301_v1 = vadd.f32 %v5136_v16, %v1300_v52 }
 0x2c3   : > { %v1311_v6 = vpack.c.bf16 %v1301_v1, %v1301_v1 }
 0x2c5   : > { %v1416_v15 = vunpack.c.l.b16 %v1311_v6 }
 0x2c8   : > { %v1302_v60 = vpop.f32.mrf.mxu0 }
 0x2c9   : > { %1474 = vmatpush.bf16.xpose.msra.mxu2 %v1456_v31  ;;  %v1303_v3 = vadd.f32 %v5136_v16, %v1302_v60  ;;  %v5960_v60 = vld [vmem:[%s7540_s2 + $0x30] sm:$0xff] }
 0x2cb   : > { %v1312_v58 = vpack.c.bf16 %v1303_v3, %v1303_v3 }
 0x2cd   : > { %v1417_v19 = vunpack.c.l.b16 %v1312_v58  ;;  %v5967_v58 = vld [vmem:[%s7540_s2 + $0x38] sm:$0xff] }
 0x2cf   : > { %v5911_v18 = vpack.c.b16 %v1417_v19, %v1416_v15 }
 0x2d0   : > { %4835 = vmatmul.msk.bf16.vlgmr.msra.gmra.mxu2 %vm1442_vm1, %v5899_v62 }
 0x2e0   : > { %4836 = vmatmul.msk.bf16.gmra.mxu2 %vm1442_vm1, %v5903_v47 }
 0x2f0   : > { %4837 = vmatmul.msk.bf16.gmra.mxu2 %vm1442_vm1, %v5907_v59 }
 0x300   : > { %4838 = vmatmul.msk.bf16.gmra.mxu2 %vm1442_vm1, %v5911_v18 }
 0x30a   : > { %v1596_v26 = vpop.permute.xlu2 %1595 }
 0x30b   : > { %1617 = vmatpush.bf16.msra.mxu3 %v1596_v26 }
 0x353   : > { %v1476_v28 = vpop.f32.mrf.mxu2 }
 0x354   : > { %v1477_v16 = vadd.f32 %v1476_v28, %v5918_v27 }
 0x356   : > { %v1497_v17 = vsel %vm1496_vm2, %v1477_v16, -inf }
 0x357   : > { %1498 = vmax.xlane.f32.xlu2 %v1497_v17 }
 0x35b   : > { %v1478_v31 = vpop.f32.mrf.mxu2 }
 0x35c   : > { %v1479_v33 = vadd.f32 %v1478_v31, %v5925_v30 }
 0x35e   : > { %v1500_v0 = vsel %vm1496_vm2, %v1479_v33, -inf }
 0x35f   : > { %1501 = vmax.xlane.f32.xlu1 %v1500_v0 }
 0x363   : > { %v1481_v35 = vpop.f32.mrf.mxu2 }
 0x364   : > { %v1482_v2 = vadd.f32 %v1481_v35, %v5932_v34 }
 0x366   : > { %v1503_v39 = vsel %vm1496_vm2, %v1482_v2, -inf }
 0x367   : > { %1504 = vmax.xlane.f32.xlu0 %v1503_v39 }
 0x36b   : > { %v1483_v41 = vpop.f32.mrf.mxu2 }
 0x36c   : > { %v1484_v42 = vadd.f32 %v1483_v41, %v5939_v37 }
 0x36e   : > { %v1506_v43 = vsel %vm1496_vm2, %v1484_v42, -inf }
 0x36f   : > { %1507 = vmax.xlane.f32.xlu2 %v1506_v43 }
 0x373   : > { %v1486_v50 = vpop.f32.mrf.mxu2 }
 0x374   : > { %v1487_v51 = vadd.f32 %v1486_v50, %v5946_v36 }
 0x376   : > { %v1509_v52 = vsel %vm1496_vm2, %v1487_v51, -inf }
 0x377   : > { %1510 = vmax.xlane.f32.xlu2 %v1509_v52 }
 0x37b   : > { %v1488_v55 = vpop.f32.mrf.mxu2 }
 0x37c   : > { %v1489_v56 = vadd.f32 %v1488_v55, %v5953_v53 }
 0x37e   : > { %v1512_v57 = vsel %vm1496_vm2, %v1489_v56, -inf }
 0x37f   : > { %1513 = vmax.xlane.f32.xlu1 %v1512_v57 }
 0x383   : > { %v1491_v1 = vpop.f32.mrf.mxu2 }
 0x384   : > { %v1492_v3 = vadd.f32 %v1491_v1, %v5960_v60 }
 0x386   : > { %v1515_v6 = vsel %vm1496_vm2, %v1492_v3, -inf }
 0x387   : > { %1516 = vmax.xlane.f32.xlu2 %v1515_v6 }
 0x38b   : > { %v1493_v15 = vpop.f32.mrf.mxu2 }
 0x38c   : > { %v1494_v19 = vadd.f32 %v1493_v15, %v5967_v58 }
 0x38e   : > { %v1518_v26 = vsel %vm1496_vm2, %v1494_v19, -inf }
 0x38f   : > { %1519 = vmax.xlane.f32.xlu1 %v1518_v26 }
 0x39f   : > { %1589 = vrot.lane.b32.xlu2 %v5895_v29, %s5516_s26 }
 0x3ca   : > { %v1499_v28 = vpop.xlane.xlu2 %1498 }
 0x3cb   : > { %v1521_v17 = vsub.f32 %v1477_v16, %v1499_v28 }
 0x3cd   : > { %v1529_v31 = vmul.f32 1.442695, %v1521_v17 }
 0x3cf   : > { %5178 = vpow2.f32 %v1529_v31 }
 0x3d2   : > { %v1502_v0 = vpop.xlane.xlu1 %1501 }
 0x3d3   : > { %v1522_v35 = vsub.f32 %v1479_v33, %v1502_v0 }
 0x3d5   : > { %v5973_v39 = vpop.eup %5178  ;;  %v1531_v41 = vmul.f32 1.442695, %v1522_v35 }
 0x3d6   : > { %v1545_v43 = vsel %vm1496_vm2, %v5973_v39, 0.0 }
 0x3d7   : > { %5180 = vpow2.f32 %v1531_v41  ;;  %1546 = vadd.xlane.f32.xlu1 %v1545_v43 }
 0x3da   : > { %v1505_v50 = vpop.xlane.xlu0 %1504 }
 0x3db   : > { %v1523_v52 = vsub.f32 %v1482_v2, %v1505_v50 }
 0x3dd   : > { %v5977_v55 = vpop.eup %5180  ;;  %v1533_v57 = vmul.f32 1.442695, %v1523_v52 }
 0x3de   : > { %v1548_v16 = vsel %vm1496_vm2, %v5977_v55, 0.0 }
 0x3df   : > { %5182 = vpow2.f32 %v1533_v57  ;;  %1549 = vadd.xlane.f32.xlu0 %v1548_v16 }
 0x3e2   : > { %v1508_v26 = vpop.xlane.xlu2 %1507 }
 0x3e3   : > { %v1524_v35 = vsub.f32 %v1484_v42, %v1508_v26 }
 0x3e5   : > { %v5981_v1 = vpop.eup %5182  ;;  %v1535_v50 = vmul.f32 1.442695, %v1524_v35 }
 0x3e6   : > { %v1551_v33 = vsel %vm1496_vm2, %v5981_v1, 0.0 }
 0x3e7   : > { %1552 = vadd.xlane.f32.xlu2 %v1551_v33 }
 0x3ea   : > { %v1511_v31 = vpop.xlane.xlu2 %1510 }
 0x3eb   : > { %v1525_v0 = vsub.f32 %v1487_v51, %v1511_v31 }
 0x3ed   : > { %v1537_v41 = vmul.f32 1.442695, %v1525_v0 }
 0x3f0   : > { %1593 = vrot.lane.b32.xlu1 %v5884_v54, %s5516_s26 }
 0x3f2   : > { %v1514_v6 = vpop.xlane.xlu1 %1513 }
 0x3f3   : > { %v1526_v15 = vsub.f32 %v1489_v56, %v1514_v6  ;;  %1591 = vrot.lane.b32.xlu0 %v5888_v12, %s5516_s26 }
 0x3f5   : > { %v1539_v2 = vmul.f32 1.442695, %v1526_v15 }
 0x3f7   : > { %5184 = vpow2.f32 %v1539_v2 }
 0x3f8   : > { %5186 = vpow2.f32 %v1537_v41 }
 0x3f9   : > { %5188 = vpow2.f32 %v1535_v50 }
 0x3fa   : > { %v1517_v56 = vpop.xlane.xlu2 %1516 }
 0x3fb   : > { %v1527_v57 = vsub.f32 %v1492_v3, %v1517_v56 }
 0x3fd   : > { %v5989_v28 = vpop.eup %5184  ;;  %v1541_v6 = vmul.f32 1.442695, %v1527_v57 }
 0x3fe   : > { %v1560_v17 = vsel %vm1496_vm2, %v5989_v28, 0.0  ;;  %v5993_v33 = vpop.eup %5186 }
 0x3ff   : > { %1561 = vadd.xlane.f32.xlu2 %v1560_v17  ;;  %v5997_v15 = vpop.eup %5188  ;;  %v1557_v42 = vsel %vm1496_vm2, %v5993_v33, 0.0 }
 0x400   : > { %v1554_v51 = vsel %vm1496_vm2, %v5997_v15, 0.0 }
 0x402   : > { %v1520_v43 = vpop.xlane.xlu1 %1519  ;;  %v1590_v0 = vpop.permute.xlu2 %1589 }
 0x403   : > { %v1528_v52 = vsub.f32 %v1494_v19, %v1520_v43 }
 0x405   : > { %v1543_v16 = vmul.f32 1.442695, %v1528_v52 }
 0x407   : > { %5190 = vpow2.f32 %v1543_v16 }
 0x408   : > { %5192 = vpow2.f32 %v1541_v6 }
 0x40d   : > { %v6003_v3 = vpop.eup %5190 }
 0x40e   : > { %v6007_v19 = vpop.eup %5192  ;;  %v1566_v2 = vsel %vm1496_vm2, %v6003_v3, 0.0 }
 0x40f   : > { %v1563_v26 = vsel %vm1496_vm2, %v6007_v19, 0.0 }
 0x417   : > { %1660 = vrot.lane.b32.xlu2 %v5878_v44, %s5517_s28 }
 0x41a   : > { %1558 = vadd.xlane.f32.xlu1 %v1557_v42 }
 0x41d   : > { %1555 = vadd.xlane.f32.xlu0 %v1554_v51 }
 0x41f   : > { %1646 = vrot.lane.b32.xlu2 %v5899_v62, %s5517_s28 }
 0x422   : > { %1567 = vadd.xlane.f32.xlu1 %v1566_v2 }
 0x425   : > { %1564 = vadd.xlane.f32.xlu0 %v1563_v26 }
 0x427   : > { %1967 = vrot.lane.b32.xlu2 %v5878_v44, %s5518_s29 }
 0x42f   : > { %2235 = vrot.lane.b32.xlu2 %v5884_v54, %s5519_s27 }
 0x437   : > { %2233 = vrot.lane.b32.xlu2 %v5888_v12, %s5519_s27 }
 0x439   : > { %1658 = vrot.lane.b32.xlu0 %v5884_v54, %s5517_s28 }
 0x43b   : > { %1656 = vrot.lane.b32.xlu1 %v5888_v12, %s5517_s28 }
 0x43f   : > { %1953 = vrot.lane.b32.xlu2 %v5899_v62, %s5518_s29 }
 0x441   : > { %1654 = vrot.lane.b32.xlu0 %v5895_v29, %s5517_s28 }
 0x443   : > { %1648 = vrot.lane.b32.xlu1 %v5903_v47, %s5517_s28 }
 0x447   : > { %2225 = vrot.lane.b32.xlu2 %v5903_v47, %s5519_s27 }
 0x449   : > { %1650 = vrot.lane.b32.xlu0 %v5907_v59, %s5517_s28 }
 0x44a   : > { %v1547_v17 = vpop.xlane.xlu1 %1546 }
 0x44b   : > { %2237 = vrot.lane.b32.xlu1 %v5878_v44, %s5519_s27 }
 0x44f   : > { %1959 = vrot.lane.b32.xlu2 %v5911_v18, %s5518_s29 }
 0x451   : > { %1965 = vrot.lane.b32.xlu0 %v5884_v54, %s5518_s29 }
 0x452   : > { %v1550_v31 = vpop.xlane.xlu0 %1549 }
 0x453   : > { %1652 = vrot.lane.b32.xlu1 %v5911_v18, %s5517_s28  ;;  %5194 = vrcp.f32 %v1550_v31 }
 0x454   : > { %5196 = vrcp.f32 %v1547_v17 }
 0x459   : > { %1963 = vrot.lane.b32.xlu0 %v5888_v12, %s5518_s29  ;;  %v5195_v41 = vpop.eup %5194 }
 0x45a   : > { %v5197_v50 = vpop.eup %5196  ;;  %v1578_v56 = vmul.f32 %v5195_v41, %v5977_v55  ;;  %v1553_v57 = vpop.xlane.xlu2 %1552 }
 0x45b   : > { %1961 = vrot.lane.b32.xlu1 %v5895_v29, %s5518_s29  ;;  %v1577_v52 = vmul.f32 %v5197_v50, %v5973_v39  ;;  %5198 = vrcp.f32 %v1553_v57 }
 0x45d   : > { %v1585_v16 = vpack.c.bf16 %v1578_v56, %v1577_v52 }
 0x461   : > { %2231 = vrot.lane.b32.xlu0 %v5895_v29, %s5519_s27  ;;  %v5199_v6 = vpop.eup %5198 }
 0x462   : > { %v1594_v35 = vpop.permute.xlu1 %1593  ;;  %v1579_v51 = vmul.f32 %v5199_v6, %v5981_v1 }
 0x463   : > { %1618 = vmatpush.bf16.msra.mxu3 %v1594_v35  ;;  %2223 = vrot.lane.b32.xlu1 %v5899_v62, %s5519_s27 }
 0x465   : > { %v1592_v43 = vpop.permute.xlu0 %1591 }
 0x467   : > { %1619 = vmatpush.bf16.msra.mxu3 %v1592_v43 }
 0x469   : > { %1955 = vrot.lane.b32.xlu0 %v5903_v47, %s5518_s29 }
 0x46b   : > { %1957 = vrot.lane.b32.xlu1 %v5907_v59, %s5518_s29  ;;  %1620 = vmatpush.bf16.msra.mxu3 %v1590_v0 }
 0x46e   : > { %4839 = vmatmul.msk.bf16.vlgmr.msra.gmra.mxu3 %vm1496_vm2, %v1585_v16 }
 0x471   : > { %2227 = vrot.lane.b32.xlu0 %v5907_v59, %s5519_s27  ;;  %v1398_v59 = vld [vmem:[%s7547_s9] sm:$0xf] }
 0x472   : > { %v1562_v62 = vpop.xlane.xlu2 %1561 }
 0x473   : > { %2229 = vrot.lane.b32.xlu1 %v5911_v18, %s5519_s27  ;;  %v1922_v18 = vsel %vm1876_vm3, %v1398_v59, 0 }
 0x474   : > { %1931 = vmatpush.bf16.msrb.mxu2 %v1922_v18 }
 0x47a   : > { %v1661_v55 = vpop.permute.xlu2 %1660 }
 0x47b   : > { %v1684_v47 = vsel %vm1442_vm1, %v1661_v55, 0 }
 0x47c   : > { %1690 = vmatpush.bf16.xpose.msra.mxu0 %v1684_v47 }
 0x482   : > { %v1647_v52 = vpop.permute.xlu2 %1646 }
 0x48d   : > { %v1559_v26 = vpop.xlane.xlu1 %1558 }
 0x490   : > { %v1556_v39 = vpop.xlane.xlu0 %1555 }
 0x491   : > { %5200 = vrcp.f32 %v1556_v39 }
 0x492   : > { %5202 = vrcp.f32 %v1559_v26 }
 0x493   : > { %5204 = vrcp.f32 %v1562_v62 }
 0x495   : > { %v1568_v1 = vpop.xlane.xlu1 %1567 }
 0x497   : > { %v5201_v42 = vpop.eup %5200 }
 0x498   : > { %v1580_v2 = vmul.f32 %v5201_v42, %v5997_v15  ;;  %v5203_v31 = vpop.eup %5202  ;;  %v1565_v0 = vpop.xlane.xlu0 %1564 }
 0x499   : > { %v5205_v35 = vpop.eup %5204  ;;  %v1581_v15 = vmul.f32 %v5203_v31, %v5993_v33  ;;  %5206 = vrcp.f32 %v1565_v0  ;;  %v1968_v33 = vpop.permute.xlu2 %1967 }
 0x49a   : > { %v1586_v17 = vpack.c.bf16 %v1580_v2, %v1579_v51  ;;  %v1582_v41 = vmul.f32 %v5205_v35, %v5989_v28  ;;  %5208 = vrcp.f32 %v1568_v1  ;;  %v1991_v26 = vsel %vm1442_vm1, %v1968_v33, 0 }
 0x49c   : > { %4840 = vmatmul.msk.bf16.gmra.mxu3 %vm1496_vm2, %v1586_v17  ;;  %v1587_v43 = vpack.c.bf16 %v1582_v41, %v1581_v15 }
 0x49f   : > { %v5207_v16 = vpop.eup %5206 }
 0x4a0   : > { %v5209_v47 = vpop.eup %5208  ;;  %v1583_v28 = vmul.f32 %v5207_v16, %v6007_v19 }
 0x4a1   : > { %v1584_v6 = vmul.f32 %v5209_v47, %v6003_v3  ;;  %v2236_v18 = vpop.permute.xlu2 %2235 }
 0x4a2   : > { %v2258_v19 = vsel %vm1442_vm1, %v2236_v18, 0 }
 0x4a3   : > { %v1588_v42 = vpack.c.bf16 %v1584_v6, %v1583_v28 }
 0x4a9   : > { %v2234_v35 = vpop.permute.xlu2 %2233 }
 0x4aa   : > { %v2255_v41 = vsel %vm1442_vm1, %v2234_v35, 0 }
 0x4ab   : > { %v1659_v50 = vpop.permute.xlu0 %1658 }
 0x4ac   : > { %4841 = vmatmul.msk.bf16.gmra.mxu3 %vm1496_vm2, %v1587_v43  ;;  %v1681_v56 = vsel %vm1442_vm1, %v1659_v50, 0 }
 0x4ad   : > { %v1657_v57 = vpop.permute.xlu1 %1656  ;;  %1691 = vmatpush.bf16.xpose.msra.mxu0 %v1681_v56 }
 0x4ae   : > { %v1678_v55 = vsel %vm1442_vm1, %v1657_v57, 0 }
 0x4b3   : > { %v1655_v62 = vpop.permute.xlu0 %1654 }
 0x4b4   : > { %v1675_v2 = vsel %vm1442_vm1, %v1655_v62, 0 }
 0x4b5   : > { %v1649_v39 = vpop.permute.xlu1 %1648  ;;  %1692 = vmatpush.bf16.xpose.msra.mxu0 %v1678_v55  ;;  %v1954_v55 = vpop.permute.xlu2 %1953 }
 0x4bb   : > { %v1651_v51 = vpop.permute.xlu0 %1650 }
 0x4bc   : > { %4842 = vmatmul.msk.bf16.gmra.mxu3 %vm1496_vm2, %v1588_v42 }
 0x4bd   : > { %v2238_v17 = vpop.permute.xlu1 %2237  ;;  %1693 = vmatpush.bf16.xpose.msra.mxu0 %v1675_v2 }
 0x4be   : > { %v2261_v59 = vsel %vm1442_vm1, %v2238_v17, 0 }
 0x4bf   : > { %2267 = vmatpush.bf16.xpose.msra.mxu2 %v2261_v59 }
 0x4c3   : > { %v1966_v31 = vpop.permute.xlu0 %1965 }
 0x4c4   : > { %4843 = vmatmul.msk.bf16.vlgmr.msra.gmra.mxu0 %vm1442_vm1, %v1647_v52  ;;  %v1988_v3 = vsel %vm1442_vm1, %v1966_v31, 0 }
 0x4c5   : > { %1997 = vmatpush.bf16.xpose.msrb.mxu0 %v1991_v26  ;;  %v1653_v0 = vpop.permute.xlu1 %1652 }
 0x4c7   : > { %2268 = vmatpush.bf16.xpose.msra.mxu2 %v2258_v19 }
 0x4cb   : > { %v1964_v1 = vpop.permute.xlu0 %1963 }
 0x4cc   : > { %v1985_v15 = vsel %vm1442_vm1, %v1964_v1, 0 }
 0x4cd   : > { %1998 = vmatpush.bf16.xpose.msrb.mxu0 %v1988_v3  ;;  %v1962_v43 = vpop.permute.xlu1 %1961 }
 0x4ce   : > { %v1982_v56 = vsel %vm1442_vm1, %v1962_v43, 0 }
 0x4cf   : > { %2269 = vmatpush.bf16.xpose.msra.mxu2 %v2255_v41 }
 0x4d3   : > { %v2232_v50 = vpop.permute.xlu0 %2231 }
 0x4d4   : > { %4844 = vmatmul.msk.bf16.gmra.mxu0 %vm1442_vm1, %v1649_v39  ;;  %v2252_v52 = vsel %vm1442_vm1, %v2232_v50, 0 }
 0x4d5   : > { %1999 = vmatpush.bf16.xpose.msrb.mxu0 %v1985_v15  ;;  %v2224_v39 = vpop.permute.xlu1 %2223 }
 0x4d7   : > { %2270 = vmatpush.bf16.xpose.msra.mxu2 %v2252_v52 }
 0x4db   : > { %v1956_v47 = vpop.permute.xlu0 %1955 }
 0x4dd   : > { %2000 = vmatpush.bf16.xpose.msrb.mxu0 %v1982_v56  ;;  %v1958_v33 = vpop.permute.xlu1 %1957 }
 0x4e4   : > { %4845 = vmatmul.msk.bf16.gmra.mxu0 %vm1442_vm1, %v1651_v51  ;;  %v2226_v51 = vpop.permute.xlu2 %2225 }
 0x4ec   : > { %v1960_v26 = vpop.permute.xlu2 %1959 }
 0x4f1   : > { %v1622_v57 = vpop.f32.mrf.mxu3 }
 0x4f4   : > { %4846 = vmatmul.msk.bf16.gmra.mxu0 %vm1442_vm1, %v1653_v0 }
 0x4f9   : > { %v1624_v16 = vpop.f32.mrf.mxu3 }
 0x4fa   : > { %v1642_v62 = vpack.c.bf16 %v1624_v16, %v1622_v57 }
 0x4fc   : > { %4855 = vmatmul.msk.bf16.vlgmr.msrb.gmra.mxu2 %vm1442_vm1, %v1642_v62 }
 0x504   : > { %4859 = vmatmul.msk.bf16.vlgmr.msrb.gmra.mxu0 %vm1442_vm1, %v1954_v55 }
 0x514   : > { %4860 = vmatmul.msk.bf16.gmra.mxu0 %vm1442_vm1, %v1956_v47 }
 0x51f   : > { %v1627_v28 = vpop.f32.mrf.mxu3 }
 0x524   : > { %4861 = vmatmul.msk.bf16.gmra.mxu0 %vm1442_vm1, %v1958_v33 }
 0x527   : > { %v1629_v6 = vpop.f32.mrf.mxu3 }
 0x528   : > { %v1643_v42 = vpack.c.bf16 %v1629_v6, %v1627_v28 }
 0x52a   : > { %4856 = vmatmul.msk.bf16.gmra.mxu2 %vm1442_vm1, %v1643_v42 }
 0x52f   : > { %v1632_v2 = vpop.f32.mrf.mxu3 }
 0x534   : > { %4862 = vmatmul.msk.bf16.gmra.mxu0 %vm1442_vm1, %v1960_v26  ;;  %v2228_v26 = vpop.permute.xlu0 %2227 }
 0x537   : > { %v1634_v17 = vpop.f32.mrf.mxu3 }
 0x538   : > { %v1644_v59 = vpack.c.bf16 %v1634_v17, %v1632_v2 }
 0x53a   : > { %4857 = vmatmul.msk.bf16.gmra.mxu2 %vm1442_vm1, %v1644_v59 }
 0x53f   : > { %v1637_v18 = vpop.f32.mrf.mxu3 }
 0x541   : > { %v1695_v31 = vpop.f32.mrf.mxu0 }
 0x542   : > { %v6097_v3 = vadd.f32 %v1695_v31, %v5918_v27  ;;  %v2230_v31 = vpop.permute.xlu1 %2229 }
 0x544   : > { %v1715_v19 = vsel %vm1496_vm2, %v6097_v3, -inf }
 0x545   : > { %1716 = vmax.xlane.f32.xlu0 %v1715_v19 }
 0x547   : > { %v1639_v0 = vpop.f32.mrf.mxu3 }
 0x548   : > { %v1645_v35 = vpack.c.bf16 %v1639_v0, %v1637_v18 }
 0x549   : > { %v1697_v1 = vpop.f32.mrf.mxu0 }
 0x54a   : > { %v6102_v15 = vadd.f32 %v1697_v1, %v5925_v30  ;;  %4858 = vmatmul.msk.bf16.gmra.mxu2 %vm1442_vm1, %v1645_v35 }
 0x54c   : > { %v1718_v41 = vsel %vm1496_vm2, %v6102_v15, -inf }
 0x54d   : > { %1719 = vmax.xlane.f32.xlu2 %v1718_v41 }
 0x551   : > { %v1700_v43 = vpop.f32.mrf.mxu0 }
 0x552   : > { %v6108_v50 = vadd.f32 %v1700_v43, %v5932_v34 }
 0x554   : > { %v1721_v56 = vsel %vm1496_vm2, %v6108_v50, -inf }
 0x555   : > { %1722 = vmax.xlane.f32.xlu1 %v1721_v56 }
 0x559   : > { %v1702_v52 = vpop.f32.mrf.mxu0 }
 0x55a   : > { %v6113_v57 = vadd.f32 %v1702_v52, %v5939_v37  ;;  %4871 = vmatmul.msk.bf16.vlgmr.msra.gmra.mxu2 %vm1442_vm1, %v2224_v39 }
 0x55c   : > { %v1724_v16 = vsel %vm1496_vm2, %v6113_v57, -inf }
 0x55d   : > { %1725 = vmax.xlane.f32.xlu0 %v1724_v16 }
 0x561   : > { %v1705_v62 = vpop.f32.mrf.mxu0 }
 0x562   : > { %v6119_v55 = vadd.f32 %v1705_v62, %v5946_v36 }
 0x564   : > { %v1727_v47 = vsel %vm1496_vm2, %v6119_v55, -inf }
 0x565   : > { %1728 = vmax.xlane.f32.xlu2 %v1727_v47 }
 0x569   : > { %v1707_v28 = vpop.f32.mrf.mxu0 }
 0x56a   : > { %v6124_v33 = vadd.f32 %v1707_v28, %v5953_v53  ;;  %4872 = vmatmul.msk.bf16.gmra.mxu2 %vm1442_vm1, %v2226_v51 }
 0x56c   : > { %v1730_v39 = vsel %vm1496_vm2, %v6124_v33, -inf }
 0x56d   : > { %1731 = vmax.xlane.f32.xlu1 %v1730_v39 }
 0x571   : > { %v1710_v6 = vpop.f32.mrf.mxu0 }
 0x572   : > { %v6130_v42 = vadd.f32 %v1710_v6, %v5960_v60 }
 0x574   : > { %v1733_v2 = vsel %vm1496_vm2, %v6130_v42, -inf }
 0x575   : > { %1734 = vmax.xlane.f32.xlu0 %v1733_v2 }
 0x579   : > { %v1712_v17 = vpop.f32.mrf.mxu0 }
 0x57a   : > { %v6135_v59 = vadd.f32 %v1712_v17, %v5967_v58  ;;  %4873 = vmatmul.msk.bf16.gmra.mxu2 %vm1442_vm1, %v2228_v26 }
 0x57c   : > { %v1736_v51 = vsel %vm1496_vm2, %v6135_v59, -inf }
 0x57d   : > { %1737 = vmax.xlane.f32.xlu2 %v1736_v51 }
 0x57f   : > { %v6149_v35 = vpop.f32.mrf.mxu2 }
 0x581   : > { %v2002_v18 = vpop.f32.mrf.mxu0 }
 0x582   : > { %v6158_v52 = vadd.f32 %v2002_v18, %v5918_v27 }
 0x584   : > { %v2022_v16 = vsel %vm1496_vm2, %v6158_v52, -inf }
 0x586   : > { %1813 = vrot.lane.b32.xlu1 %v5878_v44, %s5520_s17 }
 0x587   : > { %v6153_v41 = vpop.f32.mrf.mxu2 }
 0x589   : > { %1811 = vrot.lane.b32.xlu0 %v5884_v54, %s5520_s17  ;;  %v2004_v19 = vpop.f32.mrf.mxu0 }
 0x58a   : > { %4874 = vmatmul.msk.bf16.gmra.mxu2 %vm1442_vm1, %v2230_v31  ;;  %v6163_v62 = vadd.f32 %v2004_v19, %v5925_v30 }
 0x58c   : > { %v2025_v6 = vsel %vm1496_vm2, %v6163_v62, -inf }
 0x58e   : > { %1807 = vrot.lane.b32.xlu1 %v5895_v29, %s5520_s17 }
 0x591   : > { %v2007_v0 = vpop.f32.mrf.mxu0 }
 0x592   : > { %v6168_v39 = vadd.f32 %v2007_v0, %v5932_v34 }
 0x594   : > { %v2028_v2 = vsel %vm1496_vm2, %v6168_v39, -inf }
 0x595   : > { %1809 = vrot.lane.b32.xlu2 %v5888_v12, %s5520_s17 }
 0x599   : > { %v2009_v1 = vpop.f32.mrf.mxu0 }
 0x59a   : > { %v6175_v26 = vadd.f32 %v2009_v1, %v5939_v37 }
 0x59c   : > { %v2031_v19 = vsel %vm1496_vm2, %v6175_v26, -inf }
 0x59d   : > { %2120 = vrot.lane.b32.xlu2 %v5878_v44, %s7566_s20 }
 0x5a1   : > { %v2012_v43 = vpop.f32.mrf.mxu0 }
 0x5a2   : > { %v6180_v51 = vadd.f32 %v2012_v43, %v5946_v36 }
 0x5a4   : > { %v2034_v1 = vsel %vm1496_vm2, %v6180_v51, -inf }
 0x5a9   : > { %v2014_v47 = vpop.f32.mrf.mxu0 }
 0x5ad   : > { %v6155_v56 = vpop.f32.mrf.mxu2 }
 0x5b1   : > { %v2017_v18 = vpop.f32.mrf.mxu0 }
 0x5b2   : > { %v6194_v10 = vadd.f32 %v2017_v18, %v5960_v60 }
 0x5b3   : > { %2023 = vmax.xlane.f32.xlu0 %v2022_v16 }
 0x5b5   : > { %v6165_v28 = vpop.f32.mrf.mxu2 }
 0x5b8   : > { %2026 = vmax.xlane.f32.xlu1 %v2025_v6  ;;  %v1717_v31 = vpop.xlane.xlu0 %1716 }
 0x5b9   : > { %v1739_v16 = vsub.f32 %v6097_v3, %v1717_v31  ;;  %v2019_v31 = vpop.f32.mrf.mxu0 }
 0x5bb   : > { %2029 = vmax.xlane.f32.xlu0 %v2028_v2  ;;  %v6189_v2 = vadd.f32 %v2014_v47, %v5953_v53  ;;  %v1747_v43 = vmul.f32 1.442695, %v1739_v16  ;;  %v2040_v47 = vsel %vm1496_vm2, %v6194_v10, -inf }
 0x5bd   : > { %v6177_v17 = vpop.f32.mrf.mxu2  ;;  %v2037_v3 = vsel %vm1496_vm2, %v6189_v2, -inf }
 0x5c0   : > { %2032 = vmax.xlane.f32.xlu1 %v2031_v19  ;;  %v1720_v0 = vpop.xlane.xlu2 %1719 }
 0x5c1   : > { %v1740_v6 = vsub.f32 %v6102_v15, %v1720_v0 }
 0x5c3   : > { %v1749_v11 = vmul.f32 1.442695, %v1740_v6  ;;  %2035 = vmax.xlane.f32.xlu0 %v2034_v1 }
 0x5c5   : > { %5210 = vpow2.f32 %v1749_v11  ;;  %v6191_v45 = vpop.f32.mrf.mxu2  ;;  %v6204_v11 = vadd.f32 %v2019_v31, %v5967_v58 }
 0x5c6   : > { %5212 = vpow2.f32 %v1747_v43 }
 0x5c8   : > { %v1723_v15 = vpop.xlane.xlu1 %1722  ;;  %2038 = vmax.xlane.f32.xlu1 %v2037_v3 }
 0x5c9   : > { %v1741_v19 = vsub.f32 %v6108_v50, %v1723_v15  ;;  %v2043_v50 = vsel %vm1496_vm2, %v6204_v11, -inf }
 0x5cb   : > { %v6201_v0 = vpop.eup %5210  ;;  %v1751_v16 = vmul.f32 1.442695, %v1741_v19  ;;  %2041 = vmax.xlane.f32.xlu0 %v2040_v47 }
 0x5cc   : > { %v1766_v18 = vsel %vm1496_vm2, %v6201_v0, 0.0  ;;  %v6210_v1 = vpop.eup %5212 }
 0x5cd   : > { %5214 = vpow2.f32 %v1751_v16  ;;  %v6208_v6 = vpop.f32.mrf.mxu2  ;;  %1767 = vadd.xlane.f32.xlu2 %v1766_v18  ;;  %v1763_v31 = vsel %vm1496_vm2, %v6210_v1, 0.0 }
 0x5d0   : > { %v1726_v43 = vpop.xlane.xlu0 %1725  ;;  %2044 = vmax.xlane.f32.xlu1 %v2043_v50 }
 0x5d1   : > { %v1742_v3 = vsub.f32 %v6113_v57, %v1726_v43 }
 0x5d3   : > { %v6217_v15 = vpop.eup %5214  ;;  %v1753_v19 = vmul.f32 1.442695, %v1742_v3  ;;  %1764 = vadd.xlane.f32.xlu0 %v1763_v31 }
 0x5d4   : > { %v1769_v47 = vsel %vm1496_vm2, %v6217_v15, 0.0 }
 0x5d5   : > { %5216 = vpow2.f32 %v1753_v19  ;;  %v6221_v16 = vpop.f32.mrf.mxu2  ;;  %1770 = vadd.xlane.f32.xlu2 %v1769_v47 }
 0x5d6   : > { %7578 = vst [vmem:[#allocation12_spill] sm:$0xff] %v6221_v16 }
 0x5d8   : > { %v1729_v18 = vpop.xlane.xlu2 %1728 }
 0x5d9   : > { %v1743_v9 = vsub.f32 %v6119_v55, %v1729_v18 }
 0x5db   : > { %v6224_v50 = vpop.eup %5216  ;;  %v1755_v57 = vmul.f32 1.442695, %v1743_v9 }
 0x5dc   : > { %v1772_v43 = vsel %vm1496_vm2, %v6224_v50, 0.0 }
 0x5dd   : > { %5218 = vpow2.f32 %v1755_v57  ;;  %v6228_v5 = vpop.f32.mrf.mxu2  ;;  %1773 = vadd.xlane.f32.xlu0 %v1772_v43 }
 0x5e0   : > { %v1732_v3 = vpop.xlane.xlu1 %1731 }
 0x5e1   : > { %v1744_v31 = vsub.f32 %v6124_v33, %v1732_v3 }
 0x5e3   : > { %v6231_v19 = vpop.eup %5218  ;;  %v1757_v4 = vmul.f32 1.442695, %v1744_v31 }
 0x5e4   : > { %v1775_v47 = vsel %vm1496_vm2, %v6231_v19, 0.0 }
 0x5e5   : > { %5220 = vpow2.f32 %v1757_v4  ;;  %v2274_v55 = vpop.f32.mrf.mxu2  ;;  %1776 = vadd.xlane.f32.xlu2 %v1775_v47 }
 0x5e8   : > { %v1735_v9 = vpop.xlane.xlu0 %1734 }
 0x5e9   : > { %v1745_v18 = vsub.f32 %v6130_v42, %v1735_v9  ;;  %v6246_v9 = vadd.f32 %v2274_v55, %v5925_v30 }
 0x5eb   : > { %v6236_v8 = vpop.eup %5220  ;;  %v1759_v57 = vmul.f32 1.442695, %v1745_v18 }
 0x5ec   : > { %v1778_v43 = vsel %vm1496_vm2, %v6236_v8, 0.0 }
 0x5ed   : > { %5222 = vpow2.f32 %v1759_v57  ;;  %v2277_v33 = vpop.f32.mrf.mxu2  ;;  %1779 = vadd.xlane.f32.xlu0 %v1778_v43 }
 0x5f0   : > { %v1738_v3 = vpop.xlane.xlu2 %1737 }
 0x5f1   : > { %v1746_v31 = vsub.f32 %v6135_v59, %v1738_v3  ;;  %v2295_v59 = vsel %vm1496_vm2, %v6246_v9, -inf }
 0x5f3   : > { %v6241_v7 = vpop.eup %5222  ;;  %v1761_v4 = vmul.f32 1.442695, %v1746_v31 }
 0x5f4   : > { %v1781_v47 = vsel %vm1496_vm2, %v6241_v7, 0.0 }
 0x5f5   : > { %5224 = vpow2.f32 %v1761_v4  ;;  %v2279_v42 = vpop.f32.mrf.mxu2  ;;  %1782 = vadd.xlane.f32.xlu2 %v1781_v47 }
 0x5f6   : > { %v6255_v4 = vadd.f32 %v2279_v42, %v5939_v37 }
 0x5f8   : > { %v1814_v18 = vpop.permute.xlu1 %1813  ;;  %v1810_v43 = vpop.permute.xlu2 %1809  ;;  %v2301_v55 = vsel %vm1496_vm2, %v6255_v4, -inf }
 0x5f9   : > { %1835 = vmatpush.bf16.msrb.mxu1 %v1814_v18 }
 0x5fb   : > { %v6248_v57 = vpop.eup %5224  ;;  %v1812_v25 = vpop.permute.xlu0 %1811 }
 0x5fc   : > { %v1784_v3 = vsel %vm1496_vm2, %v6248_v57, 0.0 }
 0x5fd   : > { %1836 = vmatpush.bf16.msrb.mxu1 %v1812_v25  ;;  %v2282_v31 = vpop.f32.mrf.mxu2  ;;  %2296 = vmax.xlane.f32.xlu2 %v2295_v59 }
 0x5fe   : > { %1785 = vadd.xlane.f32.xlu0 %v1784_v3 }
 0x600   : > { %v1808_v30 = vpop.permute.xlu1 %1807  ;;  %v2121_v47 = vpop.permute.xlu2 %2120 }
 0x601   : > { %1837 = vmatpush.bf16.msrb.mxu1 %v1810_v43 }
 0x605   : > { %v2284_v18 = vpop.f32.mrf.mxu2  ;;  %2302 = vmax.xlane.f32.xlu2 %v2301_v55  ;;  %1838 = vmatpush.bf16.msrb.mxu1 %v1808_v30 }
 0x606   : > { %v6260_v16 = vadd.f32 %v2284_v18, %v5953_v53 }
 0x608   : > { %v2307_v25 = vsel %vm1496_vm2, %v6260_v16, -inf }
 0x609   : > { %2142 = vmatpush.bf16.msra.mxu1 %v2121_v47 }
 0x60d   : > { %2308 = vmax.xlane.f32.xlu2 %v2307_v25 }
 0x612   : > { %2118 = vrot.lane.b32.xlu0 %v5884_v54, %s7566_s20 }
 0x625   : > { %2116 = vrot.lane.b32.xlu2 %v5888_v12, %s7566_s20 }
 0x626   : > { %v2024_v37 = vpop.xlane.xlu0 %2023 }
 0x627   : > { %v2046_v42 = vsub.f32 %v6158_v52, %v2024_v37  ;;  %v6282_v52 = vadd.f32 %v6228_v5, %v5918_v27 }
 0x629   : > { %v2054_v3 = vmul.f32 1.442695, %v2046_v42  ;;  %v2292_v42 = vsel %vm1496_vm2, %v6282_v52, -inf }
 0x62b   : > { %v2027_v43 = vpop.xlane.xlu1 %2026 }
 0x62c   : > { %v2047_v59 = vsub.f32 %v6163_v62, %v2027_v43 }
 0x62e   : > { %v2056_v30 = vmul.f32 1.442695, %v2047_v59  ;;  %v6270_v53 = vpop.xlane.xlu0 %2029  ;;  %v6291_v59 = vadd.f32 %v2277_v33, %v5932_v34 }
 0x630   : > { %5226 = vpow2.f32 %v2056_v30  ;;  %v2298_v5 = vsel %vm1496_vm2, %v6291_v59, -inf  ;;  %v6296_v30 = vadd.f32 %v2282_v31, %v5946_v36 }
 0x631   : > { %5228 = vpow2.f32 %v2054_v3 }
 0x632   : > { %v2304_v34 = vsel %vm1496_vm2, %v6296_v30, -inf }
 0x636   : > { %v6272_v55 = vpop.eup %5226  ;;  %v6274_v47 = vpop.xlane.xlu0 %2035 }
 0x637   : > { %v2073_v18 = vsel %vm1496_vm2, %v6272_v55, 0.0  ;;  %v6278_v25 = vpop.eup %5228 }
 0x638   : > { %2074 = vadd.xlane.f32.xlu1 %v2073_v18  ;;  %v2070_v62 = vsel %vm1496_vm2, %v6278_v25, 0.0 }
 0x63c   : > { %2071 = vadd.xlane.f32.xlu0 %v2070_v62 }
 0x63e   : > { %v6286_v37 = vpop.xlane.xlu0 %2041 }
 0x640   : > { %2293 = vmax.xlane.f32.xlu1 %v2292_v42  ;;  %v1768_v43 = vpop.xlane.xlu2 %1767 }
 0x641   : > { %5230 = vrcp.f32 %v1768_v43 }
 0x646   : > { %v1765_v3 = vpop.xlane.xlu0 %1764 }
 0x647   : > { %5232 = vrcp.f32 %v1765_v3  ;;  %v5231_v27 = vpop.eup %5230 }
 0x648   : > { %2299 = vmax.xlane.f32.xlu1 %v2298_v5  ;;  %v1796_v62 = vmul.f32 %v5231_v27, %v6201_v0  ;;  %v1771_v3 = vpop.xlane.xlu2 %1770 }
 0x64d   : > { %v5233_v18 = vpop.eup %5232 }
 0x64e   : > { %v1795_v42 = vmul.f32 %v5233_v18, %v6210_v1 }
 0x650   : > { %v1803_v33 = vpack.c.bf16 %v1796_v62, %v1795_v42  ;;  %2305 = vmax.xlane.f32.xlu1 %v2304_v34  ;;  %v1774_v43 = vpop.xlane.xlu0 %1773 }
 0x651   : > { %5234 = vrcp.f32 %v1774_v43 }
 0x652   : > { %4847 = vmatmul.msk.bf16.vlgmr.msrb.gmra.mxu1 %vm1496_vm2, %v1803_v33  ;;  %5236 = vrcp.f32 %v1771_v3  ;;  %v2033_v33 = vpop.xlane.xlu1 %2032 }
 0x657   : > { %v5235_v5 = vpop.eup %5234 }
 0x658   : > { %v5237_v20 = vpop.eup %5236  ;;  %v1798_v36 = vmul.f32 %v5235_v5, %v6224_v50  ;;  %v1777_v0 = vpop.xlane.xlu2 %1776  ;;  %v2049_v5 = vsub.f32 %v6175_v26, %v2033_v33 }
 0x659   : > { %v1797_v31 = vmul.f32 %v5237_v20, %v6217_v15 }
 0x65a   : > { %v2039_v33 = vpop.xlane.xlu1 %2038 }
 0x65b   : > { %v1804_v1 = vpack.c.bf16 %v1798_v36, %v1797_v31 }
 0x660   : > { %v1780_v27 = vpop.xlane.xlu0 %1779 }
 0x661   : > { %5238 = vrcp.f32 %v1780_v27 }
 0x662   : > { %4848 = vmatmul.msk.bf16.gmra.mxu1 %vm1496_vm2, %v1804_v1  ;;  %5240 = vrcp.f32 %v1777_v0 }
 0x667   : > { %v5239_v62 = vpop.eup %5238 }
 0x668   : > { %v1783_v18 = vpop.xlane.xlu2 %1782  ;;  %v5241_v42 = vpop.eup %5240  ;;  %v1800_v34 = vmul.f32 %v5239_v62, %v6236_v8  ;;  %v2060_v8 = vmul.f32 1.442695, %v2049_v5 }
 0x669   : > { %2390 = vrot.lane.b32.xlu1 %v5878_v44, %s7564_s21  ;;  %v1799_v50 = vmul.f32 %v5241_v42, %v6231_v19 }
 0x66b   : > { %v1805_v15 = vpack.c.bf16 %v1800_v34, %v1799_v50 }
 0x670   : > { %v2297_v20 = vpop.xlane.xlu2 %2296 }
 0x671   : > { %v1786_v43 = vpop.xlane.xlu0 %1785  ;;  %v2317_v3 = vsub.f32 %v6246_v9, %v2297_v20  ;;  %2114 = vrot.lane.b32.xlu1 %v5895_v29, %s7566_s20  ;;  %v2287_v20 = vpop.f32.mrf.mxu2  ;;  %s4764_s20 = sshll.u32 %s4753_s19, 3 }
 0x672   : > { %4849 = vmatmul.msk.bf16.gmra.mxu1 %vm1496_vm2, %v1805_v15  ;;  %5242 = vrcp.f32 %v1786_v43  ;;  %v6338_v15 = vadd.f32 %v2287_v20, %v5960_v60  ;;  %v2048_v60 = vsub.f32 %v6168_v39, %v6270_v53  ;;  %p521_p4 = scmp.lt.s32.totalorder %s4764_s20, 15 }
 0x673   : > { %v2326_v44 = vmul.f32 1.442695, %v2317_v3  ;;  %5244 = vrcp.f32 %v1783_v18 }
 0x674   : > { %v2310_v43 = vsel %vm1496_vm2, %v6338_v15, -inf  ;;  %s7595_s20 = smov (!%p521_p4, %s4764_s20), 15 }
 0x675   : > { %5246 = vpow2.f32 %v2326_v44  ;;  %s4765_s30 = sshll.u32 %s7595_s20, 3 }
 0x676   : > { %5248 = vpow2.f32 %v2060_v8  ;;  %s6780_s22 = scalar_lea.vmem %s7553_s15, %s4765_s30  ;;  %s5524_s30 = smov 32  }
 0x678   : > { %v2303_v36 = vpop.xlane.xlu2 %2302  ;;  %v5243_v19 = vpop.eup %5242 }
 0x679   : > { %2388 = vrot.lane.b32.xlu1 %v5884_v54, %s7564_s21  ;;  %v5245_v31 = vpop.eup %5244  ;;  %v2319_v9 = vsub.f32 %v6255_v4, %v2303_v36  ;;  %v1802_v26 = vmul.f32 %v5243_v19, %v6248_v57  ;;  %v2289_v3 = vpop.f32.mrf.mxu2 }
 0x67a   : > { %v1801_v1 = vmul.f32 %v5245_v31, %v6241_v7  ;;  %v6343_v44 = vadd.f32 %v2289_v3, %v5967_v58  ;;  %v2058_v58 = vmul.f32 1.442695, %v2048_v60 }
 0x67b   : > { %v6317_v0 = vpop.eup %5246  ;;  %v2330_v18 = vmul.f32 1.442695, %v2319_v9  ;;  %v1399_v9 = vld [vmem:[%s7547_s9 + $0x4] sm:$0xf] }
 0x67c   : > { %v2343_v27 = vsel %vm1496_vm2, %v6317_v0, 0.0  ;;  %v1806_v42 = vpack.c.bf16 %v1802_v26, %v1801_v1  ;;  %v6326_v34 = vpop.eup %5248  ;;  %v2313_v8 = vsel %vm1496_vm2, %v6343_v44, -inf }
 0x67d   : > { %2344 = vadd.xlane.f32.xlu0 %v2343_v27  ;;  %5250 = vpow2.f32 %v2330_v18  ;;  %v2079_v4 = vsel %vm1496_vm2, %v6326_v34, 0.0  ;;  %v1878_v27 = vsel %vm1876_vm3, %v1399_v9, 0 }
 0x67e   : > { %1887 = vmatpush.bf16.msrb.mxu3 %v1878_v27 }
 0x680   : > { %v6324_v62 = vpop.xlane.xlu2 %2308 }
 0x681   : > { %2386 = vrot.lane.b32.xlu1 %v5888_v12, %s7564_s21  ;;  %v2045_v12 = vpop.xlane.xlu1 %2044 }
 0x682   : > { %4850 = vmatmul.msk.bf16.gmra.mxu1 %vm1496_vm2, %v1806_v42  ;;  %v2053_v60 = vsub.f32 %v6204_v11, %v2045_v12 }
 0x683   : > { %v6333_v7 = vpop.eup %5250 }
 0x684   : > { %v2119_v54 = vpop.permute.xlu0 %2118  ;;  %v2349_v50 = vsel %vm1496_vm2, %v6333_v7, 0.0  ;;  %v2068_v27 = vmul.f32 1.442695, %v2053_v60 }
 0x685   : > { %2143 = vmatpush.bf16.msra.mxu1 %v2119_v54  ;;  %2080 = vadd.xlane.f32.xlu0 %v2079_v4  ;;  %v2051_v4 = vsub.f32 %v6189_v2, %v2039_v33 }
 0x687   : > { %v2064_v20 = vmul.f32 1.442695, %v2051_v4  ;;  %v2050_v4 = vsub.f32 %v6180_v51, %v6274_v47 }
 0x688   : > { %v2117_v57 = vpop.permute.xlu2 %2116 }
 0x689   : > { %2144 = vmatpush.bf16.msra.mxu1 %v2117_v57  ;;  %v2052_v57 = vsub.f32 %v6194_v10, %v6286_v37  ;;  %v2321_v10 = vsub.f32 %v6260_v16, %v6324_v62 }
 0x68d   : > { %2350 = vadd.xlane.f32.xlu0 %v2349_v50 }
 0x6ab   : > { %2311 = vmax.xlane.f32.xlu1 %v2310_v43  ;;  %v2075_v5 = vpop.xlane.xlu1 %2074  ;;  %v2066_v43 = vmul.f32 1.442695, %v2052_v57 }
 0x6b3   : > { %2314 = vmax.xlane.f32.xlu1 %v2313_v8  ;;  %v2294_v36 = vpop.xlane.xlu1 %2293  ;;  %v2334_v8 = vmul.f32 1.442695, %v2321_v10 }
 0x6b4   : > { %v2316_v19 = vsub.f32 %v6282_v52, %v2294_v36 }
 0x6b6   : > { %v2324_v31 = vmul.f32 1.442695, %v2316_v19  ;;  %v2072_v19 = vpop.xlane.xlu0 %2071 }
 0x6b8   : > { %5252 = vpow2.f32 %v2324_v31 }
 0x6b9   : > { %5254 = vpow2.f32 %v2058_v58 }
 0x6bb   : > { %v2300_v26 = vpop.xlane.xlu1 %2299 }
 0x6bc   : > { %v2318_v18 = vsub.f32 %v6291_v59, %v2300_v26 }
 0x6be   : > { %v6354_v1 = vpop.eup %5252  ;;  %v2328_v39 = vmul.f32 1.442695, %v2318_v18 }
 0x6bf   : > { %v2340_v52 = vsel %vm1496_vm2, %v6354_v1, 0.0  ;;  %v6359_v42 = vpop.eup %5254 }
 0x6c0   : > { %2341 = vadd.xlane.f32.xlu2 %v2340_v52  ;;  %5256 = vpow2.f32 %v2328_v39  ;;  %v2076_v59 = vsel %vm1496_vm2, %v6359_v42, 0.0 }
 0x6c3   : > { %v2306_v53 = vpop.xlane.xlu1 %2305 }
 0x6c4   : > { %v2320_v54 = vsub.f32 %v6296_v30, %v2306_v53 }
 0x6c6   : > { %v2332_v50 = vmul.f32 1.442695, %v2320_v54  ;;  %v6367_v3 = vpop.eup %5256 }
 0x6c7   : > { %v2346_v37 = vsel %vm1496_vm2, %v6367_v3, 0.0 }
 0x6c8   : > { %5258 = vpow2.f32 %v2332_v50  ;;  %2077 = vadd.xlane.f32.xlu2 %v2076_v59 }
 0x6c9   : > { %5260 = vpow2.f32 %v2064_v20  ;;  %v2062_v20 = vmul.f32 1.442695, %v2050_v4 }
 0x6ca   : > { %5262 = vpow2.f32 %v2066_v43 }
 0x6cb   : > { %5264 = vpow2.f32 %v2334_v8 }
 0x6cc   : > { %2384 = vrot.lane.b32.xlu1 %v5895_v29, %s7564_s21  ;;  %5266 = vrcp.f32 %v2072_v19 }
 0x6cd   : > { %5268 = vrcp.f32 %v2075_v5 }
 0x6ce   : > { %v6371_v30 = vpop.eup %5258  ;;  %5270 = vpow2.f32 %v2068_v27 }
 0x6cf   : > { %v1840_v2 = vpop.f32.mrf.mxu1  ;;  %v2352_v33 = vsel %vm1496_vm2, %v6371_v30, 0.0  ;;  %v6379_v36 = vpop.eup %5260  ;;  %5272 = vpow2.f32 %v2062_v20 }
 0x6d0   : > { %2347 = vadd.xlane.f32.xlu2 %v2346_v37  ;;  %2353 = vadd.xlane.f32.xlu0 %v2352_v33  ;;  %v6381_v29 = vpop.eup %5262  ;;  %v2085_v16 = vsel %vm1496_vm2, %v6379_v36, 0.0 }
 0x6d1   : > { %v2088_v62 = vsel %vm1496_vm2, %v6381_v29, 0.0  ;;  %v6389_v26 = vpop.eup %5264 }
 0x6d2   : > { %v5267_v11 = vpop.eup %5266  ;;  %v2355_v18 = vsel %vm1496_vm2, %v6389_v26, 0.0 }
 0x6d3   : > { %v5269_v52 = vpop.eup %5268  ;;  %v2102_v39 = vmul.f32 %v5267_v11, %v6278_v25 }
 0x6d4   : > { %v2103_v53 = vmul.f32 %v5269_v52, %v6272_v55  ;;  %v6395_v5 = vpop.eup %5270 }
 0x6d5   : > { %v2091_v59 = vsel %vm1496_vm2, %v6395_v5, 0.0  ;;  %v6403_v10 = vpop.eup %5272 }
 0x6d6   : > { %v2110_v57 = vpack.c.bf16 %v2103_v53, %v2102_v39  ;;  %v2082_v47 = vsel %vm1496_vm2, %v6403_v10, 0.0 }
 0x6d7   : > { %v1842_v31 = vpop.f32.mrf.mxu1 }
 0x6d8   : > { %v1860_v9 = vpack.c.bf16 %v1842_v31, %v1840_v2  ;;  %2086 = vadd.xlane.f32.xlu2 %v2085_v16  ;;  %2089 = vadd.xlane.f32.xlu0 %v2088_v62 }
 0x6da   : > { %4851 = vmatmul.msk.bf16.vlgmr.msrb.gmra.mxu3 %vm1442_vm1, %v1860_v9 }
 0x6db   : > { %v2391_v58 = vpop.permute.xlu1 %2390 }
 0x6dc   : > { %2412 = vmatpush.bf16.msra.mxu0 %v2391_v58 }
 0x6df   : > { %v1845_v12 = vpop.f32.mrf.mxu1 }
 0x6e0   : > { %2356 = vadd.xlane.f32.xlu2 %v2355_v18 }
 0x6e3   : > { %v2115_v54 = vpop.permute.xlu1 %2114 }
 0x6e4   : > { %2145 = vmatpush.bf16.msra.mxu1 %v2115_v54 }
 0x6e7   : > { %v1847_v50 = vpop.f32.mrf.mxu1  ;;  %4863 = vmatmul.msk.bf16.vlgmr.msra.gmra.mxu1 %vm1496_vm2, %v2110_v57 }
 0x6e8   : > { %v1861_v43 = vpack.c.bf16 %v1847_v50, %v1845_v12  ;;  %2092 = vadd.xlane.f32.xlu2 %v2091_v59 }
 0x6ea   : > { %4852 = vmatmul.msk.bf16.gmra.mxu3 %vm1442_vm1, %v1861_v43 }
 0x6eb   : > { %v2389_v55 = vpop.permute.xlu1 %2388 }
 0x6ec   : > { %2413 = vmatpush.bf16.msra.mxu0 %v2389_v55 }
 0x6ef   : > { %v1850_v25 = vpop.f32.mrf.mxu1 }
 0x6f0   : > { %v2345_v12 = vpop.xlane.xlu0 %2344 }
 0x6f3   : > { %v2387_v51 = vpop.permute.xlu1 %2386 }
 0x6f4   : > { %2414 = vmatpush.bf16.msra.mxu0 %v2387_v51 }
 0x6f6   : > { %2083 = vadd.xlane.f32.xlu1 %v2082_v47 }
 0x6f7   : > { %v1852_v2 = vpop.f32.mrf.mxu1 }
 0x6f8   : > { %v1862_v37 = vpack.c.bf16 %v1852_v2, %v1850_v25  ;;  %v2081_v52 = vpop.xlane.xlu0 %2080 }
 0x6fa   : > { %4853 = vmatmul.msk.bf16.gmra.mxu3 %vm1442_vm1, %v1862_v37 }
 0x6ff   : > { %v1855_v33 = vpop.f32.mrf.mxu1 }
 0x700   : > { %v2351_v20 = vpop.xlane.xlu0 %2350 }
 0x707   : > { %v1857_v8 = vpop.f32.mrf.mxu1 }
 0x708   : > { %v1863_v19 = vpack.c.bf16 %v1857_v8, %v1855_v33 }
 0x70a   : > { %4854 = vmatmul.msk.bf16.gmra.mxu3 %vm1442_vm1, %v1863_v19 }
 0x70f   : > { %3031 = vrot.lane.b32.xlu1 %v5817_v24, %s5516_s26 }
 0x71e   : > { %v2312_v60 = vpop.xlane.xlu1 %2311 }
 0x71f   : > { %v2322_v31 = vsub.f32 %v6338_v15, %v2312_v60 }
 0x721   : > { %v2336_v16 = vmul.f32 1.442695, %v2322_v31 }
 0x723   : > { %5274 = vpow2.f32 %v2336_v16 }
 0x726   : > { %v2315_v62 = vpop.xlane.xlu1 %2314 }
 0x727   : > { %v2323_v9 = vsub.f32 %v6343_v44, %v2315_v62 }
 0x729   : > { %v6413_v27 = vpop.eup %5274  ;;  %v2338_v58 = vmul.f32 1.442695, %v2323_v9 }
 0x72a   : > { %v2358_v11 = vsel %vm1496_vm2, %v6413_v27, 0.0 }
 0x72b   : > { %5276 = vpow2.f32 %v2338_v58  ;;  %2359 = vadd.xlane.f32.xlu0 %v2358_v11 }
 0x731   : > { %v6417_v18 = vpop.eup %5276 }
 0x732   : > { %v2361_v24 = vsel %vm1496_vm2, %v6417_v18, 0.0 }
 0x733   : > { %2362 = vadd.xlane.f32.xlu2 %v2361_v24  ;;  %v2342_v15 = vpop.xlane.xlu2 %2341 }
 0x734   : > { %5278 = vrcp.f32 %v2342_v15 }
 0x735   : > { %5280 = vrcp.f32 %v2345_v12 }
 0x736   : > { %5282 = vrcp.f32 %v2081_v52 }
 0x73a   : > { %v5279_v44 = vpop.eup %5278 }
 0x73b   : > { %v5281_v39 = vpop.eup %5280  ;;  %v2078_v53 = vpop.xlane.xlu2 %2077  ;;  %v2372_v54 = vmul.f32 %v5279_v44, %v6354_v1 }
 0x73c   : > { %5284 = vrcp.f32 %v2078_v53  ;;  %v2373_v4 = vmul.f32 %v5281_v39, %v6317_v0  ;;  %v5283_v50 = vpop.eup %5282 }
 0x73d   : > { %v2105_v51 = vmul.f32 %v5283_v50, %v6326_v34  ;;  %5286 = vrcp.f32 %v2351_v20 }
 0x73e   : > { %v2385_v57 = vpop.permute.xlu1 %2384  ;;  %v2380_v59 = vpack.c.bf16 %v2373_v4, %v2372_v54  ;;  %v5099_v4 = vld [vmem:[%s7543_s5 + $0x18] sm:$0xff] }
 0x73f   : > { %2415 = vmatpush.bf16.msra.mxu0 %v2385_v57  ;;  %3027 = vrot.lane.b32.xlu0 %v5753_v48, %s5516_s26 }
 0x742   : > { %v5285_v43 = vpop.eup %5284  ;;  %4875 = vmatmul.msk.bf16.vlgmr.msra.gmra.mxu0 %vm1496_vm2, %v2380_v59 }
 0x743   : > { %v2348_v55 = vpop.xlane.xlu2 %2347  ;;  %v2104_v25 = vmul.f32 %v5285_v43, %v6359_v42  ;;  %v5287_v48 = vpop.eup %5286  ;;  %v1400_v42 = vld [vmem:[%s7547_s9 + $0x8] sm:$0xf]  ;;  %2982 = vmatpush.bf16.msrb.mxu0 %v5099_v4 }
 0x744   : > { %5288 = vrcp.f32 %v2348_v55  ;;  %v2184_v2 = vsel %vm1876_vm3, %v1400_v42, 0  ;;  %v2375_v37 = vmul.f32 %v5287_v48, %v6333_v7  ;;  %v2354_v33 = vpop.xlane.xlu0 %2353 }
 0x745   : > { %v2111_v1 = vpack.c.bf16 %v2105_v51, %v2104_v25  ;;  %2193 = vmatpush.bf16.msra.mxu3 %v2184_v2 }
 0x747   : > { %3033 = vrot.lane.b32.xlu0 %v5847_v49, %s5516_s26  ;;  %4864 = vmatmul.msk.bf16.gmra.mxu1 %vm1496_vm2, %v2111_v1 }
 0x74a   : > { %v5289_v0 = vpop.eup %5288 }
 0x74b   : > { %3029 = vrot.lane.b32.xlu2 %v5789_v32, %s5516_s26  ;;  %v2087_v47 = vpop.xlane.xlu2 %2086  ;;  %v2374_v34 = vmul.f32 %v5289_v0, %v6367_v3 }
 0x74d   : > { %v2381_v49 = vpack.c.bf16 %v2375_v37, %v2374_v34 }
 0x752   : > { %4876 = vmatmul.msk.bf16.gmra.mxu0 %vm1496_vm2, %v2381_v49 }
 0x753   : > { %v2357_v8 = vpop.xlane.xlu2 %2356 }
 0x754   : > { %5290 = vrcp.f32 %v2357_v8 }
 0x755   : > { %5292 = vrcp.f32 %v2354_v33 }
 0x756   : > { %5294 = vrcp.f32 %v2087_v47 }
 0x75a   : > { %v5291_v32 = vpop.eup %5290 }
 0x75b   : > { %v5293_v19 = vpop.eup %5292  ;;  %v2377_v60 = vmul.f32 %v5291_v32, %v6389_v26  ;;  %v2093_v26 = vpop.xlane.xlu2 %2092 }
 0x75c   : > { %v2376_v31 = vmul.f32 %v5293_v19, %v6371_v30  ;;  %v5295_v58 = vpop.eup %5294  ;;  %v2090_v30 = vpop.xlane.xlu0 %2089 }
 0x75d   : > { %v2107_v12 = vmul.f32 %v5295_v58, %v6379_v36  ;;  %v1401_v36 = vld [vmem:[%s7547_s9 + $0xc] sm:$0xf]  ;;  %v1889_v37 = vpop.f32.mrf.mxu3 }
 0x75e   : > { %v2382_v16 = vpack.c.bf16 %v2377_v60, %v2376_v31 }
 0x762   : > { %4877 = vmatmul.msk.bf16.gmra.mxu0 %vm1496_vm2, %v2382_v16 }
 0x764   : > { %v2147_v3 = vpop.f32.mrf.mxu1 }
 0x769   : > { %v2084_v62 = vpop.xlane.xlu1 %2083 }
 0x76a   : > { %5296 = vrcp.f32 %v2084_v62 }
 0x76b   : > { %5298 = vrcp.f32 %v2093_v26  ;;  %v1934_v26 = vadd.f32 %v6149_v35, %v1889_v37 }
 0x76c   : > { %v2149_v7 = vpop.f32.mrf.mxu1  ;;  %5300 = vrcp.f32 %v2090_v30  ;;  %v6492_v30 = vld [vmem:[%s7548_s10] ss:$0 sm:$0xff] }
 0x76d   : > { %v2167_v9 = vpack.c.bf16 %v2149_v7, %v2147_v3  ;;  %v5101_v3 = vld [vmem:[%s7545_s7 + $0x18] sm:$0xff] }
 0x76f   : > { %4867 = vmatmul.msk.bf16.vlgmr.msra.gmra.mxu3 %vm1442_vm1, %v2167_v9 }
 0x770   : > { %v5297_v11 = vpop.eup %5296 }
 0x771   : > { %v2106_v24 = vmul.f32 %v5297_v11, %v6403_v10  ;;  %v5299_v52 = vpop.eup %5298  ;;  %v2454_v10 = vsel %vm1876_vm3, %v1401_v36, 0 }
 0x772   : > { %v5301_v44 = vpop.eup %5300  ;;  %v2109_v39 = vmul.f32 %v5299_v52, %v6395_v5  ;;  %2463 = vmatpush.bf16.msrb.mxu1 %v2454_v10  ;;  %v5098_v5 = vld [vmem:[%s7543_s5 + $0x10] sm:$0xff] }
 0x773   : > { %v2112_v15 = vpack.c.bf16 %v2107_v12, %v2106_v24  ;;  %v2108_v53 = vmul.f32 %v5301_v44, %v6381_v29  ;;  %2983 = vmatpush.bf16.msrb.mxu0 %v5098_v5 }
 0x775   : > { %4865 = vmatmul.msk.bf16.gmra.mxu1 %vm1496_vm2, %v2112_v15  ;;  %v2113_v54 = vpack.c.bf16 %v2109_v39, %v2108_v53 }
 0x776   : > { %3065 = vmatpush.bf16.msra.mxu1 %v5101_v3 }
 0x785   : > { %4866 = vmatmul.msk.bf16.gmra.mxu1 %vm1496_vm2, %v2113_v54 }
 0x79e   : > { %v2360_v29 = vpop.xlane.xlu0 %2359 }
 0x79f   : > { %5302 = vrcp.f32 %v2360_v29 }
 0x7a5   : > { %v5303_v50 = vpop.eup %5302 }
 0x7a6   : > { %v2363_v57 = vpop.xlane.xlu2 %2362  ;;  %v2378_v20 = vmul.f32 %v5303_v50, %v6413_v27 }
 0x7a7   : > { %5304 = vrcp.f32 %v2363_v57 }
 0x7ad   : > { %v5305_v59 = vpop.eup %5304 }
 0x7ae   : > { %v2379_v43 = vmul.f32 %v5305_v59, %v6417_v18 }
 0x7b0   : > { %v2383_v55 = vpack.c.bf16 %v2379_v43, %v2378_v20 }
 0x7b1   : > { %v3028_v39 = vpop.permute.xlu0 %3027 }
 0x7b2   : > { %4878 = vmatmul.msk.bf16.gmra.mxu0 %vm1496_vm2, %v2383_v55 }
 0x7bf   : > { %v2417_v25 = vpop.f32.mrf.mxu0 }
 0x7c2   : > { %4940 = vmatmul.msk.bf16.vlgmr.msrb.gmra.mxu0 %vm575_vm0, %v5821_v46 }
 0x7c4   : > { %v2152_v51 = vpop.f32.mrf.mxu1 }
 0x7c7   : > { %v2419_v1 = vpop.f32.mrf.mxu0 }
 0x7c8   : > { %v2437_v48 = vpack.c.bf16 %v2419_v1, %v2417_v25  ;;  %v3030_v25 = vpop.permute.xlu2 %3029 }
 0x7ca   : > { %4879 = vmatmul.msk.bf16.vlgmr.msrb.gmra.mxu1 %vm1442_vm1, %v2437_v48 }
 0x7cc   : > { %v2154_v0 = vpop.f32.mrf.mxu1 }
 0x7cd   : > { %v2168_v47 = vpack.c.bf16 %v2154_v0, %v2152_v51 }
 0x7cf   : > { %4868 = vmatmul.msk.bf16.gmra.mxu3 %vm1442_vm1, %v2168_v47  ;;  %v2422_v42 = vpop.f32.mrf.mxu0 }
 0x7d2   : > { %4941 = vmatmul.msk.bf16.gmra.mxu0 %vm575_vm0, %v5813_v23  ;;  %v1891_v23 = vpop.f32.mrf.mxu3 }
 0x7d3   : > { %v1936_v36 = vadd.f32 %v6153_v41, %v1891_v23 }
 0x7d7   : > { %v2424_v27 = vpop.f32.mrf.mxu0 }
 0x7d8   : > { %v2438_v18 = vpack.c.bf16 %v2424_v27, %v2422_v42 }
 0x7da   : > { %4880 = vmatmul.msk.bf16.gmra.mxu1 %vm1442_vm1, %v2438_v18  ;;  %v1894_v19 = vpop.f32.mrf.mxu3 }
 0x7db   : > { %v1939_v59 = vadd.f32 %v6155_v56, %v1894_v19 }
 0x7df   : > { %v2427_v34 = vpop.f32.mrf.mxu0 }
 0x7e2   : > { %4942 = vmatmul.msk.bf16.gmra.mxu0 %vm575_vm0, %v5861_v13  ;;  %v1896_v13 = vpop.f32.mrf.mxu3 }
 0x7e3   : > { %v1941_v48 = vadd.f32 %v6165_v28, %v1896_v13  ;;  %v3032_v28 = vpop.permute.xlu1 %3031 }
 0x7e7   : > { %v2429_v46 = vpop.f32.mrf.mxu0 }
 0x7e8   : > { %v2439_v2 = vpack.c.bf16 %v2429_v46, %v2427_v34 }
 0x7ea   : > { %4881 = vmatmul.msk.bf16.gmra.mxu1 %vm1442_vm1, %v2439_v2  ;;  %v1899_v16 = vpop.f32.mrf.mxu3 }
 0x7eb   : > { %v1944_v46 = vadd.f32 %v6177_v17, %v1899_v16 }
 0x7f2   : > { %v2157_v49 = vpop.f32.mrf.mxu1  ;;  %4943 = vmatmul.msk.bf16.gmra.mxu0 %vm575_vm0, %v5865_v14  ;;  %v1901_v62 = vpop.f32.mrf.mxu3  ;;  %v5100_v14 = vld [vmem:[%s7545_s7 + $0x10] sm:$0xff] }
 0x7f3   : > { %3066 = vmatpush.bf16.msra.mxu1 %v5100_v14 }
 0x7fa   : > { %v2159_v33 = vpop.f32.mrf.mxu1  ;;  %v6483_v7 = vpop.f32.mrf.mxu3 }
 0x7fb   : > { %v2169_v8 = vpack.c.bf16 %v2159_v33, %v2157_v49 }
 0x7fd   : > { %4869 = vmatmul.msk.bf16.gmra.mxu3 %vm1442_vm1, %v2169_v8 }
 0x802   : > { %v2162_v32 = vpop.f32.mrf.mxu1  ;;  %v6485_v11 = vpop.f32.mrf.mxu3 }
 0x80a   : > { %v2164_v60 = vpop.f32.mrf.mxu1  ;;  %v2195_v24 = vpop.f32.mrf.mxu3 }
 0x80b   : > { %v2170_v31 = vpack.c.bf16 %v2164_v60, %v2162_v32  ;;  %v2215_v15 = vadd.f32 %v2195_v24, %v1934_v26 }
 0x80d   : > { %4870 = vmatmul.msk.bf16.gmra.mxu3 %vm1442_vm1, %v2170_v31 }
 0x812   : > { %v2197_v53 = vpop.f32.mrf.mxu3 }
 0x813   : > { %v2216_v35 = vadd.f32 %v2197_v53, %v1936_v36 }
 0x82f   : > { %v2432_v9 = vpop.f32.mrf.mxu0 }
 0x837   : > { %v2434_v58 = vpop.f32.mrf.mxu0 }
 0x838   : > { %v2440_v12 = vpack.c.bf16 %v2434_v58, %v2432_v9  ;;  %v1949_v9 = vadd.f32 %v6208_v6, %v6483_v7  ;;  %v7580_v6 = vld [vmem:[#allocation12_spill] sm:$0xff] }
 0x839   : > { %v1951_v7 = vadd.f32 %v7580_v6, %v6485_v11 }
 0x83a   : > { %4882 = vmatmul.msk.bf16.gmra.mxu1 %vm1442_vm1, %v2440_v12 }
 0x847   : > { %v2465_v52 = vpop.f32.mrf.mxu1 }
 0x848   : > { %v2485_v44 = vadd.f32 %v2465_v52, %v2215_v15  ;;  %v7579_v52 = vld [vmem:[#allocation6_spill] sm:$0xff] }
 0x84a   : > { %v2497_v54 = vadd.f32 %v6492_v30, %v2485_v44  ;;  %4957 = vmatmul.msk.bf16.vlgmr.msra.gmra.mxu1 %vm575_vm0, %v3028_v39 }
 0x84c   : > { %v6498_v10 = vadd.f32 %v2497_v54, %v5741_v38 }
 0x84e   : > { %v2513_v4 = vsel %vm575_vm0, %v6498_v10, 0.0 }
 0x84f   : > { %2514 = vadd.xlane.f32.xlu0 %v2513_v4  ;;  %v2467_v5 = vpop.f32.mrf.mxu1 }
 0x850   : > { %v2486_v29 = vadd.f32 %v2467_v5, %v2216_v35 }
 0x852   : > { %v2498_v57 = vadd.f32 %v6492_v30, %v2486_v29  ;;  %v2200_v50 = vpop.f32.mrf.mxu3 }
 0x853   : > { %v2217_v43 = vadd.f32 %v2200_v50, %v1939_v59 }
 0x854   : > { %v6505_v20 = vadd.f32 %v2498_v57, %v5743_v40 }
 0x856   : > { %v2516_v38 = vsel %vm575_vm0, %v6505_v20, 0.0 }
 0x857   : > { %2517 = vadd.xlane.f32.xlu2 %v2516_v38  ;;  %v2470_v41 = vpop.f32.mrf.mxu1 }
 0x858   : > { %v2487_v55 = vadd.f32 %v2470_v41, %v2217_v43 }
 0x85a   : > { %v2499_v51 = vadd.f32 %v6492_v30, %v2487_v55  ;;  %4958 = vmatmul.msk.bf16.gmra.mxu1 %vm575_vm0, %v3030_v25  ;;  %v2202_v1 = vpop.f32.mrf.mxu3 }
 0x85b   : > { %v2218_v40 = vadd.f32 %v2202_v1, %v1941_v48 }
 0x85c   : > { %v6513_v56 = vadd.f32 %v2499_v51, %v5782_v21  ;;  %v3034_v21 = vpop.permute.xlu0 %3033  ;;  %v7581_v51 = vld [vmem:[#allocation7_spill] sm:$0xff] }
 0x85e   : > { %v2519_v0 = vsel %vm575_vm0, %v6513_v56, 0.0 }
 0x85f   : > { %2520 = vadd.xlane.f32.xlu1 %v2519_v0  ;;  %v2472_v47 = vpop.f32.mrf.mxu1 }
 0x860   : > { %v2488_v42 = vadd.f32 %v2472_v47, %v2218_v40 }
 0x862   : > { %v2500_v27 = vadd.f32 %v6492_v30, %v2488_v42 }
 0x864   : > { %v6519_v18 = vadd.f32 %v2500_v27, %v5785_v22  ;;  %v1946_v22 = vadd.f32 %v6191_v45, %v1901_v62  ;;  %v5523_v45 = vmov 32.0  }
 0x865   : > { %5306 = vrcp.f32 %v5523_v45 }
 0x866   : > { %v2522_v34 = vsel %vm575_vm0, %v6519_v18, 0.0 }
 0x867   : > { %2523 = vadd.xlane.f32.xlu0 %v2522_v34  ;;  %v2475_v2 = vpop.f32.mrf.mxu1 }
 0x86a   : > { %4959 = vmatmul.msk.bf16.gmra.mxu1 %vm575_vm0, %v3032_v28 }
 0x86f   : > { %v2477_v31 = vpop.f32.mrf.mxu1 }
 0x87a   : > { %4960 = vmatmul.msk.bf16.gmra.mxu1 %vm575_vm0, %v3034_v21 }
 0x880   : > { %v2205_v37 = vpop.f32.mrf.mxu3 }
 0x881   : > { %v2219_v49 = vadd.f32 %v2205_v37, %v1944_v46 }
 0x883   : > { %v2489_v33 = vadd.f32 %v2475_v2, %v2219_v49 }
 0x885   : > { %v2501_v8 = vadd.f32 %v6492_v30, %v2489_v33 }
 0x887   : > { %v6529_v23 = vadd.f32 %v2501_v8, %v5796_v61  ;;  %v5307_v61 = vpop.eup %5306 }
 0x888   : > { %v2207_v32 = vpop.f32.mrf.mxu3  ;;  %v2538_v62 = vmul.f32 32.0, %v5307_v61  ;;  %vm2542_vm4 = vweird.f32 %v5307_v61 }
 0x889   : > { %v2220_v19 = vadd.f32 %v2207_v32, %v1946_v22  ;;  %v2525_v60 = vsel %vm575_vm0, %v6529_v23, 0.0  ;;  %v5089_v22 = vld [vmem:[%s7549_s11 + $0x8] sm:$0xff] }
 0x88a   : > { %2526 = vadd.xlane.f32.xlu2 %v2525_v60  ;;  %v2539_v58 = vsub.f32 1.0, %v2538_v62  ;;  %2738 = vmatpush.bf16.msrb.mxu3 %v5089_v22 }
 0x88b   : > { %v2490_v13 = vadd.f32 %v2477_v31, %v2220_v19  ;;  %v5088_v19 = vld [vmem:[%s7549_s11] sm:$0xff] }
 0x88c   : > { %v2540_v15 = vmul.f32 %v5307_v61, %v2539_v58 }
 0x88d   : > { %v2502_v17 = vadd.f32 %v6492_v30, %v2490_v13  ;;  %v5140_v13 = vld [vmem:[%s7546_s8 + $0x1] ss:$0 sm:$0xff] }
 0x88e   : > { %v2541_v39 = vadd.f32 %v5307_v61, %v2540_v15  ;;  %2739 = vmatpush.bf16.msrb.mxu3 %v5088_v19 }
 0x88f   : > { %v6535_v16 = vadd.f32 %v2502_v17, %v5799_v63 }
 0x890   : > { %v2210_v14 = vpop.f32.mrf.mxu3  ;;  %v6547_v35 = vsel %vm2542_vm4, %v5307_v61, %v2541_v39 }
 0x891   : > { %v2528_v3 = vsel %vm575_vm0, %v6535_v16, 0.0  ;;  %v2221_v12 = vadd.f32 %v2210_v14, %v1949_v9 }
 0x892   : > { %2529 = vadd.xlane.f32.xlu0 %v2528_v3 }
 0x898   : > { %v2212_v36 = vpop.f32.mrf.mxu3 }
 0x899   : > { %v2222_v5 = vadd.f32 %v2212_v36, %v1951_v7 }
 0x8b7   : > { %v2480_v24 = vpop.f32.mrf.mxu1 }
 0x8b8   : > { %v2491_v26 = vadd.f32 %v2480_v24, %v2221_v12 }
 0x8ba   : > { %v2503_v63 = vadd.f32 %v6492_v30, %v2491_v26 }
 0x8bc   : > { %v6543_v44 = vadd.f32 %v2503_v63, %v7579_v52 }
 0x8be   : > { %v2531_v53 = vsel %vm575_vm0, %v6543_v44, 0.0 }
 0x8bf   : > { %2532 = vadd.xlane.f32.xlu0 %v2531_v53  ;;  %v2482_v54 = vpop.f32.mrf.mxu1 }
 0x8c0   : > { %v2492_v57 = vadd.f32 %v2482_v54, %v2222_v5 }
 0x8c2   : > { %v2515_v4 = vpop.xlane.xlu0 %2514  ;;  %v2504_v38 = vadd.f32 %v6492_v30, %v2492_v57 }
 0x8c3   : > { %v2544_v29 = vmul.f32 %v6547_v35, %v2515_v4 }
 0x8c4   : > { %v6566_v1 = vadd.f32 %v2504_v38, %v7581_v51 }
 0x8c5   : > { %v6553_v50 = vsub.f32 %v6498_v10, %v2544_v29 }
 0x8c6   : > { %v2534_v0 = vsel %vm575_vm0, %v6566_v1, 0.0 }
 0x8c7   : > { %v6555_v59 = vpop.f32.mrf.mxu1  ;;  %v2560_v43 = vmul.f32 %v6553_v50, %v6553_v50 }
 0x8c9   : > { %v2568_v41 = vsel %vm575_vm0, %v2560_v43, 0.0 }
 0x8ca   : > { %2569 = vadd.xlane.f32.xlu2 %v2568_v41  ;;  %v2518_v55 = vpop.xlane.xlu2 %2517 }
 0x8cb   : > { %v2545_v11 = vmul.f32 %v6547_v35, %v2518_v55 }
 0x8cd   : > { %v6563_v25 = vsub.f32 %v6505_v20, %v2545_v11 }
 0x8cf   : > { %v3070_v48 = vpop.f32.mrf.mxu1  ;;  %v2561_v40 = vmul.f32 %v6563_v25, %v6563_v25 }
 0x8d1   : > { %v2571_v30 = vsel %vm575_vm0, %v2561_v40, 0.0  ;;  %v3071_v40 = vadd.f32 %v5140_v13, %v3070_v48 }
 0x8d2   : > { %v2521_v47 = vpop.xlane.xlu1 %2520  ;;  %2535 = vadd.xlane.f32.xlu2 %v2534_v0  ;;  %2572 = vadd.xlane.f32.xlu1 %v2571_v30 }
 0x8d3   : > { %v2546_v42 = vmul.f32 %v6547_v35, %v2521_v47  ;;  %v3069_v47 = vadd.f32 %v5140_v13, %v6555_v59 }
 0x8d5   : > { %v6575_v27 = vsub.f32 %v6513_v56, %v2546_v42 }
 0x8d7   : > { %v3073_v34 = vpop.f32.mrf.mxu1  ;;  %v2562_v28 = vmul.f32 %v6575_v27, %v6575_v27 }
 0x8d8   : > { %v3074_v57 = vadd.f32 %v5140_v13, %v3073_v34  ;;  %v3089_v34 = vpack.c.bf16 %v3071_v40, %v3071_v40 }
 0x8d9   : > { %v2574_v21 = vsel %vm575_vm0, %v2562_v28, 0.0 }
 0x8da   : > { %v2524_v46 = vpop.xlane.xlu0 %2523  ;;  %2575 = vadd.xlane.f32.xlu1 %v2574_v21  ;;  %v3090_v51 = vpack.c.bf16 %v3074_v57, %v3074_v57  ;;  %v3088_v21 = vpack.c.bf16 %v3069_v47, %v3069_v47 }
 0x8db   : > { %v2547_v2 = vmul.f32 %v6547_v35, %v2524_v46  ;;  %v3130_v46 = vunpack.c.l.b16 %v3089_v34 }
 0x8dc   : > { %v3131_v42 = vunpack.c.l.b16 %v3090_v51 }
 0x8dd   : > { %v6582_v37 = vsub.f32 %v6519_v18, %v2547_v2 }
 0x8df   : > { %v3075_v49 = vpop.f32.mrf.mxu1  ;;  %v2563_v33 = vmul.f32 %v6582_v37, %v6582_v37 }
 0x8e0   : > { %v3076_v7 = vadd.f32 %v5140_v13, %v3075_v49  ;;  %v3129_v49 = vunpack.c.l.b16 %v3088_v21 }
 0x8e1   : > { %v2577_v8 = vsel %vm575_vm0, %v2563_v33, 0.0 }
 0x8e2   : > { %2578 = vadd.xlane.f32.xlu0 %v2577_v8  ;;  %v3091_v41 = vpack.c.bf16 %v3076_v7, %v3076_v7  ;;  %v6623_v33 = vpack.c.b16 %v3130_v46, %v3129_v49 }
 0x8e4   : > { %v3132_v0 = vunpack.c.l.b16 %v3091_v41  ;;  %v3154_v48 = vsel %vm1442_vm1, %v6623_v33, 0 }
 0x8e6   : > { %v6619_v28 = vpack.c.b16 %v3132_v0, %v3131_v42 }
 0x8e7   : > { %v3078_v32 = vpop.f32.mrf.mxu1 }
 0x8e8   : > { %v3079_v12 = vadd.f32 %v5140_v13, %v3078_v32  ;;  %v3157_v2 = vsel %vm1442_vm1, %v6619_v28, 0 }
 0x8ea   : > { %v3092_v54 = vpack.c.bf16 %v3079_v12, %v3079_v12 }
 0x8ec   : > { %v3133_v43 = vunpack.c.l.b16 %v3092_v54 }
 0x8ef   : > { %v3080_v60 = vpop.f32.mrf.mxu1 }
 0x8f0   : > { %v3081_v62 = vadd.f32 %v5140_v13, %v3080_v60 }
 0x8f2   : > { %v3093_v15 = vpack.c.bf16 %v3081_v62, %v3081_v62 }
 0x8f4   : > { %v3134_v4 = vunpack.c.l.b16 %v3093_v15 }
 0x8f6   : > { %v6613_v55 = vpack.c.b16 %v3134_v4, %v3133_v43 }
 0x8f7   : > { %v3083_v31 = vpop.f32.mrf.mxu1 }
 0x8f8   : > { %v3084_v17 = vadd.f32 %v5140_v13, %v3083_v31  ;;  %v3160_v30 = vsel %vm1442_vm1, %v6613_v55, 0 }
 0x8fa   : > { %v3094_v14 = vpack.c.bf16 %v3084_v17, %v3084_v17 }
 0x8fc   : > { %v3135_v63 = vunpack.c.l.b16 %v3094_v14 }
 0x8fd   : > { %v2527_v3 = vpop.xlane.xlu2 %2526 }
 0x8fe   : > { %v2548_v45 = vmul.f32 %v6547_v35, %v2527_v3 }
 0x8ff   : > { %v3085_v61 = vpop.f32.mrf.mxu1 }
 0x900   : > { %v6598_v9 = vsub.f32 %v6529_v23, %v2548_v45  ;;  %v3086_v58 = vadd.f32 %v5140_v13, %v3085_v61 }
 0x902   : > { %v3095_v24 = vpack.c.bf16 %v3086_v58, %v3086_v58  ;;  %v2564_v26 = vmul.f32 %v6598_v9, %v6598_v9 }
 0x904   : > { %v3136_v52 = vunpack.c.l.b16 %v3095_v24  ;;  %v2580_v39 = vsel %vm575_vm0, %v2564_v26, 0.0 }
 0x905   : > { %v2530_v53 = vpop.xlane.xlu0 %2529  ;;  %2581 = vadd.xlane.f32.xlu2 %v2580_v39 }
 0x906   : > { %v6603_v36 = vpack.c.b16 %v3136_v52, %v3135_v63  ;;  %v2549_v6 = vmul.f32 %v6547_v35, %v2530_v53 }
 0x908   : > { %v6607_v5 = vsub.f32 %v6535_v16, %v2549_v6  ;;  %v3163_v29 = vsel %vm1442_vm1, %v6603_v36, 0 }
 0x909   : > { %3169 = vmatpush.bf16.xpose.msra.mxu3 %v3163_v29 }
 0x90a   : > { %v2565_v38 = vmul.f32 %v6607_v5, %v6607_v5 }
 0x90c   : > { %v2583_v11 = vsel %vm575_vm0, %v2565_v38, 0.0 }
 0x90d   : > { %2584 = vadd.xlane.f32.xlu1 %v2583_v11 }
 0x911   : > { %3170 = vmatpush.bf16.xpose.msra.mxu3 %v3160_v30 }
 0x919   : > { %3171 = vmatpush.bf16.xpose.msra.mxu3 %v3157_v2 }
 0x921   : > { %3172 = vmatpush.bf16.xpose.msra.mxu3 %v3154_v48 }
 0x932   : > { %v2533_v8 = vpop.xlane.xlu0 %2532 }
 0x933   : > { %v2550_v59 = vmul.f32 %v6547_v35, %v2533_v8 }
 0x935   : > { %v6629_v22 = vsub.f32 %v6543_v44, %v2550_v59 }
 0x937   : > { %v2566_v32 = vmul.f32 %v6629_v22, %v6629_v22 }
 0x939   : > { %v2586_v19 = vsel %vm575_vm0, %v2566_v32, 0.0 }
 0x93a   : > { %2587 = vadd.xlane.f32.xlu0 %v2586_v19 }
 0x93d   : > { %v2570_v60 = vpop.xlane.xlu2 %2569 }
 0x93e   : > { %v2592_v31 = vmul.f32 %v2570_v60, %v6547_v35 }
 0x940   : > { %v2600_v13 = vadd.f32 1e-05, %v2592_v31 }
 0x942   : > { %5308 = vrsqrt.f32 %v2600_v13  ;;  %vm2614_vm6 = vweird.f32 %v2600_v13 }
 0x945   : > { %v2573_v17 = vpop.xlane.xlu1 %2572  ;;  %v2536_v3 = vpop.xlane.xlu2 %2535 }
 0x946   : > { %v2593_v45 = vmul.f32 %v2573_v17, %v6547_v35  ;;  %v2551_v61 = vmul.f32 %v6547_v35, %v2536_v3 }
 0x948   : > { %v5309_v62 = vpop.eup %5308  ;;  %v2601_v14 = vadd.f32 1e-05, %v2593_v45  ;;  %v6638_v58 = vsub.f32 %v6566_v1, %v2551_v61 }
 0x949   : > { %v2609_v12 = vmul.f32 %v5309_v62, %v2600_v13  ;;  %vm2615_vm5 = vweird.f32 %v5309_v62 }
 0x94a   : > { %5310 = vrsqrt.f32 %v2601_v14  ;;  %v2567_v24 = vmul.f32 %v6638_v58, %v6638_v58  ;;  %vm2616_vm8 = vmor %vm2614_vm6, %vm2615_vm5  ;;  %vm2624_vm9 = vweird.f32 %v2601_v14 }
 0x94b   : > { %v2610_v26 = vmul.f32 %v5309_v62, %v2609_v12 }
 0x94c   : > { %v2589_v15 = vsel %vm575_vm0, %v2567_v24, 0.0 }
 0x94d   : > { %v2611_v63 = vmul.f32 0.5, %v2610_v26  ;;  %v2576_v52 = vpop.xlane.xlu1 %2575  ;;  %2590 = vadd.xlane.f32.xlu2 %v2589_v15 }
 0x94e   : > { %v2594_v39 = vmul.f32 %v2576_v52, %v6547_v35 }
 0x94f   : > { %v2612_v6 = vsub.f32 1.5, %v2611_v63 }
 0x950   : > { %v5311_v53 = vpop.eup %5310  ;;  %v2602_v54 = vadd.f32 1e-05, %v2594_v39 }
 0x951   : > { %v2619_v7 = vmul.f32 %v5311_v53, %v2601_v14  ;;  %v2613_v29 = vmul.f32 %v5309_v62, %v2612_v6  ;;  %vm2625_vm7 = vweird.f32 %v5311_v53  ;;  %v5097_v14 = vld [vmem:[%s7551_s13 + $0x38] sm:$0xff]  ;;  %v5096_v6 = vld [vmem:[%s7551_s13 + $0x30] sm:$0xff] }
 0x952   : > { %5312 = vrsqrt.f32 %v2602_v54  ;;  %vm2626_vm10 = vmor %vm2624_vm9, %vm2625_vm7  ;;  %vm2634_vm12 = vweird.f32 %v2602_v54  ;;  %2905 = vmatpush.bf16.msrb.mxu2 %v5097_v14 }
 0x953   : > { %v2620_v4 = vmul.f32 %v5311_v53, %v2619_v7  ;;  %v2617_v40 = vsel %vm2616_vm8, %v5309_v62, %v2613_v29 }
 0x954   : > { %v2688_v34 = vmul.f32 %v2617_v40, %v6553_v50  ;;  %v5094_v40 = vld [vmem:[%s7551_s13 + $0x20] sm:$0xff] }
 0x955   : > { %v2621_v57 = vmul.f32 0.5, %v2620_v4  ;;  %v2579_v43 = vpop.xlane.xlu0 %2578 }
 0x956   : > { %v2595_v38 = vmul.f32 %v2579_v43, %v6547_v35  ;;  %2906 = vmatpush.bf16.msrb.mxu2 %v5096_v6 }
 0x957   : > { %v2622_v41 = vsub.f32 1.5, %v2621_v57  ;;  %v5095_v57 = vld [vmem:[%s7551_s13 + $0x28] sm:$0xff] }
 0x958   : > { %v5313_v11 = vpop.eup %5312  ;;  %v2603_v51 = vadd.f32 1e-05, %v2595_v38 }
 0x959   : > { %v2623_v0 = vmul.f32 %v5311_v53, %v2622_v41  ;;  %v2629_v30 = vmul.f32 %v5313_v11, %v2602_v54  ;;  %vm2635_vm11 = vweird.f32 %v5313_v11 }
 0x95a   : > { %5314 = vrsqrt.f32 %v2603_v51  ;;  %vm2636_vm14 = vmor %vm2634_vm12, %vm2635_vm11  ;;  %vm2644_vm15 = vweird.f32 %v2603_v51  ;;  %2907 = vmatpush.bf16.msrb.mxu2 %v5095_v57 }
 0x95b   : > { %v2627_v47 = vsel %vm2626_vm10, %v5311_v53, %v2623_v0  ;;  %v2630_v42 = vmul.f32 %v5313_v11, %v2629_v30  ;;  %v5093_v30 = vld [vmem:[%s7551_s13 + $0x18] sm:$0xff] }
 0x95c   : > { %v2689_v21 = vmul.f32 %v2627_v47, %v6563_v25  ;;  %v5092_v47 = vld [vmem:[%s7551_s13 + $0x10] sm:$0xff] }
 0x95d   : > { %v2631_v46 = vmul.f32 0.5, %v2630_v42 }
 0x95e   : > { %v2696_v2 = vpack.c.bf16 %v2689_v21, %v2688_v34  ;;  %2908 = vmatpush.bf16.msrb.mxu2 %v5094_v40 }
 0x95f   : > { %v2632_v48 = vsub.f32 1.5, %v2631_v46 }
 0x960   : > { %v5315_v49 = vpop.eup %5314  ;;  %4891 = vmatmul.msk.bf16.vlgmr.msrb.gmra.mxu3 %vm575_vm0, %v2696_v2 }
 0x961   : > { %v2639_v8 = vmul.f32 %v5315_v49, %v2603_v51  ;;  %v2633_v32 = vmul.f32 %v5313_v11, %v2632_v48  ;;  %vm2645_vm13 = vweird.f32 %v5315_v49 }
 0x962   : > { %vm2646_vm4 = vmor %vm2644_vm15, %vm2645_vm13  ;;  %2909 = vmatpush.bf16.msrb.mxu2 %v5093_v30 }
 0x963   : > { %v2640_v59 = vmul.f32 %v5315_v49, %v2639_v8  ;;  %v2637_v50 = vsel %vm2636_vm14, %v5313_v11, %v2633_v32 }
 0x964   : > { %v2690_v13 = vmul.f32 %v2637_v50, %v6575_v27 }
 0x965   : > { %v2641_v19 = vmul.f32 0.5, %v2640_v59  ;;  %3292 = vrot.lane.b32.xlu2 %v6603_v36, %s5516_s26  ;;  %v2985_v59 = vpop.f32.mrf.mxu0 }
 0x966   : > { %2910 = vmatpush.bf16.msrb.mxu2 %v5092_v47 }
 0x967   : > { %v2642_v60 = vsub.f32 1.5, %v2641_v19 }
 0x969   : > { %v2643_v25 = vmul.f32 %v5315_v49, %v2642_v60 }
 0x96b   : > { %v2647_v31 = vsel %vm2646_vm4, %v5315_v49, %v2643_v25 }
 0x96c   : > { %v2691_v17 = vmul.f32 %v2647_v31, %v6582_v37 }
 0x96e   : > { %v2697_v3 = vpack.c.bf16 %v2691_v17, %v2690_v13  ;;  %v2987_v13 = vpop.f32.mrf.mxu0 }
 0x970   : > { %4892 = vmatmul.msk.bf16.gmra.mxu3 %vm575_vm0, %v2697_v3 }
 0x978   : > { %v2582_v45 = vpop.xlane.xlu2 %2581 }
 0x979   : > { %v2596_v61 = vmul.f32 %v2582_v45, %v6547_v35 }
 0x97b   : > { %v2604_v62 = vadd.f32 1e-05, %v2596_v61 }
 0x97d   : > { %5316 = vrsqrt.f32 %v2604_v62  ;;  %vm2654_vm6 = vweird.f32 %v2604_v62 }
 0x980   : > { %v2585_v12 = vpop.xlane.xlu1 %2584 }
 0x981   : > { %v2597_v24 = vmul.f32 %v2585_v12, %v6547_v35 }
 0x983   : > { %v5317_v26 = vpop.eup %5316  ;;  %v2605_v27 = vadd.f32 1e-05, %v2597_v24 }
 0x984   : > { %v2649_v15 = vmul.f32 %v5317_v26, %v2604_v62  ;;  %vm2655_vm5 = vweird.f32 %v5317_v26 }
 0x985   : > { %5318 = vrsqrt.f32 %v2605_v27  ;;  %vm2656_vm8 = vmor %vm2654_vm6, %vm2655_vm5  ;;  %vm2664_vm9 = vweird.f32 %v2605_v27 }
 0x986   : > { %v2650_v37 = vmul.f32 %v5317_v26, %v2649_v15 }
 0x988   : > { %v2651_v63 = vmul.f32 0.5, %v2650_v37  ;;  %v6689_v37 = vld [vmem:[%s7544_s6 + $0x1] ss:$0 sm:$0xff] }
 0x98a   : > { %v2652_v39 = vsub.f32 1.5, %v2651_v63  ;;  %v2988_v63 = vadd.f32 %v6689_v37, %v2987_v13 }
 0x98b   : > { %v5319_v52 = vpop.eup %5318 }
 0x98c   : > { %v2659_v53 = vmul.f32 %v5319_v52, %v2605_v27  ;;  %v2653_v7 = vmul.f32 %v5317_v26, %v2652_v39  ;;  %vm2665_vm7 = vweird.f32 %v5319_v52  ;;  %v2990_v27 = vpop.f32.mrf.mxu0  ;;  %v6697_v39 = vld [vmem:[%s7550_s12] ss:$0 sm:$0xff] }
 0x98d   : > { %vm2666_vm10 = vmor %vm2664_vm9, %vm2665_vm7 }
 0x98e   : > { %v2660_v54 = vmul.f32 %v5319_v52, %v2659_v53  ;;  %v2657_v43 = vsel %vm2656_vm8, %v5317_v26, %v2653_v7 }
 0x98f   : > { %v2692_v11 = vmul.f32 %v2657_v43, %v6598_v9  ;;  %v5091_v9 = vld [vmem:[%s7551_s13 + $0x8] sm:$0xff] }
 0x990   : > { %v2661_v4 = vmul.f32 0.5, %v2660_v54  ;;  %2911 = vmatpush.bf16.msrb.mxu2 %v5091_v9  ;;  %v2991_v9 = vadd.f32 %v6689_v37, %v2990_v27 }
 0x992   : > { %v2662_v29 = vsub.f32 1.5, %v2661_v4 }
 0x994   : > { %v2663_v38 = vmul.f32 %v5319_v52, %v2662_v29 }
 0x996   : > { %v2667_v41 = vsel %vm2666_vm10, %v5319_v52, %v2663_v38  ;;  %v2986_v52 = vadd.f32 %v6689_v37, %v2985_v59 }
 0x997   : > { %v2693_v51 = vmul.f32 %v2667_v41, %v6607_v5  ;;  %v5090_v5 = vld [vmem:[%s7551_s13] sm:$0xff] }
 0x998   : > { %2912 = vmatpush.bf16.msrb.mxu2 %v5090_v5  ;;  %v3005_v53 = vpack.c.bf16 %v2986_v52, %v2986_v52 }
 0x999   : > { %v2698_v0 = vpack.c.bf16 %v2693_v51, %v2692_v11 }
 0x99a   : > { %v3109_v29 = vunpack.c.l.b16 %v3005_v53 }
 0x99b   : > { %4893 = vmatmul.msk.bf16.gmra.mxu3 %vm575_vm0, %v2698_v0 }
 0x9ad   : > { %v2588_v42 = vpop.xlane.xlu0 %2587 }
 0x9ae   : > { %v2598_v34 = vmul.f32 %v2588_v42, %v6547_v35 }
 0x9b0   : > { %v2606_v21 = vadd.f32 1e-05, %v2598_v34 }
 0x9b2   : > { %5320 = vrsqrt.f32 %v2606_v21  ;;  %vm2674_vm12 = vweird.f32 %v2606_v21 }
 0x9b8   : > { %v5321_v46 = vpop.eup %5320 }
 0x9b9   : > { %v2669_v2 = vmul.f32 %v5321_v46, %v2606_v21  ;;  %vm2675_vm11 = vweird.f32 %v5321_v46  ;;  %v3007_v21 = vpack.c.bf16 %v2991_v9, %v2991_v9 }
 0x9ba   : > { %vm2676_vm14 = vmor %vm2674_vm12, %vm2675_vm11 }
 0x9bb   : > { %v2670_v32 = vmul.f32 %v5321_v46, %v2669_v2 }
 0x9bd   : > { %v2671_v19 = vmul.f32 0.5, %v2670_v32 }
 0x9bf   : > { %v2672_v25 = vsub.f32 1.5, %v2671_v19  ;;  %v3111_v19 = vunpack.c.l.b16 %v3007_v21 }
 0x9c0   : > { %v2591_v49 = vpop.xlane.xlu2 %2590 }
 0x9c1   : > { %v2599_v48 = vmul.f32 %v2591_v49, %v6547_v35  ;;  %v2673_v3 = vmul.f32 %v5321_v46, %v2672_v25 }
 0x9c3   : > { %v2607_v8 = vadd.f32 1e-05, %v2599_v48  ;;  %v2677_v62 = vsel %vm2676_vm14, %v5321_v46, %v2673_v3 }
 0x9c4   : > { %v2694_v24 = vmul.f32 %v2677_v62, %v6629_v22  ;;  %v3006_v22 = vpack.c.bf16 %v2988_v63, %v2988_v63 }
 0x9c5   : > { %5322 = vrsqrt.f32 %v2607_v8  ;;  %vm2684_vm15 = vweird.f32 %v2607_v8 }
 0x9c6   : > { %v3110_v7 = vunpack.c.l.b16 %v3006_v22 }
 0x9c8   : > { %v3293_v60 = vpop.permute.xlu2 %3292  ;;  %v6700_v43 = vpack.c.b16 %v3110_v7, %v3109_v29 }
 0x9c9   : > { %3314 = vmatpush.bf16.msra.mxu2 %v3293_v60 }
 0x9cb   : > { %v5323_v50 = vpop.eup %5322 }
 0x9cc   : > { %v2679_v31 = vmul.f32 %v5323_v50, %v2607_v8  ;;  %vm2685_vm13 = vweird.f32 %v5323_v50 }
 0x9cd   : > { %vm2686_vm4 = vmor %vm2684_vm15, %vm2685_vm13 }
 0x9ce   : > { %v2680_v17 = vmul.f32 %v5323_v50, %v2679_v31 }
 0x9d0   : > { %v2681_v45 = vmul.f32 0.5, %v2680_v17 }
 0x9d2   : > { %v2682_v61 = vsub.f32 1.5, %v2681_v45 }
 0x9d4   : > { %v2683_v14 = vmul.f32 %v5323_v50, %v2682_v61 }
 0x9d6   : > { %v2687_v12 = vsel %vm2686_vm4, %v5323_v50, %v2683_v14 }
 0x9d7   : > { %v2695_v26 = vmul.f32 %v2687_v12, %v6638_v58  ;;  %v2992_v58 = vpop.f32.mrf.mxu0 }
 0x9d8   : > { %v2993_v0 = vadd.f32 %v6689_v37, %v2992_v58 }
 0x9d9   : > { %v2699_v15 = vpack.c.bf16 %v2695_v26, %v2694_v24 }
 0x9da   : > { %v3008_v42 = vpack.c.bf16 %v2993_v0, %v2993_v0 }
 0x9db   : > { %4894 = vmatmul.msk.bf16.gmra.mxu3 %vm575_vm0, %v2699_v15 }
 0x9dc   : > { %v3112_v48 = vunpack.c.l.b16 %v3008_v42 }
 0x9de   : > { %v6708_v25 = vpack.c.b16 %v3112_v48, %v3111_v19 }
 0x9df   : > { %v2995_v11 = vpop.f32.mrf.mxu0 }
 0x9e0   : > { %v2996_v24 = vadd.f32 %v6689_v37, %v2995_v11 }
 0x9e2   : > { %v3009_v53 = vpack.c.bf16 %v2996_v24, %v2996_v24 }
 0x9e3   : > { %v2741_v54 = vpop.f32.mrf.mxu3 }
 0x9e4   : > { %v2742_v6 = vadd.f32 %v6697_v39, %v2741_v54 }
 0x9e6   : > { %v2761_v4 = vmul.f32 %v2742_v6, %v2742_v6 }
 0x9e7   : > { %v2997_v8 = vpop.f32.mrf.mxu0 }
 0x9e8   : > { %v2769_v57 = vmul.f32 %v2761_v4, %v2742_v6  ;;  %v2998_v61 = vadd.f32 %v6689_v37, %v2997_v8 }
 0x9ea   : > { %v2777_v38 = vmul.f32 0.044715, %v2769_v57  ;;  %v3010_v52 = vpack.c.bf16 %v2998_v61, %v2998_v61 }
 0x9eb   : > { %v2743_v41 = vpop.f32.mrf.mxu3  ;;  %4965 = vmatmul.msk.bf16.vlgmr.msra.gmra.mxu3 %vm1442_vm1, %v6700_v43 }
 0x9ec   : > { %v2785_v51 = vadd.f32 %v2777_v38, %v2742_v6  ;;  %v2744_v40 = vadd.f32 %v6697_v39, %v2743_v41  ;;  %v3114_v29 = vunpack.c.l.b16 %v3010_v52  ;;  %v3113_v41 = vunpack.c.l.b16 %v3009_v53 }
 0x9ee   : > { %v2793_v30 = vmul.f32 0.7978846, %v2785_v51  ;;  %v2762_v47 = vmul.f32 %v2744_v40, %v2744_v40  ;;  %v6715_v11 = vpack.c.b16 %v3114_v29, %v3113_v41 }
 0x9ef   : > { %v3000_v15 = vpop.f32.mrf.mxu0 }
 0x9f0   : > { %v2770_v5 = vmul.f32 %v2762_v47, %v2744_v40  ;;  %5324 = vtanh.f32 %v2793_v30 }
 0x9f2   : > { %v2778_v34 = vmul.f32 0.044715, %v2770_v5 }
 0x9f3   : > { %v2746_v46 = vpop.f32.mrf.mxu3 }
 0x9f4   : > { %v2786_v2 = vadd.f32 %v2778_v34, %v2744_v40  ;;  %v2747_v49 = vadd.f32 %v6697_v39, %v2746_v46 }
 0x9f6   : > { %v2794_v59 = vmul.f32 0.7978846, %v2786_v2  ;;  %v2763_v32 = vmul.f32 %v2747_v49, %v2747_v49  ;;  %v5325_v60 = vpop.eup %5324 }
 0x9f7   : > { %v2809_v13 = vadd.f32 1.0, %v5325_v60  ;;  %v3002_v0 = vpop.f32.mrf.mxu0 }
 0x9f8   : > { %5326 = vtanh.f32 %v2794_v59  ;;  %v2771_v50 = vmul.f32 %v2763_v32, %v2747_v49  ;;  %v3003_v47 = vadd.f32 %v6689_v37, %v3002_v0 }
 0x9f9   : > { %v2817_v26 = vmul.f32 0.5, %v2809_v13 }
 0x9fa   : > { %v2779_v31 = vmul.f32 0.044715, %v2771_v50  ;;  %v3012_v42 = vpack.c.bf16 %v3003_v47, %v3003_v47 }
 0x9fb   : > { %v2748_v17 = vpop.f32.mrf.mxu3  ;;  %4966 = vmatmul.msk.bf16.gmra.mxu3 %vm1442_vm1, %v6708_v25  ;;  %v2825_v54 = vmul.f32 %v2817_v26, %v2742_v6  ;;  %v3001_v6 = vadd.f32 %v6689_v37, %v3000_v15 }
 0x9fc   : > { %v2787_v3 = vadd.f32 %v2779_v31, %v2747_v49  ;;  %v2749_v45 = vadd.f32 %v6697_v39, %v2748_v17  ;;  %v3116_v48 = vunpack.c.l.b16 %v3012_v42 }
 0x9fd   : > { %v3011_v21 = vpack.c.bf16 %v3001_v6, %v3001_v6 }
 0x9fe   : > { %v5327_v62 = vpop.eup %5326  ;;  %v2795_v14 = vmul.f32 0.7978846, %v2787_v3  ;;  %v2764_v12 = vmul.f32 %v2749_v45, %v2749_v45 }
 0x9ff   : > { %v2810_v27 = vadd.f32 1.0, %v5327_v62  ;;  %v3115_v59 = vunpack.c.l.b16 %v3011_v21 }
 0xa00   : > { %v2772_v63 = vmul.f32 %v2764_v12, %v2749_v45  ;;  %5328 = vtanh.f32 %v2795_v14 }
 0xa01   : > { %v2818_v22 = vmul.f32 0.5, %v2810_v27  ;;  %v6721_v32 = vpack.c.b16 %v3116_v48, %v3115_v59  ;;  %v6742_v48 = vld [vmem:[%s7540_s2 + $0x8] sm:$0xff] }
 0xa02   : > { %v2780_v58 = vmul.f32 0.044715, %v2772_v63 }
 0xa03   : > { %v2826_v7 = vmul.f32 %v2818_v22, %v2744_v40 }
 0xa04   : > { %v2788_v4 = vadd.f32 %v2780_v58, %v2749_v45 }
 0xa05   : > { %v2833_v57 = vpack.c.bf16 %v2826_v7, %v2825_v54 }
 0xa06   : > { %v2796_v38 = vmul.f32 0.7978846, %v2788_v4  ;;  %v5329_v51 = vpop.eup %5328 }
 0xa07   : > { %2913 = vmatmul.bf16.vlgmr.msrb.gmra.mxu2 %v2833_v57  ;;  %v2811_v30 = vadd.f32 1.0, %v5329_v51 }
 0xa08   : > { %5330 = vtanh.f32 %v2796_v38 }
 0xa09   : > { %v2819_v5 = vmul.f32 0.5, %v2811_v30 }
 0xa0b   : > { %4967 = vmatmul.msk.bf16.gmra.mxu3 %vm1442_vm1, %v6715_v11  ;;  %v2827_v46 = vmul.f32 %v2819_v5, %v2747_v49  ;;  %v6732_v5 = vld [vmem:[%s7540_s2] sm:$0xff] }
 0xa0e   : > { %v5331_v9 = vpop.eup %5330 }
 0xa0f   : > { %v2812_v40 = vadd.f32 1.0, %v5331_v9 }
 0xa11   : > { %v2820_v34 = vmul.f32 0.5, %v2812_v40 }
 0xa13   : > { %v2828_v2 = vmul.f32 %v2820_v34, %v2749_v45 }
 0xa15   : > { %v2834_v8 = vpack.c.bf16 %v2828_v2, %v2827_v46 }
 0xa17   : > { %2918 = vmatmul.bf16.gmra.mxu2 %v2834_v8 }
 0xa1b   : > { %4968 = vmatmul.msk.bf16.gmra.mxu3 %vm1442_vm1, %v6721_v32 }
 0xa1e   : > { %v2751_v19 = vpop.f32.mrf.mxu3 }
 0xa1f   : > { %v2752_v60 = vadd.f32 %v6697_v39, %v2751_v19 }
 0xa21   : > { %v2765_v37 = vmul.f32 %v2752_v60, %v2752_v60 }
 0xa23   : > { %v2773_v50 = vmul.f32 %v2765_v37, %v2752_v60 }
 0xa25   : > { %v2781_v31 = vmul.f32 0.044715, %v2773_v50 }
 0xa26   : > { %v2753_v13 = vpop.f32.mrf.mxu3 }
 0xa27   : > { %v2789_v17 = vadd.f32 %v2781_v31, %v2752_v60  ;;  %v2754_v49 = vadd.f32 %v6697_v39, %v2753_v13 }
 0xa29   : > { %v2797_v3 = vmul.f32 0.7978846, %v2789_v17  ;;  %v2766_v45 = vmul.f32 %v2754_v49, %v2754_v49 }
 0xa2b   : > { %v2774_v61 = vmul.f32 %v2766_v45, %v2754_v49  ;;  %5332 = vtanh.f32 %v2797_v3 }
 0xa2d   : > { %v2782_v62 = vmul.f32 0.044715, %v2774_v61 }
 0xa2f   : > { %v2790_v14 = vadd.f32 %v2782_v62, %v2754_v49 }
 0xa31   : > { %v2798_v12 = vmul.f32 0.7978846, %v2790_v14  ;;  %v5333_v24 = vpop.eup %5332  ;;  %v6764_v14 = vld [vmem:[%s7540_s2 + $0x18] sm:$0xff] }
 0xa32   : > { %v2813_v26 = vadd.f32 1.0, %v5333_v24  ;;  %v6772_v24 = vld [vmem:[%s7552_s14] ss:$0 sm:$0xff] }
 0xa33   : > { %5334 = vtanh.f32 %v2798_v12 }
 0xa34   : > { %v2821_v63 = vmul.f32 0.5, %v2813_v26 }
 0xa36   : > { %v2829_v22 = vmul.f32 %v2821_v63, %v2752_v60 }
 0xa39   : > { %v5335_v27 = vpop.eup %5334 }
 0xa3a   : > { %v2814_v15 = vadd.f32 1.0, %v5335_v27 }
 0xa3c   : > { %v2822_v52 = vmul.f32 0.5, %v2814_v15 }
 0xa3e   : > { %v2830_v58 = vmul.f32 %v2822_v52, %v2754_v49  ;;  %v6754_v49 = vld [vmem:[%s7540_s2 + $0x10] sm:$0xff] }
 0xa40   : > { %v2835_v53 = vpack.c.bf16 %v2830_v58, %v2829_v22  ;;  %v6788_v22 = vld [vmem:[%s7540_s2 + $0x20] sm:$0xff] }
 0xa42   : > { %2923 = vmatmul.bf16.gmra.mxu2 %v2835_v53 }
 0xa5e   : > { %v2756_v54 = vpop.f32.mrf.mxu3 }
 0xa5f   : > { %v2757_v7 = vadd.f32 %v6697_v39, %v2756_v54 }
 0xa61   : > { %v2767_v4 = vmul.f32 %v2757_v7, %v2757_v7 }
 0xa63   : > { %v2775_v29 = vmul.f32 %v2767_v4, %v2757_v7 }
 0xa65   : > { %v2783_v57 = vmul.f32 0.044715, %v2775_v29  ;;  %v6802_v29 = vld [vmem:[%s7540_s2 + $0x28] sm:$0xff] }
 0xa66   : > { %v2758_v38 = vpop.f32.mrf.mxu3 }
 0xa67   : > { %v2791_v41 = vadd.f32 %v2783_v57, %v2757_v7  ;;  %v2759_v51 = vadd.f32 %v6697_v39, %v2758_v38 }
 0xa69   : > { %v2799_v0 = vmul.f32 0.7978846, %v2791_v41  ;;  %v2768_v30 = vmul.f32 %v2759_v51, %v2759_v51 }
 0xa6b   : > { %v2776_v47 = vmul.f32 %v2768_v30, %v2759_v51  ;;  %5336 = vtanh.f32 %v2799_v0  ;;  %v6813_v30 = vld [vmem:[%s7540_s2 + $0x30] sm:$0xff] }
 0xa6d   : > { %v2784_v9 = vmul.f32 0.044715, %v2776_v47 }
 0xa6e   : > { %v3174_v6 = vpop.f32.mrf.mxu3 }
 0xa6f   : > { %v2792_v40 = vadd.f32 %v2784_v9, %v2759_v51  ;;  %v6735_v42 = vadd.f32 %v6732_v5, %v3174_v6 }
 0xa71   : > { %v2800_v34 = vmul.f32 0.7978846, %v2792_v40  ;;  %v3194_v21 = vsel %vm1496_vm2, %v6735_v42, -inf  ;;  %v5337_v39 = vpop.eup %5336 }
 0xa72   : > { %3195 = vmax.xlane.f32.xlu1 %v3194_v21  ;;  %v2815_v2 = vadd.f32 1.0, %v5337_v39  ;;  %v6827_v21 = vld [vmem:[%s7540_s2 + $0x38] sm:$0xff] }
 0xa73   : > { %5338 = vtanh.f32 %v2800_v34 }
 0xa74   : > { %v2823_v37 = vmul.f32 0.5, %v2815_v2 }
 0xa76   : > { %v3176_v46 = vpop.f32.mrf.mxu3  ;;  %v2831_v13 = vmul.f32 %v2823_v37, %v2757_v7 }
 0xa77   : > { %v6745_v8 = vadd.f32 %v6742_v48, %v3176_v46 }
 0xa79   : > { %v5339_v59 = vpop.eup %5338  ;;  %v3197_v19 = vsel %vm1496_vm2, %v6745_v8, -inf }
 0xa7a   : > { %3198 = vmax.xlane.f32.xlu0 %v3197_v19  ;;  %v2816_v60 = vadd.f32 1.0, %v5339_v59 }
 0xa7c   : > { %v2824_v50 = vmul.f32 0.5, %v2816_v60 }
 0xa7e   : > { %v3179_v31 = vpop.f32.mrf.mxu3  ;;  %v2832_v17 = vmul.f32 %v2824_v50, %v2759_v51 }
 0xa7f   : > { %v6757_v3 = vadd.f32 %v6754_v49, %v3179_v31 }
 0xa80   : > { %v2836_v45 = vpack.c.bf16 %v2832_v17, %v2831_v13 }
 0xa81   : > { %v3200_v61 = vsel %vm1496_vm2, %v6757_v3, -inf }
 0xa82   : > { %3201 = vmax.xlane.f32.xlu2 %v3200_v61  ;;  %2928 = vmatmul.bf16.gmra.mxu2 %v2836_v45 }
 0xa86   : > { %v3181_v62 = vpop.f32.mrf.mxu3 }
 0xa87   : > { %v6767_v12 = vadd.f32 %v6764_v14, %v3181_v62 }
 0xa89   : > { %v3203_v26 = vsel %vm1496_vm2, %v6767_v12, -inf }
 0xa8a   : > { %v2914_v27 = vpop.f32.mrf.mxu2  ;;  %3204 = vmax.xlane.f32.xlu1 %v3203_v26 }
 0xa8b   : > { %v2915_v15 = vadd.f32 %v6772_v24, %v2914_v27 }
 0xa8d   : > { %v2934_v63 = vadd.f32 %v2915_v15, %v6498_v10 }
 0xa8e   : > { %v3184_v52 = vpop.f32.mrf.mxu3 }
 0xa8f   : > { %4636 = vst.msk [vmem:[%s6780_s22] sm:$0xff] %vm575_vm0, %v2934_v63  ;;  %v6791_v58 = vadd.f32 %v6788_v22, %v3184_v52 }
 0xa91   : > { %v3206_v53 = vsel %vm1496_vm2, %v6791_v58, -inf }
 0xa92   : > { %v2916_v54 = vpop.f32.mrf.mxu2  ;;  %3207 = vmax.xlane.f32.xlu0 %v3206_v53 }
 0xa93   : > { %v2917_v7 = vadd.f32 %v6772_v24, %v2916_v54 }
 0xa95   : > { %v2935_v10 = vadd.f32 %v2917_v7, %v6505_v20 }
 0xa96   : > { %v3186_v4 = vpop.f32.mrf.mxu3 }
 0xa97   : > { %4637 = vst.msk [vmem:[%s6780_s22 + $0x8] sm:$0xff] %vm575_vm0, %v2935_v10  ;;  %v3187_v57 = vadd.f32 %v6802_v29, %v3186_v4 }
 0xa99   : > { %v3209_v38 = vsel %vm1496_vm2, %v3187_v57, -inf }
 0xa9a   : > { %v2919_v41 = vpop.f32.mrf.mxu2  ;;  %3210 = vmax.xlane.f32.xlu2 %v3209_v38 }
 0xa9b   : > { %v2920_v51 = vadd.f32 %v6772_v24, %v2919_v41 }
 0xa9d   : > { %v2936_v0 = vadd.f32 %v2920_v51, %v6513_v56 }
 0xa9e   : > { %v3189_v20 = vpop.f32.mrf.mxu3 }
 0xa9f   : > { %4638 = vst.msk [vmem:[%s6780_s22 + $0x10] sm:$0xff] %vm575_vm0, %v2936_v0  ;;  %v6816_v47 = vadd.f32 %v6813_v30, %v3189_v20 }
 0xaa1   : > { %v3212_v9 = vsel %vm1496_vm2, %v6816_v47, -inf }
 0xaa2   : > { %v2921_v6 = vpop.f32.mrf.mxu2  ;;  %3213 = vmax.xlane.f32.xlu1 %v3212_v9 }
 0xaa3   : > { %v2922_v40 = vadd.f32 %v6772_v24, %v2921_v6 }
 0xaa5   : > { %v2937_v56 = vadd.f32 %v2922_v40, %v6519_v18 }
 0xaa6   : > { %v3191_v34 = vpop.f32.mrf.mxu3 }
 0xaa7   : > { %4639 = vst.msk [vmem:[%s6780_s22 + $0x18] sm:$0xff] %vm575_vm0, %v2937_v56  ;;  %v3192_v39 = vadd.f32 %v6827_v21, %v3191_v34 }
 0xaa9   : > { %v3215_v46 = vsel %vm1496_vm2, %v3192_v39, -inf }
 0xaaa   : > { %3216 = vmax.xlane.f32.xlu0 %v3215_v46 }
 0xab2   : > { %3286 = vrot.lane.b32.xlu2 %v6623_v33, %s5516_s26 }
 0xac5   : > { %v2924_v2 = vpop.f32.mrf.mxu2 }
 0xac6   : > { %v2925_v59 = vadd.f32 %v6772_v24, %v2924_v2 }
 0xac8   : > { %v2938_v18 = vadd.f32 %v2925_v59, %v6529_v23 }
 0xaca   : > { %4640 = vst.msk [vmem:[%s6780_s22 + $0x20] sm:$0xff] %vm575_vm0, %v2938_v18 }
 0xacd   : > { %v2926_v19 = vpop.f32.mrf.mxu2 }
 0xace   : > { %v2927_v60 = vadd.f32 %v6772_v24, %v2926_v19 }
 0xad0   : > { %v2939_v37 = vadd.f32 %v2927_v60, %v6535_v16 }
 0xad2   : > { %4641 = vst.msk [vmem:[%s6780_s22 + $0x28] sm:$0xff] %vm575_vm0, %v2939_v37 }
 0xae5   : > { %v3196_v50 = vpop.xlane.xlu1 %3195 }
 0xae6   : > { %v3218_v31 = vsub.f32 %v6735_v42, %v3196_v50 }
 0xae8   : > { %v3226_v13 = vmul.f32 1.442695, %v3218_v31 }
 0xaea   : > { %5340 = vpow2.f32 %v3226_v13 }
 0xaed   : > { %v3199_v17 = vpop.xlane.xlu0 %3198 }
 0xaee   : > { %v3219_v45 = vsub.f32 %v6745_v8, %v3199_v17 }
 0xaf0   : > { %v6843_v61 = vpop.eup %5340  ;;  %v3228_v23 = vmul.f32 1.442695, %v3219_v45 }
 0xaf1   : > { %v3242_v62 = vsel %vm1496_vm2, %v6843_v61, 0.0 }
 0xaf2   : > { %5342 = vpow2.f32 %v3228_v23  ;;  %3243 = vadd.xlane.f32.xlu1 %v3242_v62 }
 0xaf5   : > { %v3202_v16 = vpop.xlane.xlu2 %3201 }
 0xaf6   : > { %v3220_v26 = vsub.f32 %v6757_v3, %v3202_v16 }
 0xaf8   : > { %v6848_v27 = vpop.eup %5342  ;;  %v3230_v42 = vmul.f32 1.442695, %v3220_v26 }
 0xaf9   : > { %v3245_v15 = vsel %vm1496_vm2, %v6848_v27, 0.0 }
 0xafa   : > { %5344 = vpow2.f32 %v3230_v42  ;;  %3246 = vadd.xlane.f32.xlu0 %v3245_v15 }
 0xafd   : > { %v3205_v20 = vpop.xlane.xlu1 %3204 }
 0xb00   : > { %v6852_v8 = vpop.eup %5344 }
 0xb01   : > { %v3248_v63 = vsel %vm1496_vm2, %v6852_v8, 0.0 }
 0xb02   : > { %3249 = vadd.xlane.f32.xlu2 %v3248_v63 }
 0xb05   : > { %v2929_v52 = vpop.f32.mrf.mxu2  ;;  %v3208_v0 = vpop.xlane.xlu0 %3207 }
 0xb06   : > { %v2930_v53 = vadd.f32 %v6772_v24, %v2929_v52 }
 0xb08   : > { %v2940_v3 = vadd.f32 %v2930_v53, %v6543_v44 }
 0xb0a   : > { %4642 = vst.msk [vmem:[%s6780_s22 + $0x30] sm:$0xff] %vm575_vm0, %v2940_v3 }
 0xb0b   : > { %3290 = vrot.lane.b32.xlu1 %v6613_v55, %s5516_s26 }
 0xb0d   : > { %v2931_v54 = vpop.f32.mrf.mxu2  ;;  %v3211_v7 = vpop.xlane.xlu2 %3210 }
 0xb0e   : > { %v2932_v10 = vadd.f32 %v6772_v24, %v2931_v54  ;;  %v3223_v4 = vsub.f32 %v3187_v57, %v3211_v7  ;;  %3288 = vrot.lane.b32.xlu0 %v6619_v28, %s5516_s26  ;;  %v3222_v24 = vsub.f32 %v6791_v58, %v3208_v0  ;;  %v3221_v57 = vsub.f32 %v6767_v12, %v3205_v20 }
 0xb10   : > { %v2941_v38 = vadd.f32 %v2932_v10, %v6566_v1  ;;  %v3236_v41 = vmul.f32 1.442695, %v3223_v4  ;;  %v3234_v9 = vmul.f32 1.442695, %v3222_v24  ;;  %v3232_v40 = vmul.f32 1.442695, %v3221_v57 }
 0xb12   : > { %4643 = vst.msk [vmem:[%s6780_s22 + $0x38] sm:$0xff] %vm575_vm0, %v2941_v38  ;;  %5346 = vpow2.f32 %v3236_v41 }
 0xb13   : > { %5348 = vpow2.f32 %v3234_v9 }
 0xb14   : > { %5350 = vpow2.f32 %v3232_v40 }
 0xb15   : > { %v3214_v1 = vpop.xlane.xlu1 %3213  ;;  %v3287_v31 = vpop.permute.xlu2 %3286 }
 0xb16   : > { %v3224_v34 = vsub.f32 %v6816_v47, %v3214_v1 }
 0xb18   : > { %v6868_v44 = vpop.eup %5346  ;;  %v3238_v59 = vmul.f32 1.442695, %v3224_v34 }
 0xb19   : > { %v3257_v51 = vsel %vm1496_vm2, %v6868_v44, 0.0  ;;  %v6875_v2 = vpop.eup %5348 }
 0xb1a   : > { %3258 = vadd.xlane.f32.xlu2 %v3257_v51  ;;  %v5351_v58 = vpop.eup %5350  ;;  %v3254_v12 = vsel %vm1496_vm2, %v6875_v2, 0.0 }
 0xb1b   : > { %v3251_v18 = vsel %vm1496_vm2, %v5351_v58, 0.0 }
 0xb1d   : > { %v3217_v6 = vpop.xlane.xlu0 %3216 }
 0xb1e   : > { %v3225_v56 = vsub.f32 %v3192_v39, %v3217_v6 }
 0xb20   : > { %v3240_v46 = vmul.f32 1.442695, %v3225_v56 }
 0xb22   : > { %5352 = vpow2.f32 %v3240_v46 }
 0xb23   : > { %5354 = vpow2.f32 %v3238_v59 }
 0xb28   : > { %v6882_v39 = vpop.eup %5352 }
 0xb29   : > { %v6886_v47 = vpop.eup %5354  ;;  %v3263_v19 = vsel %vm1496_vm2, %v6882_v39, 0.0 }
 0xb2a   : > { %v3260_v60 = vsel %vm1496_vm2, %v6886_v47, 0.0 }
 0xb32   : > { %3357 = vrot.lane.b32.xlu2 %v6603_v36, %s5517_s28 }
 0xb35   : > { %3255 = vadd.xlane.f32.xlu1 %v3254_v12 }
 0xb38   : > { %3252 = vadd.xlane.f32.xlu0 %v3251_v18 }
 0xb3a   : > { %3343 = vrot.lane.b32.xlu2 %v6700_v43, %s5517_s28 }
 0xb3d   : > { %3264 = vadd.xlane.f32.xlu1 %v3263_v19 }
 0xb40   : > { %3261 = vadd.xlane.f32.xlu0 %v3260_v60 }
 0xb42   : > { %3663 = vrot.lane.b32.xlu2 %v6603_v36, %s5518_s29 }
 0xb4a   : > { %3931 = vrot.lane.b32.xlu2 %v6613_v55, %s5519_s27 }
 0xb52   : > { %3929 = vrot.lane.b32.xlu2 %v6619_v28, %s5519_s27 }
 0xb54   : > { %3355 = vrot.lane.b32.xlu0 %v6613_v55, %s5517_s28 }
 0xb56   : > { %3353 = vrot.lane.b32.xlu1 %v6619_v28, %s5517_s28 }
 0xb5a   : > { %3649 = vrot.lane.b32.xlu2 %v6700_v43, %s5518_s29 }
 0xb5c   : > { %3351 = vrot.lane.b32.xlu0 %v6623_v33, %s5517_s28 }
 0xb5e   : > { %3345 = vrot.lane.b32.xlu1 %v6708_v25, %s5517_s28 }
 0xb62   : > { %3921 = vrot.lane.b32.xlu2 %v6708_v25, %s5519_s27 }
 0xb64   : > { %3347 = vrot.lane.b32.xlu0 %v6715_v11, %s5517_s28 }
 0xb65   : > { %v3244_v37 = vpop.xlane.xlu1 %3243 }
 0xb66   : > { %3933 = vrot.lane.b32.xlu1 %v6603_v36, %s5519_s27 }
 0xb6a   : > { %3655 = vrot.lane.b32.xlu2 %v6721_v32, %s5518_s29 }
 0xb6c   : > { %3661 = vrot.lane.b32.xlu0 %v6613_v55, %s5518_s29 }
 0xb6d   : > { %v3247_v50 = vpop.xlane.xlu0 %3246 }
 0xb6e   : > { %3349 = vrot.lane.b32.xlu1 %v6721_v32, %s5517_s28  ;;  %5356 = vrcp.f32 %v3247_v50 }
 0xb6f   : > { %5358 = vrcp.f32 %v3244_v37 }
 0xb74   : > { %3659 = vrot.lane.b32.xlu0 %v6619_v28, %s5518_s29  ;;  %v5357_v17 = vpop.eup %5356 }
 0xb75   : > { %v5359_v23 = vpop.eup %5358  ;;  %v3275_v62 = vmul.f32 %v5357_v17, %v6848_v27  ;;  %v3250_v26 = vpop.xlane.xlu2 %3249 }
 0xb76   : > { %3657 = vrot.lane.b32.xlu1 %v6623_v33, %s5518_s29  ;;  %v3274_v16 = vmul.f32 %v5359_v23, %v6843_v61  ;;  %5360 = vrcp.f32 %v3250_v26 }
 0xb78   : > { %v3282_v42 = vpack.c.bf16 %v3275_v62, %v3274_v16 }
 0xb7c   : > { %3927 = vrot.lane.b32.xlu0 %v6623_v33, %s5519_s27  ;;  %v5361_v15 = vpop.eup %5360 }
 0xb7d   : > { %v3291_v13 = vpop.permute.xlu1 %3290  ;;  %v3276_v52 = vmul.f32 %v5361_v15, %v6852_v8 }
 0xb7e   : > { %3919 = vrot.lane.b32.xlu1 %v6700_v43, %s5519_s27  ;;  %3315 = vmatpush.bf16.msra.mxu2 %v3291_v13 }
 0xb80   : > { %v3289_v45 = vpop.permute.xlu0 %3288 }
 0xb82   : > { %3316 = vmatpush.bf16.msra.mxu2 %v3289_v45 }
 0xb84   : > { %3651 = vrot.lane.b32.xlu0 %v6708_v25, %s5518_s29 }
 0xb86   : > { %3653 = vrot.lane.b32.xlu1 %v6715_v11, %s5518_s29  ;;  %3317 = vmatpush.bf16.msra.mxu2 %v3287_v31  ;;  %s7582_s29 = smov 80  }
 0xb89   : > { %4969 = vmatmul.msk.bf16.vlgmr.msra.gmra.mxu2 %vm1496_vm2, %v3282_v42 }
 0xb8c   : > { %3923 = vrot.lane.b32.xlu0 %v6715_v11, %s5519_s27  ;;  %v4961_v11 = vld [vmem:[%s7547_s9 + $0x10] sm:$0xf] }
 0xb8d   : > { %v3259_v43 = vpop.xlane.xlu2 %3258 }
 0xb8e   : > { %3925 = vrot.lane.b32.xlu1 %v6721_v32, %s5519_s27  ;;  %v3618_v32 = vsel %vm1876_vm3, %v4961_v11, 0  ;;  %s7583_s27 = smov 72  }
 0xb8f   : > { %3627 = vmatpush.bf16.msrb.mxu2 %v3618_v32 }
 0xb95   : > { %v3358_v27 = vpop.permute.xlu2 %3357 }
 0xb96   : > { %v3381_v25 = vsel %vm1442_vm1, %v3358_v27, 0 }
 0xb97   : > { %3387 = vmatpush.bf16.xpose.msra.mxu0 %v3381_v25 }
 0xb9d   : > { %v3344_v24 = vpop.permute.xlu2 %3343 }
 0xba5   : > { %v3664_v34 = vpop.permute.xlu2 %3663 }
 0xba6   : > { %v3687_v12 = vsel %vm1442_vm1, %v3664_v34, 0 }
 0xba8   : > { %v3256_v3 = vpop.xlane.xlu1 %3255 }
 0xbab   : > { %v3253_v61 = vpop.xlane.xlu0 %3252 }
 0xbac   : > { %5362 = vrcp.f32 %v3253_v61 }
 0xbad   : > { %5364 = vrcp.f32 %v3256_v3  ;;  %v3932_v60 = vpop.permute.xlu2 %3931 }
 0xbae   : > { %5366 = vrcp.f32 %v3259_v43 }
 0xbb0   : > { %v3265_v38 = vpop.xlane.xlu1 %3264 }
 0xbb2   : > { %v5363_v63 = vpop.eup %5362 }
 0xbb3   : > { %v3277_v53 = vmul.f32 %v5363_v63, %v5351_v58  ;;  %v5365_v7 = vpop.eup %5364  ;;  %v3262_v10 = vpop.xlane.xlu0 %3261 }
 0xbb4   : > { %v5367_v4 = vpop.eup %5366  ;;  %v3278_v8 = vmul.f32 %v5365_v7, %v6875_v2  ;;  %5368 = vrcp.f32 %v3262_v10 }
 0xbb5   : > { %v3283_v54 = vpack.c.bf16 %v3277_v53, %v3276_v52  ;;  %v3279_v41 = vmul.f32 %v5367_v4, %v6868_v44  ;;  %5370 = vrcp.f32 %v3265_v38  ;;  %v3930_v31 = vpop.permute.xlu2 %3929 }
 0xbb6   : > { %v3951_v45 = vsel %vm1442_vm1, %v3930_v31, 0 }
 0xbb7   : > { %4970 = vmatmul.msk.bf16.gmra.mxu2 %vm1496_vm2, %v3283_v54  ;;  %v3284_v51 = vpack.c.bf16 %v3279_v41, %v3278_v8 }
 0xbba   : > { %v5369_v9 = vpop.eup %5368 }
 0xbbb   : > { %v5371_v1 = vpop.eup %5370  ;;  %v3280_v44 = vmul.f32 %v5369_v9, %v6886_v47 }
 0xbbc   : > { %v3281_v46 = vmul.f32 %v5371_v1, %v6882_v39  ;;  %v3954_v39 = vsel %vm1442_vm1, %v3932_v60, 0 }
 0xbbd   : > { %v3650_v25 = vpop.permute.xlu2 %3649 }
 0xbbe   : > { %v3285_v2 = vpack.c.bf16 %v3281_v46, %v3280_v44 }
 0xbc5   : > { %v3922_v54 = vpop.permute.xlu2 %3921 }
 0xbc6   : > { %v3356_v0 = vpop.permute.xlu0 %3355 }
 0xbc7   : > { %v3378_v20 = vsel %vm1442_vm1, %v3356_v0, 0  ;;  %4971 = vmatmul.msk.bf16.gmra.mxu2 %vm1496_vm2, %v3284_v51 }
 0xbc8   : > { %v3354_v57 = vpop.permute.xlu1 %3353  ;;  %3388 = vmatpush.bf16.xpose.msra.mxu0 %v3378_v20 }
 0xbc9   : > { %v3375_v40 = vsel %vm1442_vm1, %v3354_v57, 0 }
 0xbcd   : > { %v3656_v32 = vpop.permute.xlu2 %3655 }
 0xbce   : > { %v3352_v6 = vpop.permute.xlu0 %3351 }
 0xbcf   : > { %v3372_v58 = vsel %vm1442_vm1, %v3352_v6, 0 }
 0xbd0   : > { %v3346_v56 = vpop.permute.xlu1 %3345  ;;  %3389 = vmatpush.bf16.xpose.msra.mxu0 %v3375_v40 }
 0xbd6   : > { %v3348_v59 = vpop.permute.xlu0 %3347 }
 0xbd7   : > { %4972 = vmatmul.msk.bf16.gmra.mxu2 %vm1496_vm2, %v3285_v2 }
 0xbd8   : > { %v3934_v18 = vpop.permute.xlu1 %3933  ;;  %3390 = vmatpush.bf16.xpose.msra.mxu0 %v3372_v58 }
 0xbd9   : > { %v3957_v19 = vsel %vm1442_vm1, %v3934_v18, 0 }
 0xbda   : > { %3963 = vmatpush.bf16.xpose.msra.mxu2 %v3957_v19 }
 0xbde   : > { %v3662_v37 = vpop.permute.xlu0 %3661 }
 0xbdf   : > { %v3684_v47 = vsel %vm1442_vm1, %v3662_v37, 0  ;;  %4973 = vmatmul.msk.bf16.vlgmr.msra.gmra.mxu0 %vm1442_vm1, %v3344_v24 }
 0xbe0   : > { %3693 = vmatpush.bf16.xpose.msrb.mxu0 %v3687_v12  ;;  %v3350_v50 = vpop.permute.xlu1 %3349 }
 0xbe2   : > { %3964 = vmatpush.bf16.xpose.msra.mxu2 %v3954_v39 }
 0xbe6   : > { %v3660_v13 = vpop.permute.xlu0 %3659 }
 0xbe7   : > { %v3681_v17 = vsel %vm1442_vm1, %v3660_v13, 0 }
 0xbe8   : > { %3694 = vmatpush.bf16.xpose.msrb.mxu0 %v3684_v47  ;;  %v3658_v23 = vpop.permute.xlu1 %3657 }
 0xbe9   : > { %v3678_v16 = vsel %vm1442_vm1, %v3658_v23, 0 }
 0xbea   : > { %3965 = vmatpush.bf16.xpose.msra.mxu2 %v3951_v45 }
 0xbee   : > { %v3928_v62 = vpop.permute.xlu0 %3927 }
 0xbef   : > { %4974 = vmatmul.msk.bf16.gmra.mxu0 %vm1442_vm1, %v3346_v56  ;;  %v3948_v26 = vsel %vm1442_vm1, %v3928_v62, 0 }
 0xbf0   : > { %3695 = vmatpush.bf16.xpose.msrb.mxu0 %v3681_v17  ;;  %v3920_v15 = vpop.permute.xlu1 %3919 }
 0xbf2   : > { %3966 = vmatpush.bf16.xpose.msra.mxu2 %v3948_v26 }
 0xbf6   : > { %v3652_v61 = vpop.permute.xlu0 %3651 }
 0xbf8   : > { %3696 = vmatpush.bf16.xpose.msrb.mxu0 %v3678_v16  ;;  %v3654_v52 = vpop.permute.xlu1 %3653 }
 0xbfe   : > { %v3924_v37 = vpop.permute.xlu0 %3923 }
 0xbff   : > { %4975 = vmatmul.msk.bf16.gmra.mxu0 %vm1442_vm1, %v3348_v59 }
 0xc00   : > { %v3926_v31 = vpop.permute.xlu1 %3925 }
 0xc0c   : > { %v3319_v42 = vpop.f32.mrf.mxu2 }
 0xc0f   : > { %4976 = vmatmul.msk.bf16.gmra.mxu0 %vm1442_vm1, %v3350_v50 }
 0xc14   : > { %v3321_v43 = vpop.f32.mrf.mxu2 }
 0xc15   : > { %v3339_v27 = vpack.c.bf16 %v3321_v43, %v3319_v42 }
 0xc17   : > { %4985 = vmatmul.msk.bf16.vlgmr.msrb.gmra.mxu2 %vm1442_vm1, %v3339_v27 }
 0xc1f   : > { %4989 = vmatmul.msk.bf16.vlgmr.msrb.gmra.mxu0 %vm1442_vm1, %v3650_v25 }
 0xc2f   : > { %4990 = vmatmul.msk.bf16.gmra.mxu0 %vm1442_vm1, %v3652_v61 }
 0xc3a   : > { %v3324_v63 = vpop.f32.mrf.mxu2 }
 0xc3f   : > { %4991 = vmatmul.msk.bf16.gmra.mxu0 %vm1442_vm1, %v3654_v52 }
 0xc42   : > { %v3326_v53 = vpop.f32.mrf.mxu2 }
 0xc43   : > { %v3340_v3 = vpack.c.bf16 %v3326_v53, %v3324_v63 }
 0xc45   : > { %4986 = vmatmul.msk.bf16.gmra.mxu2 %vm1442_vm1, %v3340_v3 }
 0xc4a   : > { %v3329_v11 = vpop.f32.mrf.mxu2 }
 0xc4f   : > { %4992 = vmatmul.msk.bf16.gmra.mxu0 %vm1442_vm1, %v3656_v32 }
 0xc52   : > { %v3331_v7 = vpop.f32.mrf.mxu2 }
 0xc53   : > { %v3341_v10 = vpack.c.bf16 %v3331_v7, %v3329_v11 }
 0xc55   : > { %4987 = vmatmul.msk.bf16.gmra.mxu2 %vm1442_vm1, %v3341_v10 }
 0xc5a   : > { %v3334_v4 = vpop.f32.mrf.mxu2 }
 0xc5c   : > { %v3392_v38 = vpop.f32.mrf.mxu0 }
 0xc5d   : > { %v3393_v8 = vadd.f32 %v6732_v5, %v3392_v38 }
 0xc5f   : > { %v3412_v41 = vsel %vm1496_vm2, %v3393_v8, -inf }
 0xc60   : > { %3413 = vmax.xlane.f32.xlu0 %v3412_v41 }
 0xc62   : > { %v3336_v51 = vpop.f32.mrf.mxu2 }
 0xc63   : > { %v3342_v0 = vpack.c.bf16 %v3336_v51, %v3334_v4 }
 0xc64   : > { %v3394_v20 = vpop.f32.mrf.mxu0 }
 0xc65   : > { %v3395_v24 = vadd.f32 %v6742_v48, %v3394_v20  ;;  %4988 = vmatmul.msk.bf16.gmra.mxu2 %vm1442_vm1, %v3342_v0 }
 0xc67   : > { %v3415_v57 = vsel %vm1496_vm2, %v3395_v24, -inf }
 0xc68   : > { %3416 = vmax.xlane.f32.xlu2 %v3415_v57 }
 0xc6c   : > { %v3397_v9 = vpop.f32.mrf.mxu0 }
 0xc6d   : > { %v3398_v6 = vadd.f32 %v6754_v49, %v3397_v9 }
 0xc6f   : > { %v3418_v40 = vsel %vm1496_vm2, %v3398_v6, -inf }
 0xc70   : > { %3419 = vmax.xlane.f32.xlu1 %v3418_v40 }
 0xc74   : > { %v3399_v1 = vpop.f32.mrf.mxu0 }
 0xc75   : > { %v6982_v56 = vadd.f32 %v6764_v14, %v3399_v1  ;;  %5001 = vmatmul.msk.bf16.vlgmr.msra.gmra.mxu2 %vm1442_vm1, %v3920_v15 }
 0xc77   : > { %v3421_v44 = vsel %vm1496_vm2, %v6982_v56, -inf }
 0xc78   : > { %3422 = vmax.xlane.f32.xlu2 %v3421_v44 }
 0xc7c   : > { %v3402_v34 = vpop.f32.mrf.mxu0 }
 0xc7d   : > { %v3403_v46 = vadd.f32 %v6788_v22, %v3402_v34 }
 0xc7f   : > { %v3424_v2 = vsel %vm1496_vm2, %v3403_v46, -inf }
 0xc80   : > { %3425 = vmax.xlane.f32.xlu0 %v3424_v2 }
 0xc84   : > { %v3404_v59 = vpop.f32.mrf.mxu0 }
 0xc85   : > { %v6990_v58 = vadd.f32 %v6802_v29, %v3404_v59  ;;  %5002 = vmatmul.msk.bf16.gmra.mxu2 %vm1442_vm1, %v3922_v54 }
 0xc87   : > { %v3427_v12 = vsel %vm1496_vm2, %v6990_v58, -inf }
 0xc88   : > { %3428 = vmax.xlane.f32.xlu1 %v3427_v12 }
 0xc8c   : > { %v3407_v18 = vpop.f32.mrf.mxu0 }
 0xc8d   : > { %v3408_v19 = vadd.f32 %v6813_v30, %v3407_v18 }
 0xc8f   : > { %v3430_v60 = vsel %vm1496_vm2, %v3408_v19, -inf }
 0xc90   : > { %3431 = vmax.xlane.f32.xlu2 %v3430_v60 }
 0xc94   : > { %v3409_v47 = vpop.f32.mrf.mxu0 }
 0xc95   : > { %v6998_v39 = vadd.f32 %v6827_v21, %v3409_v47  ;;  %5003 = vmatmul.msk.bf16.gmra.mxu2 %vm1442_vm1, %v3924_v37 }
 0xc97   : > { %v3433_v50 = vsel %vm1496_vm2, %v6998_v39, -inf }
 0xc98   : > { %3434 = vmax.xlane.f32.xlu0 %v3433_v50 }
 0xc9a   : > { %v7008_v23 = vpop.f32.mrf.mxu2 }
 0xc9c   : > { %v3698_v53 = vpop.f32.mrf.mxu0 }
 0xc9d   : > { %v7055_v50 = vadd.f32 %v6732_v5, %v3698_v53 }
 0xca1   : > { %3510 = vrot.lane.b32.xlu1 %v6603_v36, %s5520_s17 }
 0xca2   : > { %v7014_v61 = vpop.f32.mrf.mxu2 }
 0xca4   : > { %v3700_v10 = vpop.f32.mrf.mxu0 }
 0xca5   : > { %5004 = vmatmul.msk.bf16.gmra.mxu2 %vm1442_vm1, %v3926_v31  ;;  %v7047_v12 = vadd.f32 %v6742_v48, %v3700_v10 }
 0xca7   : > { %v3721_v47 = vsel %vm1496_vm2, %v7047_v12, -inf }
 0xca9   : > { %3504 = vrot.lane.b32.xlu1 %v6623_v33, %s5520_s17 }
 0xcac   : > { %v3703_v51 = vpop.f32.mrf.mxu0 }
 0xcc8   : > { %v7020_v3 = vpop.f32.mrf.mxu2 }
 0xcd0   : > { %v7026_v38 = vpop.f32.mrf.mxu2 }
 0xcd3   : > { %v3414_v13 = vpop.xlane.xlu0 %3413 }
 0xcd4   : > { %v3436_v17 = vsub.f32 %v3393_v8, %v3414_v13  ;;  %v3718_v13 = vsel %vm1496_vm2, %v7055_v50, -inf }
 0xcd6   : > { %v3444_v45 = vmul.f32 1.442695, %v3436_v17 }
 0xcd8   : > { %5372 = vpow2.f32 %v3444_v45  ;;  %v7036_v20 = vpop.f32.mrf.mxu2 }
 0xcdb   : > { %v3417_v62 = vpop.xlane.xlu2 %3416 }
 0xcdc   : > { %v3437_v16 = vsub.f32 %v3395_v24, %v3417_v62 }
 0xcde   : > { %v7010_v26 = vpop.eup %5372  ;;  %v3446_v42 = vmul.f32 1.442695, %v3437_v16 }
 0xcdf   : > { %v3460_v43 = vsel %vm1496_vm2, %v7010_v26, 0.0 }
 0xce0   : > { %5374 = vpow2.f32 %v3446_v42  ;;  %3461 = vadd.xlane.f32.xlu2 %v3460_v43  ;;  %v7038_v40 = vpop.f32.mrf.mxu2 }
 0xce3   : > { %v3420_v27 = vpop.xlane.xlu1 %3419 }
 0xce4   : > { %v3438_v25 = vsub.f32 %v3398_v6, %v3420_v27  ;;  %v3705_v6 = vpop.f32.mrf.mxu0 }
 0xce5   : > { %v7058_v31 = vadd.f32 %v6764_v14, %v3705_v6 }
 0xce6   : > { %v7016_v15 = vpop.eup %5374  ;;  %v3448_v63 = vmul.f32 1.442695, %v3438_v25 }
 0xce7   : > { %v3463_v52 = vsel %vm1496_vm2, %v7016_v15, 0.0  ;;  %v3727_v17 = vsel %vm1496_vm2, %v7058_v31, -inf }
 0xce8   : > { %5376 = vpow2.f32 %v3448_v63  ;;  %3464 = vadd.xlane.f32.xlu0 %v3463_v52  ;;  %v7044_v59 = vpop.f32.mrf.mxu2  ;;  %v7079_v63 = vadd.f32 %v6754_v49, %v3703_v51 }
 0xceb   : > { %v3423_v8 = vpop.xlane.xlu2 %3422 }
 0xcec   : > { %v3439_v18 = vsub.f32 %v6982_v56, %v3423_v8 }
 0xcee   : > { %v7022_v54 = vpop.eup %5376  ;;  %v3450_v37 = vmul.f32 1.442695, %v3439_v18 }
 0xcef   : > { %v3466_v11 = vsel %vm1496_vm2, %v7022_v54, 0.0 }
 0xcf0   : > { %3467 = vadd.xlane.f32.xlu1 %v3466_v11  ;;  %v7050_v60 = vpop.f32.mrf.mxu2 }
 0xcf3   : > { %v3426_v32 = vpop.xlane.xlu0 %3425 }
 0xcf4   : > { %v3440_v7 = vsub.f32 %v3403_v46, %v3426_v32  ;;  %v3708_v46 = vpop.f32.mrf.mxu0 }
 0xcf6   : > { %v3452_v4 = vmul.f32 1.442695, %v3440_v7 }
 0xcf8   : > { %5378 = vpow2.f32 %v3452_v4  ;;  %3508 = vrot.lane.b32.xlu2 %v6613_v55, %s5520_s17  ;;  %v7064_v45 = vpop.f32.mrf.mxu2 }
 0xcfb   : > { %v3429_v1 = vpop.xlane.xlu1 %3428 }
 0xcfc   : > { %3506 = vrot.lane.b32.xlu0 %v6619_v28, %s5520_s17  ;;  %v3441_v42 = vsub.f32 %v6990_v58, %v3429_v1  ;;  %v3724_v58 = vsel %vm1496_vm2, %v7079_v63, -inf }
 0xcfe   : > { %v7032_v41 = vpop.eup %5378  ;;  %v3454_v27 = vmul.f32 1.442695, %v3441_v42 }
 0xcff   : > { %v3472_v0 = vsel %vm1496_vm2, %v7032_v41, 0.0 }
 0xd00   : > { %3473 = vadd.xlane.f32.xlu1 %v3472_v0  ;;  %v3970_v53 = vpop.f32.mrf.mxu2 }
 0xd01   : > { %v7105_v1 = vadd.f32 %v6742_v48, %v3970_v53 }
 0xd03   : > { %v3432_v24 = vpop.xlane.xlu2 %3431 }
 0xd04   : > { %v3442_v57 = vsub.f32 %v3408_v19, %v3432_v24  ;;  %v3710_v19 = vpop.f32.mrf.mxu0  ;;  %v7096_v24 = vadd.f32 %v6788_v22, %v3708_v46 }
 0xd05   : > { %v7071_v16 = vadd.f32 %v6802_v29, %v3710_v19 }
 0xd06   : > { %v3456_v9 = vmul.f32 1.442695, %v3442_v57  ;;  %v3730_v57 = vsel %vm1496_vm2, %v7096_v24, -inf }
 0xd07   : > { %v3733_v25 = vsel %vm1496_vm2, %v7071_v16, -inf }
 0xd08   : > { %5380 = vpow2.f32 %v3456_v9  ;;  %v7091_v8 = vpop.f32.mrf.mxu2 }
 0xd09   : > { %5382 = vpow2.f32 %v3450_v37 }
 0xd0a   : > { %5384 = vpow2.f32 %v3454_v27 }
 0xd0b   : > { %v3435_v7 = vpop.xlane.xlu0 %3434 }
 0xd0c   : > { %v3713_v56 = vpop.f32.mrf.mxu0  ;;  %v3443_v4 = vsub.f32 %v6998_v39, %v3435_v7 }
 0xd0e   : > { %v7040_v44 = vpop.eup %5380  ;;  %v3458_v0 = vmul.f32 1.442695, %v3443_v4 }
 0xd0f   : > { %v3478_v34 = vsel %vm1496_vm2, %v7040_v44, 0.0  ;;  %v7068_v62 = vpop.eup %5382 }
 0xd10   : > { %3479 = vadd.xlane.f32.xlu1 %v3478_v34  ;;  %v3469_v43 = vsel %vm1496_vm2, %v7068_v62, 0.0  ;;  %v7088_v10 = vpop.eup %5384  ;;  %5386 = vpow2.f32 %v3458_v0  ;;  %v3975_v9 = vpop.f32.mrf.mxu2  ;;  %v7108_v34 = vadd.f32 %v6813_v30, %v3713_v56 }
 0xd11   : > { %v3475_v51 = vsel %vm1496_vm2, %v7088_v10, 0.0  ;;  %v7117_v37 = vadd.f32 %v6764_v14, %v3975_v9 }
 0xd12   : > { %v3736_v19 = vsel %vm1496_vm2, %v7108_v34, -inf }
 0xd13   : > { %v3511_v2 = vpop.permute.xlu1 %3510  ;;  %v3997_v48 = vsel %vm1496_vm2, %v7117_v37, -inf }
 0xd14   : > { %3532 = vmatpush.bf16.msrb.mxu1 %v3511_v2  ;;  %v3715_v52 = vpop.f32.mrf.mxu0  ;;  %v3991_v2 = vsel %vm1496_vm2, %v7105_v1, -inf }
 0xd15   : > { %v7082_v11 = vadd.f32 %v6827_v21, %v3715_v52 }
 0xd16   : > { %v7100_v6 = vpop.eup %5386 }
 0xd17   : > { %v3739_v32 = vsel %vm1496_vm2, %v7082_v11, -inf  ;;  %v3481_v39 = vsel %vm1496_vm2, %v7100_v6, 0.0 }
 0xd18   : > { %v7110_v46 = vpop.f32.mrf.mxu2 }
 0xd1b   : > { %v3505_v52 = vpop.permute.xlu1 %3504 }
 0xd21   : > { %3722 = vmax.xlane.f32.xlu2 %v3721_v47  ;;  %v3980_v47 = vpop.f32.mrf.mxu2 }
 0xd22   : > { %v7122_v56 = vadd.f32 %v6802_v29, %v3980_v47 }
 0xd26   : > { %3719 = vmax.xlane.f32.xlu0 %v3718_v13 }
 0xd29   : > { %3728 = vmax.xlane.f32.xlu2 %v3727_v17  ;;  %3816 = vrot.lane.b32.xlu1 %v6603_v36, %s7582_s29  ;;  %v4003_v17 = vsel %vm1496_vm2, %v7122_v56, -inf }
 0xd2e   : > { %3470 = vadd.xlane.f32.xlu0 %v3469_v43 }
 0xd31   : > { %3734 = vmax.xlane.f32.xlu2 %v3733_v25 }
 0xd36   : > { %3725 = vmax.xlane.f32.xlu0 %v3724_v58 }
 0xd39   : > { %3740 = vmax.xlane.f32.xlu2 %v3739_v32 }
 0xd3e   : > { %3476 = vadd.xlane.f32.xlu0 %v3475_v51 }
 0xd46   : > { %3731 = vmax.xlane.f32.xlu0 %v3730_v57 }
 0xd4e   : > { %3482 = vadd.xlane.f32.xlu0 %v3481_v39 }
 0xd53   : > { %3992 = vmax.xlane.f32.xlu1 %v3991_v2  ;;  %v3462_v18 = vpop.xlane.xlu2 %3461 }
 0xd56   : > { %3737 = vmax.xlane.f32.xlu0 %v3736_v19 }
 0xd5b   : > { %3998 = vmax.xlane.f32.xlu1 %v3997_v48  ;;  %v3509_v13 = vpop.permute.xlu2 %3508  ;;  %v3465_v42 = vpop.xlane.xlu0 %3464 }
 0xd5c   : > { %3533 = vmatpush.bf16.msrb.mxu1 %v3509_v13  ;;  %5388 = vrcp.f32 %v3465_v42 }
 0xd5d   : > { %5390 = vrcp.f32 %v3462_v18 }
 0xd62   : > { %v5389_v14 = vpop.eup %5388 }
 0xd63   : > { %4004 = vmax.xlane.f32.xlu1 %v4003_v17  ;;  %v5391_v27 = vpop.eup %5390  ;;  %v3493_v25 = vmul.f32 %v5389_v14, %v7016_v15  ;;  %v3468_v29 = vpop.xlane.xlu1 %3467 }
 0xd64   : > { %v3492_v53 = vmul.f32 %v5391_v27, %v7010_v26 }
 0xd66   : > { %v3500_v58 = vpack.c.bf16 %v3493_v25, %v3492_v53 }
 0xd6e   : > { %v3507_v43 = vpop.permute.xlu0 %3506 }
 0xd6f   : > { %3534 = vmatpush.bf16.msrb.mxu1 %v3507_v43 }
 0xd73   : > { %3535 = vmatpush.bf16.msrb.mxu1 %v3505_v52  ;;  %v3474_v32 = vpop.xlane.xlu1 %3473 }
 0xd76   : > { %4977 = vmatmul.msk.bf16.vlgmr.msrb.gmra.mxu1 %vm1496_vm2, %v3500_v58 }
 0xd7c   : > { %3812 = vrot.lane.b32.xlu1 %v6619_v28, %s7582_s29 }
 0xd83   : > { %v3480_v7 = vpop.xlane.xlu1 %3479 }
 0xd94   : > { %v3723_v4 = vpop.xlane.xlu2 %3722 }
 0xd95   : > { %v3743_v51 = vsub.f32 %v7047_v12, %v3723_v4  ;;  %v7141_v12 = vadd.f32 %v6732_v5, %v7064_v45  ;;  %v7153_v5 = vadd.f32 %v6754_v49, %v7091_v8 }
 0xd97   : > { %v3752_v0 = vmul.f32 1.442695, %v3743_v51  ;;  %v3988_v13 = vsel %vm1496_vm2, %v7141_v12, -inf  ;;  %v3994_v45 = vsel %vm1496_vm2, %v7153_v5, -inf }
 0xd99   : > { %5392 = vpow2.f32 %v3752_v0  ;;  %v3720_v57 = vpop.xlane.xlu0 %3719 }
 0xd9a   : > { %v3742_v15 = vsub.f32 %v7055_v50, %v3720_v57 }
 0xd9b   : > { %v3817_v9 = vpop.permute.xlu1 %3816 }
 0xd9c   : > { %v3750_v26 = vmul.f32 1.442695, %v3742_v15  ;;  %3838 = vmatpush.bf16.msra.mxu1 %v3817_v9 }
 0xd9e   : > { %5394 = vpow2.f32 %v3750_v26 }
 0xd9f   : > { %v7133_v39 = vpop.eup %5392  ;;  %5396 = vrcp.f32 %v3468_v29  ;;  %v3729_v29 = vpop.xlane.xlu2 %3728 }
 0xda0   : > { %v3769_v2 = vsel %vm1496_vm2, %v7133_v39, 0.0  ;;  %v3745_v51 = vsub.f32 %v7058_v31, %v3729_v29 }
 0xda1   : > { %v3471_v18 = vpop.xlane.xlu0 %3470  ;;  %3770 = vadd.xlane.f32.xlu2 %v3769_v2 }
 0xda2   : > { %5398 = vrcp.f32 %v3471_v18  ;;  %v3756_v9 = vmul.f32 1.442695, %v3745_v51 }
 0xda3   : > { %5400 = vrcp.f32 %v3474_v32 }
 0xda4   : > { %v7137_v19 = vpop.eup %5394 }
 0xda5   : > { %v3766_v50 = vsel %vm1496_vm2, %v7137_v19, 0.0  ;;  %v5397_v48 = vpop.eup %5396 }
 0xda6   : > { %3767 = vadd.xlane.f32.xlu0 %v3766_v50  ;;  %v3494_v17 = vmul.f32 %v5397_v48, %v7022_v54  ;;  %v7160_v54 = vadd.f32 %v6788_v22, %v7110_v46 }
 0xda8   : > { %v5399_v47 = vpop.eup %5398  ;;  %v4000_v52 = vsel %vm1496_vm2, %v7160_v54, -inf }
 0xda9   : > { %v3495_v42 = vmul.f32 %v5399_v47, %v7068_v62  ;;  %v7149_v14 = vpop.xlane.xlu0 %3725  ;;  %3989 = vmax.xlane.f32.xlu2 %v3988_v13  ;;  %v5401_v62 = vpop.eup %5400 }
 0xdaa   : > { %v3496_v49 = vmul.f32 %v5401_v62, %v7032_v41 }
 0xdab   : > { %v3501_v43 = vpack.c.bf16 %v3495_v42, %v3494_v17  ;;  %v3735_v17 = vpop.xlane.xlu2 %3734  ;;  %v3983_v42 = vpop.f32.mrf.mxu2 }
 0xdad   : > { %4978 = vmatmul.msk.bf16.gmra.mxu1 %vm1496_vm2, %v3501_v43 }
 0xdb1   : > { %v3477_v27 = vpop.xlane.xlu0 %3476  ;;  %3995 = vmax.xlane.f32.xlu2 %v3994_v45  ;;  %v7205_v45 = vadd.f32 %v6813_v30, %v3983_v42  ;;  %v3744_v30 = vsub.f32 %v7079_v63, %v7149_v14 }
 0xdb2   : > { %5402 = vrcp.f32 %v3477_v27 }
 0xdb3   : > { %5404 = vrcp.f32 %v3480_v7  ;;  %v7202_v43 = vpop.xlane.xlu2 %3740  ;;  %v3985_v27 = vpop.f32.mrf.mxu2 }
 0xdb8   : > { %v5403_v25 = vpop.eup %5402 }
 0xdb9   : > { %v3497_v8 = vmul.f32 %v5403_v25, %v7088_v10  ;;  %v7166_v53 = vpop.xlane.xlu0 %3731  ;;  %4001 = vmax.xlane.f32.xlu2 %v4000_v52  ;;  %v5405_v46 = vpop.eup %5404 }
 0xdba   : > { %3814 = vrot.lane.b32.xlu0 %v6613_v55, %s7582_s29  ;;  %v3498_v10 = vmul.f32 %v5405_v46, %v7040_v44 }
 0xdbb   : > { %v3502_v58 = vpack.c.bf16 %v3497_v8, %v3496_v49 }
 0xdbd   : > { %4979 = vmatmul.msk.bf16.gmra.mxu1 %vm1496_vm2, %v3502_v58 }
 0xdc1   : > { %v3483_v22 = vpop.xlane.xlu0 %3482 }
 0xdc2   : > { %5406 = vrcp.f32 %v3483_v22  ;;  %v3754_v22 = vmul.f32 1.442695, %v3744_v30 }
 0xdc6   : > { %v3993_v32 = vpop.xlane.xlu1 %3992 }
 0xdc7   : > { %v4013_v4 = vsub.f32 %v7105_v1, %v3993_v32 }
 0xdc8   : > { %v5407_v41 = vpop.eup %5406 }
 0xdc9   : > { %v3499_v0 = vmul.f32 %v5407_v41, %v7100_v6  ;;  %v4022_v57 = vmul.f32 1.442695, %v4013_v4  ;;  %v3738_v52 = vpop.xlane.xlu0 %3737 }
 0xdcb   : > { %5408 = vpow2.f32 %v4022_v57  ;;  %v3503_v15 = vpack.c.bf16 %v3499_v0, %v3498_v10  ;;  %v3747_v57 = vsub.f32 %v7071_v16, %v3735_v17 }
 0xdcc   : > { %5410 = vpow2.f32 %v3756_v9 }
 0xdcd   : > { %4980 = vmatmul.msk.bf16.gmra.mxu1 %vm1496_vm2, %v3503_v15  ;;  %v3748_v15 = vsub.f32 %v7108_v34, %v3738_v52 }
 0xdce   : > { %v3999_v7 = vpop.xlane.xlu1 %3998 }
 0xdcf   : > { %v4015_v2 = vsub.f32 %v7117_v37, %v3999_v7  ;;  %v4962_v37 = vld [vmem:[%s7547_s9 + $0x14] sm:$0xf] }
 0xdd1   : > { %v7176_v26 = vpop.eup %5408  ;;  %4086 = vrot.lane.b32.xlu2 %v6603_v36, %s7583_s27  ;;  %v4026_v31 = vmul.f32 1.442695, %v4015_v2  ;;  %v3574_v36 = vsel %vm1876_vm3, %v4962_v37, 0  ;;  %v3760_v2 = vmul.f32 1.442695, %v3747_v57 }
 0xdd2   : > { %v4039_v44 = vsel %vm1496_vm2, %v7176_v26, 0.0  ;;  %v7183_v6 = vpop.eup %5410  ;;  %3583 = vmatpush.bf16.msrb.mxu3 %v3574_v36 }
 0xdd3   : > { %4040 = vadd.xlane.f32.xlu1 %v4039_v44  ;;  %5412 = vpow2.f32 %v4026_v31  ;;  %v3775_v1 = vsel %vm1496_vm2, %v7183_v6, 0.0 }
 0xdd6   : > { %v4005_v4 = vpop.xlane.xlu1 %4004 }
 0xdd7   : > { %v4017_v36 = vsub.f32 %v7122_v56, %v4005_v4 }
 0xdd9   : > { %3810 = vrot.lane.b32.xlu2 %v6623_v33, %s7582_s29  ;;  %v7193_v18 = vpop.eup %5412  ;;  %v4030_v17 = vmul.f32 1.442695, %v4017_v36 }
 0xdda   : > { %v4045_v50 = vsel %vm1496_vm2, %v7193_v18, 0.0 }
 0xddb   : > { %3776 = vadd.xlane.f32.xlu1 %v3775_v1 }
 0xde1   : > { %4084 = vrot.lane.b32.xlu2 %v6613_v55, %s7583_s27  ;;  %v4006_v55 = vsel %vm1496_vm2, %v7205_v45, -inf }
 0xde3   : > { %4046 = vadd.xlane.f32.xlu1 %v4045_v50 }
 0xde9   : > { %4082 = vrot.lane.b32.xlu2 %v6619_v28, %s7583_s27  ;;  %v7210_v28 = vadd.f32 %v6827_v21, %v3985_v27 }
 0xdeb   : > { %v4009_v25 = vsel %vm1496_vm2, %v7210_v28, -inf }
 0xdee   : > { %v3813_v9 = vpop.permute.xlu1 %3812 }
 0xdf3   : > { %v3537_v48 = vpop.f32.mrf.mxu1 }
 0xdfb   : > { %v3539_v47 = vpop.f32.mrf.mxu1 }
 0xdfc   : > { %v3557_v13 = vpack.c.bf16 %v3539_v47, %v3537_v48 }
 0xdfe   : > { %4981 = vmatmul.msk.bf16.vlgmr.msrb.gmra.mxu3 %vm1442_vm1, %v3557_v13 }
 0xe12   : > { %4007 = vmax.xlane.f32.xlu2 %v4006_v55 }
 0xe14   : > { %v3771_v62 = vpop.xlane.xlu2 %3770 }
 0xe19   : > { %v3768_v46 = vpop.xlane.xlu0 %3767 }
 0xe1a   : > { %4010 = vmax.xlane.f32.xlu2 %v4009_v25  ;;  %v3749_v25 = vsub.f32 %v7082_v11, %v7202_v43  ;;  %v3746_v43 = vsub.f32 %v7096_v24, %v7166_v53 }
 0xe1c   : > { %v3990_v49 = vpop.xlane.xlu2 %3989 }
 0xe1d   : > { %v4012_v8 = vsub.f32 %v7141_v12, %v3990_v49  ;;  %v3764_v49 = vmul.f32 1.442695, %v3749_v25 }
 0xe1f   : > { %v4020_v58 = vmul.f32 1.442695, %v4012_v8 }
 0xe21   : > { %5414 = vpow2.f32 %v4020_v58 }
 0xe22   : > { %5416 = vpow2.f32 %v3754_v22 }
 0xe24   : > { %v3996_v29 = vpop.xlane.xlu2 %3995 }
 0xe25   : > { %v4014_v21 = vsub.f32 %v7153_v5, %v3996_v29 }
 0xe27   : > { %v7217_v32 = vpop.eup %5414  ;;  %v4024_v12 = vmul.f32 1.442695, %v4014_v21  ;;  %v3758_v21 = vmul.f32 1.442695, %v3746_v43 }
 0xe28   : > { %v4036_v41 = vsel %vm1496_vm2, %v7217_v32, 0.0  ;;  %v7222_v63 = vpop.eup %5416 }
 0xe29   : > { %4037 = vadd.xlane.f32.xlu0 %v4036_v41  ;;  %5418 = vpow2.f32 %v4024_v12  ;;  %v3772_v7 = vsel %vm1496_vm2, %v7222_v63, 0.0 }
 0xe2a   : > { %v3542_v10 = vpop.f32.mrf.mxu1  ;;  %5420 = vrcp.f32 %v3768_v46 }
 0xe2c   : > { %v3815_v51 = vpop.permute.xlu0 %3814  ;;  %v4002_v0 = vpop.xlane.xlu2 %4001 }
 0xe2d   : > { %v4016_v14 = vsub.f32 %v7160_v54, %v4002_v0  ;;  %3839 = vmatpush.bf16.msra.mxu1 %v3815_v51  ;;  %v3762_v54 = vmul.f32 1.442695, %v3748_v15 }
 0xe2f   : > { %v4028_v5 = vmul.f32 1.442695, %v4016_v14  ;;  %v7231_v34 = vpop.eup %5418 }
 0xe30   : > { %v5421_v1 = vpop.eup %5420  ;;  %v4042_v50 = vsel %vm1496_vm2, %v7231_v34, 0.0 }
 0xe31   : > { %5422 = vpow2.f32 %v4028_v5  ;;  %3840 = vmatpush.bf16.msra.mxu1 %v3813_v9  ;;  %3773 = vadd.xlane.f32.xlu0 %v3772_v7  ;;  %v3798_v47 = vmul.f32 %v5421_v1, %v7137_v19 }
 0xe32   : > { %v3544_v44 = vpop.f32.mrf.mxu1  ;;  %4080 = vrot.lane.b32.xlu2 %v6623_v33, %s7583_s27  ;;  %5424 = vrcp.f32 %v3771_v62 }
 0xe33   : > { %v3558_v16 = vpack.c.bf16 %v3544_v44, %v3542_v10  ;;  %5426 = vpow2.f32 %v3760_v2 }
 0xe34   : > { %v4087_v31 = vpop.permute.xlu2 %4086  ;;  %5428 = vpow2.f32 %v3762_v54 }
 0xe35   : > { %4982 = vmatmul.msk.bf16.gmra.mxu3 %vm1442_vm1, %v3558_v16  ;;  %4108 = vmatpush.bf16.msra.mxu0 %v4087_v31  ;;  %5430 = vpow2.f32 %v4030_v17 }
 0xe36   : > { %5432 = vpow2.f32 %v3764_v49 }
 0xe37   : > { %v7234_v37 = vpop.eup %5422  ;;  %5434 = vpow2.f32 %v3758_v21 }
 0xe38   : > { %v4048_v33 = vsel %vm1496_vm2, %v7234_v37, 0.0  ;;  %v5425_v48 = vpop.eup %5424 }
 0xe39   : > { %4043 = vadd.xlane.f32.xlu0 %v4042_v50  ;;  %4049 = vadd.xlane.f32.xlu1 %v4048_v33  ;;  %v7242_v42 = vpop.eup %5426  ;;  %v3799_v55 = vmul.f32 %v5425_v48, %v7133_v39  ;;  %v4963_v33 = vld [vmem:[%s7547_s9 + $0x18] sm:$0xf] }
 0xe3a   : > { %v3547_v13 = vpop.f32.mrf.mxu1  ;;  %v7245_v62 = vpop.eup %5428  ;;  %v3781_v19 = vsel %vm1496_vm2, %v7242_v42, 0.0  ;;  %v3880_v48 = vsel %vm1876_vm3, %v4963_v33, 0 }
 0xe3b   : > { %v3806_v56 = vpack.c.bf16 %v3799_v55, %v3798_v47  ;;  %v3784_v52 = vsel %vm1496_vm2, %v7245_v62, 0.0  ;;  %v7254_v58 = vpop.eup %5430  ;;  %3889 = vmatpush.bf16.msra.mxu3 %v3880_v48 }
 0xe3c   : > { %v3811_v27 = vpop.permute.xlu2 %3810  ;;  %v4051_v11 = vsel %vm1496_vm2, %v7254_v58, 0.0  ;;  %v7261_v29 = vpop.eup %5432 }
 0xe3d   : > { %3841 = vmatpush.bf16.msra.mxu1 %v3811_v27  ;;  %v3787_v4 = vsel %vm1496_vm2, %v7261_v29, 0.0  ;;  %v7266_v12 = vpop.eup %5434 }
 0xe3e   : > { %v3778_v24 = vsel %vm1496_vm2, %v7266_v12, 0.0 }
 0xe40   : > { %4993 = vmatmul.msk.bf16.vlgmr.msra.gmra.mxu1 %vm1496_vm2, %v3806_v56 }
 0xe41   : > { %3782 = vadd.xlane.f32.xlu0 %v3781_v19  ;;  %3785 = vadd.xlane.f32.xlu1 %v3784_v52 }
 0xe42   : > { %v3549_v39 = vpop.f32.mrf.mxu1 }
 0xe43   : > { %v3559_v8 = vpack.c.bf16 %v3549_v39, %v3547_v13 }
 0xe44   : > { %v4085_v30 = vpop.permute.xlu2 %4084 }
 0xe45   : > { %4983 = vmatmul.msk.bf16.gmra.mxu3 %vm1442_vm1, %v3559_v8  ;;  %4109 = vmatpush.bf16.msra.mxu0 %v4085_v30 }
 0xe46   : > { %v4041_v7 = vpop.xlane.xlu1 %4040 }
 0xe49   : > { %4052 = vadd.xlane.f32.xlu0 %v4051_v11 }
 0xe4a   : > { %v3552_v22 = vpop.f32.mrf.mxu1 }
 0xe4c   : > { %v4083_v46 = vpop.permute.xlu2 %4082 }
 0xe4d   : > { %4110 = vmatpush.bf16.msra.mxu0 %v4083_v46 }
 0xe51   : > { %3788 = vadd.xlane.f32.xlu0 %v3787_v4 }
 0xe52   : > { %v3554_v41 = vpop.f32.mrf.mxu1 }
 0xe53   : > { %v3560_v10 = vpack.c.bf16 %v3554_v41, %v3552_v22 }
 0xe55   : > { %4984 = vmatmul.msk.bf16.gmra.mxu3 %vm1442_vm1, %v3560_v10 }
 0xe5b   : > { %3779 = vadd.xlane.f32.xlu2 %v3778_v24 }
 0xe85   : > { %v4008_v53 = vpop.xlane.xlu2 %4007 }
 0xe86   : > { %v4018_v51 = vsub.f32 %v7205_v45, %v4008_v53 }
 0xe88   : > { %v4032_v0 = vmul.f32 1.442695, %v4018_v51 }
 0xe8a   : > { %5436 = vpow2.f32 %v4032_v0 }
 0xe8d   : > { %v4011_v14 = vpop.xlane.xlu2 %4010 }
 0xe8e   : > { %v4019_v57 = vsub.f32 %v7210_v28, %v4011_v14  ;;  %v3777_v28 = vpop.xlane.xlu1 %3776 }
 0xe90   : > { %v7272_v15 = vpop.eup %5436  ;;  %v4034_v5 = vmul.f32 1.442695, %v4019_v57 }
 0xe91   : > { %v4054_v9 = vsel %vm1496_vm2, %v7272_v15, 0.0 }
 0xe92   : > { %5438 = vpow2.f32 %v4034_v5  ;;  %4055 = vadd.xlane.f32.xlu1 %v4054_v9 }
 0xe93   : > { %5440 = vrcp.f32 %v4041_v7 }
 0xe95   : > { %v4081_v2 = vpop.permute.xlu2 %4080 }
 0xe96   : > { %4111 = vmatpush.bf16.msra.mxu0 %v4081_v2  ;;  %v4047_v13 = vpop.xlane.xlu1 %4046 }
 0xe98   : > { %v7276_v44 = vpop.eup %5438 }
 0xe99   : > { %v4057_v45 = vsel %vm1496_vm2, %v7276_v44, 0.0  ;;  %v5441_v16 = vpop.eup %5440 }
 0xe9a   : > { %4058 = vadd.xlane.f32.xlu0 %v4057_v45  ;;  %v4069_v1 = vmul.f32 %v5441_v16, %v7176_v26 }
 0xe9c   : > { %v4038_v54 = vpop.xlane.xlu0 %4037 }
 0xe9d   : > { %5442 = vrcp.f32 %v4038_v54 }
 0xe9e   : > { %5444 = vrcp.f32 %v3777_v28 }
 0xea3   : > { %v5443_v31 = vpop.eup %5442 }
 0xea4   : > { %v4068_v36 = vmul.f32 %v5443_v31, %v7217_v32  ;;  %v3774_v50 = vpop.xlane.xlu0 %3773  ;;  %v5445_v17 = vpop.eup %5444 }
 0xea5   : > { %5446 = vrcp.f32 %v3774_v50  ;;  %v3801_v26 = vmul.f32 %v5445_v17, %v7183_v6 }
 0xea6   : > { %v4076_v47 = vpack.c.bf16 %v4069_v1, %v4068_v36  ;;  %5448 = vrcp.f32 %v4047_v13 }
 0xea8   : > { %5005 = vmatmul.msk.bf16.vlgmr.msra.gmra.mxu0 %vm1496_vm2, %v4076_v47 }
 0xeab   : > { %v5447_v55 = vpop.eup %5446 }
 0xeac   : > { %v3800_v32 = vmul.f32 %v5447_v55, %v7222_v63  ;;  %v4044_v27 = vpop.xlane.xlu0 %4043  ;;  %v5449_v25 = vpop.eup %5448 }
 0xead   : > { %5450 = vrcp.f32 %v4044_v27  ;;  %v4071_v52 = vmul.f32 %v5449_v25, %v7193_v18  ;;  %v4050_v30 = vpop.xlane.xlu1 %4049 }
 0xeae   : > { %v3807_v56 = vpack.c.bf16 %v3801_v26, %v3800_v32  ;;  %5452 = vrcp.f32 %v4050_v30  ;;  %v3585_v26 = vpop.f32.mrf.mxu3 }
 0xeb0   : > { %4994 = vmatmul.msk.bf16.gmra.mxu1 %vm1496_vm2, %v3807_v56 }
 0xeb3   : > { %v5451_v19 = vpop.eup %5450 }
 0xeb4   : > { %v4070_v39 = vmul.f32 %v5451_v19, %v7231_v34  ;;  %v3783_v49 = vpop.xlane.xlu0 %3782  ;;  %v5453_v11 = vpop.eup %5452 }
 0xeb5   : > { %v4072_v22 = vmul.f32 %v5453_v11, %v7234_v37  ;;  %v3786_v0 = vpop.xlane.xlu1 %3785 }
 0xeb6   : > { %v4077_v8 = vpack.c.bf16 %v4071_v52, %v4070_v39  ;;  %v3587_v56 = vpop.f32.mrf.mxu3 }
 0xeb8   : > { %5006 = vmatmul.msk.bf16.gmra.mxu0 %vm1496_vm2, %v4077_v8 }
 0xebc   : > { %v4053_v6 = vpop.xlane.xlu0 %4052 }
 0xebd   : > { %5454 = vrcp.f32 %v4053_v6  ;;  %v3843_v63 = vpop.f32.mrf.mxu1 }
 0xebe   : > { %5456 = vrcp.f32 %v3783_v49  ;;  %v3590_v19 = vpop.f32.mrf.mxu3 }
 0xec3   : > { %v5455_v43 = vpop.eup %5454 }
 0xec4   : > { %v4073_v46 = vmul.f32 %v5455_v43, %v7254_v58  ;;  %v5457_v41 = vpop.eup %5456  ;;  %v3789_v51 = vpop.xlane.xlu0 %3788 }
 0xec5   : > { %v3845_v21 = vpop.f32.mrf.mxu1  ;;  %v3803_v24 = vmul.f32 %v5457_v41, %v7242_v42  ;;  %v4964_v42 = vld [vmem:[%s7547_s9 + $0x1c] sm:$0xf] }
 0xec6   : > { %v3863_v4 = vpack.c.bf16 %v3845_v21, %v3843_v63  ;;  %v4078_v18 = vpack.c.bf16 %v4073_v46, %v4072_v22  ;;  %v3592_v49 = vpop.f32.mrf.mxu3  ;;  %v3630_v21 = vadd.f32 %v7008_v23, %v3585_v26 }
 0xec8   : > { %4997 = vmatmul.msk.bf16.vlgmr.msra.gmra.mxu3 %vm1442_vm1, %v3863_v4  ;;  %5007 = vmatmul.msk.bf16.gmra.mxu0 %vm1496_vm2, %v4078_v18  ;;  %v7323_v18 = vld [vmem:[%s7548_s10 + $0x1] ss:$0 sm:$0xff] }
 0xece   : > { %v3780_v34 = vpop.xlane.xlu2 %3779  ;;  %v3595_v8 = vpop.f32.mrf.mxu3 }
 0xecf   : > { %5458 = vrcp.f32 %v3780_v34 }
 0xed0   : > { %5460 = vrcp.f32 %v3789_v51  ;;  %v7584_v51 = vld [vmem:[#allocation4_spill] sm:$0xff] }
 0xed1   : > { %5462 = vrcp.f32 %v3786_v0 }
 0xed5   : > { %v5459_v10 = vpop.eup %5458 }
 0xed6   : > { %v3802_v53 = vmul.f32 %v5459_v10, %v7266_v12  ;;  %v5461_v58 = vpop.eup %5460  ;;  %v4150_v12 = vsel %vm1876_vm3, %v4964_v42, 0  ;;  %v3597_v30 = vpop.f32.mrf.mxu3 }
 0xed7   : > { %v5463_v14 = vpop.eup %5462  ;;  %v3805_v57 = vmul.f32 %v5461_v58, %v7261_v29  ;;  %4159 = vmatpush.bf16.msrb.mxu1 %v4150_v12  ;;  %v3642_v26 = vadd.f32 %v7038_v40, %v3597_v30 }
 0xed8   : > { %v3808_v37 = vpack.c.bf16 %v3803_v24, %v3802_v53  ;;  %v3804_v5 = vmul.f32 %v5463_v14, %v7245_v62  ;;  %v3632_v53 = vadd.f32 %v7014_v61, %v3587_v56 }
 0xeda   : > { %4995 = vmatmul.msk.bf16.gmra.mxu1 %vm1496_vm2, %v3808_v37  ;;  %v3809_v9 = vpack.c.bf16 %v3805_v57, %v3804_v5  ;;  %v3635_v5 = vadd.f32 %v7020_v3, %v3590_v19 }
 0xede   : > { %v3600_v6 = vpop.f32.mrf.mxu3 }
 0xedf   : > { %v3645_v30 = vadd.f32 %v7044_v59, %v3600_v6 }
 0xee6   : > { %v7316_v43 = vpop.f32.mrf.mxu3 }
 0xeea   : > { %4996 = vmatmul.msk.bf16.gmra.mxu1 %vm1496_vm2, %v3809_v9  ;;  %v7585_v9 = vld [vmem:[#allocation5_spill] sm:$0xff] }
 0xf05   : > { %v4056_v7 = vpop.xlane.xlu1 %4055 }
 0xf06   : > { %5464 = vrcp.f32 %v4056_v7 }
 0xf0c   : > { %v5465_v45 = vpop.eup %5464 }
 0xf0d   : > { %v4059_v2 = vpop.xlane.xlu0 %4058  ;;  %v4074_v29 = vmul.f32 %v5465_v45, %v7272_v15 }
 0xf0e   : > { %5466 = vrcp.f32 %v4059_v2 }
 0xf14   : > { %v5467_v54 = vpop.eup %5466 }
 0xf15   : > { %v4075_v62 = vmul.f32 %v5467_v54, %v7276_v44 }
 0xf17   : > { %v4079_v28 = vpack.c.bf16 %v4075_v62, %v4074_v29  ;;  %v3637_v29 = vadd.f32 %v7026_v38, %v3592_v49  ;;  %v7586_v62 = vld [vmem:[#allocation2_spill] sm:$0xff]  ;;  %v3640_v38 = vadd.f32 %v7036_v20, %v3595_v8 }
 0xf18   : > { %v7589_v49 = vld [vmem:[#allocation10_spill] sm:$0xff] }
 0xf19   : > { %5008 = vmatmul.msk.bf16.gmra.mxu0 %vm1496_vm2, %v4079_v28 }
 0xf25   : > { %v4113_v16 = vpop.f32.mrf.mxu0 }
 0xf2d   : > { %v3848_v31 = vpop.f32.mrf.mxu1  ;;  %v4115_v1 = vpop.f32.mrf.mxu0 }
 0xf2e   : > { %v4133_v36 = vpack.c.bf16 %v4115_v1, %v4113_v16 }
 0xf30   : > { %5009 = vmatmul.msk.bf16.vlgmr.msrb.gmra.mxu1 %vm1442_vm1, %v4133_v36 }
 0xf35   : > { %v3850_v50 = vpop.f32.mrf.mxu1  ;;  %v4118_v33 = vpop.f32.mrf.mxu0 }
 0xf36   : > { %v3864_v48 = vpack.c.bf16 %v3850_v50, %v3848_v31 }
 0xf38   : > { %4998 = vmatmul.msk.bf16.gmra.mxu3 %vm1442_vm1, %v3864_v48 }
 0xf3d   : > { %v4120_v47 = vpop.f32.mrf.mxu0 }
 0xf3e   : > { %v4134_v13 = vpack.c.bf16 %v4120_v47, %v4118_v33  ;;  %v7587_v33 = vld [vmem:[#allocation3_spill] sm:$0xff] }
 0xf40   : > { %5010 = vmatmul.msk.bf16.gmra.mxu1 %vm1442_vm1, %v4134_v13 }
 0xf45   : > { %v4123_v15 = vpop.f32.mrf.mxu0 }
 0xf4b   : > { %v3891_v46 = vpop.f32.mrf.mxu3 }
 0xf4c   : > { %v3911_v4 = vadd.f32 %v3891_v46, %v3630_v21 }
 0xf4d   : > { %v4125_v44 = vpop.f32.mrf.mxu0 }
 0xf4e   : > { %v4135_v17 = vpack.c.bf16 %v4125_v44, %v4123_v15 }
 0xf50   : > { %5011 = vmatmul.msk.bf16.gmra.mxu1 %vm1442_vm1, %v4135_v17 }
 0xf53   : > { %v3893_v24 = vpop.f32.mrf.mxu3 }
 0xf54   : > { %v3912_v0 = vadd.f32 %v3893_v24, %v3632_v53  ;;  %v3647_v24 = vadd.f32 %v7050_v60, %v7316_v43  ;;  %v7591_v43 = vld [vmem:[#allocation11_spill] sm:$0xff] }
 0xf57   : > { %v3853_v55 = vpop.f32.mrf.mxu1 }
 0xf5f   : > { %v3855_v32 = vpop.f32.mrf.mxu1 }
 0xf60   : > { %v3865_v27 = vpack.c.bf16 %v3855_v32, %v3853_v55  ;;  %v7588_v32 = vld [vmem:[#allocation9_spill] sm:$0xff] }
 0xf62   : > { %4999 = vmatmul.msk.bf16.gmra.mxu3 %vm1442_vm1, %v3865_v27 }
 0xf67   : > { %v3858_v25 = vpop.f32.mrf.mxu1 }
 0xf6f   : > { %v3860_v52 = vpop.f32.mrf.mxu1 }
 0xf70   : > { %v3866_v39 = vpack.c.bf16 %v3860_v52, %v3858_v25 }
 0xf72   : > { %5000 = vmatmul.msk.bf16.gmra.mxu3 %vm1442_vm1, %v3866_v39 }
 0xf96   : > { %v4128_v63 = vpop.f32.mrf.mxu0 }
 0xf9e   : > { %v4130_v11 = vpop.f32.mrf.mxu0 }
 0xf9f   : > { %v4136_v22 = vpack.c.bf16 %v4130_v11, %v4128_v63 }
 0xfa1   : > { %5012 = vmatmul.msk.bf16.gmra.mxu1 %vm1442_vm1, %v4136_v22 }
 0xfad   : > { %v4161_v34 = vpop.f32.mrf.mxu1 }
 0xfae   : > { %v4181_v41 = vadd.f32 %v4161_v34, %v3911_v4  ;;  %v7590_v4 = vld [vmem:[#allocation8_spill] sm:$0xff] }
 0xfb0   : > { %v4194_v10 = vadd.f32 %v7323_v18, %v4181_v41 }
 0xfb2   : > { %v7328_v37 = vadd.f32 %v4194_v10, %v7584_v51 }
 0xfb4   : > { %v4210_v23 = vsel %vm575_vm0, %v7328_v37, 0.0 }
 0xfb5   : > { %4211 = vadd.xlane.f32.xlu1 %v4210_v23  ;;  %v4163_v58 = vpop.f32.mrf.mxu1 }
 0xfb6   : > { %v4182_v14 = vadd.f32 %v4163_v58, %v3912_v0 }
 0xfb8   : > { %v4195_v57 = vadd.f32 %v7323_v18, %v4182_v14 }
 0xfba   : > { %v7335_v42 = vadd.f32 %v4195_v57, %v7585_v9 }
 0xfbb   : > { %v3896_v12 = vpop.f32.mrf.mxu3 }
 0xfbc   : > { %v3913_v7 = vadd.f32 %v3896_v12, %v3635_v5  ;;  %v4213_v61 = vsel %vm575_vm0, %v7335_v42, 0.0 }
 0xfbd   : > { %4214 = vadd.xlane.f32.xlu0 %v4213_v61  ;;  %v4166_v2 = vpop.f32.mrf.mxu1 }
 0xfbe   : > { %v4183_v45 = vadd.f32 %v4166_v2, %v3913_v7 }
 0xfc0   : > { %v4196_v54 = vadd.f32 %v7323_v18, %v4183_v45 }
 0xfc2   : > { %v7342_v28 = vadd.f32 %v4196_v54, %v7586_v62 }
 0xfc3   : > { %v3898_v16 = vpop.f32.mrf.mxu3 }
 0xfc4   : > { %v3914_v3 = vadd.f32 %v3898_v16, %v3637_v29  ;;  %v4216_v31 = vsel %vm575_vm0, %v7342_v28, 0.0 }
 0xfc5   : > { %4217 = vadd.xlane.f32.xlu1 %v4216_v31  ;;  %v4168_v1 = vpop.f32.mrf.mxu1 }
 0xfc6   : > { %v4184_v36 = vadd.f32 %v4168_v1, %v3914_v3 }
 0xfc8   : > { %v4197_v50 = vadd.f32 %v7323_v18, %v4184_v36 }
 0xfca   : > { %v7348_v48 = vadd.f32 %v4197_v50, %v7587_v33 }
 0xfcc   : > { %v4219_v47 = vsel %vm575_vm0, %v7348_v48, 0.0 }
 0xfcd   : > { %4220 = vadd.xlane.f32.xlu2 %v4219_v47  ;;  %v4171_v13 = vpop.f32.mrf.mxu1 }
 0xfd5   : > { %v4173_v52 = vpop.f32.mrf.mxu1 }
 0xfe5   : > { %v3901_v15 = vpop.f32.mrf.mxu3 }
 0xfe6   : > { %v3915_v44 = vadd.f32 %v3901_v15, %v3640_v38 }
 0xfe8   : > { %v4185_v17 = vadd.f32 %v4171_v13, %v3915_v44 }
 0xfea   : > { %v4198_v55 = vadd.f32 %v7323_v18, %v4185_v17 }
 0xfec   : > { %v7356_v27 = vadd.f32 %v4198_v55, %v7588_v32 }
 0xfed   : > { %v3903_v56 = vpop.f32.mrf.mxu3 }
 0xfee   : > { %v3916_v25 = vadd.f32 %v3903_v56, %v3642_v26  ;;  %v4222_v19 = vsel %vm575_vm0, %v7356_v27, 0.0 }
 0xfef   : > { %4223 = vadd.xlane.f32.xlu0 %v4222_v19 }
 0xff0   : > { %v4186_v39 = vadd.f32 %v4173_v52, %v3916_v25  ;;  %v5103_v52 = vld [vmem:[%s7549_s11 + $0x18] sm:$0xff] }
 0xff1   : > { %4430 = vmatpush.bf16.msrb.mxu3 %v5103_v52 }
 0xff2   : > { %v4199_v20 = vadd.f32 %v7323_v18, %v4186_v39 }
 0xff4   : > { %v7362_v8 = vadd.f32 %v4199_v20, %v7589_v49  ;;  %v5102_v20 = vld [vmem:[%s7549_s11 + $0x10] sm:$0xff] }
 0xff5   : > { %v3906_v40 = vpop.f32.mrf.mxu3  ;;  %4431 = vmatpush.bf16.msrb.mxu3 %v5102_v20 }
 0xff6   : > { %v4225_v63 = vsel %vm575_vm0, %v7362_v8, 0.0  ;;  %v3917_v11 = vadd.f32 %v3906_v40, %v3645_v30 }
 0xff7   : > { %4226 = vadd.xlane.f32.xlu1 %v4225_v63 }
 0xffd   : > { %v3908_v10 = vpop.f32.mrf.mxu3 }
 0xffe   : > { %v3918_v0 = vadd.f32 %v3908_v10, %v3647_v24 }
0x101e   : > { %v4176_v22 = vpop.f32.mrf.mxu1 }
0x101f   : > { %v4187_v46 = vadd.f32 %v4176_v22, %v3917_v11 }
0x1021   : > { %v4200_v21 = vadd.f32 %v7323_v18, %v4187_v46 }
0x1023   : > { %v7369_v34 = vadd.f32 %v4200_v21, %v7590_v4 }
0x1025   : > { %v4228_v41 = vsel %vm575_vm0, %v7369_v34, 0.0 }
0x1026   : > { %4229 = vadd.xlane.f32.xlu1 %v4228_v41  ;;  %v4178_v53 = vpop.f32.mrf.mxu1 }
0x1027   : > { %v4188_v6 = vadd.f32 %v4178_v53, %v3918_v0 }
0x1028   : > { %v4212_v51 = vpop.xlane.xlu1 %4211 }
0x1029   : > { %v4234_v59 = vmul.f32 %v4212_v51, %v6547_v35  ;;  %v4201_v14 = vadd.f32 %v7323_v18, %v4188_v6 }
0x102b   : > { %v7377_v23 = vsub.f32 %v7328_v37, %v4234_v59  ;;  %v7385_v9 = vadd.f32 %v4201_v14, %v7591_v43 }
0x102d   : > { %v4250_v58 = vmul.f32 %v7377_v23, %v7377_v23  ;;  %v4231_v18 = vsel %vm575_vm0, %v7385_v9, 0.0 }
0x102f   : > { %v4258_v57 = vsel %vm575_vm0, %v4250_v58, 0.0 }
0x1030   : > { %v4215_v5 = vpop.xlane.xlu0 %4214  ;;  %4259 = vadd.xlane.f32.xlu2 %v4258_v57 }
0x1031   : > { %v4235_v60 = vmul.f32 %v4215_v5, %v6547_v35 }
0x1033   : > { %v7388_v12 = vsub.f32 %v7335_v42, %v4235_v60 }
0x1035   : > { %v4251_v7 = vmul.f32 %v7388_v12, %v7388_v12 }
0x1037   : > { %v4261_v61 = vsel %vm575_vm0, %v4251_v7, 0.0 }
0x1038   : > { %v4218_v2 = vpop.xlane.xlu1 %4217  ;;  %4262 = vadd.xlane.f32.xlu0 %v4261_v61  ;;  %4232 = vadd.xlane.f32.xlu2 %v4231_v18 }
0x1039   : > { %v4236_v45 = vmul.f32 %v4218_v2, %v6547_v35 }
0x103b   : > { %v7397_v54 = vsub.f32 %v7342_v28, %v4236_v45 }
0x103d   : > { %v4252_v29 = vmul.f32 %v7397_v54, %v7397_v54 }
0x103f   : > { %v4264_v62 = vsel %vm575_vm0, %v4252_v29, 0.0 }
0x1040   : > { %v4221_v16 = vpop.xlane.xlu2 %4220  ;;  %4265 = vadd.xlane.f32.xlu0 %v4264_v62 }
0x1041   : > { %v4237_v3 = vmul.f32 %v4221_v16, %v6547_v35 }
0x1043   : > { %v7404_v31 = vsub.f32 %v7348_v48, %v4237_v3 }
0x1045   : > { %v4253_v1 = vmul.f32 %v7404_v31, %v7404_v31 }
0x1047   : > { %v4267_v36 = vsel %vm575_vm0, %v4253_v1, 0.0 }
0x1048   : > { %4268 = vadd.xlane.f32.xlu1 %v4267_v36 }
0x1062   : > { %v4224_v50 = vpop.xlane.xlu0 %4223 }
0x1063   : > { %v4238_v33 = vmul.f32 %v4224_v50, %v6547_v35 }
0x1065   : > { %v7411_v47 = vsub.f32 %v7356_v27, %v4238_v33 }
0x1067   : > { %v4254_v38 = vmul.f32 %v7411_v47, %v7411_v47 }
0x1069   : > { %v4270_v13 = vsel %vm575_vm0, %v4254_v38, 0.0 }
0x106a   : > { %v4227_v15 = vpop.xlane.xlu1 %4226  ;;  %4271 = vadd.xlane.f32.xlu2 %v4270_v13 }
0x106b   : > { %v4239_v44 = vmul.f32 %v4227_v15, %v6547_v35 }
0x106d   : > { %v7418_v17 = vsub.f32 %v7362_v8, %v4239_v44 }
0x106f   : > { %v4255_v55 = vmul.f32 %v7418_v17, %v7418_v17 }
0x1071   : > { %v4273_v26 = vsel %vm575_vm0, %v4255_v55, 0.0 }
0x1072   : > { %4274 = vadd.xlane.f32.xlu0 %v4273_v26 }
0x1099   : > { %v4230_v32 = vpop.xlane.xlu1 %4229 }
0x109a   : > { %v4240_v56 = vmul.f32 %v4230_v32, %v6547_v35 }
0x109c   : > { %v7425_v25 = vsub.f32 %v7369_v34, %v4240_v56 }
0x109e   : > { %v4256_v19 = vmul.f32 %v7425_v25, %v7425_v25 }
0x10a0   : > { %v4276_v39 = vsel %vm575_vm0, %v4256_v19, 0.0 }
0x10a1   : > { %4277 = vadd.xlane.f32.xlu1 %v4276_v39 }
0x10a3   : > { %v4260_v49 = vpop.xlane.xlu2 %4259 }
0x10a4   : > { %v4282_v63 = vmul.f32 %v4260_v49, %v6547_v35 }
0x10a6   : > { %v4290_v40 = vadd.f32 1e-05, %v4282_v63 }
0x10a8   : > { %5468 = vrsqrt.f32 %v4290_v40  ;;  %vm4304_vm2 = vweird.f32 %v4290_v40 }
0x10ab   : > { %v4263_v30 = vpop.xlane.xlu0 %4262  ;;  %v4233_v11 = vpop.xlane.xlu2 %4232 }
0x10ac   : > { %v4283_v22 = vmul.f32 %v4263_v30, %v6547_v35  ;;  %v4241_v46 = vmul.f32 %v4233_v11, %v6547_v35 }
0x10ae   : > { %v5469_v21 = vpop.eup %5468  ;;  %v4291_v4 = vadd.f32 1e-05, %v4283_v22  ;;  %v7440_v41 = vsub.f32 %v7385_v9, %v4241_v46 }
0x10af   : > { %v4299_v10 = vmul.f32 %v5469_v21, %v4290_v40  ;;  %vm4305_vm1 = vweird.f32 %v5469_v21 }
0x10b0   : > { %5470 = vrsqrt.f32 %v4291_v4  ;;  %v4257_v24 = vmul.f32 %v7440_v41, %v7440_v41  ;;  %vm4306_vm5 = vmor %vm4304_vm2, %vm4305_vm1  ;;  %vm4314_vm6 = vweird.f32 %v4291_v4 }
0x10b1   : > { %v4300_v53 = vmul.f32 %v5469_v21, %v4299_v10 }
0x10b2   : > { %v4279_v51 = vsel %vm575_vm0, %v4257_v24, 0.0 }
0x10b3   : > { %v4301_v0 = vmul.f32 0.5, %v4300_v53  ;;  %v4266_v59 = vpop.xlane.xlu0 %4265  ;;  %4280 = vadd.xlane.f32.xlu2 %v4279_v51 }
0x10b4   : > { %v4284_v6 = vmul.f32 %v4266_v59, %v6547_v35 }
0x10b5   : > { %v4302_v57 = vsub.f32 1.5, %v4301_v0 }
0x10b6   : > { %v5471_v58 = vpop.eup %5470  ;;  %v4292_v14 = vadd.f32 1e-05, %v4284_v6 }
0x10b7   : > { %v4309_v5 = vmul.f32 %v5471_v58, %v4291_v4  ;;  %v4303_v43 = vmul.f32 %v5469_v21, %v4302_v57  ;;  %vm4315_vm3 = vweird.f32 %v5471_v58 }
0x10b8   : > { %5472 = vrsqrt.f32 %v4292_v14  ;;  %vm4316_vm7 = vmor %vm4314_vm6, %vm4315_vm3  ;;  %vm4324_vm9 = vweird.f32 %v4292_v14 }
0x10b9   : > { %v4310_v60 = vmul.f32 %v5471_v58, %v4309_v5  ;;  %v4307_v62 = vsel %vm4306_vm5, %v5469_v21, %v4303_v43 }
0x10ba   : > { %v4378_v50 = vmul.f32 %v4307_v62, %v7377_v23 }
0x10bb   : > { %v4311_v7 = vmul.f32 0.5, %v4310_v60  ;;  %v4269_v61 = vpop.xlane.xlu1 %4268 }
0x10bc   : > { %v4285_v18 = vmul.f32 %v4269_v61, %v6547_v35 }
0x10bd   : > { %v4312_v2 = vsub.f32 1.5, %v4311_v7 }
0x10be   : > { %v5473_v45 = vpop.eup %5472  ;;  %v4293_v29 = vadd.f32 1e-05, %v4285_v18 }
0x10bf   : > { %v4313_v16 = vmul.f32 %v5471_v58, %v4312_v2  ;;  %v4319_v3 = vmul.f32 %v5473_v45, %v4292_v14  ;;  %vm4325_vm8 = vweird.f32 %v5473_v45 }
0x10c0   : > { %5474 = vrsqrt.f32 %v4293_v29  ;;  %vm4326_vm11 = vmor %vm4324_vm9, %vm4325_vm8  ;;  %vm4334_vm12 = vweird.f32 %v4293_v29 }
0x10c1   : > { %v4317_v1 = vsel %vm4316_vm7, %v5471_v58, %v4313_v16  ;;  %v4320_v36 = vmul.f32 %v5473_v45, %v4319_v3 }
0x10c2   : > { %v4379_v33 = vmul.f32 %v4317_v1, %v7388_v12 }
0x10c3   : > { %v4321_v38 = vmul.f32 0.5, %v4320_v36  ;;  %v5110_v36 = vld [vmem:[%s7551_s13 + $0x70] sm:$0xff] }
0x10c4   : > { %v4386_v13 = vpack.c.bf16 %v4379_v33, %v4378_v50 }
0x10c5   : > { %v4322_v44 = vsub.f32 1.5, %v4321_v38 }
0x10c6   : > { %v5475_v15 = vpop.eup %5474  ;;  %5027 = vmatmul.msk.bf16.vlgmr.msrb.gmra.mxu3 %vm575_vm0, %v4386_v13 }
0x10c7   : > { %v4329_v55 = vmul.f32 %v5475_v15, %v4293_v29  ;;  %v4323_v32 = vmul.f32 %v5473_v45, %v4322_v44  ;;  %vm4335_vm10 = vweird.f32 %v5475_v15 }
0x10c8   : > { %vm4336_vm13 = vmor %vm4334_vm12, %vm4335_vm10 }
0x10c9   : > { %v4330_v26 = vmul.f32 %v5475_v15, %v4329_v55  ;;  %v4327_v52 = vsel %vm4326_vm11, %v5473_v45, %v4323_v32  ;;  %v5108_v55 = vld [vmem:[%s7551_s13 + $0x60] sm:$0xff] }
0x10ca   : > { %v4380_v12 = vmul.f32 %v4327_v52, %v7397_v54 }
0x10cb   : > { %v4331_v56 = vmul.f32 0.5, %v4330_v26 }
0x10cd   : > { %v4332_v19 = vsub.f32 1.5, %v4331_v56 }
0x10cf   : > { %v4333_v39 = vmul.f32 %v5475_v15, %v4332_v19 }
0x10d1   : > { %v4337_v23 = vsel %vm4336_vm13, %v5475_v15, %v4333_v39  ;;  %v5107_v39 = vld [vmem:[%s7551_s13 + $0x58] sm:$0xff] }
0x10d2   : > { %v4381_v20 = vmul.f32 %v4337_v23, %v7404_v31 }
0x10d4   : > { %v4387_v49 = vpack.c.bf16 %v4381_v20, %v4380_v12  ;;  %v5106_v12 = vld [vmem:[%s7551_s13 + $0x50] sm:$0xff]  ;;  %v5105_v20 = vld [vmem:[%s7551_s13 + $0x48] sm:$0xff] }
0x10d6   : > { %5028 = vmatmul.msk.bf16.gmra.mxu3 %vm575_vm0, %v4387_v49  ;;  %v5104_v49 = vld [vmem:[%s7551_s13 + $0x40] sm:$0xff] }
0x10dd   : > { %v4272_v63 = vpop.xlane.xlu2 %4271 }
0x10de   : > { %v4286_v40 = vmul.f32 %v4272_v63, %v6547_v35 }
0x10e0   : > { %v4294_v30 = vadd.f32 1e-05, %v4286_v40 }
0x10e2   : > { %5476 = vrsqrt.f32 %v4294_v30  ;;  %vm4344_vm15 = vweird.f32 %v4294_v30 }
0x10e5   : > { %v4275_v11 = vpop.xlane.xlu0 %4274 }
0x10e6   : > { %v4287_v22 = vmul.f32 %v4275_v11, %v6547_v35 }
0x10e8   : > { %v5477_v46 = vpop.eup %5476  ;;  %v4295_v21 = vadd.f32 1e-05, %v4287_v22 }
0x10e9   : > { %v4339_v4 = vmul.f32 %v5477_v46, %v4294_v30  ;;  %vm4345_vm14 = vweird.f32 %v5477_v46 }
0x10ea   : > { %5478 = vrsqrt.f32 %v4295_v21  ;;  %vm4346_vm1 = vmor %vm4344_vm15, %vm4345_vm14  ;;  %vm4354_vm2 = vweird.f32 %v4295_v21 }
0x10eb   : > { %v4340_v10 = vmul.f32 %v5477_v46, %v4339_v4 }
0x10ed   : > { %v4341_v24 = vmul.f32 0.5, %v4340_v10 }
0x10ef   : > { %v4342_v53 = vsub.f32 1.5, %v4341_v24 }
0x10f0   : > { %v5479_v54 = vpop.eup %5478 }
0x10f1   : > { %v4349_v31 = vmul.f32 %v5479_v54, %v4295_v21  ;;  %v4343_v0 = vmul.f32 %v5477_v46, %v4342_v53  ;;  %vm4355_vm4 = vweird.f32 %v5479_v54 }
0x10f2   : > { %vm4356_vm3 = vmor %vm4354_vm2, %vm4355_vm4 }
0x10f3   : > { %v4350_v51 = vmul.f32 %v5479_v54, %v4349_v31  ;;  %v4347_v58 = vsel %vm4346_vm1, %v5477_v46, %v4343_v0 }
0x10f4   : > { %v4382_v5 = vmul.f32 %v4347_v58, %v7411_v47  ;;  %v5111_v47 = vld [vmem:[%s7551_s13 + $0x78] sm:$0xff] }
0x10f5   : > { %v4351_v59 = vmul.f32 0.5, %v4350_v51  ;;  %4599 = vmatpush.bf16.msrb.mxu2 %v5111_v47 }
0x10f7   : > { %v4352_v6 = vsub.f32 1.5, %v4351_v59 }
0x10f9   : > { %v4353_v14 = vmul.f32 %v5479_v54, %v4352_v6  ;;  %4600 = vmatpush.bf16.msrb.mxu2 %v5110_v36 }
0x10fb   : > { %v4357_v57 = vsel %vm4356_vm3, %v5479_v54, %v4353_v14 }
0x10fc   : > { %v4383_v60 = vmul.f32 %v4357_v57, %v7418_v17 }
0x10fe   : > { %v4388_v43 = vpack.c.bf16 %v4383_v60, %v4382_v5 }
0x1100   : > { %5029 = vmatmul.msk.bf16.gmra.mxu3 %vm575_vm0, %v4388_v43 }
0x1114   : > { %v4278_v7 = vpop.xlane.xlu1 %4277 }
0x1115   : > { %v4288_v61 = vmul.f32 %v4278_v7, %v6547_v35 }
0x1117   : > { %v4296_v18 = vadd.f32 1e-05, %v4288_v61 }
0x1119   : > { %5480 = vrsqrt.f32 %v4296_v18  ;;  %vm4364_vm6 = vweird.f32 %v4296_v18 }
0x111f   : > { %v5481_v2 = vpop.eup %5480 }
0x1120   : > { %v4359_v45 = vmul.f32 %v5481_v2, %v4296_v18  ;;  %vm4365_vm5 = vweird.f32 %v5481_v2 }
0x1121   : > { %vm4366_vm8 = vmor %vm4364_vm6, %vm4365_vm5 }
0x1122   : > { %v4360_v3 = vmul.f32 %v5481_v2, %v4359_v45 }
0x1124   : > { %v4361_v17 = vmul.f32 0.5, %v4360_v3 }
0x1126   : > { %v4281_v29 = vpop.xlane.xlu2 %4280  ;;  %v4362_v50 = vsub.f32 1.5, %v4361_v17 }
0x1127   : > { %v4289_v62 = vmul.f32 %v4281_v29, %v6547_v35  ;;  %v5109_v35 = vld [vmem:[%s7551_s13 + $0x68] sm:$0xff] }
0x1128   : > { %v4363_v13 = vmul.f32 %v5481_v2, %v4362_v50  ;;  %4601 = vmatpush.bf16.msrb.mxu2 %v5109_v35 }
0x1129   : > { %v4297_v16 = vadd.f32 1e-05, %v4289_v62 }
0x112a   : > { %v4367_v26 = vsel %vm4366_vm8, %v5481_v2, %v4363_v13 }
0x112b   : > { %5482 = vrsqrt.f32 %v4297_v16  ;;  %vm4374_vm9 = vweird.f32 %v4297_v16  ;;  %v4384_v19 = vmul.f32 %v4367_v26, %v7425_v25  ;;  %v7487_v25 = vld [vmem:[%s7550_s12 + $0x1] ss:$0 sm:$0xff] }
0x112c   : > { %4602 = vmatpush.bf16.msrb.mxu2 %v5108_v55 }
0x1130   : > { %4603 = vmatpush.bf16.msrb.mxu2 %v5107_v39 }
0x1131   : > { %v5483_v1 = vpop.eup %5482 }
0x1132   : > { %v4369_v33 = vmul.f32 %v5483_v1, %v4297_v16  ;;  %vm4375_vm7 = vweird.f32 %v5483_v1 }
0x1133   : > { %vm4376_vm10 = vmor %vm4374_vm9, %vm4375_vm7 }
0x1134   : > { %v4370_v38 = vmul.f32 %v5483_v1, %v4369_v33  ;;  %4604 = vmatpush.bf16.msrb.mxu2 %v5106_v12 }
0x1136   : > { %v4371_v15 = vmul.f32 0.5, %v4370_v38 }
0x1138   : > { %v4372_v44 = vsub.f32 1.5, %v4371_v15  ;;  %4605 = vmatpush.bf16.msrb.mxu2 %v5105_v20 }
0x113a   : > { %v4373_v32 = vmul.f32 %v5483_v1, %v4372_v44 }
0x113c   : > { %v4377_v56 = vsel %vm4376_vm10, %v5483_v1, %v4373_v32  ;;  %4606 = vmatpush.bf16.msrb.mxu2 %v5104_v49 }
0x113d   : > { %v4385_v52 = vmul.f32 %v4377_v56, %v7440_v41 }
0x113f   : > { %v4389_v23 = vpack.c.bf16 %v4385_v52, %v4384_v19 }
0x1141   : > { %5030 = vmatmul.msk.bf16.gmra.mxu3 %vm575_vm0, %v4389_v23  ;;  %vm4676_vm0 = vcmask 523520  }
0x1149   : > { %v4433_v41 = vpop.f32.mrf.mxu3 }
0x114a   : > { %v4434_v63 = vadd.f32 %v7487_v25, %v4433_v41 }
0x114c   : > { %v4453_v40 = vmul.f32 %v4434_v63, %v4434_v63 }
0x114e   : > { %v4461_v30 = vmul.f32 %v4453_v40, %v4434_v63 }
0x1150   : > { %v4469_v11 = vmul.f32 0.044715, %v4461_v30 }
0x1151   : > { %v4435_v22 = vpop.f32.mrf.mxu3 }
0x1152   : > { %v4477_v46 = vadd.f32 %v4469_v11, %v4434_v63  ;;  %v4436_v21 = vadd.f32 %v7487_v25, %v4435_v22 }
0x1154   : > { %v4485_v4 = vmul.f32 0.7978846, %v4477_v46  ;;  %v4454_v10 = vmul.f32 %v4436_v21, %v4436_v21 }
0x1156   : > { %v4462_v24 = vmul.f32 %v4454_v10, %v4436_v21  ;;  %5484 = vtanh.f32 %v4485_v4 }
0x1158   : > { %v4470_v54 = vmul.f32 0.044715, %v4462_v24 }
0x1159   : > { %v4438_v53 = vpop.f32.mrf.mxu3 }
0x115a   : > { %v4478_v31 = vadd.f32 %v4470_v54, %v4436_v21  ;;  %v4439_v51 = vadd.f32 %v7487_v25, %v4438_v53 }
0x115c   : > { %v4486_v0 = vmul.f32 0.7978846, %v4478_v31  ;;  %v4455_v59 = vmul.f32 %v4439_v51, %v4439_v51  ;;  %v5485_v6 = vpop.eup %5484 }
0x115d   : > { %v4501_v57 = vadd.f32 1.0, %v5485_v6 }
0x115e   : > { %5486 = vtanh.f32 %v4486_v0  ;;  %v4463_v58 = vmul.f32 %v4455_v59, %v4439_v51 }
0x115f   : > { %v4509_v2 = vmul.f32 0.5, %v4501_v57 }
0x1160   : > { %v4471_v14 = vmul.f32 0.044715, %v4463_v58 }
0x1161   : > { %v4440_v5 = vpop.f32.mrf.mxu3  ;;  %v4517_v3 = vmul.f32 %v4509_v2, %v4434_v63 }
0x1162   : > { %v4479_v60 = vadd.f32 %v4471_v14, %v4439_v51  ;;  %v4441_v43 = vadd.f32 %v7487_v25, %v4440_v5 }
0x1164   : > { %v5487_v7 = vpop.eup %5486  ;;  %v4487_v61 = vmul.f32 0.7978846, %v4479_v60  ;;  %v4456_v18 = vmul.f32 %v4441_v43, %v4441_v43 }
0x1165   : > { %v4502_v45 = vadd.f32 1.0, %v5487_v7 }
0x1166   : > { %v4464_v29 = vmul.f32 %v4456_v18, %v4441_v43  ;;  %5488 = vtanh.f32 %v4487_v61 }
0x1167   : > { %v4510_v62 = vmul.f32 0.5, %v4502_v45 }
0x1168   : > { %v4472_v16 = vmul.f32 0.044715, %v4464_v29 }
0x1169   : > { %v4518_v47 = vmul.f32 %v4510_v62, %v4436_v21 }
0x116a   : > { %v4480_v17 = vadd.f32 %v4472_v16, %v4441_v43 }
0x116b   : > { %v4525_v1 = vpack.c.bf16 %v4518_v47, %v4517_v3 }
0x116c   : > { %v4488_v36 = vmul.f32 0.7978846, %v4480_v17  ;;  %v5489_v50 = vpop.eup %5488 }
0x116d   : > { %4607 = vmatmul.bf16.vlgmr.msrb.gmra.mxu2 %v4525_v1  ;;  %v4503_v33 = vadd.f32 1.0, %v5489_v50 }
0x116e   : > { %5490 = vtanh.f32 %v4488_v36 }
0x116f   : > { %v4511_v13 = vmul.f32 0.5, %v4503_v33 }
0x1171   : > { %v4519_v44 = vmul.f32 %v4511_v13, %v4439_v51 }
0x1174   : > { %v5491_v38 = vpop.eup %5490 }
0x1175   : > { %v4504_v35 = vadd.f32 1.0, %v5491_v38 }
0x1177   : > { %v4512_v15 = vmul.f32 0.5, %v4504_v35 }
0x1179   : > { %v4520_v55 = vmul.f32 %v4512_v15, %v4441_v43 }
0x117b   : > { %v4526_v26 = vpack.c.bf16 %v4520_v55, %v4519_v44 }
0x117d   : > { %4612 = vmatmul.bf16.gmra.mxu2 %v4526_v26 }
0x1183   : > { %v4443_v32 = vpop.f32.mrf.mxu3 }
0x1184   : > { %v4444_v56 = vadd.f32 %v7487_v25, %v4443_v32 }
0x1186   : > { %v4457_v19 = vmul.f32 %v4444_v56, %v4444_v56 }
0x1188   : > { %v4465_v52 = vmul.f32 %v4457_v19, %v4444_v56 }
0x118a   : > { %v4473_v39 = vmul.f32 0.044715, %v4465_v52 }
0x118b   : > { %v4445_v23 = vpop.f32.mrf.mxu3 }
0x118c   : > { %v4481_v12 = vadd.f32 %v4473_v39, %v4444_v56  ;;  %v4446_v20 = vadd.f32 %v7487_v25, %v4445_v23 }
0x118e   : > { %v4489_v41 = vmul.f32 0.7978846, %v4481_v12  ;;  %v4458_v49 = vmul.f32 %v4446_v20, %v4446_v20 }
0x1190   : > { %v4466_v63 = vmul.f32 %v4458_v49, %v4446_v20  ;;  %5492 = vtanh.f32 %v4489_v41 }
0x1192   : > { %v4474_v40 = vmul.f32 0.044715, %v4466_v63 }
0x1194   : > { %v4482_v30 = vadd.f32 %v4474_v40, %v4446_v20 }
0x1196   : > { %v4490_v11 = vmul.f32 0.7978846, %v4482_v30  ;;  %v5493_v22 = vpop.eup %5492 }
0x1197   : > { %v4505_v46 = vadd.f32 1.0, %v5493_v22 }
0x1198   : > { %5494 = vtanh.f32 %v4490_v11 }
0x1199   : > { %v4513_v10 = vmul.f32 0.5, %v4505_v46 }
0x119b   : > { %v4521_v54 = vmul.f32 %v4513_v10, %v4444_v56 }
0x119e   : > { %v5495_v21 = vpop.eup %5494 }
0x119f   : > { %v4506_v4 = vadd.f32 1.0, %v5495_v21 }
0x11a1   : > { %v4514_v24 = vmul.f32 0.5, %v4506_v4 }
0x11a3   : > { %v4522_v53 = vmul.f32 %v4514_v24, %v4446_v20 }
0x11a5   : > { %v4527_v31 = vpack.c.bf16 %v4522_v53, %v4521_v54 }
0x11a7   : > { %4617 = vmatmul.bf16.gmra.mxu2 %v4527_v31 }
0x11c4   : > { %v4448_v51 = vpop.f32.mrf.mxu3 }
0x11c5   : > { %v4449_v0 = vadd.f32 %v7487_v25, %v4448_v51 }
0x11c7   : > { %v4459_v59 = vmul.f32 %v4449_v0, %v4449_v0 }
0x11c9   : > { %v4467_v6 = vmul.f32 %v4459_v59, %v4449_v0 }
0x11cb   : > { %v4475_v58 = vmul.f32 0.044715, %v4467_v6 }
0x11cc   : > { %v4450_v14 = vpop.f32.mrf.mxu3 }
0x11cd   : > { %v4483_v57 = vadd.f32 %v4475_v58, %v4449_v0  ;;  %v4451_v5 = vadd.f32 %v7487_v25, %v4450_v14  ;;  %v5145_v25 = vld [vmem:[%s7552_s14 + $0x1] ss:$0 sm:$0xff] }
0x11cf   : > { %v4491_v60 = vmul.f32 0.7978846, %v4483_v57  ;;  %v4460_v43 = vmul.f32 %v4451_v5, %v4451_v5 }
0x11d1   : > { %v4468_v7 = vmul.f32 %v4460_v43, %v4451_v5  ;;  %5496 = vtanh.f32 %v4491_v60 }
0x11d3   : > { %v4476_v61 = vmul.f32 0.044715, %v4468_v7 }
0x11d5   : > { %v4484_v18 = vadd.f32 %v4476_v61, %v4451_v5 }
0x11d7   : > { %v4492_v2 = vmul.f32 0.7978846, %v4484_v18  ;;  %v5497_v45 = vpop.eup %5496 }
0x11d8   : > { %v4507_v29 = vadd.f32 1.0, %v5497_v45 }
0x11d9   : > { %5498 = vtanh.f32 %v4492_v2 }
0x11da   : > { %v4515_v3 = vmul.f32 0.5, %v4507_v29 }
0x11dc   : > { %v4523_v17 = vmul.f32 %v4515_v3, %v4449_v0 }
0x11df   : > { %v5499_v62 = vpop.eup %5498 }
0x11e0   : > { %v4508_v16 = vadd.f32 1.0, %v5499_v62 }
0x11e2   : > { %v4516_v47 = vmul.f32 0.5, %v4508_v16 }
0x11e4   : > { %v4524_v1 = vmul.f32 %v4516_v47, %v4451_v5 }
0x11e6   : > { %v4528_v36 = vpack.c.bf16 %v4524_v1, %v4523_v17 }
0x11e8   : > { %4622 = vmatmul.bf16.gmra.mxu2 %v4528_v36 }
0x11f0   : > { %v4608_v50 = vpop.f32.mrf.mxu2 }
0x11f1   : > { %v4609_v33 = vadd.f32 %v5145_v25, %v4608_v50 }
0x11f3   : > { %v4628_v38 = vadd.f32 %v4609_v33, %v7328_v37 }
0x11f5   : > { %4652 = vrot.lane.b32.xlu0 %v4628_v38, %s5524_s30 }
0x11f8   : > { %v4610_v35 = vpop.f32.mrf.mxu2 }
0x11f9   : > { %v4611_v13 = vadd.f32 %v5145_v25, %v4610_v35 }
0x11fb   : > { %v4629_v15 = vadd.f32 %v4611_v13, %v7335_v42 }
0x11fd   : > { %4654 = vrot.lane.b32.xlu1 %v4629_v15, %s5524_s30 }
0x1200   : > { %v4613_v44 = vpop.f32.mrf.mxu2 }
0x1201   : > { %v4614_v55 = vadd.f32 %v5145_v25, %v4613_v44 }
0x1203   : > { %v4630_v26 = vadd.f32 %v4614_v55, %v7342_v28 }
0x1205   : > { %4656 = vrot.lane.b32.xlu2 %v4630_v26, %s5524_s30 }
0x1208   : > { %v4615_v32 = vpop.f32.mrf.mxu2 }
0x1209   : > { %v4616_v56 = vadd.f32 %v5145_v25, %v4615_v32 }
0x120b   : > { %v4631_v37 = vadd.f32 %v4616_v56, %v7348_v48 }
0x120d   : > { %4658 = vrot.lane.b32.xlu0 %v4631_v37, %s5524_s30 }
0x122a   : > { %v4618_v19 = vpop.f32.mrf.mxu2 }
0x122b   : > { %v4619_v52 = vadd.f32 %v5145_v25, %v4618_v19 }
0x122d   : > { %v4632_v42 = vadd.f32 %v4619_v52, %v7356_v27 }
0x122f   : > { %4660 = vrot.lane.b32.xlu1 %v4632_v42, %s5524_s30 }
0x1232   : > { %v4620_v39 = vpop.f32.mrf.mxu2 }
0x1233   : > { %v4621_v23 = vadd.f32 %v5145_v25, %v4620_v39 }
0x1235   : > { %v4633_v28 = vadd.f32 %v4621_v23, %v7362_v8 }
0x1237   : > { %4662 = vrot.lane.b32.xlu0 %v4633_v28, %s5524_s30 }
0x125f   : > { %v4657_v12 = vpop.permute.xlu2 %4656 }
0x1260   : > { %4679 = vst.msk [vmem:[%s6780_s22 + $0x10] sm:$0xff] %vm4676_vm0, %v4657_v12 }
0x1267   : > { %v4653_v48 = vpop.permute.xlu0 %4652 }
0x1268   : > { %4677 = vst.msk [vmem:[%s6780_s22] sm:$0xff] %vm4676_vm0, %v4653_v48 }
0x126b   : > { %v4623_v20 = vpop.f32.mrf.mxu2 }
0x126c   : > { %v4624_v27 = vadd.f32 %v5145_v25, %v4623_v20 }
0x126e   : > { %v4634_v41 = vadd.f32 %v4624_v27, %v7369_v34 }
0x126f   : > { %v4655_v49 = vpop.permute.xlu1 %4654 }
0x1270   : > { %4678 = vst.msk [vmem:[%s6780_s22 + $0x8] sm:$0xff] %vm4676_vm0, %v4655_v49  ;;  %4664 = vrot.lane.b32.xlu2 %v4634_v41, %s5524_s30 }
0x1273   : > { %v4625_v8 = vpop.f32.mrf.mxu2 }
0x1274   : > { %v4626_v63 = vadd.f32 %v5145_v25, %v4625_v8 }
0x1276   : > { %v4635_v40 = vadd.f32 %v4626_v63, %v7385_v9 }
0x1278   : > { %4666 = vrot.lane.b32.xlu1 %v4635_v40, %s5524_s30 }
0x127f   : > { %v4659_v30 = vpop.permute.xlu0 %4658 }
0x1280   : > { %4680 = vst.msk [vmem:[%s6780_s22 + $0x18] sm:$0xff] %vm4676_vm0, %v4659_v30 }
0x12a1   : > { %v4661_v11 = vpop.permute.xlu1 %4660 }
0x12a2   : > { %4681 = vst.msk [vmem:[%s6780_s22 + $0x20] sm:$0xff] %vm4676_vm0, %v4661_v11 }
0x12a9   : > { %v4663_v22 = vpop.permute.xlu0 %4662 }
0x12aa   : > { %4682 = vst.msk [vmem:[%s6780_s22 + $0x28] sm:$0xff] %vm4676_vm0, %v4663_v22 }
0x12ca   : > { %v4665_v34 = vpop.permute.xlu2 %4664 }
0x12cb   : > { %4683 = vst.msk [vmem:[%s6780_s22 + $0x30] sm:$0xff] %vm4676_vm0, %v4665_v34 }
0x12ea   : > { %v4667_v46 = vpop.permute.xlu1 %4666 }
0x12eb   : > { %4684 = vst.msk [vmem:[%s6780_s22 + $0x38] sm:$0xff] %vm4676_vm0, %v4667_v46 }
0x12ec PF: > { %s25_s18 = sadd.s32 1, %s5514_s18  }
0x12ed   : > { %p22_p5 = scmp.ge.s32.totalorder %s25_s18, 4  }
0x12ef   :  { %24 = sbr.rel (!%p22_p5) target bundleno = 1 (0x1), region = 131 }

</bundles_post_ra>
